<compile_context>
chip_gen: v7x
topology: tpu7x:2x2x1
jax: 0.10.0
libtpu: 0.0.40
codegen_flags: <defaults>
</compile_context>

<pallas_src>
import functools

import numpy as np
import jax
import jax.numpy as jnp
from jax.experimental import pallas as pl
from jax.experimental.pallas import tpu as pltpu

# ----------------------------------------------------------------------------
# Small-model configuration (proportional to SAM's vit_h mask decoder)
# ----------------------------------------------------------------------------
C = 32                 # transformer_dim      (orig 256)
VIT_DIM = 64           # vit_dim              (orig 1280)
EMB_HW = 8             # image-embedding H=W  (orig 64)
IMG_SIZE = 128         # input image size     (orig 1024)  -> scale 16, as orig
MID_DIM = 4 * C        # mid_dim              (orig 1024)
HEAD = 8               # aggregation heads
NUM_MULTIMASK = 3
NUM_MASK_TOKENS = NUM_MULTIMASK + 1
NUM_HQ_TOKENS = 1
TOTAL_MASK_TOKENS = NUM_MASK_TOKENS + NUM_HQ_TOKENS
IOU_HIDDEN = 64        # iou_head_hidden_dim  (orig 256)

MATMUL_DTYPE = jnp.bfloat16    # MXU operand dtype (f32 accumulation everywhere)


# ----------------------------------------------------------------------------
# Pallas kernels
# ----------------------------------------------------------------------------
def _apply_act(x, act):
    if act == 'relu':
        return jnp.maximum(x, 0.0)
    if act == 'leaky_relu':
        return jnp.where(x >= 0, x, 0.01 * x)
    if act == 'sigmoid':
        return jax.nn.sigmoid(x)
    return x


def _mm_fused_kernel(act, has_res, has_ln, eps, *refs):
    """o = act( LN( A @ W + bias [+ residual] ) )   (LN / residual optional)."""
    a_ref, w_ref, b_ref = refs[:3]
    i = 3
    res_ref = g_ref = be_ref = None
    if has_res:
        res_ref = refs[i]; i += 1
    if has_ln:
        g_ref, be_ref = refs[i], refs[i + 1]; i += 2
    o_ref = refs[i]

    x = jnp.dot(a_ref[...], w_ref[...], preferred_element_type=jnp.float32)
    x = x + b_ref[...]
    if has_res:
        x = x + res_ref[...]
    if has_ln:
        mu = jnp.mean(x, axis=-1, keepdims=True)
        var = jnp.mean(jnp.square(x - mu), axis=-1, keepdims=True)
        x = (x - mu) * jax.lax.rsqrt(var + eps) * g_ref[...] + be_ref[...]
    o_ref[...] = _apply_act(x, act)


def fused_matmul(a, w, bias, *, act=None, residual=None, ln=None, ln_eps=1e-6):
    """(M,K) @ (K,N) + bias with fused residual / LayerNorm / activation.

    M is tiled over a parallel grid when large; otherwise the full arrays are
    single blocks (always legal, no host padding needed)."""
    M, K = a.shape
    K2, N = w.shape
    assert K == K2
    a = a.astype(w.dtype)                      # bf16 operands, f32 accumulate
    bias2 = jnp.asarray(bias, jnp.float32).reshape(1, N)

    has_res = residual is not None
    has_ln = ln is not None
    ops = [a, w, bias2]
    if has_res:
        ops.append(residual.astype(jnp.float32))
    if has_ln:
        g, be = ln
        ops.append(jnp.asarray(g, jnp.float32).reshape(1, N))
        ops.append(jnp.asarray(be, jnp.float32).reshape(1, N))

    if M >= 512 and M % 256 == 0:
        tile = 256
        grid = (M // tile,)
        a_spec = pl.BlockSpec((tile, K), lambda i: (i, 0))
        mn_spec = pl.BlockSpec((tile, N), lambda i: (i, 0))
        sem = ("parallel",)
    else:
        grid = (1,)
        a_spec = pl.BlockSpec((M, K), lambda i: (0, 0))
        mn_spec = pl.BlockSpec((M, N), lambda i: (0, 0))
        sem = ("arbitrary",)

    w_spec = pl.BlockSpec((K, N), lambda i: (0, 0))
    vec_spec = pl.BlockSpec((1, N), lambda i: (0, 0))
    in_specs = [a_spec, w_spec, vec_spec]
    if has_res:
        in_specs.append(mn_spec)
    if has_ln:
        in_specs += [vec_spec, vec_spec]

    bytes_accessed = int(a.size * a.dtype.itemsize + w.size * w.dtype.itemsize
                         + 4 * M * N * (2 if has_res else 1))
    return pl.pallas_call(
        functools.partial(_mm_fused_kernel, act, has_res, has_ln, ln_eps),
        out_shape=jax.ShapeDtypeStruct((M, N), jnp.float32),
        grid=grid,
        in_specs=in_specs,
        out_specs=mn_spec,
        compiler_params=pltpu.CompilerParams(dimension_semantics=sem),
        cost_estimate=pl.CostEstimate(flops=int(2 * M * K * N),
                                      transcendentals=0,
                                      bytes_accessed=bytes_accessed),
    )(*ops)


def _ln_kernel(eps, x_ref, g_ref, b_ref, o_ref):
    x = x_ref[...]
    mu = jnp.mean(x, axis=-1, keepdims=True)
    var = jnp.mean(jnp.square(x - mu), axis=-1, keepdims=True)
    o_ref[...] = (x - mu) * jax.lax.rsqrt(var + eps) * g_ref[...] + b_ref[...]


def pallas_layernorm(x2d, gamma, beta, eps):
    """LayerNorm over the last dim of a (R, C) array, row-tiled when large."""
    R, Cc = x2d.shape
    x2d = x2d.astype(jnp.float32)
    g = jnp.asarray(gamma, jnp.float32).reshape(1, Cc)
    b = jnp.asarray(beta, jnp.float32).reshape(1, Cc)
    if R >= 512 and R % 256 == 0:
        tile = 256
        grid = (R // tile,)
        x_spec = pl.BlockSpec((tile, Cc), lambda i: (i, 0))
        sem = ("parallel",)
    else:
        grid = (1,)
        x_spec = pl.BlockSpec((R, Cc), lambda i: (0, 0))
        sem = ("arbitrary",)
    vec_spec = pl.BlockSpec((1, Cc), lambda i: (0, 0))
    return pl.pallas_call(
        functools.partial(_ln_kernel, eps),
        out_shape=jax.ShapeDtypeStruct((R, Cc), jnp.float32),
        grid=grid,
        in_specs=[x_spec, vec_spec, vec_spec],
        out_specs=x_spec,
        compiler_params=pltpu.CompilerParams(dimension_semantics=sem),
    )(x2d, g, b)


def _bmm_kernel(a_ref, b_ref, o_ref):
    o_ref[0] = jnp.dot(a_ref[0], b_ref[0], preferred_element_type=jnp.float32)


def pallas_bmm(a, b):
    """Batched matmul (G, M, K) x (G, K, N) -> (G, M, N) with grid=(G,)."""
    G, M, K = a.shape
    _, _, N = b.shape
    return pl.pallas_call(
        _bmm_kernel,
        out_shape=jax.ShapeDtypeStruct((G, M, N), jnp.float32),
        grid=(G,),
        in_specs=[pl.BlockSpec((1, M, K), lambda g: (g, 0, 0)),
                  pl.BlockSpec((1, K, N), lambda g: (g, 0, 0))],
        out_specs=pl.BlockSpec((1, M, N), lambda g: (g, 0, 0)),
        compiler_params=pltpu.CompilerParams(dimension_semantics=("parallel",)),
    )(a.astype(jnp.float32), b.astype(jnp.float32))


def _softmax_last(x):
    m = jnp.max(x, axis=-1, keepdims=True)
    e = jnp.exp(x - m)
    return e / jnp.sum(e, axis=-1, keepdims=True)


def _twoway_attn_kernel(scale, t_ref, s_ref, pos_ref,
                        wq_ref, bq_ref, wk_ref, bk_ref, wv_ref, bv_ref,
                        wq2_ref, bq2_ref, wk2_ref, bk2_ref, wv2_ref, bv2_ref,
                        t_out_ref, s_out_ref):
    f32 = jnp.float32
    t = t_ref[0]
    s = s_ref[0]
    kin = s + pos_ref[0]
    q = jnp.dot(t, wq_ref[...], preferred_element_type=f32) + bq_ref[...]
    k = jnp.dot(kin, wk_ref[...], preferred_element_type=f32) + bk_ref[...]
    v = jnp.dot(s, wv_ref[...], preferred_element_type=f32) + bv_ref[...]
    logits = jax.lax.dot_general(q, k, (((1,), (1,)), ((), ())),
                                 preferred_element_type=f32) * scale
    t_out = t + jnp.dot(_softmax_last(logits), v, preferred_element_type=f32)

    q2 = jnp.dot(kin, wq2_ref[...], preferred_element_type=f32) + bq2_ref[...]
    k2 = jnp.dot(t_out, wk2_ref[...], preferred_element_type=f32) + bk2_ref[...]
    v2 = jnp.dot(t_out, wv2_ref[...], preferred_element_type=f32) + bv2_ref[...]
    logits2 = jax.lax.dot_general(q2, k2, (((1,), (1,)), ((), ())),
                                  preferred_element_type=f32) * scale
    s_out_ref[0] = s + jnp.dot(_softmax_last(logits2), v2, preferred_element_type=f32)
    t_out_ref[0] = t_out


def _hyper_mlp_kernel(x_ref, w1_ref, b1_ref, w2_ref, b2_ref, w3_ref, b3_ref, o_ref):
    x = x_ref[0]
    h = jnp.maximum(jnp.dot(x, w1_ref[0], preferred_element_type=jnp.float32) + b1_ref[0], 0.0)
    h = jnp.maximum(jnp.dot(h, w2_ref[0], preferred_element_type=jnp.float32) + b2_ref[0], 0.0)
    o_ref[0] = jnp.dot(h, w3_ref[0], preferred_element_type=jnp.float32) + b3_ref[0]


def _mlp3_kernel(x_ref, w1_ref, b1_ref, w2_ref, b2_ref, w3_ref, b3_ref, o_ref):
    x = x_ref[...]
    h = jnp.maximum(jnp.dot(x, w1_ref[...], preferred_element_type=jnp.float32) + b1_ref[...], 0.0)
    h = jnp.maximum(jnp.dot(h, w2_ref[...], preferred_element_type=jnp.float32) + b2_ref[...], 0.0)
    o_ref[...] = jnp.dot(h, w3_ref[...], preferred_element_type=jnp.float32) + b3_ref[...]


def _mask_mm_kernel(n_sam, h_ref, us_ref, uh_ref, o_ref):
    hyper = h_ref[0]                                            # (5, C//8)
    m_sam = jnp.dot(hyper[:n_sam], us_ref[0], preferred_element_type=jnp.float32)
    m_hq = jnp.dot(hyper[n_sam:], uh_ref[0], preferred_element_type=jnp.float32)
    o_ref[0] = jnp.concatenate([m_sam, m_hq], axis=0)


# ----------------------------------------------------------------------------
# NN building blocks (glue in JAX, compute via the Pallas kernels above)
# ----------------------------------------------------------------------------
def im2col3x3(x_nhwc):
    """(B,H,W,Cin) -> (B*H*W, 9*Cin), K index = (di*3+dj)*Cin + cin."""
    B, H, W, Cin = x_nhwc.shape
    xp = jnp.pad(x_nhwc, ((0, 0), (1, 1), (1, 1), (0, 0)))
    cols = jnp.stack([xp[:, di:di + H, dj:dj + W, :]
                      for di in range(3) for dj in range(3)], axis=3)
    return cols.reshape(B * H * W, 9 * Cin)


def conv3x3_nhwc(x_nhwc, w_kn, b, **fuse):
    B, H, W, _ = x_nhwc.shape
    out = fused_matmul(im2col3x3(x_nhwc), w_kn, b, **fuse)
    return out.reshape(B, H, W, -1)


def conv_transpose2x2_nhwc(x_nhwc, w_kn, b4, **fuse):
    """ConvTranspose2d k=2 s=2 as a matmul; weight cols ordered (cout, di, dj)."""
    B, H, W, Cin = x_nhwc.shape
    out = fused_matmul(x_nhwc.reshape(B * H * W, Cin), w_kn, b4, **fuse)
    Cout = out.shape[1] // 4
    out = out.reshape(B, H, W, Cout, 2, 2).transpose(0, 1, 4, 2, 5, 3)
    return out.reshape(B, 2 * H, 2 * W, Cout)


def layernorm_nhwc(x_nhwc, g, b, eps):
    B, H, W, Cc = x_nhwc.shape
    return pallas_layernorm(x_nhwc.reshape(B * H * W, Cc), g, b, eps).reshape(B, H, W, Cc)


def adaptive_max_pool_nhwc(x, out_size):
    B, H, W, Cc = x.shape
    oh, ow = out_size
    ceil_div = lambda a, bb: -(-a // bb)
    rows = []
    for i in range(oh):
        h0, h1 = (i * H) // oh, ceil_div((i + 1) * H, oh)
        cols = []
        for j in range(ow):
            w0, w1 = (j * W) // ow, ceil_div((j + 1) * W, ow)
            cols.append(jnp.max(x[:, h0:h1, w0:w1, :], axis=(1, 2)))
        rows.append(jnp.stack(cols, axis=1))
    return jnp.stack(rows, axis=1)               # (B, oh, ow, C)


# ----------------------------------------------------------------------------
# SimilarityWeightedAggregation (returns pre-out_conv per-position features;
# the out_conv is fused with the residual + norm1 in predict_masks).
# NOTE: assumes the query batch is 1, as in the reference usage.
# ----------------------------------------------------------------------------
def aggt_features(p, query_nhwc, keys_nhwc, values_nhwc):
    head, hd = HEAD, C // HEAD
    _, h_q, w_q, Cc = query_nhwc.shape
    nk = len(keys_nhwc)
    hw = h_q * w_q

    # in_conv (1x1) + LayerNorm fused; all pooled keys / values batched into one call each
    q_ln = fused_matmul(query_nhwc.reshape(hw, Cc), p['in_w'], p['in_b'],
                        ln=(p['norm_g'], p['norm_b']), ln_eps=1e-5)          # (hw, C)
    pooled_k = jnp.concatenate(
        [adaptive_max_pool_nhwc(k, (3, 3)).reshape(9, Cc) for k in keys_nhwc], axis=0)
    k_ln = fused_matmul(pooled_k, p['in_w'], p['in_b'],
                        ln=(p['norm_g'], p['norm_b']), ln_eps=1e-5)          # (nk*9, C)
    pooled_v = jnp.concatenate(
        [adaptive_max_pool_nhwc(v, (3, 3)).reshape(9, Cc) for v in values_nhwc], axis=0)
    v_p = fused_matmul(pooled_v, p['in_w'], p['in_b'])                       # (nk*9, C)

    # per-head 3x3 cross-correlation of query with each key -> one batched matmul
    q_sp = q_ln.reshape(h_q, w_q, head, hd)
    q_pad = jnp.pad(q_sp, ((1, 1), (1, 1), (0, 0), (0, 0)))
    qcols = jnp.stack([q_pad[di:di + h_q, dj:dj + w_q]
                       for di in range(3) for dj in range(3)], axis=2)       # (h,w,9,head,hd)
    qcols = qcols.transpose(3, 0, 1, 2, 4).reshape(head, hw, 9 * hd)
    kcat = k_ln.reshape(nk, 3, 3, head, hd).transpose(3, 1, 2, 4, 0).reshape(head, 9 * hd, nk)
    attns = pallas_bmm(qcols, kcat)                                          # (head, hw, nk)

    attns = attns.transpose(0, 2, 1).reshape(head, nk, h_q, w_q)
    attns = attns * float(C * 3 * 3) ** (-0.5)
    attns = jnp.exp(attns)      # matches reference (no max-subtraction by spec)
    attns_sn = attns / jnp.max(attns, axis=(2, 3), keepdims=True)
    attns_en = attns / jnp.sum(attns, axis=1, keepdims=True)
    attns = attns_sn * attns_en                                              # dropout p=0

    # flipped-kernel "deconvolution" back onto the values, batched over heads
    a_pad = jnp.pad(attns, ((0, 0), (0, 0), (1, 1), (1, 1)))
    acols = jnp.stack([a_pad[:, :, (2 - a):(2 - a) + h_q, (2 - b):(2 - b) + w_q]
                       for a in range(3) for b in range(3)], axis=2)         # (head,nk,9,h,w)
    acols = acols.transpose(0, 3, 4, 1, 2).reshape(head, hw, nk * 9)
    vcat = v_p.reshape(nk, 3, 3, head, hd).transpose(3, 0, 1, 2, 4).reshape(head, nk * 9, hd)
    feats = pallas_bmm(acols, vcat)                                          # (head, hw, hd)
    return feats.transpose(1, 0, 2).reshape(hw, Cc)                          # channel = h*hd+c


# ----------------------------------------------------------------------------
# Transformer stand-in
# TODO(synk): the transformer is an injected constructor dependency in
# MaskDecoder (SAM's TwoWayTransformer); this is a minimal one-layer two-way
# cross-attention stand-in with the correct interface, fully fused per batch.
# ----------------------------------------------------------------------------
def transformer_forward(tp, src_nhwc, pos_nhwc, tokens):
    B, H, W, Cc = src_nhwc.shape
    HW = H * W
    T = tokens.shape[1]
    s = src_nhwc.reshape(B, HW, Cc).astype(jnp.float32)
    pos = pos_nhwc.reshape(B, HW, Cc).astype(jnp.float32)
    scale = 1.0 / float(np.sqrt(Cc))

    t_spec = pl.BlockSpec((1, T, Cc), lambda b: (b, 0, 0))
    s_spec = pl.BlockSpec((1, HW, Cc), lambda b: (b, 0, 0))
    w_spec = pl.BlockSpec((Cc, Cc), lambda b: (0, 0))
    b_spec = pl.BlockSpec((1, Cc), lambda b: (0, 0))
    hs, s_out = pl.pallas_call(
        functools.partial(_twoway_attn_kernel, scale),
        out_shape=(jax.ShapeDtypeStruct((B, T, Cc), jnp.float32),
                   jax.ShapeDtypeStruct((B, HW, Cc), jnp.float32)),
        grid=(B,),
        in_specs=[t_spec, s_spec, s_spec,
                  w_spec, b_spec, w_spec, b_spec, w_spec, b_spec,
                  w_spec, b_spec, w_spec, b_spec, w_spec, b_spec],
        out_specs=(t_spec, s_spec),
        compiler_params=pltpu.CompilerParams(dimension_semantics=("parallel",)),
    )(tokens.astype(jnp.float32), s, pos,
      tp['wq'], tp['bq'], tp['wk'], tp['bk'], tp['wv'], tp['bv'],
      tp['wq2'], tp['bq2'], tp['wk2'], tp['bk2'], tp['wv2'], tp['bv2'])
    return hs, s_out


def hyper_mlps_forward(P, x):
    """x: (5, B, C) -> (5, B, C//8); one pallas_call for all 5 MLPs x 3 layers."""
    G, Bt, Cc = x.shape
    co = P['hyperW3'].shape[-1]
    xs = pl.BlockSpec((1, Bt, Cc), lambda g: (g, 0, 0))
    w_sq = pl.BlockSpec((1, Cc, Cc), lambda g: (g, 0, 0))
    b_sq = pl.BlockSpec((1, 1, Cc), lambda g: (g, 0, 0))
    w3s = pl.BlockSpec((1, Cc, co), lambda g: (g, 0, 0))
    b3s = pl.BlockSpec((1, 1, co), lambda g: (g, 0, 0))
    o_spec = pl.BlockSpec((1, Bt, co), lambda g: (g, 0, 0))
    return pl.pallas_call(
        _hyper_mlp_kernel,
        out_shape=jax.ShapeDtypeStruct((G, Bt, co), jnp.float32),
        grid=(G,),
        in_specs=[xs, w_sq, b_sq, w_sq, b_sq, w3s, b3s],
        out_specs=o_spec,
        compiler_params=pltpu.CompilerParams(dimension_semantics=("parallel",)),
    )(x.astype(jnp.float32), P['hyperW1'], P['hyperB1'],
      P['hyperW2'], P['hyperB2'], P['hyperW3'], P['hyperB3'])


def iou_head_forward(P, x):
    Bt, Cc = x.shape
    H1 = P['iouW1'].shape[1]
    od = P['iouW3'].shape[1]
    full = lambda shp: pl.BlockSpec(shp, lambda i: tuple(0 for _ in shp))
    return pl.pallas_call(
        _mlp3_kernel,
        out_shape=jax.ShapeDtypeStruct((Bt, od), jnp.float32),
        grid=(1,),
        in_specs=[full((Bt, Cc)), full((Cc, H1)), full((1, H1)),
                  full((H1, H1)), full((1, H1)), full((H1, od)), full((1, od))],
        out_specs=full((Bt, od)),
        compiler_params=pltpu.CompilerParams(dimension_semantics=("arbitrary",)),
    )(x.astype(jnp.float32), P['iouW1'], P['iouB1'], P['iouW2'], P['iouB2'],
      P['iouW3'], P['iouB3'])


def mask_matmul(hyper_in, u_sam_t, u_hq_t):
    """hyper_in (B,5,C//8), u_*_t (B,C//8,HW) -> masks (B,5,HW); grid over B."""
    B, T5, c8 = hyper_in.shape
    HW2 = u_sam_t.shape[-1]
    h_spec = pl.BlockSpec((1, T5, c8), lambda b: (b, 0, 0))
    u_spec = pl.BlockSpec((1, c8, HW2), lambda b: (b, 0, 0))
    o_spec = pl.BlockSpec((1, T5, HW2), lambda b: (b, 0, 0))
    return pl.pallas_call(
        functools.partial(_mask_mm_kernel, NUM_MASK_TOKENS),
        out_shape=jax.ShapeDtypeStruct((B, T5, HW2), jnp.float32),
        grid=(B,),
        in_specs=[h_spec, u_spec, u_spec],
        out_specs=o_spec,
        compiler_params=pltpu.CompilerParams(dimension_semantics=("parallel",)),
    )(hyper_in.astype(jnp.float32), u_sam_t.astype(jnp.float32),
      u_hq_t.astype(jnp.float32))


# ----------------------------------------------------------------------------
# MaskDecoder
# ----------------------------------------------------------------------------
def predict_masks(P, image_embeddings_nchw, image_pe_nchw, sparse, dense_nchw,
                  hq_features_nhwc, prompt_img_feature_nchw):
    gelu = functools.partial(jax.nn.gelu, approximate=False)

    # torch.fliplr flips dim 1, torch.flipud flips dim 0 (reproduced exactly on NCHW)
    aug = [prompt_img_feature_nchw,
           jnp.flip(prompt_img_feature_nchw, axis=1),
           jnp.flip(prompt_img_feature_nchw, axis=0),
           jnp.rot90(prompt_img_feature_nchw, 1, axes=(2, 3))]
    aug_nhwc = [a.transpose(0, 2, 3, 1) for a in aug]

    img_nhwc = image_embeddings_nchw.transpose(0, 2, 3, 1)          # (1, 8, 8, C)
    _, H, W, Cc = img_nhwc.shape
    tgt_flat = img_nhwc.reshape(H * W, Cc)

    # SimilarityWeightedAggregation + (out_conv + residual + norm1) fused
    feats = aggt_features(P['aggt'], img_nhwc, aug_nhwc, aug_nhwc)  # (HW, C)
    tgt = fused_matmul(feats, P['aggt']['out_w'], P['aggt']['out_b'],
                       residual=tgt_flat, ln=(P['norm1_g'], P['norm1_b']), ln_eps=1e-5)

    # conv1 + leaky_relu fused; conv2 + residual + norm2 fused
    t1 = conv3x3_nhwc(tgt.reshape(1, H, W, Cc), P['conv1_w'], P['conv1_b'],
                      act='leaky_relu')
    tgt = fused_matmul(im2col3x3(t1), P['conv2_w'], P['conv2_b'],
                       residual=tgt, ln=(P['norm2_g'], P['norm2_b']), ln_eps=1e-5)
    img_final = tgt.reshape(1, H, W, Cc)                            # final image_embeddings

    output_tokens = jnp.concatenate(
        [P['iou_token'], P['mask_tokens'], P['hf_token']], axis=0)  # (6, C)
    B = sparse.shape[0]
    output_tokens = jnp.broadcast_to(output_tokens[None], (B,) + output_tokens.shape)
    tokens = jnp.concatenate([output_tokens, sparse], axis=1)       # (B, 8, C)

    dense_nhwc = dense_nchw.transpose(0, 2, 3, 1)
    src = jnp.broadcast_to(img_final, (B, H, W, Cc)) + dense_nhwc
    pos_src = jnp.broadcast_to(image_pe_nchw.transpose(0, 2, 3, 1), (B, H, W, Cc))

    hs, src_flat = transformer_forward(P['transformer'], src, pos_src, tokens)
    iou_token_out = hs[:, 0, :]
    mask_tokens_out = hs[:, 1:1 + TOTAL_MASK_TOKENS, :]             # (B, 5, C)
    src_nhwc = src_flat.reshape(B, H, W, Cc)

    # output_upscaling: convT -> LN2d -> GELU -> convT -> GELU
    x = conv_transpose2x2_nhwc(src_nhwc, P['up1_w'], P['up1_b'])    # (B, 16, 16, C/4)
    x = layernorm_nhwc(x, P['up_ln_g'], P['up_ln_b'], 1e-6)
    x = gelu(x)
    x = conv_transpose2x2_nhwc(x, P['up2_w'], P['up2_b'])           # (B, 32, 32, C/8)
    upscaled_sam = gelu(x)

    # embedding_maskfeature: conv3x3 (+LN fused) -> GELU -> conv3x3 (+hq residual fused)
    y = conv3x3_nhwc(upscaled_sam, P['mf1_w'], P['mf1_b'],
                     ln=(P['mf_ln_g'], P['mf_ln_b']), ln_eps=1e-6)
    y = gelu(y)
    Bu, Hu, Wu, Cu = upscaled_sam.shape
    hq_res = jnp.broadcast_to(hq_features_nhwc, (Bu, Hu, Wu, Cu)).reshape(Bu * Hu * Wu, Cu)
    upscaled_hq = fused_matmul(im2col3x3(y), P['mf2_w'], P['mf2_b'],
                               residual=hq_res).reshape(Bu, Hu, Wu, Cu)

    # hypernetworks: 5 MLPs (4 hyper + hf) in one batched kernel
    hyper_in = hyper_mlps_forward(P, mask_tokens_out.transpose(1, 0, 2))     # (5, B, C/8)
    hyper_in = hyper_in.transpose(1, 0, 2)                                   # (B, 5, C/8)

    # mask matmuls, batched over B
    u_sam_t = upscaled_sam.reshape(Bu, Hu * Wu, Cu).transpose(0, 2, 1)       # (B, C/8, HW)
    u_hq_t = upscaled_hq.reshape(Bu, Hu * Wu, Cu).transpose(0, 2, 1)
    masks = mask_matmul(hyper_in, u_sam_t, u_hq_t).reshape(Bu, TOTAL_MASK_TOKENS, Hu, Wu)

    iou_pred = iou_head_forward(P, iou_token_out)                            # (B, 4)
    return masks, iou_pred


def _forward_core(P, image_embeddings, image_pe, sparse, dense,
                  interm0, prompt_img_feature, *, multimask_output):
    gelu = functools.partial(jax.nn.gelu, approximate=False)
    vit_nhwc = interm0                                              # already NHWC
    img_nhwc = image_embeddings.transpose(0, 2, 3, 1)

    # embedding_encoder(image_embeddings)
    x = conv_transpose2x2_nhwc(img_nhwc, P['ee1_w'], P['ee1_b'])
    x = layernorm_nhwc(x, P['ee_ln_g'], P['ee_ln_b'], 1e-6)
    x = gelu(x)
    enc = conv_transpose2x2_nhwc(x, P['ee2_w'], P['ee2_b'])

    # compress_vit_feat(vit_features)
    y = conv_transpose2x2_nhwc(vit_nhwc, P['cv1_w'], P['cv1_b'])
    y = layernorm_nhwc(y, P['cv_ln_g'], P['cv_ln_b'], 1e-6)
    y = gelu(y)
    cvf = conv_transpose2x2_nhwc(y, P['cv2_w'], P['cv2_b'])

    hq_features = enc + cvf                                         # NHWC (1, 32, 32, C/8)

    masks, iou_pred = predict_masks(P, image_embeddings, image_pe, sparse,
                                    dense, hq_features, prompt_img_feature)

    mask_slice = slice(1, None) if multimask_output else slice(0, 1)
    masks_sam = masks[:, mask_slice, :, :]
    iou_pred = iou_pred[:, mask_slice]
    masks_hq = masks[:, NUM_MASK_TOKENS - 1:NUM_MASK_TOKENS]
    masks = masks_sam + masks_hq
    return masks, iou_pred


_forward_jit = jax.jit(_forward_core, static_argnames=('multimask_output',))


def mask_decoder_forward(P, image_embeddings, image_pe, sparse, dense,
                         multimask_output, interm_embeddings, prompt_box):
    # host-side (static) prompt-box handling, same arithmetic as the reference
    normalized_box = np.divide(np.asarray(prompt_box)[0], IMG_SIZE // EMB_HW)
    x1, y1, x2, y2 = np.around(normalized_box)
    prompt_img_feature = image_embeddings[:, :, int(y1):int(y2), int(x1):int(x2)]
    return _forward_jit(P, image_embeddings, image_pe, sparse, dense,
                        interm_embeddings[0], prompt_img_feature,
                        multimask_output=bool(multimask_output))


# ----------------------------------------------------------------------------
# Deterministic parameter init: weights stored in matmul-ready (K, N) layout,
# bf16 for MXU operands, f32 biases / LN params.
# ----------------------------------------------------------------------------
def init_params(key):
    keys = iter(jax.random.split(key, 128))

    def nrm(shape, scale=0.05, dtype=jnp.float32):
        return (scale * jax.random.normal(next(keys), shape, dtype=jnp.float32)).astype(dtype)

    wdt = MATMUL_DTYPE
    conv1x1_w = lambda cin, cout: nrm((cin, cout), dtype=wdt)
    conv3x3_w = lambda cin, cout: nrm((9 * cin, cout), dtype=wdt)
    convT_w = lambda cin, cout: nrm((cin, 4 * cout), dtype=wdt)

    def convT_b(cout):
        return jnp.repeat(nrm((cout,)), 4)      # one bias per cout, repeated over 2x2

    P = {}
    P['iou_token'] = nrm((1, C))
    P['mask_tokens'] = nrm((NUM_MASK_TOKENS, C))
    P['hf_token'] = nrm((1, C))
    # output_upscaling
    P['up1_w'] = convT_w(C, C // 4); P['up1_b'] = convT_b(C // 4)
    P['up_ln_g'] = jnp.ones((C // 4,)); P['up_ln_b'] = jnp.zeros((C // 4,))
    P['up2_w'] = convT_w(C // 4, C // 8); P['up2_b'] = convT_b(C // 8)
    # heads
    P['iouW1'] = nrm((C, IOU_HIDDEN)); P['iouB1'] = nrm((1, IOU_HIDDEN))
    P['iouW2'] = nrm((IOU_HIDDEN, IOU_HIDDEN)); P['iouB2'] = nrm((1, IOU_HIDDEN))
    P['iouW3'] = nrm((IOU_HIDDEN, NUM_MASK_TOKENS)); P['iouB3'] = nrm((1, NUM_MASK_TOKENS))
    # hypernetwork MLPs stacked: indices 0..3 = output_hypernetworks_mlps, 4 = hf_mlp
    P['hyperW1'] = nrm((TOTAL_MASK_TOKENS, C, C)); P['hyperB1'] = nrm((TOTAL_MASK_TOKENS, 1, C))
    P['hyperW2'] = nrm((TOTAL_MASK_TOKENS, C, C)); P['hyperB2'] = nrm((TOTAL_MASK_TOKENS, 1, C))
    P['hyperW3'] = nrm((TOTAL_MASK_TOKENS, C, C // 8)); P['hyperB3'] = nrm((TOTAL_MASK_TOKENS, 1, C // 8))
    # compress_vit_feat
    P['cv1_w'] = convT_w(VIT_DIM, C); P['cv1_b'] = convT_b(C)
    P['cv_ln_g'] = jnp.ones((C,)); P['cv_ln_b'] = jnp.zeros((C,))
    P['cv2_w'] = convT_w(C, C // 8); P['cv2_b'] = convT_b(C // 8)
    # embedding_encoder
    P['ee1_w'] = convT_w(C, C // 4); P['ee1_b'] = convT_b(C // 4)
    P['ee_ln_g'] = jnp.ones((C // 4,)); P['ee_ln_b'] = jnp.zeros((C // 4,))
    P['ee2_w'] = convT_w(C // 4, C // 8); P['ee2_b'] = convT_b(C // 8)
    # embedding_maskfeature
    P['mf1_w'] = conv3x3_w(C // 8, C // 4); P['mf1_b'] = nrm((C // 4,))
    P['mf_ln_g'] = jnp.ones((C // 4,)); P['mf_ln_b'] = jnp.zeros((C // 4,))
    P['mf2_w'] = conv3x3_w(C // 4, C // 8); P['mf2_b'] = nrm((C // 8,))
    # SimilarityWeightedAggregation
    P['aggt'] = {
        'in_w': conv1x1_w(C, C), 'in_b': nrm((C,)),
        'out_w': conv1x1_w(C, C), 'out_b': nrm((C,)),
        'norm_g': jnp.ones((C,)), 'norm_b': jnp.zeros((C,)),
    }
    # conv1 / conv2 / norm1 / norm2
    P['conv1_w'] = conv3x3_w(C, MID_DIM); P['conv1_b'] = nrm((MID_DIM,))
    P['conv2_w'] = conv3x3_w(MID_DIM, C); P['conv2_b'] = nrm((C,))
    P['norm1_g'] = jnp.ones((C,)); P['norm1_b'] = jnp.zeros((C,))
    P['norm2_g'] = jnp.ones((C,)); P['norm2_b'] = jnp.zeros((C,))
    # transformer stand-in (f32 weights, biases pre-shaped (1, C))
    tp = {}
    for name in ['q', 'k', 'v', 'q2', 'k2', 'v2']:
        tp['w' + name] = nrm((C, C))
        tp['b' + name] = nrm((1, C))
    P['transformer'] = tp
    return P


# ----------------------------------------------------------------------------
if __name__ == "__main__":
    key = jax.random.PRNGKey(0)
    kp, k1, k2, k3, k4, k5 = jax.random.split(key, 6)
    P = init_params(kp)

    B = 2
    image_embeddings = jax.random.normal(k1, (1, C, EMB_HW, EMB_HW), jnp.float32)
    image_pe = jax.random.normal(k2, (1, C, EMB_HW, EMB_HW), jnp.float32)
    sparse_prompt_embeddings = jax.random.normal(k3, (B, 2, C), jnp.float32)
    dense_prompt_embeddings = jax.random.normal(k4, (B, C, EMB_HW, EMB_HW), jnp.float32)
    interm0 = jax.random.normal(k5, (1, EMB_HW, EMB_HW, VIT_DIM), jnp.float32)  # NHWC
    prompt_box = np.array([[16.0, 32.0, 80.0, 96.0]], dtype=np.float32)

    masks, iou_pred = mask_decoder_forward(
        P, image_embeddings, image_pe, sparse_prompt_embeddings,
        dense_prompt_embeddings, True, [interm0], prompt_box)

    masks, iou_pred = jax.block_until_ready((masks, iou_pred))
    assert masks.shape == (B, NUM_MASK_TOKENS, 4 * EMB_HW, 4 * EMB_HW), masks.shape
    assert iou_pred.shape == (B, NUM_MULTIMASK), iou_pred.shape
    assert bool(jnp.all(jnp.isfinite(masks))) and bool(jnp.all(jnp.isfinite(iou_pred)))
    print("KERNEL_OK")
</pallas_src>

<mosaic_0001>
module attributes {stable_mosaic.version = 11 : i64} {
  func.func @_mm_fused_kernel(%arg0: i32, %arg1: memref<64x64xbf16, #tpu.memory_space<vmem>>, %arg2: memref<64x128xbf16, #tpu.memory_space<vmem>>, %arg3: memref<1x128xf32, #tpu.memory_space<vmem>>, %arg4: memref<64x128xf32, #tpu.memory_space<vmem>>) attributes {dimension_semantics = [#tpu.dimension_semantics<arbitrary>], iteration_bounds = array<i64: 1>, scalar_prefetch = 0 : i64, scratch_operands = 0 : i64, tpu.core_type = #tpu.core_type<tc>, window_params = [{pipeline_mode = #tpu.pipeline_mode<synchronous>, transform_indices = @transform_0, window_bounds = array<i64: 64, 64>}, {pipeline_mode = #tpu.pipeline_mode<synchronous>, transform_indices = @transform_1, window_bounds = array<i64: 64, 128>}, {pipeline_mode = #tpu.pipeline_mode<synchronous>, transform_indices = @transform_2, window_bounds = array<i64: 1, 128>}, {pipeline_mode = #tpu.pipeline_mode<synchronous>, transform_indices = @transform_3, window_bounds = array<i64: 64, 128>}]} {
    %c0 = arith.constant 0 : index
    %c0_0 = arith.constant 0 : index
    %0 = vector.load %arg1[%c0, %c0_0] : memref<64x64xbf16, #tpu.memory_space<vmem>>, vector<64x64xbf16>
    %c0_1 = arith.constant 0 : index
    %c0_2 = arith.constant 0 : index
    %1 = vector.load %arg2[%c0_1, %c0_2] : memref<64x128xbf16, #tpu.memory_space<vmem>>, vector<64x128xbf16>
    %cst = arith.constant dense<0.000000e+00> : vector<64x128xf32>
    %2 = tpu.matmul %0, %1, %cst {dimension_numbers = #tpu.dot_dimension_numbers<[1], [0], [0], [1], [0, 0, 1, 1], [], []>} : vector<64x64xbf16>, vector<64x128xbf16>, vector<64x128xf32> -> vector<64x128xf32>
    %c0_3 = arith.constant 0 : index
    %c0_4 = arith.constant 0 : index
    %3 = vector.load %arg3[%c0_3, %c0_4] : memref<1x128xf32, #tpu.memory_space<vmem>>, vector<1x128xf32>
    %4 = vector.broadcast %3 : vector<1x128xf32> to vector<64x128xf32>
    %5 = arith.addf %2, %4 : vector<64x128xf32>
    %c0_5 = arith.constant 0 : index
    %c0_6 = arith.constant 0 : index
    %6 = vector.load %arg4[%c0_5, %c0_6] : memref<64x128xf32, #tpu.memory_space<vmem>>, vector<64x128xf32>
    tpu.vector_store %arg4[%c0_5, %c0_6], %5 {strides = array<i32>} : memref<64x128xf32, #tpu.memory_space<vmem>>, vector<64x128xf32>,
    return
  }
  func.func @transform_0(%arg0: i32) -> (i32, i32) {
    %c0_i32 = arith.constant 0 : i32
    %c0_i32_0 = arith.constant 0 : i32
    %c0_i32_1 = arith.constant 0 : i32
    return %c0_i32, %c0_i32_0 : i32, i32
  }
  func.func @transform_1(%arg0: i32) -> (i32, i32) {
    %c0_i32 = arith.constant 0 : i32
    %c0_i32_0 = arith.constant 0 : i32
    %c0_i32_1 = arith.constant 0 : i32
    return %c0_i32, %c0_i32_0 : i32, i32
  }
  func.func @transform_2(%arg0: i32) -> (i32, i32) {
    %c0_i32 = arith.constant 0 : i32
    %c0_i32_0 = arith.constant 0 : i32
    %c0_i32_1 = arith.constant 0 : i32
    return %c0_i32, %c0_i32_0 : i32, i32
  }
  func.func @transform_3(%arg0: i32) -> (i32, i32) {
    %c0_i32 = arith.constant 0 : i32
    %c0_i32_0 = arith.constant 0 : i32
    %c0_i32_1 = arith.constant 0 : i32
    return %c0_i32, %c0_i32_0 : i32, i32
  }
}

module attributes {stable_mosaic.version = 11 : i64} {
  func.func @_mm_fused_kernel(%arg0: i32, %arg1: memref<36x32xbf16, #tpu.memory_space<vmem>>, %arg2: memref<32x32xbf16, #tpu.memory_space<vmem>>, %arg3: memref<1x32xf32, #tpu.memory_space<vmem>>, %arg4: memref<36x32xf32, #tpu.memory_space<vmem>>) attributes {dimension_semantics = [#tpu.dimension_semantics<arbitrary>], iteration_bounds = array<i64: 1>, scalar_prefetch = 0 : i64, scratch_operands = 0 : i64, tpu.core_type = #tpu.core_type<tc>, window_params = [{pipeline_mode = #tpu.pipeline_mode<synchronous>, transform_indices = @transform_0, window_bounds = array<i64: 36, 32>}, {pipeline_mode = #tpu.pipeline_mode<synchronous>, transform_indices = @transform_1, window_bounds = array<i64: 32, 32>}, {pipeline_mode = #tpu.pipeline_mode<synchronous>, transform_indices = @transform_2, window_bounds = array<i64: 1, 32>}, {pipeline_mode = #tpu.pipeline_mode<synchronous>, transform_indices = @transform_3, window_bounds = array<i64: 36, 32>}]} {
    %c0 = arith.constant 0 : index
    %c0_0 = arith.constant 0 : index
    %0 = vector.load %arg1[%c0, %c0_0] : memref<36x32xbf16, #tpu.memory_space<vmem>>, vector<36x32xbf16>
    %c0_1 = arith.constant 0 : index
    %c0_2 = arith.constant 0 : index
    %1 = vector.load %arg2[%c0_1, %c0_2] : memref<32x32xbf16, #tpu.memory_space<vmem>>, vector<32x32xbf16>
    %cst = arith.constant dense<0.000000e+00> : vector<36x32xf32>
    %2 = tpu.matmul %0, %1, %cst {dimension_numbers = #tpu.dot_dimension_numbers<[1], [0], [0], [1], [0, 0, 1, 1], [], []>} : vector<36x32xbf16>, vector<32x32xbf16>, vector<36x32xf32> -> vector<36x32xf32>
    %c0_3 = arith.constant 0 : index
    %c0_4 = arith.constant 0 : index
    %3 = vector.load %arg3[%c0_3, %c0_4] : memref<1x32xf32, #tpu.memory_space<vmem>>, vector<1x32xf32>
    %4 = vector.broadcast %3 : vector<1x32xf32> to vector<36x32xf32>
    %5 = arith.addf %2, %4 : vector<36x32xf32>
    %c0_5 = arith.constant 0 : index
    %c0_6 = arith.constant 0 : index
    %6 = vector.load %arg4[%c0_5, %c0_6] : memref<36x32xf32, #tpu.memory_space<vmem>>, vector<36x32xf32>
    tpu.vector_store %arg4[%c0_5, %c0_6], %5 {strides = array<i32>} : memref<36x32xf32, #tpu.memory_space<vmem>>, vector<36x32xf32>,
    return
  }
  func.func @transform_0(%arg0: i32) -> (i32, i32) {
    %c0_i32 = arith.constant 0 : i32
    %c0_i32_0 = arith.constant 0 : i32
    %c0_i32_1 = arith.constant 0 : i32
    return %c0_i32, %c0_i32_0 : i32, i32
  }
  func.func @transform_1(%arg0: i32) -> (i32, i32) {
    %c0_i32 = arith.constant 0 : i32
    %c0_i32_0 = arith.constant 0 : i32
    %c0_i32_1 = arith.constant 0 : i32
    return %c0_i32, %c0_i32_0 : i32, i32
  }
  func.func @transform_2(%arg0: i32) -> (i32, i32) {
    %c0_i32 = arith.constant 0 : i32
    %c0_i32_0 = arith.constant 0 : i32
    %c0_i32_1 = arith.constant 0 : i32
    return %c0_i32, %c0_i32_0 : i32, i32
  }
  func.func @transform_3(%arg0: i32) -> (i32, i32) {
    %c0_i32 = arith.constant 0 : i32
    %c0_i32_0 = arith.constant 0 : i32
    %c0_i32_1 = arith.constant 0 : i32
    return %c0_i32, %c0_i32_0 : i32, i32
  }
}

module attributes {stable_mosaic.version = 11 : i64} {
  func.func @_mm_fused_kernel(%arg0: i32, %arg1: memref<64x32xbf16, #tpu.memory_space<vmem>>, %arg2: memref<32x32xbf16, #tpu.memory_space<vmem>>, %arg3: memref<1x32xf32, #tpu.memory_space<vmem>>, %arg4: memref<64x32xf32, #tpu.memory_space<vmem>>) attributes {dimension_semantics = [#tpu.dimension_semantics<arbitrary>], iteration_bounds = array<i64: 1>, scalar_prefetch = 0 : i64, scratch_operands = 0 : i64, tpu.core_type = #tpu.core_type<tc>, window_params = [{pipeline_mode = #tpu.pipeline_mode<synchronous>, transform_indices = @transform_0, window_bounds = array<i64: 64, 32>}, {pipeline_mode = #tpu.pipeline_mode<synchronous>, transform_indices = @transform_1, window_bounds = array<i64: 32, 32>}, {pipeline_mode = #tpu.pipeline_mode<synchronous>, transform_indices = @transform_2, window_bounds = array<i64: 1, 32>}, {pipeline_mode = #tpu.pipeline_mode<synchronous>, transform_indices = @transform_3, window_bounds = array<i64: 64, 32>}]} {
    %c0 = arith.constant 0 : index
    %c0_0 = arith.constant 0 : index
    %0 = vector.load %arg1[%c0, %c0_0] : memref<64x32xbf16, #tpu.memory_space<vmem>>, vector<64x32xbf16>
    %c0_1 = arith.constant 0 : index
    %c0_2 = arith.constant 0 : index
    %1 = vector.load %arg2[%c0_1, %c0_2] : memref<32x32xbf16, #tpu.memory_space<vmem>>, vector<32x32xbf16>
    %cst = arith.constant dense<0.000000e+00> : vector<64x32xf32>
    %2 = tpu.matmul %0, %1, %cst {dimension_numbers = #tpu.dot_dimension_numbers<[1], [0], [0], [1], [0, 0, 1, 1], [], []>} : vector<64x32xbf16>, vector<32x32xbf16>, vector<64x32xf32> -> vector<64x32xf32>
    %c0_3 = arith.constant 0 : index
    %c0_4 = arith.constant 0 : index
    %3 = vector.load %arg3[%c0_3, %c0_4] : memref<1x32xf32, #tpu.memory_space<vmem>>, vector<1x32xf32>
    %4 = vector.broadcast %3 : vector<1x32xf32> to vector<64x32xf32>
    %5 = arith.addf %2, %4 : vector<64x32xf32>
    %c0_5 = arith.constant 0 : index
    %c0_6 = arith.constant 0 : index
    %6 = vector.load %arg4[%c0_5, %c0_6] : memref<64x32xf32, #tpu.memory_space<vmem>>, vector<64x32xf32>
    tpu.vector_store %arg4[%c0_5, %c0_6], %5 {strides = array<i32>} : memref<64x32xf32, #tpu.memory_space<vmem>>, vector<64x32xf32>,
    return
  }
  func.func @transform_0(%arg0: i32) -> (i32, i32) {
    %c0_i32 = arith.constant 0 : i32
    %c0_i32_0 = arith.constant 0 : i32
    %c0_i32_1 = arith.constant 0 : i32
    return %c0_i32, %c0_i32_0 : i32, i32
  }
  func.func @transform_1(%arg0: i32) -> (i32, i32) {
    %c0_i32 = arith.constant 0 : i32
    %c0_i32_0 = arith.constant 0 : i32
    %c0_i32_1 = arith.constant 0 : i32
    return %c0_i32, %c0_i32_0 : i32, i32
  }
  func.func @transform_2(%arg0: i32) -> (i32, i32) {
    %c0_i32 = arith.constant 0 : i32
    %c0_i32_0 = arith.constant 0 : i32
    %c0_i32_1 = arith.constant 0 : i32
    return %c0_i32, %c0_i32_0 : i32, i32
  }
  func.func @transform_3(%arg0: i32) -> (i32, i32) {
    %c0_i32 = arith.constant 0 : i32
    %c0_i32_0 = arith.constant 0 : i32
    %c0_i32_1 = arith.constant 0 : i32
    return %c0_i32, %c0_i32_0 : i32, i32
  }
}

module attributes {stable_mosaic.version = 11 : i64} {
  func.func @_mm_fused_kernel(%arg0: i32, %arg1: memref<36x32xbf16, #tpu.memory_space<vmem>>, %arg2: memref<32x32xbf16, #tpu.memory_space<vmem>>, %arg3: memref<1x32xf32, #tpu.memory_space<vmem>>, %arg4: memref<1x32xf32, #tpu.memory_space<vmem>>, %arg5: memref<1x32xf32, #tpu.memory_space<vmem>>, %arg6: memref<36x32xf32, #tpu.memory_space<vmem>>) attributes {dimension_semantics = [#tpu.dimension_semantics<arbitrary>], iteration_bounds = array<i64: 1>, scalar_prefetch = 0 : i64, scratch_operands = 0 : i64, tpu.core_type = #tpu.core_type<tc>, window_params = [{pipeline_mode = #tpu.pipeline_mode<synchronous>, transform_indices = @transform_0, window_bounds = array<i64: 36, 32>}, {pipeline_mode = #tpu.pipeline_mode<synchronous>, transform_indices = @transform_1, window_bounds = array<i64: 32, 32>}, {pipeline_mode = #tpu.pipeline_mode<synchronous>, transform_indices = @transform_2, window_bounds = array<i64: 1, 32>}, {pipeline_mode = #tpu.pipeline_mode<synchronous>, transform_indices = @transform_3, window_bounds = array<i64: 1, 32>}, {pipeline_mode = #tpu.pipeline_mode<synchronous>, transform_indices = @transform_4, window_bounds = array<i64: 1, 32>}, {pipeline_mode = #tpu.pipeline_mode<synchronous>, transform_indices = @transform_5, window_bounds = array<i64: 36, 32>}]} {
    %c0 = arith.constant 0 : index
    %c0_0 = arith.constant 0 : index
    %0 = vector.load %arg1[%c0, %c0_0] : memref<36x32xbf16, #tpu.memory_space<vmem>>, vector<36x32xbf16>
    %c0_1 = arith.constant 0 : index
    %c0_2 = arith.constant 0 : index
    %1 = vector.load %arg2[%c0_1, %c0_2] : memref<32x32xbf16, #tpu.memory_space<vmem>>, vector<32x32xbf16>
    %cst = arith.constant dense<0.000000e+00> : vector<36x32xf32>
    %2 = tpu.matmul %0, %1, %cst {dimension_numbers = #tpu.dot_dimension_numbers<[1], [0], [0], [1], [0, 0, 1, 1], [], []>} : vector<36x32xbf16>, vector<32x32xbf16>, vector<36x32xf32> -> vector<36x32xf32>
    %c0_3 = arith.constant 0 : index
    %c0_4 = arith.constant 0 : index
    %3 = vector.load %arg3[%c0_3, %c0_4] : memref<1x32xf32, #tpu.memory_space<vmem>>, vector<1x32xf32>
    %4 = vector.broadcast %3 : vector<1x32xf32> to vector<36x32xf32>
    %5 = arith.addf %2, %4 : vector<36x32xf32>
    %cst_5 = arith.constant dense<0.000000e+00> : vector<36xf32>
    %6 = vector.multi_reduction <add>, %5, %cst_5 [1] : vector<36x32xf32> to vector<36xf32>
    %7 = vector.shape_cast %6 : vector<36xf32> to vector<36x1xf32>
    %cst_6 = arith.constant 3.200000e+01 : f32
    %8 = vector.broadcast %cst_6 : f32 to vector<36x1xf32>
    %9 = arith.divf %7, %8 : vector<36x1xf32>
    %10 = vector.broadcast %9 : vector<36x1xf32> to vector<36x32xf32>
    %11 = arith.subf %5, %10 : vector<36x32xf32>
    %12 = arith.mulf %11, %11 : vector<36x32xf32>
    %cst_7 = arith.constant dense<0.000000e+00> : vector<36xf32>
    %13 = vector.multi_reduction <add>, %12, %cst_7 [1] : vector<36x32xf32> to vector<36xf32>
    %14 = vector.shape_cast %13 : vector<36xf32> to vector<36x1xf32>
    %cst_8 = arith.constant 3.200000e+01 : f32
    %15 = vector.broadcast %cst_8 : f32 to vector<36x1xf32>
    %16 = arith.divf %14, %15 : vector<36x1xf32>
    %17 = vector.broadcast %9 : vector<36x1xf32> to vector<36x32xf32>
    %18 = arith.subf %5, %17 : vector<36x32xf32>
    %cst_9 = arith.constant 9.99999974E-6 : f32
    %19 = vector.broadcast %cst_9 : f32 to vector<36x1xf32>
    %20 = arith.addf %16, %19 : vector<36x1xf32>
    %21 = math.rsqrt %20 : vector<36x1xf32>
    %22 = vector.broadcast %21 : vector<36x1xf32> to vector<36x32xf32>
    %23 = arith.mulf %18, %22 : vector<36x32xf32>
    %c0_10 = arith.constant 0 : index
    %c0_11 = arith.constant 0 : index
    %24 = vector.load %arg4[%c0_10, %c0_11] : memref<1x32xf32, #tpu.memory_space<vmem>>, vector<1x32xf32>
    %25 = vector.broadcast %24 : vector<1x32xf32> to vector<36x32xf32>
    %26 = arith.mulf %23, %25 : vector<36x32xf32>
    %c0_12 = arith.constant 0 : index
    %c0_13 = arith.constant 0 : index
    %27 = vector.load %arg5[%c0_12, %c0_13] : memref<1x32xf32, #tpu.memory_space<vmem>>, vector<1x32xf32>
    %28 = vector.broadcast %27 : vector<1x32xf32> to vector<36x32xf32>
    %29 = arith.addf %26, %28 : vector<36x32xf32>
    %c0_14 = arith.constant 0 : index
    %c0_15 = arith.constant 0 : index
    %30 = vector.load %arg6[%c0_14, %c0_15] : memref<36x32xf32, #tpu.memory_space<vmem>>, vector<36x32xf32>
    tpu.vector_store %arg6[%c0_14, %c0_15], %29 {strides = array<i32>} : memref<36x32xf32, #tpu.memory_space<vmem>>, vector<36x32xf32>,
    return
  }
  func.func @transform_0(%arg0: i32) -> (i32, i32) {
    %c0_i32 = arith.constant 0 : i32
    %c0_i32_0 = arith.constant 0 : i32
    %c0_i32_1 = arith.constant 0 : i32
    return %c0_i32, %c0_i32_0 : i32, i32
  }
  func.func @transform_1(%arg0: i32) -> (i32, i32) {
    %c0_i32 = arith.constant 0 : i32
    %c0_i32_0 = arith.constant 0 : i32
    %c0_i32_1 = arith.constant 0 : i32
    return %c0_i32, %c0_i32_0 : i32, i32
  }
  func.func @transform_2(%arg0: i32) -> (i32, i32) {
    %c0_i32 = arith.constant 0 : i32
    %c0_i32_0 = arith.constant 0 : i32
    %c0_i32_1 = arith.constant 0 : i32
    return %c0_i32, %c0_i32_0 : i32, i32
  }
  func.func @transform_3(%arg0: i32) -> (i32, i32) {
    %c0_i32 = arith.constant 0 : i32
    %c0_i32_0 = arith.constant 0 : i32
    %c0_i32_1 = arith.constant 0 : i32
    return %c0_i32, %c0_i32_0 : i32, i32
  }
  func.func @transform_4(%arg0: i32) -> (i32, i32) {
    %c0_i32 = arith.constant 0 : i32
    %c0_i32_0 = arith.constant 0 : i32
    %c0_i32_1 = arith.constant 0 : i32
    return %c0_i32, %c0_i32_0 : i32, i32
  }
  func.func @transform_5(%arg0: i32) -> (i32, i32) {
    %c0_i32 = arith.constant 0 : i32
    %c0_i32_0 = arith.constant 0 : i32
    %c0_i32_1 = arith.constant 0 : i32
    return %c0_i32, %c0_i32_0 : i32, i32
  }
}

module attributes {stable_mosaic.version = 11 : i64} {
  func.func @_mm_fused_kernel(%arg0: i32, %arg1: memref<64x32xbf16, #tpu.memory_space<vmem>>, %arg2: memref<32x32xbf16, #tpu.memory_space<vmem>>, %arg3: memref<1x32xf32, #tpu.memory_space<vmem>>, %arg4: memref<1x32xf32, #tpu.memory_space<vmem>>, %arg5: memref<1x32xf32, #tpu.memory_space<vmem>>, %arg6: memref<64x32xf32, #tpu.memory_space<vmem>>) attributes {dimension_semantics = [#tpu.dimension_semantics<arbitrary>], iteration_bounds = array<i64: 1>, scalar_prefetch = 0 : i64, scratch_operands = 0 : i64, tpu.core_type = #tpu.core_type<tc>, window_params = [{pipeline_mode = #tpu.pipeline_mode<synchronous>, transform_indices = @transform_0, window_bounds = array<i64: 64, 32>}, {pipeline_mode = #tpu.pipeline_mode<synchronous>, transform_indices = @transform_1, window_bounds = array<i64: 32, 32>}, {pipeline_mode = #tpu.pipeline_mode<synchronous>, transform_indices = @transform_2, window_bounds = array<i64: 1, 32>}, {pipeline_mode = #tpu.pipeline_mode<synchronous>, transform_indices = @transform_3, window_bounds = array<i64: 1, 32>}, {pipeline_mode = #tpu.pipeline_mode<synchronous>, transform_indices = @transform_4, window_bounds = array<i64: 1, 32>}, {pipeline_mode = #tpu.pipeline_mode<synchronous>, transform_indices = @transform_5, window_bounds = array<i64: 64, 32>}]} {
    %c0 = arith.constant 0 : index
    %c0_0 = arith.constant 0 : index
    %0 = vector.load %arg1[%c0, %c0_0] : memref<64x32xbf16, #tpu.memory_space<vmem>>, vector<64x32xbf16>
    %c0_1 = arith.constant 0 : index
    %c0_2 = arith.constant 0 : index
    %1 = vector.load %arg2[%c0_1, %c0_2] : memref<32x32xbf16, #tpu.memory_space<vmem>>, vector<32x32xbf16>
    %cst = arith.constant dense<0.000000e+00> : vector<64x32xf32>
    %2 = tpu.matmul %0, %1, %cst {dimension_numbers = #tpu.dot_dimension_numbers<[1], [0], [0], [1], [0, 0, 1, 1], [], []>} : vector<64x32xbf16>, vector<32x32xbf16>, vector<64x32xf32> -> vector<64x32xf32>
    %c0_3 = arith.constant 0 : index
    %c0_4 = arith.constant 0 : index
    %3 = vector.load %arg3[%c0_3, %c0_4] : memref<1x32xf32, #tpu.memory_space<vmem>>, vector<1x32xf32>
    %4 = vector.broadcast %3 : vector<1x32xf32> to vector<64x32xf32>
    %5 = arith.addf %2, %4 : vector<64x32xf32>
    %cst_5 = arith.constant dense<0.000000e+00> : vector<64xf32>
    %6 = vector.multi_reduction <add>, %5, %cst_5 [1] : vector<64x32xf32> to vector<64xf32>
    %7 = vector.shape_cast %6 : vector<64xf32> to vector<64x1xf32>
    %cst_6 = arith.constant 3.200000e+01 : f32
    %8 = vector.broadcast %cst_6 : f32 to vector<64x1xf32>
    %9 = arith.divf %7, %8 : vector<64x1xf32>
    %10 = vector.broadcast %9 : vector<64x1xf32> to vector<64x32xf32>
    %11 = arith.subf %5, %10 : vector<64x32xf32>
    %12 = arith.mulf %11, %11 : vector<64x32xf32>
    %cst_7 = arith.constant dense<0.000000e+00> : vector<64xf32>
    %13 = vector.multi_reduction <add>, %12, %cst_7 [1] : vector<64x32xf32> to vector<64xf32>
    %14 = vector.shape_cast %13 : vector<64xf32> to vector<64x1xf32>
    %cst_8 = arith.constant 3.200000e+01 : f32
    %15 = vector.broadcast %cst_8 : f32 to vector<64x1xf32>
    %16 = arith.divf %14, %15 : vector<64x1xf32>
    %17 = vector.broadcast %9 : vector<64x1xf32> to vector<64x32xf32>
    %18 = arith.subf %5, %17 : vector<64x32xf32>
    %cst_9 = arith.constant 9.99999974E-6 : f32
    %19 = vector.broadcast %cst_9 : f32 to vector<64x1xf32>
    %20 = arith.addf %16, %19 : vector<64x1xf32>
    %21 = math.rsqrt %20 : vector<64x1xf32>
    %22 = vector.broadcast %21 : vector<64x1xf32> to vector<64x32xf32>
    %23 = arith.mulf %18, %22 : vector<64x32xf32>
    %c0_10 = arith.constant 0 : index
    %c0_11 = arith.constant 0 : index
    %24 = vector.load %arg4[%c0_10, %c0_11] : memref<1x32xf32, #tpu.memory_space<vmem>>, vector<1x32xf32>
    %25 = vector.broadcast %24 : vector<1x32xf32> to vector<64x32xf32>
    %26 = arith.mulf %23, %25 : vector<64x32xf32>
    %c0_12 = arith.constant 0 : index
    %c0_13 = arith.constant 0 : index
    %27 = vector.load %arg5[%c0_12, %c0_13] : memref<1x32xf32, #tpu.memory_space<vmem>>, vector<1x32xf32>
    %28 = vector.broadcast %27 : vector<1x32xf32> to vector<64x32xf32>
    %29 = arith.addf %26, %28 : vector<64x32xf32>
    %c0_14 = arith.constant 0 : index
    %c0_15 = arith.constant 0 : index
    %30 = vector.load %arg6[%c0_14, %c0_15] : memref<64x32xf32, #tpu.memory_space<vmem>>, vector<64x32xf32>
    tpu.vector_store %arg6[%c0_14, %c0_15], %29 {strides = array<i32>} : memref<64x32xf32, #tpu.memory_space<vmem>>, vector<64x32xf32>,
    return
  }
  func.func @transform_0(%arg0: i32) -> (i32, i32) {
    %c0_i32 = arith.constant 0 : i32
    %c0_i32_0 = arith.constant 0 : i32
    %c0_i32_1 = arith.constant 0 : i32
    return %c0_i32, %c0_i32_0 : i32, i32
  }
  func.func @transform_1(%arg0: i32) -> (i32, i32) {
    %c0_i32 = arith.constant 0 : i32
    %c0_i32_0 = arith.constant 0 : i32
    %c0_i32_1 = arith.constant 0 : i32
    return %c0_i32, %c0_i32_0 : i32, i32
  }
  func.func @transform_2(%arg0: i32) -> (i32, i32) {
    %c0_i32 = arith.constant 0 : i32
    %c0_i32_0 = arith.constant 0 : i32
    %c0_i32_1 = arith.constant 0 : i32
    return %c0_i32, %c0_i32_0 : i32, i32
  }
  func.func @transform_3(%arg0: i32) -> (i32, i32) {
    %c0_i32 = arith.constant 0 : i32
    %c0_i32_0 = arith.constant 0 : i32
    %c0_i32_1 = arith.constant 0 : i32
    return %c0_i32, %c0_i32_0 : i32, i32
  }
  func.func @transform_4(%arg0: i32) -> (i32, i32) {
    %c0_i32 = arith.constant 0 : i32
    %c0_i32_0 = arith.constant 0 : i32
    %c0_i32_1 = arith.constant 0 : i32
    return %c0_i32, %c0_i32_0 : i32, i32
  }
  func.func @transform_5(%arg0: i32) -> (i32, i32) {
    %c0_i32 = arith.constant 0 : i32
    %c0_i32_0 = arith.constant 0 : i32
    %c0_i32_1 = arith.constant 0 : i32
    return %c0_i32, %c0_i32_0 : i32, i32
  }
}

module attributes {stable_mosaic.version = 11 : i64} {
  func.func @_ln_kernel(%arg0: i32, %arg1: memref<256x8xf32, #tpu.memory_space<vmem>>, %arg2: memref<1x8xf32, #tpu.memory_space<vmem>>, %arg3: memref<1x8xf32, #tpu.memory_space<vmem>>, %arg4: memref<256x8xf32, #tpu.memory_space<vmem>>) attributes {dimension_semantics = [#tpu.dimension_semantics<arbitrary>], iteration_bounds = array<i64: 1>, scalar_prefetch = 0 : i64, scratch_operands = 0 : i64, tpu.core_type = #tpu.core_type<tc>, window_params = [{pipeline_mode = #tpu.pipeline_mode<synchronous>, transform_indices = @transform_0, window_bounds = array<i64: 256, 8>}, {pipeline_mode = #tpu.pipeline_mode<synchronous>, transform_indices = @transform_1, window_bounds = array<i64: 1, 8>}, {pipeline_mode = #tpu.pipeline_mode<synchronous>, transform_indices = @transform_2, window_bounds = array<i64: 1, 8>}, {pipeline_mode = #tpu.pipeline_mode<synchronous>, transform_indices = @transform_3, window_bounds = array<i64: 256, 8>}]} {
    %c0 = arith.constant 0 : index
    %c0_0 = arith.constant 0 : index
    %0 = vector.load %arg1[%c0, %c0_0] : memref<256x8xf32, #tpu.memory_space<vmem>>, vector<256x8xf32>
    %cst = arith.constant dense<0.000000e+00> : vector<256xf32>
    %1 = vector.multi_reduction <add>, %0, %cst [1] : vector<256x8xf32> to vector<256xf32>
    %2 = vector.shape_cast %1 : vector<256xf32> to vector<256x1xf32>
    %cst_1 = arith.constant 8.000000e+00 : f32
    %3 = vector.broadcast %cst_1 : f32 to vector<256x1xf32>
    %4 = arith.divf %2, %3 : vector<256x1xf32>
    %5 = vector.broadcast %4 : vector<256x1xf32> to vector<256x8xf32>
    %6 = arith.subf %0, %5 : vector<256x8xf32>
    %7 = arith.mulf %6, %6 : vector<256x8xf32>
    %cst_2 = arith.constant dense<0.000000e+00> : vector<256xf32>
    %8 = vector.multi_reduction <add>, %7, %cst_2 [1] : vector<256x8xf32> to vector<256xf32>
    %9 = vector.shape_cast %8 : vector<256xf32> to vector<256x1xf32>
    %cst_3 = arith.constant 8.000000e+00 : f32
    %10 = vector.broadcast %cst_3 : f32 to vector<256x1xf32>
    %11 = arith.divf %9, %10 : vector<256x1xf32>
    %12 = vector.broadcast %4 : vector<256x1xf32> to vector<256x8xf32>
    %13 = arith.subf %0, %12 : vector<256x8xf32>
    %cst_4 = arith.constant 9.99999997E-7 : f32
    %14 = vector.broadcast %cst_4 : f32 to vector<256x1xf32>
    %15 = arith.addf %11, %14 : vector<256x1xf32>
    %16 = math.rsqrt %15 : vector<256x1xf32>
    %17 = vector.broadcast %16 : vector<256x1xf32> to vector<256x8xf32>
    %18 = arith.mulf %13, %17 : vector<256x8xf32>
    %c0_5 = arith.constant 0 : index
    %c0_6 = arith.constant 0 : index
    %19 = vector.load %arg2[%c0_5, %c0_6] : memref<1x8xf32, #tpu.memory_space<vmem>>, vector<1x8xf32>
    %20 = vector.broadcast %19 : vector<1x8xf32> to vector<256x8xf32>
    %21 = arith.mulf %18, %20 : vector<256x8xf32>
    %c0_7 = arith.constant 0 : index
    %c0_8 = arith.constant 0 : index
    %22 = vector.load %arg3[%c0_7, %c0_8] : memref<1x8xf32, #tpu.memory_space<vmem>>, vector<1x8xf32>
    %23 = vector.broadcast %22 : vector<1x8xf32> to vector<256x8xf32>
    %24 = arith.addf %21, %23 : vector<256x8xf32>
    %c0_9 = arith.constant 0 : index
    %c0_10 = arith.constant 0 : index
    %25 = vector.load %arg4[%c0_9, %c0_10] : memref<256x8xf32, #tpu.memory_space<vmem>>, vector<256x8xf32>
    tpu.vector_store %arg4[%c0_9, %c0_10], %24 {strides = array<i32>} : memref<256x8xf32, #tpu.memory_space<vmem>>, vector<256x8xf32>,
    return
  }
  func.func @transform_0(%arg0: i32) -> (i32, i32) {
    %c0_i32 = arith.constant 0 : i32
    %c0_i32_0 = arith.constant 0 : i32
    %c0_i32_1 = arith.constant 0 : i32
    return %c0_i32, %c0_i32_0 : i32, i32
  }
  func.func @transform_1(%arg0: i32) -> (i32, i32) {
    %c0_i32 = arith.constant 0 : i32
    %c0_i32_0 = arith.constant 0 : i32
    %c0_i32_1 = arith.constant 0 : i32
    return %c0_i32, %c0_i32_0 : i32, i32
  }
  func.func @transform_2(%arg0: i32) -> (i32, i32) {
    %c0_i32 = arith.constant 0 : i32
    %c0_i32_0 = arith.constant 0 : i32
    %c0_i32_1 = arith.constant 0 : i32
    return %c0_i32, %c0_i32_0 : i32, i32
  }
  func.func @transform_3(%arg0: i32) -> (i32, i32) {
    %c0_i32 = arith.constant 0 : i32
    %c0_i32_0 = arith.constant 0 : i32
    %c0_i32_1 = arith.constant 0 : i32
    return %c0_i32, %c0_i32_0 : i32, i32
  }
}

module attributes {stable_mosaic.version = 11 : i64} {
  func.func @_mm_fused_kernel(%arg0: i32, %arg1: memref<256x8xbf16, #tpu.memory_space<vmem>>, %arg2: memref<8x16xbf16, #tpu.memory_space<vmem>>, %arg3: memref<1x16xf32, #tpu.memory_space<vmem>>, %arg4: memref<256x16xf32, #tpu.memory_space<vmem>>) attributes {dimension_semantics = [#tpu.dimension_semantics<arbitrary>], iteration_bounds = array<i64: 1>, scalar_prefetch = 0 : i64, scratch_operands = 0 : i64, tpu.core_type = #tpu.core_type<tc>, window_params = [{pipeline_mode = #tpu.pipeline_mode<synchronous>, transform_indices = @transform_0, window_bounds = array<i64: 256, 8>}, {pipeline_mode = #tpu.pipeline_mode<synchronous>, transform_indices = @transform_1, window_bounds = array<i64: 8, 16>}, {pipeline_mode = #tpu.pipeline_mode<synchronous>, transform_indices = @transform_2, window_bounds = array<i64: 1, 16>}, {pipeline_mode = #tpu.pipeline_mode<synchronous>, transform_indices = @transform_3, window_bounds = array<i64: 256, 16>}]} {
    %c0 = arith.constant 0 : index
    %c0_0 = arith.constant 0 : index
    %0 = vector.load %arg1[%c0, %c0_0] : memref<256x8xbf16, #tpu.memory_space<vmem>>, vector<256x8xbf16>
    %c0_1 = arith.constant 0 : index
    %c0_2 = arith.constant 0 : index
    %1 = vector.load %arg2[%c0_1, %c0_2] : memref<8x16xbf16, #tpu.memory_space<vmem>>, vector<8x16xbf16>
    %cst = arith.constant dense<0.000000e+00> : vector<256x16xf32>
    %2 = tpu.matmul %0, %1, %cst {dimension_numbers = #tpu.dot_dimension_numbers<[1], [0], [0], [1], [0, 0, 1, 1], [], []>} : vector<256x8xbf16>, vector<8x16xbf16>, vector<256x16xf32> -> vector<256x16xf32>
    %c0_3 = arith.constant 0 : index
    %c0_4 = arith.constant 0 : index
    %3 = vector.load %arg3[%c0_3, %c0_4] : memref<1x16xf32, #tpu.memory_space<vmem>>, vector<1x16xf32>
    %4 = vector.broadcast %3 : vector<1x16xf32> to vector<256x16xf32>
    %5 = arith.addf %2, %4 : vector<256x16xf32>
    %c0_5 = arith.constant 0 : index
    %c0_6 = arith.constant 0 : index
    %6 = vector.load %arg4[%c0_5, %c0_6] : memref<256x16xf32, #tpu.memory_space<vmem>>, vector<256x16xf32>
    tpu.vector_store %arg4[%c0_5, %c0_6], %5 {strides = array<i32>} : memref<256x16xf32, #tpu.memory_space<vmem>>, vector<256x16xf32>,
    return
  }
  func.func @transform_0(%arg0: i32) -> (i32, i32) {
    %c0_i32 = arith.constant 0 : i32
    %c0_i32_0 = arith.constant 0 : i32
    %c0_i32_1 = arith.constant 0 : i32
    return %c0_i32, %c0_i32_0 : i32, i32
  }
  func.func @transform_1(%arg0: i32) -> (i32, i32) {
    %c0_i32 = arith.constant 0 : i32
    %c0_i32_0 = arith.constant 0 : i32
    %c0_i32_1 = arith.constant 0 : i32
    return %c0_i32, %c0_i32_0 : i32, i32
  }
  func.func @transform_2(%arg0: i32) -> (i32, i32) {
    %c0_i32 = arith.constant 0 : i32
    %c0_i32_0 = arith.constant 0 : i32
    %c0_i32_1 = arith.constant 0 : i32
    return %c0_i32, %c0_i32_0 : i32, i32
  }
  func.func @transform_3(%arg0: i32) -> (i32, i32) {
    %c0_i32 = arith.constant 0 : i32
    %c0_i32_0 = arith.constant 0 : i32
    %c0_i32_1 = arith.constant 0 : i32
    return %c0_i32, %c0_i32_0 : i32, i32
  }
}

module attributes {stable_mosaic.version = 11 : i64} {
  func.func @_ln_kernel(%arg0: i32, %arg1: memref<256x32xf32, #tpu.memory_space<vmem>>, %arg2: memref<1x32xf32, #tpu.memory_space<vmem>>, %arg3: memref<1x32xf32, #tpu.memory_space<vmem>>, %arg4: memref<256x32xf32, #tpu.memory_space<vmem>>) attributes {dimension_semantics = [#tpu.dimension_semantics<arbitrary>], iteration_bounds = array<i64: 1>, scalar_prefetch = 0 : i64, scratch_operands = 0 : i64, tpu.core_type = #tpu.core_type<tc>, window_params = [{pipeline_mode = #tpu.pipeline_mode<synchronous>, transform_indices = @transform_0, window_bounds = array<i64: 256, 32>}, {pipeline_mode = #tpu.pipeline_mode<synchronous>, transform_indices = @transform_1, window_bounds = array<i64: 1, 32>}, {pipeline_mode = #tpu.pipeline_mode<synchronous>, transform_indices = @transform_2, window_bounds = array<i64: 1, 32>}, {pipeline_mode = #tpu.pipeline_mode<synchronous>, transform_indices = @transform_3, window_bounds = array<i64: 256, 32>}]} {
    %c0 = arith.constant 0 : index
    %c0_0 = arith.constant 0 : index
    %0 = vector.load %arg1[%c0, %c0_0] : memref<256x32xf32, #tpu.memory_space<vmem>>, vector<256x32xf32>
    %cst = arith.constant dense<0.000000e+00> : vector<256xf32>
    %1 = vector.multi_reduction <add>, %0, %cst [1] : vector<256x32xf32> to vector<256xf32>
    %2 = vector.shape_cast %1 : vector<256xf32> to vector<256x1xf32>
    %cst_1 = arith.constant 3.200000e+01 : f32
    %3 = vector.broadcast %cst_1 : f32 to vector<256x1xf32>
    %4 = arith.divf %2, %3 : vector<256x1xf32>
    %5 = vector.broadcast %4 : vector<256x1xf32> to vector<256x32xf32>
    %6 = arith.subf %0, %5 : vector<256x32xf32>
    %7 = arith.mulf %6, %6 : vector<256x32xf32>
    %cst_2 = arith.constant dense<0.000000e+00> : vector<256xf32>
    %8 = vector.multi_reduction <add>, %7, %cst_2 [1] : vector<256x32xf32> to vector<256xf32>
    %9 = vector.shape_cast %8 : vector<256xf32> to vector<256x1xf32>
    %cst_3 = arith.constant 3.200000e+01 : f32
    %10 = vector.broadcast %cst_3 : f32 to vector<256x1xf32>
    %11 = arith.divf %9, %10 : vector<256x1xf32>
    %12 = vector.broadcast %4 : vector<256x1xf32> to vector<256x32xf32>
    %13 = arith.subf %0, %12 : vector<256x32xf32>
    %cst_4 = arith.constant 9.99999997E-7 : f32
    %14 = vector.broadcast %cst_4 : f32 to vector<256x1xf32>
    %15 = arith.addf %11, %14 : vector<256x1xf32>
    %16 = math.rsqrt %15 : vector<256x1xf32>
    %17 = vector.broadcast %16 : vector<256x1xf32> to vector<256x32xf32>
    %18 = arith.mulf %13, %17 : vector<256x32xf32>
    %c0_5 = arith.constant 0 : index
    %c0_6 = arith.constant 0 : index
    %19 = vector.load %arg2[%c0_5, %c0_6] : memref<1x32xf32, #tpu.memory_space<vmem>>, vector<1x32xf32>
    %20 = vector.broadcast %19 : vector<1x32xf32> to vector<256x32xf32>
    %21 = arith.mulf %18, %20 : vector<256x32xf32>
    %c0_7 = arith.constant 0 : index
    %c0_8 = arith.constant 0 : index
    %22 = vector.load %arg3[%c0_7, %c0_8] : memref<1x32xf32, #tpu.memory_space<vmem>>, vector<1x32xf32>
    %23 = vector.broadcast %22 : vector<1x32xf32> to vector<256x32xf32>
    %24 = arith.addf %21, %23 : vector<256x32xf32>
    %c0_9 = arith.constant 0 : index
    %c0_10 = arith.constant 0 : index
    %25 = vector.load %arg4[%c0_9, %c0_10] : memref<256x32xf32, #tpu.memory_space<vmem>>, vector<256x32xf32>
    tpu.vector_store %arg4[%c0_9, %c0_10], %24 {strides = array<i32>} : memref<256x32xf32, #tpu.memory_space<vmem>>, vector<256x32xf32>,
    return
  }
  func.func @transform_0(%arg0: i32) -> (i32, i32) {
    %c0_i32 = arith.constant 0 : i32
    %c0_i32_0 = arith.constant 0 : i32
    %c0_i32_1 = arith.constant 0 : i32
    return %c0_i32, %c0_i32_0 : i32, i32
  }
  func.func @transform_1(%arg0: i32) -> (i32, i32) {
    %c0_i32 = arith.constant 0 : i32
    %c0_i32_0 = arith.constant 0 : i32
    %c0_i32_1 = arith.constant 0 : i32
    return %c0_i32, %c0_i32_0 : i32, i32
  }
  func.func @transform_2(%arg0: i32) -> (i32, i32) {
    %c0_i32 = arith.constant 0 : i32
    %c0_i32_0 = arith.constant 0 : i32
    %c0_i32_1 = arith.constant 0 : i32
    return %c0_i32, %c0_i32_0 : i32, i32
  }
  func.func @transform_3(%arg0: i32) -> (i32, i32) {
    %c0_i32 = arith.constant 0 : i32
    %c0_i32_0 = arith.constant 0 : i32
    %c0_i32_1 = arith.constant 0 : i32
    return %c0_i32, %c0_i32_0 : i32, i32
  }
}

module attributes {stable_mosaic.version = 11 : i64} {
  func.func @_mm_fused_kernel(%arg0: i32, %arg1: memref<256x32xbf16, #tpu.memory_space<vmem>>, %arg2: memref<32x16xbf16, #tpu.memory_space<vmem>>, %arg3: memref<1x16xf32, #tpu.memory_space<vmem>>, %arg4: memref<256x16xf32, #tpu.memory_space<vmem>>) attributes {dimension_semantics = [#tpu.dimension_semantics<arbitrary>], iteration_bounds = array<i64: 1>, scalar_prefetch = 0 : i64, scratch_operands = 0 : i64, tpu.core_type = #tpu.core_type<tc>, window_params = [{pipeline_mode = #tpu.pipeline_mode<synchronous>, transform_indices = @transform_0, window_bounds = array<i64: 256, 32>}, {pipeline_mode = #tpu.pipeline_mode<synchronous>, transform_indices = @transform_1, window_bounds = array<i64: 32, 16>}, {pipeline_mode = #tpu.pipeline_mode<synchronous>, transform_indices = @transform_2, window_bounds = array<i64: 1, 16>}, {pipeline_mode = #tpu.pipeline_mode<synchronous>, transform_indices = @transform_3, window_bounds = array<i64: 256, 16>}]} {
    %c0 = arith.constant 0 : index
    %c0_0 = arith.constant 0 : index
    %0 = vector.load %arg1[%c0, %c0_0] : memref<256x32xbf16, #tpu.memory_space<vmem>>, vector<256x32xbf16>
    %c0_1 = arith.constant 0 : index
    %c0_2 = arith.constant 0 : index
    %1 = vector.load %arg2[%c0_1, %c0_2] : memref<32x16xbf16, #tpu.memory_space<vmem>>, vector<32x16xbf16>
    %cst = arith.constant dense<0.000000e+00> : vector<256x16xf32>
    %2 = tpu.matmul %0, %1, %cst {dimension_numbers = #tpu.dot_dimension_numbers<[1], [0], [0], [1], [0, 0, 1, 1], [], []>} : vector<256x32xbf16>, vector<32x16xbf16>, vector<256x16xf32> -> vector<256x16xf32>
    %c0_3 = arith.constant 0 : index
    %c0_4 = arith.constant 0 : index
    %3 = vector.load %arg3[%c0_3, %c0_4] : memref<1x16xf32, #tpu.memory_space<vmem>>, vector<1x16xf32>
    %4 = vector.broadcast %3 : vector<1x16xf32> to vector<256x16xf32>
    %5 = arith.addf %2, %4 : vector<256x16xf32>
    %c0_5 = arith.constant 0 : index
    %c0_6 = arith.constant 0 : index
    %6 = vector.load %arg4[%c0_5, %c0_6] : memref<256x16xf32, #tpu.memory_space<vmem>>, vector<256x16xf32>
    tpu.vector_store %arg4[%c0_5, %c0_6], %5 {strides = array<i32>} : memref<256x16xf32, #tpu.memory_space<vmem>>, vector<256x16xf32>,
    return
  }
  func.func @transform_0(%arg0: i32) -> (i32, i32) {
    %c0_i32 = arith.constant 0 : i32
    %c0_i32_0 = arith.constant 0 : i32
    %c0_i32_1 = arith.constant 0 : i32
    return %c0_i32, %c0_i32_0 : i32, i32
  }
  func.func @transform_1(%arg0: i32) -> (i32, i32) {
    %c0_i32 = arith.constant 0 : i32
    %c0_i32_0 = arith.constant 0 : i32
    %c0_i32_1 = arith.constant 0 : i32
    return %c0_i32, %c0_i32_0 : i32, i32
  }
  func.func @transform_2(%arg0: i32) -> (i32, i32) {
    %c0_i32 = arith.constant 0 : i32
    %c0_i32_0 = arith.constant 0 : i32
    %c0_i32_1 = arith.constant 0 : i32
    return %c0_i32, %c0_i32_0 : i32, i32
  }
  func.func @transform_3(%arg0: i32) -> (i32, i32) {
    %c0_i32 = arith.constant 0 : i32
    %c0_i32_0 = arith.constant 0 : i32
    %c0_i32_1 = arith.constant 0 : i32
    return %c0_i32, %c0_i32_0 : i32, i32
  }
}

module attributes {stable_mosaic.version = 11 : i64} {
  func.func @_bmm_kernel(%arg0: i32, %arg1: memref<1x64x36xf32, #tpu.memory_space<vmem>>, %arg2: memref<1x36x4xf32, #tpu.memory_space<vmem>>, %arg3: memref<1x64x4xf32, #tpu.memory_space<vmem>>) attributes {dimension_semantics = [#tpu.dimension_semantics<parallel>], iteration_bounds = array<i64: 8>, scalar_prefetch = 0 : i64, scratch_operands = 0 : i64, tpu.core_type = #tpu.core_type<tc>, window_params = [{transform_indices = @transform_0, window_bounds = array<i64: 1, 64, 36>}, {transform_indices = @transform_1, window_bounds = array<i64: 1, 36, 4>}, {transform_indices = @transform_2, window_bounds = array<i64: 1, 64, 4>}]} {
    %c0 = arith.constant 0 : index
    %c0_0 = arith.constant 0 : index
    %c0_1 = arith.constant 0 : index
    %0 = vector.load %arg1[%c0, %c0_0, %c0_1] : memref<1x64x36xf32, #tpu.memory_space<vmem>>, vector<1x64x36xf32>
    %1 = vector.shape_cast %0 : vector<1x64x36xf32> to vector<64x36xf32>
    %c0_2 = arith.constant 0 : index
    %c0_3 = arith.constant 0 : index
    %c0_4 = arith.constant 0 : index
    %2 = vector.load %arg2[%c0_2, %c0_3, %c0_4] : memref<1x36x4xf32, #tpu.memory_space<vmem>>, vector<1x36x4xf32>
    %3 = vector.shape_cast %2 : vector<1x36x4xf32> to vector<36x4xf32>
    %cst = arith.constant dense<0.000000e+00> : vector<64x4xf32>
    %4 = tpu.matmul %1, %3, %cst {dimension_numbers = #tpu.dot_dimension_numbers<[1], [0], [0], [1], [0, 0, 1, 1], [], []>} : vector<64x36xf32>, vector<36x4xf32>, vector<64x4xf32> -> vector<64x4xf32>
    %c0_5 = arith.constant 0 : index
    %c0_6 = arith.constant 0 : index
    %c0_7 = arith.constant 0 : index
    %5 = vector.load %arg3[%c0_5, %c0_6, %c0_7] : memref<1x64x4xf32, #tpu.memory_space<vmem>>, vector<1x64x4xf32>
    %6 = vector.shape_cast %5 : vector<1x64x4xf32> to vector<64x4xf32>
    %7 = vector.shape_cast %4 : vector<64x4xf32> to vector<1x64x4xf32>
    tpu.vector_store %arg3[%c0_5, %c0_6, %c0_7], %7 {strides = array<i32>} : memref<1x64x4xf32, #tpu.memory_space<vmem>>, vector<1x64x4xf32>,
    return
  }
  func.func @transform_0(%arg0: i32) -> (i32, i32, i32) {
    %c0_i32 = arith.constant 0 : i32
    %c0_i32_0 = arith.constant 0 : i32
    %c0_i32_1 = arith.constant 0 : i32
    return %arg0, %c0_i32, %c0_i32_0 : i32, i32, i32
  }
  func.func @transform_1(%arg0: i32) -> (i32, i32, i32) {
    %c0_i32 = arith.constant 0 : i32
    %c0_i32_0 = arith.constant 0 : i32
    %c0_i32_1 = arith.constant 0 : i32
    return %arg0, %c0_i32, %c0_i32_0 : i32, i32, i32
  }
  func.func @transform_2(%arg0: i32) -> (i32, i32, i32) {
    %c0_i32 = arith.constant 0 : i32
    %c0_i32_0 = arith.constant 0 : i32
    %c0_i32_1 = arith.constant 0 : i32
    return %arg0, %c0_i32, %c0_i32_0 : i32, i32, i32
  }
}

module attributes {stable_mosaic.version = 11 : i64} {
  func.func @_mm_fused_kernel(%arg0: i32, %arg1: memref<64x32xbf16, #tpu.memory_space<vmem>>, %arg2: memref<32x32xbf16, #tpu.memory_space<vmem>>, %arg3: memref<1x32xf32, #tpu.memory_space<vmem>>, %arg4: memref<64x32xf32, #tpu.memory_space<vmem>>, %arg5: memref<1x32xf32, #tpu.memory_space<vmem>>, %arg6: memref<1x32xf32, #tpu.memory_space<vmem>>, %arg7: memref<64x32xf32, #tpu.memory_space<vmem>>) attributes {dimension_semantics = [#tpu.dimension_semantics<arbitrary>], iteration_bounds = array<i64: 1>, scalar_prefetch = 0 : i64, scratch_operands = 0 : i64, tpu.core_type = #tpu.core_type<tc>, window_params = [{pipeline_mode = #tpu.pipeline_mode<synchronous>, transform_indices = @transform_0, window_bounds = array<i64: 64, 32>}, {pipeline_mode = #tpu.pipeline_mode<synchronous>, transform_indices = @transform_1, window_bounds = array<i64: 32, 32>}, {pipeline_mode = #tpu.pipeline_mode<synchronous>, transform_indices = @transform_2, window_bounds = array<i64: 1, 32>}, {pipeline_mode = #tpu.pipeline_mode<synchronous>, transform_indices = @transform_3, window_bounds = array<i64: 64, 32>}, {pipeline_mode = #tpu.pipeline_mode<synchronous>, transform_indices = @transform_4, window_bounds = array<i64: 1, 32>}, {pipeline_mode = #tpu.pipeline_mode<synchronous>, transform_indices = @transform_5, window_bounds = array<i64: 1, 32>}, {pipeline_mode = #tpu.pipeline_mode<synchronous>, transform_indices = @transform_6, window_bounds = array<i64: 64, 32>}]} {
    %c0 = arith.constant 0 : index
    %c0_0 = arith.constant 0 : index
    %0 = vector.load %arg1[%c0, %c0_0] : memref<64x32xbf16, #tpu.memory_space<vmem>>, vector<64x32xbf16>
    %c0_1 = arith.constant 0 : index
    %c0_2 = arith.constant 0 : index
    %1 = vector.load %arg2[%c0_1, %c0_2] : memref<32x32xbf16, #tpu.memory_space<vmem>>, vector<32x32xbf16>
    %cst = arith.constant dense<0.000000e+00> : vector<64x32xf32>
    %2 = tpu.matmul %0, %1, %cst {dimension_numbers = #tpu.dot_dimension_numbers<[1], [0], [0], [1], [0, 0, 1, 1], [], []>} : vector<64x32xbf16>, vector<32x32xbf16>, vector<64x32xf32> -> vector<64x32xf32>
    %c0_3 = arith.constant 0 : index
    %c0_4 = arith.constant 0 : index
    %3 = vector.load %arg3[%c0_3, %c0_4] : memref<1x32xf32, #tpu.memory_space<vmem>>, vector<1x32xf32>
    %4 = vector.broadcast %3 : vector<1x32xf32> to vector<64x32xf32>
    %5 = arith.addf %2, %4 : vector<64x32xf32>
    %c0_5 = arith.constant 0 : index
    %c0_6 = arith.constant 0 : index
    %6 = vector.load %arg4[%c0_5, %c0_6] : memref<64x32xf32, #tpu.memory_space<vmem>>, vector<64x32xf32>
    %7 = arith.addf %5, %6 : vector<64x32xf32>
    %cst_7 = arith.constant dense<0.000000e+00> : vector<64xf32>
    %8 = vector.multi_reduction <add>, %7, %cst_7 [1] : vector<64x32xf32> to vector<64xf32>
    %9 = vector.shape_cast %8 : vector<64xf32> to vector<64x1xf32>
    %cst_8 = arith.constant 3.200000e+01 : f32
    %10 = vector.broadcast %cst_8 : f32 to vector<64x1xf32>
    %11 = arith.divf %9, %10 : vector<64x1xf32>
    %12 = vector.broadcast %11 : vector<64x1xf32> to vector<64x32xf32>
    %13 = arith.subf %7, %12 : vector<64x32xf32>
    %14 = arith.mulf %13, %13 : vector<64x32xf32>
    %cst_9 = arith.constant dense<0.000000e+00> : vector<64xf32>
    %15 = vector.multi_reduction <add>, %14, %cst_9 [1] : vector<64x32xf32> to vector<64xf32>
    %16 = vector.shape_cast %15 : vector<64xf32> to vector<64x1xf32>
    %cst_10 = arith.constant 3.200000e+01 : f32
    %17 = vector.broadcast %cst_10 : f32 to vector<64x1xf32>
    %18 = arith.divf %16, %17 : vector<64x1xf32>
    %19 = vector.broadcast %11 : vector<64x1xf32> to vector<64x32xf32>
    %20 = arith.subf %7, %19 : vector<64x32xf32>
    %cst_11 = arith.constant 9.99999974E-6 : f32
    %21 = vector.broadcast %cst_11 : f32 to vector<64x1xf32>
    %22 = arith.addf %18, %21 : vector<64x1xf32>
    %23 = math.rsqrt %22 : vector<64x1xf32>
    %24 = vector.broadcast %23 : vector<64x1xf32> to vector<64x32xf32>
    %25 = arith.mulf %20, %24 : vector<64x32xf32>
    %c0_12 = arith.constant 0 : index
    %c0_13 = arith.constant 0 : index
    %26 = vector.load %arg5[%c0_12, %c0_13] : memref<1x32xf32, #tpu.memory_space<vmem>>, vector<1x32xf32>
    %27 = vector.broadcast %26 : vector<1x32xf32> to vector<64x32xf32>
    %28 = arith.mulf %25, %27 : vector<64x32xf32>
    %c0_14 = arith.constant 0 : index
    %c0_15 = arith.constant 0 : index
    %29 = vector.load %arg6[%c0_14, %c0_15] : memref<1x32xf32, #tpu.memory_space<vmem>>, vector<1x32xf32>
    %30 = vector.broadcast %29 : vector<1x32xf32> to vector<64x32xf32>
    %31 = arith.addf %28, %30 : vector<64x32xf32>
    %c0_16 = arith.constant 0 : index
    %c0_17 = arith.constant 0 : index
    %32 = vector.load %arg7[%c0_16, %c0_17] : memref<64x32xf32, #tpu.memory_space<vmem>>, vector<64x32xf32>
    tpu.vector_store %arg7[%c0_16, %c0_17], %31 {strides = array<i32>} : memref<64x32xf32, #tpu.memory_space<vmem>>, vector<64x32xf32>,
    return
  }
  func.func @transform_0(%arg0: i32) -> (i32, i32) {
    %c0_i32 = arith.constant 0 : i32
    %c0_i32_0 = arith.constant 0 : i32
    %c0_i32_1 = arith.constant 0 : i32
    return %c0_i32, %c0_i32_0 : i32, i32
  }
  func.func @transform_1(%arg0: i32) -> (i32, i32) {
    %c0_i32 = arith.constant 0 : i32
    %c0_i32_0 = arith.constant 0 : i32
    %c0_i32_1 = arith.constant 0 : i32
    return %c0_i32, %c0_i32_0 : i32, i32
  }
  func.func @transform_2(%arg0: i32) -> (i32, i32) {
    %c0_i32 = arith.constant 0 : i32
    %c0_i32_0 = arith.constant 0 : i32
    %c0_i32_1 = arith.constant 0 : i32
    return %c0_i32, %c0_i32_0 : i32, i32
  }
  func.func @transform_3(%arg0: i32) -> (i32, i32) {
    %c0_i32 = arith.constant 0 : i32
    %c0_i32_0 = arith.constant 0 : i32
    %c0_i32_1 = arith.constant 0 : i32
    return %c0_i32, %c0_i32_0 : i32, i32
  }
  func.func @transform_4(%arg0: i32) -> (i32, i32) {
    %c0_i32 = arith.constant 0 : i32
    %c0_i32_0 = arith.constant 0 : i32
    %c0_i32_1 = arith.constant 0 : i32
    return %c0_i32, %c0_i32_0 : i32, i32
  }
  func.func @transform_5(%arg0: i32) -> (i32, i32) {
    %c0_i32 = arith.constant 0 : i32
    %c0_i32_0 = arith.constant 0 : i32
    %c0_i32_1 = arith.constant 0 : i32
    return %c0_i32, %c0_i32_0 : i32, i32
  }
  func.func @transform_6(%arg0: i32) -> (i32, i32) {
    %c0_i32 = arith.constant 0 : i32
    %c0_i32_0 = arith.constant 0 : i32
    %c0_i32_1 = arith.constant 0 : i32
    return %c0_i32, %c0_i32_0 : i32, i32
  }
}

module attributes {stable_mosaic.version = 11 : i64} {
  func.func @_mm_fused_kernel(%arg0: i32, %arg1: memref<64x288xbf16, #tpu.memory_space<vmem>>, %arg2: memref<288x128xbf16, #tpu.memory_space<vmem>>, %arg3: memref<1x128xf32, #tpu.memory_space<vmem>>, %arg4: memref<64x128xf32, #tpu.memory_space<vmem>>) attributes {dimension_semantics = [#tpu.dimension_semantics<arbitrary>], iteration_bounds = array<i64: 1>, scalar_prefetch = 0 : i64, scratch_operands = 0 : i64, tpu.core_type = #tpu.core_type<tc>, window_params = [{pipeline_mode = #tpu.pipeline_mode<synchronous>, transform_indices = @transform_0, window_bounds = array<i64: 64, 288>}, {pipeline_mode = #tpu.pipeline_mode<synchronous>, transform_indices = @transform_1, window_bounds = array<i64: 288, 128>}, {pipeline_mode = #tpu.pipeline_mode<synchronous>, transform_indices = @transform_2, window_bounds = array<i64: 1, 128>}, {pipeline_mode = #tpu.pipeline_mode<synchronous>, transform_indices = @transform_3, window_bounds = array<i64: 64, 128>}]} {
    %c0 = arith.constant 0 : index
    %c0_0 = arith.constant 0 : index
    %0 = vector.load %arg1[%c0, %c0_0] : memref<64x288xbf16, #tpu.memory_space<vmem>>, vector<64x288xbf16>
    %c0_1 = arith.constant 0 : index
    %c0_2 = arith.constant 0 : index
    %1 = vector.load %arg2[%c0_1, %c0_2] : memref<288x128xbf16, #tpu.memory_space<vmem>>, vector<288x128xbf16>
    %cst = arith.constant dense<0.000000e+00> : vector<64x128xf32>
    %2 = tpu.matmul %0, %1, %cst {dimension_numbers = #tpu.dot_dimension_numbers<[1], [0], [0], [1], [0, 0, 1, 1], [], []>} : vector<64x288xbf16>, vector<288x128xbf16>, vector<64x128xf32> -> vector<64x128xf32>
    %c0_3 = arith.constant 0 : index
    %c0_4 = arith.constant 0 : index
    %3 = vector.load %arg3[%c0_3, %c0_4] : memref<1x128xf32, #tpu.memory_space<vmem>>, vector<1x128xf32>
    %4 = vector.broadcast %3 : vector<1x128xf32> to vector<64x128xf32>
    %5 = arith.addf %2, %4 : vector<64x128xf32>
    %cst_5 = arith.constant 0.000000e+00 : f32
    %6 = vector.broadcast %cst_5 : f32 to vector<64x128xf32>
    %7 = arith.cmpf oge, %5, %6 : vector<64x128xf32>
    %cst_6 = arith.constant 0.00999999977 : f32
    %8 = vector.broadcast %cst_6 : f32 to vector<64x128xf32>
    %9 = arith.mulf %8, %5 : vector<64x128xf32>
    %10 = arith.select %7, %5, %9 : vector<64x128xi1>, vector<64x128xf32>
    %c0_7 = arith.constant 0 : index
    %c0_8 = arith.constant 0 : index
    %11 = vector.load %arg4[%c0_7, %c0_8] : memref<64x128xf32, #tpu.memory_space<vmem>>, vector<64x128xf32>
    tpu.vector_store %arg4[%c0_7, %c0_8], %10 {strides = array<i32>} : memref<64x128xf32, #tpu.memory_space<vmem>>, vector<64x128xf32>,
    return
  }
  func.func @transform_0(%arg0: i32) -> (i32, i32) {
    %c0_i32 = arith.constant 0 : i32
    %c0_i32_0 = arith.constant 0 : i32
    %c0_i32_1 = arith.constant 0 : i32
    return %c0_i32, %c0_i32_0 : i32, i32
  }
  func.func @transform_1(%arg0: i32) -> (i32, i32) {
    %c0_i32 = arith.constant 0 : i32
    %c0_i32_0 = arith.constant 0 : i32
    %c0_i32_1 = arith.constant 0 : i32
    return %c0_i32, %c0_i32_0 : i32, i32
  }
  func.func @transform_2(%arg0: i32) -> (i32, i32) {
    %c0_i32 = arith.constant 0 : i32
    %c0_i32_0 = arith.constant 0 : i32
    %c0_i32_1 = arith.constant 0 : i32
    return %c0_i32, %c0_i32_0 : i32, i32
  }
  func.func @transform_3(%arg0: i32) -> (i32, i32) {
    %c0_i32 = arith.constant 0 : i32
    %c0_i32_0 = arith.constant 0 : i32
    %c0_i32_1 = arith.constant 0 : i32
    return %c0_i32, %c0_i32_0 : i32, i32
  }
}

module attributes {stable_mosaic.version = 11 : i64} {
  func.func @_twoway_attn_kernel(%arg0: i32, %arg1: memref<1x8x32xf32, #tpu.memory_space<vmem>>, %arg2: memref<1x64x32xf32, #tpu.memory_space<vmem>>, %arg3: memref<1x64x32xf32, #tpu.memory_space<vmem>>, %arg4: memref<32x32xf32, #tpu.memory_space<vmem>>, %arg5: memref<1x32xf32, #tpu.memory_space<vmem>>, %arg6: memref<32x32xf32, #tpu.memory_space<vmem>>, %arg7: memref<1x32xf32, #tpu.memory_space<vmem>>, %arg8: memref<32x32xf32, #tpu.memory_space<vmem>>, %arg9: memref<1x32xf32, #tpu.memory_space<vmem>>, %arg10: memref<32x32xf32, #tpu.memory_space<vmem>>, %arg11: memref<1x32xf32, #tpu.memory_space<vmem>>, %arg12: memref<32x32xf32, #tpu.memory_space<vmem>>, %arg13: memref<1x32xf32, #tpu.memory_space<vmem>>, %arg14: memref<32x32xf32, #tpu.memory_space<vmem>>, %arg15: memref<1x32xf32, #tpu.memory_space<vmem>>, %arg16: memref<1x8x32xf32, #tpu.memory_space<vmem>>, %arg17: memref<1x64x32xf32, #tpu.memory_space<vmem>>) attributes {dimension_semantics = [#tpu.dimension_semantics<parallel>], iteration_bounds = array<i64: 2>, scalar_prefetch = 0 : i64, scratch_operands = 0 : i64, tpu.core_type = #tpu.core_type<tc>, window_params = [{transform_indices = @transform_0, window_bounds = array<i64: 1, 8, 32>}, {transform_indices = @transform_1, window_bounds = array<i64: 1, 64, 32>}, {transform_indices = @transform_2, window_bounds = array<i64: 1, 64, 32>}, {pipeline_mode = #tpu.pipeline_mode<synchronous>, transform_indices = @transform_3, window_bounds = array<i64: 32, 32>}, {pipeline_mode = #tpu.pipeline_mode<synchronous>, transform_indices = @transform_4, window_bounds = array<i64: 1, 32>}, {pipeline_mode = #tpu.pipeline_mode<synchronous>, transform_indices = @transform_5, window_bounds = array<i64: 32, 32>}, {pipeline_mode = #tpu.pipeline_mode<synchronous>, transform_indices = @transform_6, window_bounds = array<i64: 1, 32>}, {pipeline_mode = #tpu.pipeline_mode<synchronous>, transform_indices = @transform_7, window_bounds = array<i64: 32, 32>}, {pipeline_mode = #tpu.pipeline_mode<synchronous>, transform_indices = @transform_8, window_bounds = array<i64: 1, 32>}, {pipeline_mode = #tpu.pipeline_mode<synchronous>, transform_indices = @transform_9, window_bounds = array<i64: 32, 32>}, {pipeline_mode = #tpu.pipeline_mode<synchronous>, transform_indices = @transform_10, window_bounds = array<i64: 1, 32>}, {pipeline_mode = #tpu.pipeline_mode<synchronous>, transform_indices = @transform_11, window_bounds = array<i64: 32, 32>}, {pipeline_mode = #tpu.pipeline_mode<synchronous>, transform_indices = @transform_12, window_bounds = array<i64: 1, 32>}, {pipeline_mode = #tpu.pipeline_mode<synchronous>, transform_indices = @transform_13, window_bounds = array<i64: 32, 32>}, {pipeline_mode = #tpu.pipeline_mode<synchronous>, transform_indices = @transform_14, window_bounds = array<i64: 1, 32>}, {transform_indices = @transform_15, window_bounds = array<i64: 1, 8, 32>}, {transform_indices = @transform_16, window_bounds = array<i64: 1, 64, 32>}]} {
    %c0 = arith.constant 0 : index
    %c0_0 = arith.constant 0 : index
    %c0_1 = arith.constant 0 : index
    %0 = vector.load %arg1[%c0, %c0_0, %c0_1] : memref<1x8x32xf32, #tpu.memory_space<vmem>>, vector<1x8x32xf32>
    %1 = vector.shape_cast %0 : vector<1x8x32xf32> to vector<8x32xf32>
    %c0_2 = arith.constant 0 : index
    %c0_3 = arith.constant 0 : index
    %c0_4 = arith.constant 0 : index
    %2 = vector.load %arg2[%c0_2, %c0_3, %c0_4] : memref<1x64x32xf32, #tpu.memory_space<vmem>>, vector<1x64x32xf32>
    %3 = vector.shape_cast %2 : vector<1x64x32xf32> to vector<64x32xf32>
    %c0_5 = arith.constant 0 : index
    %c0_6 = arith.constant 0 : index
    %c0_7 = arith.constant 0 : index
    %4 = vector.load %arg3[%c0_5, %c0_6, %c0_7] : memref<1x64x32xf32, #tpu.memory_space<vmem>>, vector<1x64x32xf32>
    %5 = vector.shape_cast %4 : vector<1x64x32xf32> to vector<64x32xf32>
    %6 = arith.addf %3, %5 : vector<64x32xf32>
    %c0_8 = arith.constant 0 : index
    %c0_9 = arith.constant 0 : index
    %7 = vector.load %arg4[%c0_8, %c0_9] : memref<32x32xf32, #tpu.memory_space<vmem>>, vector<32x32xf32>
    %cst = arith.constant dense<0.000000e+00> : vector<8x32xf32>
    %8 = tpu.matmul %1, %7, %cst {dimension_numbers = #tpu.dot_dimension_numbers<[1], [0], [0], [1], [0, 0, 1, 1], [], []>} : vector<8x32xf32>, vector<32x32xf32>, vector<8x32xf32> -> vector<8x32xf32>
    %c0_10 = arith.constant 0 : index
    %c0_11 = arith.constant 0 : index
    %9 = vector.load %arg5[%c0_10, %c0_11] : memref<1x32xf32, #tpu.memory_space<vmem>>, vector<1x32xf32>
    %10 = vector.broadcast %9 : vector<1x32xf32> to vector<8x32xf32>
    %11 = arith.addf %8, %10 : vector<8x32xf32>
    %c0_12 = arith.constant 0 : index
    %c0_13 = arith.constant 0 : index
    %12 = vector.load %arg6[%c0_12, %c0_13] : memref<32x32xf32, #tpu.memory_space<vmem>>, vector<32x32xf32>
    %cst_14 = arith.constant dense<0.000000e+00> : vector<64x32xf32>
    %13 = tpu.matmul %6, %12, %cst_14 {dimension_numbers = #tpu.dot_dimension_numbers<[1], [0], [0], [1], [0, 0, 1, 1], [], []>} : vector<64x32xf32>, vector<32x32xf32>, vector<64x32xf32> -> vector<64x32xf32>
    %c0_15 = arith.constant 0 : index
    %c0_16 = arith.constant 0 : index
    %14 = vector.load %arg7[%c0_15, %c0_16] : memref<1x32xf32, #tpu.memory_space<vmem>>, vector<1x32xf32>
    %15 = vector.broadcast %14 : vector<1x32xf32> to vector<64x32xf32>
    %16 = arith.addf %13, %15 : vector<64x32xf32>
    %c0_17 = arith.constant 0 : index
    %c0_18 = arith.constant 0 : index
    %17 = vector.load %arg8[%c0_17, %c0_18] : memref<32x32xf32, #tpu.memory_space<vmem>>, vector<32x32xf32>
    %cst_19 = arith.constant dense<0.000000e+00> : vector<64x32xf32>
    %18 = tpu.matmul %3, %17, %cst_19 {dimension_numbers = #tpu.dot_dimension_numbers<[1], [0], [0], [1], [0, 0, 1, 1], [], []>} : vector<64x32xf32>, vector<32x32xf32>, vector<64x32xf32> -> vector<64x32xf32>
    %c0_20 = arith.constant 0 : index
    %c0_21 = arith.constant 0 : index
    %19 = vector.load %arg9[%c0_20, %c0_21] : memref<1x32xf32, #tpu.memory_space<vmem>>, vector<1x32xf32>
    %20 = vector.broadcast %19 : vector<1x32xf32> to vector<64x32xf32>
    %21 = arith.addf %18, %20 : vector<64x32xf32>
    %cst_22 = arith.constant dense<0.000000e+00> : vector<8x64xf32>
    %22 = tpu.matmul %11, %16, %cst_22 {dimension_numbers = #tpu.dot_dimension_numbers<[1], [1], [0], [0], [0, 0, 1, 0], [], []>} : vector<8x32xf32>, vector<64x32xf32>, vector<8x64xf32> -> vector<8x64xf32>
    %cst_23 = arith.constant 0.176776692 : f32
    %23 = vector.broadcast %cst_23 : f32 to vector<8x64xf32>
    %24 = arith.mulf %22, %23 : vector<8x64xf32>
    %cst_24 = arith.constant dense<0xFF800000> : vector<8xf32>
    %25 = vector.multi_reduction <maximumf>, %24, %cst_24 [1] : vector<8x64xf32> to vector<8xf32>
    %26 = vector.shape_cast %25 : vector<8xf32> to vector<8x1xf32>
    %27 = vector.broadcast %26 : vector<8x1xf32> to vector<8x64xf32>
    %28 = arith.subf %24, %27 : vector<8x64xf32>
    %29 = math.exp %28 : vector<8x64xf32>
    %cst_25 = arith.constant dense<0.000000e+00> : vector<8xf32>
    %30 = vector.multi_reduction <add>, %29, %cst_25 [1] : vector<8x64xf32> to vector<8xf32>
    %31 = vector.shape_cast %30 : vector<8xf32> to vector<8x1xf32>
    %32 = vector.broadcast %31 : vector<8x1xf32> to vector<8x64xf32>
    %33 = arith.divf %29, %32 : vector<8x64xf32>
    %cst_26 = arith.constant dense<0.000000e+00> : vector<8x32xf32>
    %34 = tpu.matmul %33, %21, %cst_26 {dimension_numbers = #tpu.dot_dimension_numbers<[1], [0], [0], [1], [0, 0, 1, 1], [], []>} : vector<8x64xf32>, vector<64x32xf32>, vector<8x32xf32> -> vector<8x32xf32>
    %35 = arith.addf %1, %34 : vector<8x32xf32>
    %c0_27 = arith.constant 0 : index
    %c0_28 = arith.constant 0 : index
    %36 = vector.load %arg10[%c0_27, %c0_28] : memref<32x32xf32, #tpu.memory_space<vmem>>, vector<32x32xf32>
    %cst_29 = arith.constant dense<0.000000e+00> : vector<64x32xf32>
    %37 = tpu.matmul %6, %36, %cst_29 {dimension_numbers = #tpu.dot_dimension_numbers<[1], [0], [0], [1], [0, 0, 1, 1], [], []>} : vector<64x32xf32>, vector<32x32xf32>, vector<64x32xf32> -> vector<64x32xf32>
    %c0_30 = arith.constant 0 : index
    %c0_31 = arith.constant 0 : index
    %38 = vector.load %arg11[%c0_30, %c0_31] : memref<1x32xf32, #tpu.memory_space<vmem>>, vector<1x32xf32>
    %39 = vector.broadcast %38 : vector<1x32xf32> to vector<64x32xf32>
    %40 = arith.addf %37, %39 : vector<64x32xf32>
    %c0_32 = arith.constant 0 : index
    %c0_33 = arith.constant 0 : index
    %41 = vector.load %arg12[%c0_32, %c0_33] : memref<32x32xf32, #tpu.memory_space<vmem>>, vector<32x32xf32>
    %cst_34 = arith.constant dense<0.000000e+00> : vector<8x32xf32>
    %42 = tpu.matmul %35, %41, %cst_34 {dimension_numbers = #tpu.dot_dimension_numbers<[1], [0], [0], [1], [0, 0, 1, 1], [], []>} : vector<8x32xf32>, vector<32x32xf32>, vector<8x32xf32> -> vector<8x32xf32>
    %c0_35 = arith.constant 0 : index
    %c0_36 = arith.constant 0 : index
    %43 = vector.load %arg13[%c0_35, %c0_36] : memref<1x32xf32, #tpu.memory_space<vmem>>, vector<1x32xf32>
    %44 = vector.broadcast %43 : vector<1x32xf32> to vector<8x32xf32>
    %45 = arith.addf %42, %44 : vector<8x32xf32>
    %c0_37 = arith.constant 0 : index
    %c0_38 = arith.constant 0 : index
    %46 = vector.load %arg14[%c0_37, %c0_38] : memref<32x32xf32, #tpu.memory_space<vmem>>, vector<32x32xf32>
    %cst_39 = arith.constant dense<0.000000e+00> : vector<8x32xf32>
    %47 = tpu.matmul %35, %46, %cst_39 {dimension_numbers = #tpu.dot_dimension_numbers<[1], [0], [0], [1], [0, 0, 1, 1], [], []>} : vector<8x32xf32>, vector<32x32xf32>, vector<8x32xf32> -> vector<8x32xf32>
    %c0_40 = arith.constant 0 : index
    %c0_41 = arith.constant 0 : index
    %48 = vector.load %arg15[%c0_40, %c0_41] : memref<1x32xf32, #tpu.memory_space<vmem>>, vector<1x32xf32>
    %49 = vector.broadcast %48 : vector<1x32xf32> to vector<8x32xf32>
    %50 = arith.addf %47, %49 : vector<8x32xf32>
    %cst_42 = arith.constant dense<0.000000e+00> : vector<64x8xf32>
    %51 = tpu.matmul %40, %45, %cst_42 {dimension_numbers = #tpu.dot_dimension_numbers<[1], [1], [0], [0], [0, 0, 1, 0], [], []>} : vector<64x32xf32>, vector<8x32xf32>, vector<64x8xf32> -> vector<64x8xf32>
    %cst_43 = arith.constant 0.176776692 : f32
    %52 = vector.broadcast %cst_43 : f32 to vector<64x8xf32>
    %53 = arith.mulf %51, %52 : vector<64x8xf32>
    %cst_44 = arith.constant dense<0xFF800000> : vector<64xf32>
    %54 = vector.multi_reduction <maximumf>, %53, %cst_44 [1] : vector<64x8xf32> to vector<64xf32>
    %55 = vector.shape_cast %54 : vector<64xf32> to vector<64x1xf32>
    %56 = vector.broadcast %55 : vector<64x1xf32> to vector<64x8xf32>
    %57 = arith.subf %53, %56 : vector<64x8xf32>
    %58 = math.exp %57 : vector<64x8xf32>
    %cst_45 = arith.constant dense<0.000000e+00> : vector<64xf32>
    %59 = vector.multi_reduction <add>, %58, %cst_45 [1] : vector<64x8xf32> to vector<64xf32>
    %60 = vector.shape_cast %59 : vector<64xf32> to vector<64x1xf32>
    %61 = vector.broadcast %60 : vector<64x1xf32> to vector<64x8xf32>
    %62 = arith.divf %58, %61 : vector<64x8xf32>
    %cst_46 = arith.constant dense<0.000000e+00> : vector<64x32xf32>
    %63 = tpu.matmul %62, %50, %cst_46 {dimension_numbers = #tpu.dot_dimension_numbers<[1], [0], [0], [1], [0, 0, 1, 1], [], []>} : vector<64x8xf32>, vector<8x32xf32>, vector<64x32xf32> -> vector<64x32xf32>
    %64 = arith.addf %3, %63 : vector<64x32xf32>
    %c0_47 = arith.constant 0 : index
    %c0_48 = arith.constant 0 : index
    %c0_49 = arith.constant 0 : index
    %65 = vector.load %arg17[%c0_47, %c0_48, %c0_49] : memref<1x64x32xf32, #tpu.memory_space<vmem>>, vector<1x64x32xf32>
    %66 = vector.shape_cast %65 : vector<1x64x32xf32> to vector<64x32xf32>
    %67 = vector.shape_cast %64 : vector<64x32xf32> to vector<1x64x32xf32>
    tpu.vector_store %arg17[%c0_47, %c0_48, %c0_49], %67 {strides = array<i32>} : memref<1x64x32xf32, #tpu.memory_space<vmem>>, vector<1x64x32xf32>,
    %c0_50 = arith.constant 0 : index
    %c0_51 = arith.constant 0 : index
    %c0_52 = arith.constant 0 : index
    %68 = vector.load %arg16[%c0_50, %c0_51, %c0_52] : memref<1x8x32xf32, #tpu.memory_space<vmem>>, vector<1x8x32xf32>
    %69 = vector.shape_cast %68 : vector<1x8x32xf32> to vector<8x32xf32>
    %70 = vector.shape_cast %35 : vector<8x32xf32> to vector<1x8x32xf32>
    tpu.vector_store %arg16[%c0_50, %c0_51, %c0_52], %70 {strides = array<i32>} : memref<1x8x32xf32, #tpu.memory_space<vmem>>, vector<1x8x32xf32>,
    return
  }
  func.func @transform_0(%arg0: i32) -> (i32, i32, i32) {
    %c0_i32 = arith.constant 0 : i32
    %c0_i32_0 = arith.constant 0 : i32
    %c0_i32_1 = arith.constant 0 : i32
    return %arg0, %c0_i32, %c0_i32_0 : i32, i32, i32
  }
  func.func @transform_1(%arg0: i32) -> (i32, i32, i32) {
    %c0_i32 = arith.constant 0 : i32
    %c0_i32_0 = arith.constant 0 : i32
    %c0_i32_1 = arith.constant 0 : i32
    return %arg0, %c0_i32, %c0_i32_0 : i32, i32, i32
  }
  func.func @transform_2(%arg0: i32) -> (i32, i32, i32) {
    %c0_i32 = arith.constant 0 : i32
    %c0_i32_0 = arith.constant 0 : i32
    %c0_i32_1 = arith.constant 0 : i32
    return %arg0, %c0_i32, %c0_i32_0 : i32, i32, i32
  }
  func.func @transform_3(%arg0: i32) -> (i32, i32) {
    %c0_i32 = arith.constant 0 : i32
    %c0_i32_0 = arith.constant 0 : i32
    %c0_i32_1 = arith.constant 0 : i32
    return %c0_i32, %c0_i32_0 : i32, i32
  }
  func.func @transform_4(%arg0: i32) -> (i32, i32) {
    %c0_i32 = arith.constant 0 : i32
    %c0_i32_0 = arith.constant 0 : i32
    %c0_i32_1 = arith.constant 0 : i32
    return %c0_i32, %c0_i32_0 : i32, i32
  }
  func.func @transform_5(%arg0: i32) -> (i32, i32) {
    %c0_i32 = arith.constant 0 : i32
    %c0_i32_0 = arith.constant 0 : i32
    %c0_i32_1 = arith.constant 0 : i32
    return %c0_i32, %c0_i32_0 : i32, i32
  }
  func.func @transform_6(%arg0: i32) -> (i32, i32) {
    %c0_i32 = arith.constant 0 : i32
    %c0_i32_0 = arith.constant 0 : i32
    %c0_i32_1 = arith.constant 0 : i32
    return %c0_i32, %c0_i32_0 : i32, i32
  }
  func.func @transform_7(%arg0: i32) -> (i32, i32) {
    %c0_i32 = arith.constant 0 : i32
    %c0_i32_0 = arith.constant 0 : i32
    %c0_i32_1 = arith.constant 0 : i32
    return %c0_i32, %c0_i32_0 : i32, i32
  }
  func.func @transform_8(%arg0: i32) -> (i32, i32) {
    %c0_i32 = arith.constant 0 : i32
    %c0_i32_0 = arith.constant 0 : i32
    %c0_i32_1 = arith.constant 0 : i32
    return %c0_i32, %c0_i32_0 : i32, i32
  }
  func.func @transform_9(%arg0: i32) -> (i32, i32) {
    %c0_i32 = arith.constant 0 : i32
    %c0_i32_0 = arith.constant 0 : i32
    %c0_i32_1 = arith.constant 0 : i32
    return %c0_i32, %c0_i32_0 : i32, i32
  }
  func.func @transform_10(%arg0: i32) -> (i32, i32) {
    %c0_i32 = arith.constant 0 : i32
    %c0_i32_0 = arith.constant 0 : i32
    %c0_i32_1 = arith.constant 0 : i32
    return %c0_i32, %c0_i32_0 : i32, i32
  }
  func.func @transform_11(%arg0: i32) -> (i32, i32) {
    %c0_i32 = arith.constant 0 : i32
    %c0_i32_0 = arith.constant 0 : i32
    %c0_i32_1 = arith.constant 0 : i32
    return %c0_i32, %c0_i32_0 : i32, i32
  }
  func.func @transform_12(%arg0: i32) -> (i32, i32) {
    %c0_i32 = arith.constant 0 : i32
    %c0_i32_0 = arith.constant 0 : i32
    %c0_i32_1 = arith.constant 0 : i32
    return %c0_i32, %c0_i32_0 : i32, i32
  }
  func.func @transform_13(%arg0: i32) -> (i32, i32) {
    %c0_i32 = arith.constant 0 : i32
    %c0_i32_0 = arith.constant 0 : i32
    %c0_i32_1 = arith.constant 0 : i32
    return %c0_i32, %c0_i32_0 : i32, i32
  }
  func.func @transform_14(%arg0: i32) -> (i32, i32) {
    %c0_i32 = arith.constant 0 : i32
    %c0_i32_0 = arith.constant 0 : i32
    %c0_i32_1 = arith.constant 0 : i32
    return %c0_i32, %c0_i32_0 : i32, i32
  }
  func.func @transform_15(%arg0: i32) -> (i32, i32, i32) {
    %c0_i32 = arith.constant 0 : i32
    %c0_i32_0 = arith.constant 0 : i32
    %c0_i32_1 = arith.constant 0 : i32
    return %arg0, %c0_i32, %c0_i32_0 : i32, i32, i32
  }
  func.func @transform_16(%arg0: i32) -> (i32, i32, i32) {
    %c0_i32 = arith.constant 0 : i32
    %c0_i32_0 = arith.constant 0 : i32
    %c0_i32_1 = arith.constant 0 : i32
    return %arg0, %c0_i32, %c0_i32_0 : i32, i32, i32
  }
}

module attributes {stable_mosaic.version = 11 : i64} {
  func.func @_mm_fused_kernel(%arg0: i32, %arg1: memref<64x1152xbf16, #tpu.memory_space<vmem>>, %arg2: memref<1152x32xbf16, #tpu.memory_space<vmem>>, %arg3: memref<1x32xf32, #tpu.memory_space<vmem>>, %arg4: memref<64x32xf32, #tpu.memory_space<vmem>>, %arg5: memref<1x32xf32, #tpu.memory_space<vmem>>, %arg6: memref<1x32xf32, #tpu.memory_space<vmem>>, %arg7: memref<64x32xf32, #tpu.memory_space<vmem>>) attributes {dimension_semantics = [#tpu.dimension_semantics<arbitrary>], iteration_bounds = array<i64: 1>, scalar_prefetch = 0 : i64, scratch_operands = 0 : i64, tpu.core_type = #tpu.core_type<tc>, window_params = [{pipeline_mode = #tpu.pipeline_mode<synchronous>, transform_indices = @transform_0, window_bounds = array<i64: 64, 1152>}, {pipeline_mode = #tpu.pipeline_mode<synchronous>, transform_indices = @transform_1, window_bounds = array<i64: 1152, 32>}, {pipeline_mode = #tpu.pipeline_mode<synchronous>, transform_indices = @transform_2, window_bounds = array<i64: 1, 32>}, {pipeline_mode = #tpu.pipeline_mode<synchronous>, transform_indices = @transform_3, window_bounds = array<i64: 64, 32>}, {pipeline_mode = #tpu.pipeline_mode<synchronous>, transform_indices = @transform_4, window_bounds = array<i64: 1, 32>}, {pipeline_mode = #tpu.pipeline_mode<synchronous>, transform_indices = @transform_5, window_bounds = array<i64: 1, 32>}, {pipeline_mode = #tpu.pipeline_mode<synchronous>, transform_indices = @transform_6, window_bounds = array<i64: 64, 32>}]} {
    %c0 = arith.constant 0 : index
    %c0_0 = arith.constant 0 : index
    %0 = vector.load %arg1[%c0, %c0_0] : memref<64x1152xbf16, #tpu.memory_space<vmem>>, vector<64x1152xbf16>
    %c0_1 = arith.constant 0 : index
    %c0_2 = arith.constant 0 : index
    %1 = vector.load %arg2[%c0_1, %c0_2] : memref<1152x32xbf16, #tpu.memory_space<vmem>>, vector<1152x32xbf16>
    %cst = arith.constant dense<0.000000e+00> : vector<64x32xf32>
    %2 = tpu.matmul %0, %1, %cst {dimension_numbers = #tpu.dot_dimension_numbers<[1], [0], [0], [1], [0, 0, 1, 1], [], []>} : vector<64x1152xbf16>, vector<1152x32xbf16>, vector<64x32xf32> -> vector<64x32xf32>
    %c0_3 = arith.constant 0 : index
    %c0_4 = arith.constant 0 : index
    %3 = vector.load %arg3[%c0_3, %c0_4] : memref<1x32xf32, #tpu.memory_space<vmem>>, vector<1x32xf32>
    %4 = vector.broadcast %3 : vector<1x32xf32> to vector<64x32xf32>
    %5 = arith.addf %2, %4 : vector<64x32xf32>
    %c0_5 = arith.constant 0 : index
    %c0_6 = arith.constant 0 : index
    %6 = vector.load %arg4[%c0_5, %c0_6] : memref<64x32xf32, #tpu.memory_space<vmem>>, vector<64x32xf32>
    %7 = arith.addf %5, %6 : vector<64x32xf32>
    %cst_7 = arith.constant dense<0.000000e+00> : vector<64xf32>
    %8 = vector.multi_reduction <add>, %7, %cst_7 [1] : vector<64x32xf32> to vector<64xf32>
    %9 = vector.shape_cast %8 : vector<64xf32> to vector<64x1xf32>
    %cst_8 = arith.constant 3.200000e+01 : f32
    %10 = vector.broadcast %cst_8 : f32 to vector<64x1xf32>
    %11 = arith.divf %9, %10 : vector<64x1xf32>
    %12 = vector.broadcast %11 : vector<64x1xf32> to vector<64x32xf32>
    %13 = arith.subf %7, %12 : vector<64x32xf32>
    %14 = arith.mulf %13, %13 : vector<64x32xf32>
    %cst_9 = arith.constant dense<0.000000e+00> : vector<64xf32>
    %15 = vector.multi_reduction <add>, %14, %cst_9 [1] : vector<64x32xf32> to vector<64xf32>
    %16 = vector.shape_cast %15 : vector<64xf32> to vector<64x1xf32>
    %cst_10 = arith.constant 3.200000e+01 : f32
    %17 = vector.broadcast %cst_10 : f32 to vector<64x1xf32>
    %18 = arith.divf %16, %17 : vector<64x1xf32>
    %19 = vector.broadcast %11 : vector<64x1xf32> to vector<64x32xf32>
    %20 = arith.subf %7, %19 : vector<64x32xf32>
    %cst_11 = arith.constant 9.99999974E-6 : f32
    %21 = vector.broadcast %cst_11 : f32 to vector<64x1xf32>
    %22 = arith.addf %18, %21 : vector<64x1xf32>
    %23 = math.rsqrt %22 : vector<64x1xf32>
    %24 = vector.broadcast %23 : vector<64x1xf32> to vector<64x32xf32>
    %25 = arith.mulf %20, %24 : vector<64x32xf32>
    %c0_12 = arith.constant 0 : index
    %c0_13 = arith.constant 0 : index
    %26 = vector.load %arg5[%c0_12, %c0_13] : memref<1x32xf32, #tpu.memory_space<vmem>>, vector<1x32xf32>
    %27 = vector.broadcast %26 : vector<1x32xf32> to vector<64x32xf32>
    %28 = arith.mulf %25, %27 : vector<64x32xf32>
    %c0_14 = arith.constant 0 : index
    %c0_15 = arith.constant 0 : index
    %29 = vector.load %arg6[%c0_14, %c0_15] : memref<1x32xf32, #tpu.memory_space<vmem>>, vector<1x32xf32>
    %30 = vector.broadcast %29 : vector<1x32xf32> to vector<64x32xf32>
    %31 = arith.addf %28, %30 : vector<64x32xf32>
    %c0_16 = arith.constant 0 : index
    %c0_17 = arith.constant 0 : index
    %32 = vector.load %arg7[%c0_16, %c0_17] : memref<64x32xf32, #tpu.memory_space<vmem>>, vector<64x32xf32>
    tpu.vector_store %arg7[%c0_16, %c0_17], %31 {strides = array<i32>} : memref<64x32xf32, #tpu.memory_space<vmem>>, vector<64x32xf32>,
    return
  }
  func.func @transform_0(%arg0: i32) -> (i32, i32) {
    %c0_i32 = arith.constant 0 : i32
    %c0_i32_0 = arith.constant 0 : i32
    %c0_i32_1 = arith.constant 0 : i32
    return %c0_i32, %c0_i32_0 : i32, i32
  }
  func.func @transform_1(%arg0: i32) -> (i32, i32) {
    %c0_i32 = arith.constant 0 : i32
    %c0_i32_0 = arith.constant 0 : i32
    %c0_i32_1 = arith.constant 0 : i32
    return %c0_i32, %c0_i32_0 : i32, i32
  }
  func.func @transform_2(%arg0: i32) -> (i32, i32) {
    %c0_i32 = arith.constant 0 : i32
    %c0_i32_0 = arith.constant 0 : i32
    %c0_i32_1 = arith.constant 0 : i32
    return %c0_i32, %c0_i32_0 : i32, i32
  }
  func.func @transform_3(%arg0: i32) -> (i32, i32) {
    %c0_i32 = arith.constant 0 : i32
    %c0_i32_0 = arith.constant 0 : i32
    %c0_i32_1 = arith.constant 0 : i32
    return %c0_i32, %c0_i32_0 : i32, i32
  }
  func.func @transform_4(%arg0: i32) -> (i32, i32) {
    %c0_i32 = arith.constant 0 : i32
    %c0_i32_0 = arith.constant 0 : i32
    %c0_i32_1 = arith.constant 0 : i32
    return %c0_i32, %c0_i32_0 : i32, i32
  }
  func.func @transform_5(%arg0: i32) -> (i32, i32) {
    %c0_i32 = arith.constant 0 : i32
    %c0_i32_0 = arith.constant 0 : i32
    %c0_i32_1 = arith.constant 0 : i32
    return %c0_i32, %c0_i32_0 : i32, i32
  }
  func.func @transform_6(%arg0: i32) -> (i32, i32) {
    %c0_i32 = arith.constant 0 : i32
    %c0_i32_0 = arith.constant 0 : i32
    %c0_i32_1 = arith.constant 0 : i32
    return %c0_i32, %c0_i32_0 : i32, i32
  }
}

module attributes {stable_mosaic.version = 11 : i64} {
  func.func @_mlp3_kernel(%arg0: i32, %arg1: memref<2x32xf32, #tpu.memory_space<vmem>>, %arg2: memref<32x64xf32, #tpu.memory_space<vmem>>, %arg3: memref<1x64xf32, #tpu.memory_space<vmem>>, %arg4: memref<64x64xf32, #tpu.memory_space<vmem>>, %arg5: memref<1x64xf32, #tpu.memory_space<vmem>>, %arg6: memref<64x4xf32, #tpu.memory_space<vmem>>, %arg7: memref<1x4xf32, #tpu.memory_space<vmem>>, %arg8: memref<2x4xf32, #tpu.memory_space<vmem>>) attributes {dimension_semantics = [#tpu.dimension_semantics<arbitrary>], iteration_bounds = array<i64: 1>, scalar_prefetch = 0 : i64, scratch_operands = 0 : i64, tpu.core_type = #tpu.core_type<tc>, window_params = [{pipeline_mode = #tpu.pipeline_mode<synchronous>, transform_indices = @transform_0, window_bounds = array<i64: 2, 32>}, {pipeline_mode = #tpu.pipeline_mode<synchronous>, transform_indices = @transform_1, window_bounds = array<i64: 32, 64>}, {pipeline_mode = #tpu.pipeline_mode<synchronous>, transform_indices = @transform_2, window_bounds = array<i64: 1, 64>}, {pipeline_mode = #tpu.pipeline_mode<synchronous>, transform_indices = @transform_3, window_bounds = array<i64: 64, 64>}, {pipeline_mode = #tpu.pipeline_mode<synchronous>, transform_indices = @transform_4, window_bounds = array<i64: 1, 64>}, {pipeline_mode = #tpu.pipeline_mode<synchronous>, transform_indices = @transform_5, window_bounds = array<i64: 64, 4>}, {pipeline_mode = #tpu.pipeline_mode<synchronous>, transform_indices = @transform_6, window_bounds = array<i64: 1, 4>}, {pipeline_mode = #tpu.pipeline_mode<synchronous>, transform_indices = @transform_7, window_bounds = array<i64: 2, 4>}]} {
    %c0 = arith.constant 0 : index
    %c0_0 = arith.constant 0 : index
    %0 = vector.load %arg1[%c0, %c0_0] : memref<2x32xf32, #tpu.memory_space<vmem>>, vector<2x32xf32>
    %c0_1 = arith.constant 0 : index
    %c0_2 = arith.constant 0 : index
    %1 = vector.load %arg2[%c0_1, %c0_2] : memref<32x64xf32, #tpu.memory_space<vmem>>, vector<32x64xf32>
    %cst = arith.constant dense<0.000000e+00> : vector<2x64xf32>
    %2 = tpu.matmul %0, %1, %cst {dimension_numbers = #tpu.dot_dimension_numbers<[1], [0], [0], [1], [0, 0, 1, 1], [], []>} : vector<2x32xf32>, vector<32x64xf32>, vector<2x64xf32> -> vector<2x64xf32>
    %c0_3 = arith.constant 0 : index
    %c0_4 = arith.constant 0 : index
    %3 = vector.load %arg3[%c0_3, %c0_4] : memref<1x64xf32, #tpu.memory_space<vmem>>, vector<1x64xf32>
    %4 = vector.broadcast %3 : vector<1x64xf32> to vector<2x64xf32>
    %5 = arith.addf %2, %4 : vector<2x64xf32>
    %cst_5 = arith.constant 0.000000e+00 : f32
    %6 = vector.broadcast %cst_5 : f32 to vector<2x64xf32>
    %7 = arith.maximumf %5, %6 : vector<2x64xf32>
    %c0_6 = arith.constant 0 : index
    %c0_7 = arith.constant 0 : index
    %8 = vector.load %arg4[%c0_6, %c0_7] : memref<64x64xf32, #tpu.memory_space<vmem>>, vector<64x64xf32>
    %cst_8 = arith.constant dense<0.000000e+00> : vector<2x64xf32>
    %9 = tpu.matmul %7, %8, %cst_8 {dimension_numbers = #tpu.dot_dimension_numbers<[1], [0], [0], [1], [0, 0, 1, 1], [], []>} : vector<2x64xf32>, vector<64x64xf32>, vector<2x64xf32> -> vector<2x64xf32>
    %c0_9 = arith.constant 0 : index
    %c0_10 = arith.constant 0 : index
    %10 = vector.load %arg5[%c0_9, %c0_10] : memref<1x64xf32, #tpu.memory_space<vmem>>, vector<1x64xf32>
    %11 = vector.broadcast %10 : vector<1x64xf32> to vector<2x64xf32>
    %12 = arith.addf %9, %11 : vector<2x64xf32>
    %cst_11 = arith.constant 0.000000e+00 : f32
    %13 = vector.broadcast %cst_11 : f32 to vector<2x64xf32>
    %14 = arith.maximumf %12, %13 : vector<2x64xf32>
    %c0_12 = arith.constant 0 : index
    %c0_13 = arith.constant 0 : index
    %15 = vector.load %arg6[%c0_12, %c0_13] : memref<64x4xf32, #tpu.memory_space<vmem>>, vector<64x4xf32>
    %cst_14 = arith.constant dense<0.000000e+00> : vector<2x4xf32>
    %16 = tpu.matmul %14, %15, %cst_14 {dimension_numbers = #tpu.dot_dimension_numbers<[1], [0], [0], [1], [0, 0, 1, 1], [], []>} : vector<2x64xf32>, vector<64x4xf32>, vector<2x4xf32> -> vector<2x4xf32>
    %c0_15 = arith.constant 0 : index
    %c0_16 = arith.constant 0 : index
    %17 = vector.load %arg7[%c0_15, %c0_16] : memref<1x4xf32, #tpu.memory_space<vmem>>, vector<1x4xf32>
    %18 = vector.broadcast %17 : vector<1x4xf32> to vector<2x4xf32>
    %19 = arith.addf %16, %18 : vector<2x4xf32>
    %c0_17 = arith.constant 0 : index
    %c0_18 = arith.constant 0 : index
    %20 = vector.load %arg8[%c0_17, %c0_18] : memref<2x4xf32, #tpu.memory_space<vmem>>, vector<2x4xf32>
    tpu.vector_store %arg8[%c0_17, %c0_18], %19 {strides = array<i32>} : memref<2x4xf32, #tpu.memory_space<vmem>>, vector<2x4xf32>,
    return
  }
  func.func @transform_0(%arg0: i32) -> (i32, i32) {
    %c0_i32 = arith.constant 0 : i32
    %c0_i32_0 = arith.constant 0 : i32
    %c0_i32_1 = arith.constant 0 : i32
    return %c0_i32, %c0_i32_0 : i32, i32
  }
  func.func @transform_1(%arg0: i32) -> (i32, i32) {
    %c0_i32 = arith.constant 0 : i32
    %c0_i32_0 = arith.constant 0 : i32
    %c0_i32_1 = arith.constant 0 : i32
    return %c0_i32, %c0_i32_0 : i32, i32
  }
  func.func @transform_2(%arg0: i32) -> (i32, i32) {
    %c0_i32 = arith.constant 0 : i32
    %c0_i32_0 = arith.constant 0 : i32
    %c0_i32_1 = arith.constant 0 : i32
    return %c0_i32, %c0_i32_0 : i32, i32
  }
  func.func @transform_3(%arg0: i32) -> (i32, i32) {
    %c0_i32 = arith.constant 0 : i32
    %c0_i32_0 = arith.constant 0 : i32
    %c0_i32_1 = arith.constant 0 : i32
    return %c0_i32, %c0_i32_0 : i32, i32
  }
  func.func @transform_4(%arg0: i32) -> (i32, i32) {
    %c0_i32 = arith.constant 0 : i32
    %c0_i32_0 = arith.constant 0 : i32
    %c0_i32_1 = arith.constant 0 : i32
    return %c0_i32, %c0_i32_0 : i32, i32
  }
  func.func @transform_5(%arg0: i32) -> (i32, i32) {
    %c0_i32 = arith.constant 0 : i32
    %c0_i32_0 = arith.constant 0 : i32
    %c0_i32_1 = arith.constant 0 : i32
    return %c0_i32, %c0_i32_0 : i32, i32
  }
  func.func @transform_6(%arg0: i32) -> (i32, i32) {
    %c0_i32 = arith.constant 0 : i32
    %c0_i32_0 = arith.constant 0 : i32
    %c0_i32_1 = arith.constant 0 : i32
    return %c0_i32, %c0_i32_0 : i32, i32
  }
  func.func @transform_7(%arg0: i32) -> (i32, i32) {
    %c0_i32 = arith.constant 0 : i32
    %c0_i32_0 = arith.constant 0 : i32
    %c0_i32_1 = arith.constant 0 : i32
    return %c0_i32, %c0_i32_0 : i32, i32
  }
}

module attributes {stable_mosaic.version = 11 : i64} {
  func.func @_hyper_mlp_kernel(%arg0: i32, %arg1: memref<1x2x32xf32, #tpu.memory_space<vmem>>, %arg2: memref<1x32x32xf32, #tpu.memory_space<vmem>>, %arg3: memref<1x1x32xf32, #tpu.memory_space<vmem>>, %arg4: memref<1x32x32xf32, #tpu.memory_space<vmem>>, %arg5: memref<1x1x32xf32, #tpu.memory_space<vmem>>, %arg6: memref<1x32x4xf32, #tpu.memory_space<vmem>>, %arg7: memref<1x1x4xf32, #tpu.memory_space<vmem>>, %arg8: memref<1x2x4xf32, #tpu.memory_space<vmem>>) attributes {dimension_semantics = [#tpu.dimension_semantics<parallel>], iteration_bounds = array<i64: 5>, scalar_prefetch = 0 : i64, scratch_operands = 0 : i64, tpu.core_type = #tpu.core_type<tc>, window_params = [{transform_indices = @transform_0, window_bounds = array<i64: 1, 2, 32>}, {transform_indices = @transform_1, window_bounds = array<i64: 1, 32, 32>}, {transform_indices = @transform_2, window_bounds = array<i64: 1, 1, 32>}, {transform_indices = @transform_3, window_bounds = array<i64: 1, 32, 32>}, {transform_indices = @transform_4, window_bounds = array<i64: 1, 1, 32>}, {transform_indices = @transform_5, window_bounds = array<i64: 1, 32, 4>}, {transform_indices = @transform_6, window_bounds = array<i64: 1, 1, 4>}, {transform_indices = @transform_7, window_bounds = array<i64: 1, 2, 4>}]} {
    %c0 = arith.constant 0 : index
    %c0_0 = arith.constant 0 : index
    %c0_1 = arith.constant 0 : index
    %0 = vector.load %arg1[%c0, %c0_0, %c0_1] : memref<1x2x32xf32, #tpu.memory_space<vmem>>, vector<1x2x32xf32>
    %1 = vector.shape_cast %0 : vector<1x2x32xf32> to vector<2x32xf32>
    %c0_2 = arith.constant 0 : index
    %c0_3 = arith.constant 0 : index
    %c0_4 = arith.constant 0 : index
    %2 = vector.load %arg2[%c0_2, %c0_3, %c0_4] : memref<1x32x32xf32, #tpu.memory_space<vmem>>, vector<1x32x32xf32>
    %3 = vector.shape_cast %2 : vector<1x32x32xf32> to vector<32x32xf32>
    %cst = arith.constant dense<0.000000e+00> : vector<2x32xf32>
    %4 = tpu.matmul %1, %3, %cst {dimension_numbers = #tpu.dot_dimension_numbers<[1], [0], [0], [1], [0, 0, 1, 1], [], []>} : vector<2x32xf32>, vector<32x32xf32>, vector<2x32xf32> -> vector<2x32xf32>
    %c0_5 = arith.constant 0 : index
    %c0_6 = arith.constant 0 : index
    %c0_7 = arith.constant 0 : index
    %5 = vector.load %arg3[%c0_5, %c0_6, %c0_7] : memref<1x1x32xf32, #tpu.memory_space<vmem>>, vector<1x1x32xf32>
    %6 = vector.shape_cast %5 : vector<1x1x32xf32> to vector<1x32xf32>
    %7 = vector.broadcast %6 : vector<1x32xf32> to vector<2x32xf32>
    %8 = arith.addf %4, %7 : vector<2x32xf32>
    %cst_8 = arith.constant 0.000000e+00 : f32
    %9 = vector.broadcast %cst_8 : f32 to vector<2x32xf32>
    %10 = arith.maximumf %8, %9 : vector<2x32xf32>
    %c0_9 = arith.constant 0 : index
    %c0_10 = arith.constant 0 : index
    %c0_11 = arith.constant 0 : index
    %11 = vector.load %arg4[%c0_9, %c0_10, %c0_11] : memref<1x32x32xf32, #tpu.memory_space<vmem>>, vector<1x32x32xf32>
    %12 = vector.shape_cast %11 : vector<1x32x32xf32> to vector<32x32xf32>
    %cst_12 = arith.constant dense<0.000000e+00> : vector<2x32xf32>
    %13 = tpu.matmul %10, %12, %cst_12 {dimension_numbers = #tpu.dot_dimension_numbers<[1], [0], [0], [1], [0, 0, 1, 1], [], []>} : vector<2x32xf32>, vector<32x32xf32>, vector<2x32xf32> -> vector<2x32xf32>
    %c0_13 = arith.constant 0 : index
    %c0_14 = arith.constant 0 : index
    %c0_15 = arith.constant 0 : index
    %14 = vector.load %arg5[%c0_13, %c0_14, %c0_15] : memref<1x1x32xf32, #tpu.memory_space<vmem>>, vector<1x1x32xf32>
    %15 = vector.shape_cast %14 : vector<1x1x32xf32> to vector<1x32xf32>
    %16 = vector.broadcast %15 : vector<1x32xf32> to vector<2x32xf32>
    %17 = arith.addf %13, %16 : vector<2x32xf32>
    %cst_16 = arith.constant 0.000000e+00 : f32
    %18 = vector.broadcast %cst_16 : f32 to vector<2x32xf32>
    %19 = arith.maximumf %17, %18 : vector<2x32xf32>
    %c0_17 = arith.constant 0 : index
    %c0_18 = arith.constant 0 : index
    %c0_19 = arith.constant 0 : index
    %20 = vector.load %arg6[%c0_17, %c0_18, %c0_19] : memref<1x32x4xf32, #tpu.memory_space<vmem>>, vector<1x32x4xf32>
    %21 = vector.shape_cast %20 : vector<1x32x4xf32> to vector<32x4xf32>
    %cst_20 = arith.constant dense<0.000000e+00> : vector<2x4xf32>
    %22 = tpu.matmul %19, %21, %cst_20 {dimension_numbers = #tpu.dot_dimension_numbers<[1], [0], [0], [1], [0, 0, 1, 1], [], []>} : vector<2x32xf32>, vector<32x4xf32>, vector<2x4xf32> -> vector<2x4xf32>
    %c0_21 = arith.constant 0 : index
    %c0_22 = arith.constant 0 : index
    %c0_23 = arith.constant 0 : index
    %23 = vector.load %arg7[%c0_21, %c0_22, %c0_23] : memref<1x1x4xf32, #tpu.memory_space<vmem>>, vector<1x1x4xf32>
    %24 = vector.shape_cast %23 : vector<1x1x4xf32> to vector<1x4xf32>
    %25 = vector.broadcast %24 : vector<1x4xf32> to vector<2x4xf32>
    %26 = arith.addf %22, %25 : vector<2x4xf32>
    %c0_24 = arith.constant 0 : index
    %c0_25 = arith.constant 0 : index
    %c0_26 = arith.constant 0 : index
    %27 = vector.load %arg8[%c0_24, %c0_25, %c0_26] : memref<1x2x4xf32, #tpu.memory_space<vmem>>, vector<1x2x4xf32>
    %28 = vector.shape_cast %27 : vector<1x2x4xf32> to vector<2x4xf32>
    %29 = vector.shape_cast %26 : vector<2x4xf32> to vector<1x2x4xf32>
    tpu.vector_store %arg8[%c0_24, %c0_25, %c0_26], %29 {strides = array<i32>} : memref<1x2x4xf32, #tpu.memory_space<vmem>>, vector<1x2x4xf32>,
    return
  }
  func.func @transform_0(%arg0: i32) -> (i32, i32, i32) {
    %c0_i32 = arith.constant 0 : i32
    %c0_i32_0 = arith.constant 0 : i32
    %c0_i32_1 = arith.constant 0 : i32
    return %arg0, %c0_i32, %c0_i32_0 : i32, i32, i32
  }
  func.func @transform_1(%arg0: i32) -> (i32, i32, i32) {
    %c0_i32 = arith.constant 0 : i32
    %c0_i32_0 = arith.constant 0 : i32
    %c0_i32_1 = arith.constant 0 : i32
    return %arg0, %c0_i32, %c0_i32_0 : i32, i32, i32
  }
  func.func @transform_2(%arg0: i32) -> (i32, i32, i32) {
    %c0_i32 = arith.constant 0 : i32
    %c0_i32_0 = arith.constant 0 : i32
    %c0_i32_1 = arith.constant 0 : i32
    return %arg0, %c0_i32, %c0_i32_0 : i32, i32, i32
  }
  func.func @transform_3(%arg0: i32) -> (i32, i32, i32) {
    %c0_i32 = arith.constant 0 : i32
    %c0_i32_0 = arith.constant 0 : i32
    %c0_i32_1 = arith.constant 0 : i32
    return %arg0, %c0_i32, %c0_i32_0 : i32, i32, i32
  }
  func.func @transform_4(%arg0: i32) -> (i32, i32, i32) {
    %c0_i32 = arith.constant 0 : i32
    %c0_i32_0 = arith.constant 0 : i32
    %c0_i32_1 = arith.constant 0 : i32
    return %arg0, %c0_i32, %c0_i32_0 : i32, i32, i32
  }
  func.func @transform_5(%arg0: i32) -> (i32, i32, i32) {
    %c0_i32 = arith.constant 0 : i32
    %c0_i32_0 = arith.constant 0 : i32
    %c0_i32_1 = arith.constant 0 : i32
    return %arg0, %c0_i32, %c0_i32_0 : i32, i32, i32
  }
  func.func @transform_6(%arg0: i32) -> (i32, i32, i32) {
    %c0_i32 = arith.constant 0 : i32
    %c0_i32_0 = arith.constant 0 : i32
    %c0_i32_1 = arith.constant 0 : i32
    return %arg0, %c0_i32, %c0_i32_0 : i32, i32, i32
  }
  func.func @transform_7(%arg0: i32) -> (i32, i32, i32) {
    %c0_i32 = arith.constant 0 : i32
    %c0_i32_0 = arith.constant 0 : i32
    %c0_i32_1 = arith.constant 0 : i32
    return %arg0, %c0_i32, %c0_i32_0 : i32, i32, i32
  }
}

module attributes {stable_mosaic.version = 11 : i64} {
  func.func @_mm_fused_kernel(%arg0: i32, %arg1: memref<128x32xbf16, #tpu.memory_space<vmem>>, %arg2: memref<32x32xbf16, #tpu.memory_space<vmem>>, %arg3: memref<1x32xf32, #tpu.memory_space<vmem>>, %arg4: memref<128x32xf32, #tpu.memory_space<vmem>>) attributes {dimension_semantics = [#tpu.dimension_semantics<arbitrary>], iteration_bounds = array<i64: 1>, scalar_prefetch = 0 : i64, scratch_operands = 0 : i64, tpu.core_type = #tpu.core_type<tc>, window_params = [{pipeline_mode = #tpu.pipeline_mode<synchronous>, transform_indices = @transform_0, window_bounds = array<i64: 128, 32>}, {pipeline_mode = #tpu.pipeline_mode<synchronous>, transform_indices = @transform_1, window_bounds = array<i64: 32, 32>}, {pipeline_mode = #tpu.pipeline_mode<synchronous>, transform_indices = @transform_2, window_bounds = array<i64: 1, 32>}, {pipeline_mode = #tpu.pipeline_mode<synchronous>, transform_indices = @transform_3, window_bounds = array<i64: 128, 32>}]} {
    %c0 = arith.constant 0 : index
    %c0_0 = arith.constant 0 : index
    %0 = vector.load %arg1[%c0, %c0_0] : memref<128x32xbf16, #tpu.memory_space<vmem>>, vector<128x32xbf16>
    %c0_1 = arith.constant 0 : index
    %c0_2 = arith.constant 0 : index
    %1 = vector.load %arg2[%c0_1, %c0_2] : memref<32x32xbf16, #tpu.memory_space<vmem>>, vector<32x32xbf16>
    %cst = arith.constant dense<0.000000e+00> : vector<128x32xf32>
    %2 = tpu.matmul %0, %1, %cst {dimension_numbers = #tpu.dot_dimension_numbers<[1], [0], [0], [1], [0, 0, 1, 1], [], []>} : vector<128x32xbf16>, vector<32x32xbf16>, vector<128x32xf32> -> vector<128x32xf32>
    %c0_3 = arith.constant 0 : index
    %c0_4 = arith.constant 0 : index
    %3 = vector.load %arg3[%c0_3, %c0_4] : memref<1x32xf32, #tpu.memory_space<vmem>>, vector<1x32xf32>
    %4 = vector.broadcast %3 : vector<1x32xf32> to vector<128x32xf32>
    %5 = arith.addf %2, %4 : vector<128x32xf32>
    %c0_5 = arith.constant 0 : index
    %c0_6 = arith.constant 0 : index
    %6 = vector.load %arg4[%c0_5, %c0_6] : memref<128x32xf32, #tpu.memory_space<vmem>>, vector<128x32xf32>
    tpu.vector_store %arg4[%c0_5, %c0_6], %5 {strides = array<i32>} : memref<128x32xf32, #tpu.memory_space<vmem>>, vector<128x32xf32>,
    return
  }
  func.func @transform_0(%arg0: i32) -> (i32, i32) {
    %c0_i32 = arith.constant 0 : i32
    %c0_i32_0 = arith.constant 0 : i32
    %c0_i32_1 = arith.constant 0 : i32
    return %c0_i32, %c0_i32_0 : i32, i32
  }
  func.func @transform_1(%arg0: i32) -> (i32, i32) {
    %c0_i32 = arith.constant 0 : i32
    %c0_i32_0 = arith.constant 0 : i32
    %c0_i32_1 = arith.constant 0 : i32
    return %c0_i32, %c0_i32_0 : i32, i32
  }
  func.func @transform_2(%arg0: i32) -> (i32, i32) {
    %c0_i32 = arith.constant 0 : i32
    %c0_i32_0 = arith.constant 0 : i32
    %c0_i32_1 = arith.constant 0 : i32
    return %c0_i32, %c0_i32_0 : i32, i32
  }
  func.func @transform_3(%arg0: i32) -> (i32, i32) {
    %c0_i32 = arith.constant 0 : i32
    %c0_i32_0 = arith.constant 0 : i32
    %c0_i32_1 = arith.constant 0 : i32
    return %c0_i32, %c0_i32_0 : i32, i32
  }
}

module attributes {stable_mosaic.version = 11 : i64} {
  func.func @_ln_kernel(%arg0: i32, %arg1: memref<256x8xf32, #tpu.memory_space<vmem>>, %arg2: memref<1x8xf32, #tpu.memory_space<vmem>>, %arg3: memref<1x8xf32, #tpu.memory_space<vmem>>, %arg4: memref<256x8xf32, #tpu.memory_space<vmem>>) attributes {dimension_semantics = [#tpu.dimension_semantics<parallel>], iteration_bounds = array<i64: 2>, scalar_prefetch = 0 : i64, scratch_operands = 0 : i64, tpu.core_type = #tpu.core_type<tc>, window_params = [{transform_indices = @transform_0, window_bounds = array<i64: 256, 8>}, {pipeline_mode = #tpu.pipeline_mode<synchronous>, transform_indices = @transform_1, window_bounds = array<i64: 1, 8>}, {pipeline_mode = #tpu.pipeline_mode<synchronous>, transform_indices = @transform_2, window_bounds = array<i64: 1, 8>}, {transform_indices = @transform_3, window_bounds = array<i64: 256, 8>}]} {
    %c0 = arith.constant 0 : index
    %c0_0 = arith.constant 0 : index
    %0 = vector.load %arg1[%c0, %c0_0] : memref<256x8xf32, #tpu.memory_space<vmem>>, vector<256x8xf32>
    %cst = arith.constant dense<0.000000e+00> : vector<256xf32>
    %1 = vector.multi_reduction <add>, %0, %cst [1] : vector<256x8xf32> to vector<256xf32>
    %2 = vector.shape_cast %1 : vector<256xf32> to vector<256x1xf32>
    %cst_1 = arith.constant 8.000000e+00 : f32
    %3 = vector.broadcast %cst_1 : f32 to vector<256x1xf32>
    %4 = arith.divf %2, %3 : vector<256x1xf32>
    %5 = vector.broadcast %4 : vector<256x1xf32> to vector<256x8xf32>
    %6 = arith.subf %0, %5 : vector<256x8xf32>
    %7 = arith.mulf %6, %6 : vector<256x8xf32>
    %cst_2 = arith.constant dense<0.000000e+00> : vector<256xf32>
    %8 = vector.multi_reduction <add>, %7, %cst_2 [1] : vector<256x8xf32> to vector<256xf32>
    %9 = vector.shape_cast %8 : vector<256xf32> to vector<256x1xf32>
    %cst_3 = arith.constant 8.000000e+00 : f32
    %10 = vector.broadcast %cst_3 : f32 to vector<256x1xf32>
    %11 = arith.divf %9, %10 : vector<256x1xf32>
    %12 = vector.broadcast %4 : vector<256x1xf32> to vector<256x8xf32>
    %13 = arith.subf %0, %12 : vector<256x8xf32>
    %cst_4 = arith.constant 9.99999997E-7 : f32
    %14 = vector.broadcast %cst_4 : f32 to vector<256x1xf32>
    %15 = arith.addf %11, %14 : vector<256x1xf32>
    %16 = math.rsqrt %15 : vector<256x1xf32>
    %17 = vector.broadcast %16 : vector<256x1xf32> to vector<256x8xf32>
    %18 = arith.mulf %13, %17 : vector<256x8xf32>
    %c0_5 = arith.constant 0 : index
    %c0_6 = arith.constant 0 : index
    %19 = vector.load %arg2[%c0_5, %c0_6] : memref<1x8xf32, #tpu.memory_space<vmem>>, vector<1x8xf32>
    %20 = vector.broadcast %19 : vector<1x8xf32> to vector<256x8xf32>
    %21 = arith.mulf %18, %20 : vector<256x8xf32>
    %c0_7 = arith.constant 0 : index
    %c0_8 = arith.constant 0 : index
    %22 = vector.load %arg3[%c0_7, %c0_8] : memref<1x8xf32, #tpu.memory_space<vmem>>, vector<1x8xf32>
    %23 = vector.broadcast %22 : vector<1x8xf32> to vector<256x8xf32>
    %24 = arith.addf %21, %23 : vector<256x8xf32>
    %c0_9 = arith.constant 0 : index
    %c0_10 = arith.constant 0 : index
    %25 = vector.load %arg4[%c0_9, %c0_10] : memref<256x8xf32, #tpu.memory_space<vmem>>, vector<256x8xf32>
    tpu.vector_store %arg4[%c0_9, %c0_10], %24 {strides = array<i32>} : memref<256x8xf32, #tpu.memory_space<vmem>>, vector<256x8xf32>,
    return
  }
  func.func @transform_0(%arg0: i32) -> (i32, i32) {
    %c0_i32 = arith.constant 0 : i32
    %c0_i32_0 = arith.constant 0 : i32
    return %arg0, %c0_i32 : i32, i32
  }
  func.func @transform_1(%arg0: i32) -> (i32, i32) {
    %c0_i32 = arith.constant 0 : i32
    %c0_i32_0 = arith.constant 0 : i32
    %c0_i32_1 = arith.constant 0 : i32
    return %c0_i32, %c0_i32_0 : i32, i32
  }
  func.func @transform_2(%arg0: i32) -> (i32, i32) {
    %c0_i32 = arith.constant 0 : i32
    %c0_i32_0 = arith.constant 0 : i32
    %c0_i32_1 = arith.constant 0 : i32
    return %c0_i32, %c0_i32_0 : i32, i32
  }
  func.func @transform_3(%arg0: i32) -> (i32, i32) {
    %c0_i32 = arith.constant 0 : i32
    %c0_i32_0 = arith.constant 0 : i32
    return %arg0, %c0_i32 : i32, i32
  }
}

module attributes {stable_mosaic.version = 11 : i64} {
  func.func @_mm_fused_kernel(%arg0: i32, %arg1: memref<256x8xbf16, #tpu.memory_space<vmem>>, %arg2: memref<8x16xbf16, #tpu.memory_space<vmem>>, %arg3: memref<1x16xf32, #tpu.memory_space<vmem>>, %arg4: memref<256x16xf32, #tpu.memory_space<vmem>>) attributes {dimension_semantics = [#tpu.dimension_semantics<parallel>], iteration_bounds = array<i64: 2>, scalar_prefetch = 0 : i64, scratch_operands = 0 : i64, tpu.core_type = #tpu.core_type<tc>, window_params = [{transform_indices = @transform_0, window_bounds = array<i64: 256, 8>}, {pipeline_mode = #tpu.pipeline_mode<synchronous>, transform_indices = @transform_1, window_bounds = array<i64: 8, 16>}, {pipeline_mode = #tpu.pipeline_mode<synchronous>, transform_indices = @transform_2, window_bounds = array<i64: 1, 16>}, {transform_indices = @transform_3, window_bounds = array<i64: 256, 16>}]} {
    %c0 = arith.constant 0 : index
    %c0_0 = arith.constant 0 : index
    %0 = vector.load %arg1[%c0, %c0_0] : memref<256x8xbf16, #tpu.memory_space<vmem>>, vector<256x8xbf16>
    %c0_1 = arith.constant 0 : index
    %c0_2 = arith.constant 0 : index
    %1 = vector.load %arg2[%c0_1, %c0_2] : memref<8x16xbf16, #tpu.memory_space<vmem>>, vector<8x16xbf16>
    %cst = arith.constant dense<0.000000e+00> : vector<256x16xf32>
    %2 = tpu.matmul %0, %1, %cst {dimension_numbers = #tpu.dot_dimension_numbers<[1], [0], [0], [1], [0, 0, 1, 1], [], []>} : vector<256x8xbf16>, vector<8x16xbf16>, vector<256x16xf32> -> vector<256x16xf32>
    %c0_3 = arith.constant 0 : index
    %c0_4 = arith.constant 0 : index
    %3 = vector.load %arg3[%c0_3, %c0_4] : memref<1x16xf32, #tpu.memory_space<vmem>>, vector<1x16xf32>
    %4 = vector.broadcast %3 : vector<1x16xf32> to vector<256x16xf32>
    %5 = arith.addf %2, %4 : vector<256x16xf32>
    %c0_5 = arith.constant 0 : index
    %c0_6 = arith.constant 0 : index
    %6 = vector.load %arg4[%c0_5, %c0_6] : memref<256x16xf32, #tpu.memory_space<vmem>>, vector<256x16xf32>
    tpu.vector_store %arg4[%c0_5, %c0_6], %5 {strides = array<i32>} : memref<256x16xf32, #tpu.memory_space<vmem>>, vector<256x16xf32>,
    return
  }
  func.func @transform_0(%arg0: i32) -> (i32, i32) {
    %c0_i32 = arith.constant 0 : i32
    %c0_i32_0 = arith.constant 0 : i32
    return %arg0, %c0_i32 : i32, i32
  }
  func.func @transform_1(%arg0: i32) -> (i32, i32) {
    %c0_i32 = arith.constant 0 : i32
    %c0_i32_0 = arith.constant 0 : i32
    %c0_i32_1 = arith.constant 0 : i32
    return %c0_i32, %c0_i32_0 : i32, i32
  }
  func.func @transform_2(%arg0: i32) -> (i32, i32) {
    %c0_i32 = arith.constant 0 : i32
    %c0_i32_0 = arith.constant 0 : i32
    %c0_i32_1 = arith.constant 0 : i32
    return %c0_i32, %c0_i32_0 : i32, i32
  }
  func.func @transform_3(%arg0: i32) -> (i32, i32) {
    %c0_i32 = arith.constant 0 : i32
    %c0_i32_0 = arith.constant 0 : i32
    return %arg0, %c0_i32 : i32, i32
  }
}

module attributes {stable_mosaic.version = 11 : i64} {
  func.func @_mm_fused_kernel(%arg0: i32, %arg1: memref<256x36xbf16, #tpu.memory_space<vmem>>, %arg2: memref<36x8xbf16, #tpu.memory_space<vmem>>, %arg3: memref<1x8xf32, #tpu.memory_space<vmem>>, %arg4: memref<1x8xf32, #tpu.memory_space<vmem>>, %arg5: memref<1x8xf32, #tpu.memory_space<vmem>>, %arg6: memref<256x8xf32, #tpu.memory_space<vmem>>) attributes {dimension_semantics = [#tpu.dimension_semantics<parallel>], iteration_bounds = array<i64: 8>, scalar_prefetch = 0 : i64, scratch_operands = 0 : i64, tpu.core_type = #tpu.core_type<tc>, window_params = [{transform_indices = @transform_0, window_bounds = array<i64: 256, 36>}, {pipeline_mode = #tpu.pipeline_mode<synchronous>, transform_indices = @transform_1, window_bounds = array<i64: 36, 8>}, {pipeline_mode = #tpu.pipeline_mode<synchronous>, transform_indices = @transform_2, window_bounds = array<i64: 1, 8>}, {pipeline_mode = #tpu.pipeline_mode<synchronous>, transform_indices = @transform_3, window_bounds = array<i64: 1, 8>}, {pipeline_mode = #tpu.pipeline_mode<synchronous>, transform_indices = @transform_4, window_bounds = array<i64: 1, 8>}, {transform_indices = @transform_5, window_bounds = array<i64: 256, 8>}]} {
    %c0 = arith.constant 0 : index
    %c0_0 = arith.constant 0 : index
    %0 = vector.load %arg1[%c0, %c0_0] : memref<256x36xbf16, #tpu.memory_space<vmem>>, vector<256x36xbf16>
    %c0_1 = arith.constant 0 : index
    %c0_2 = arith.constant 0 : index
    %1 = vector.load %arg2[%c0_1, %c0_2] : memref<36x8xbf16, #tpu.memory_space<vmem>>, vector<36x8xbf16>
    %cst = arith.constant dense<0.000000e+00> : vector<256x8xf32>
    %2 = tpu.matmul %0, %1, %cst {dimension_numbers = #tpu.dot_dimension_numbers<[1], [0], [0], [1], [0, 0, 1, 1], [], []>} : vector<256x36xbf16>, vector<36x8xbf16>, vector<256x8xf32> -> vector<256x8xf32>
    %c0_3 = arith.constant 0 : index
    %c0_4 = arith.constant 0 : index
    %3 = vector.load %arg3[%c0_3, %c0_4] : memref<1x8xf32, #tpu.memory_space<vmem>>, vector<1x8xf32>
    %4 = vector.broadcast %3 : vector<1x8xf32> to vector<256x8xf32>
    %5 = arith.addf %2, %4 : vector<256x8xf32>
    %cst_5 = arith.constant dense<0.000000e+00> : vector<256xf32>
    %6 = vector.multi_reduction <add>, %5, %cst_5 [1] : vector<256x8xf32> to vector<256xf32>
    %7 = vector.shape_cast %6 : vector<256xf32> to vector<256x1xf32>
    %cst_6 = arith.constant 8.000000e+00 : f32
    %8 = vector.broadcast %cst_6 : f32 to vector<256x1xf32>
    %9 = arith.divf %7, %8 : vector<256x1xf32>
    %10 = vector.broadcast %9 : vector<256x1xf32> to vector<256x8xf32>
    %11 = arith.subf %5, %10 : vector<256x8xf32>
    %12 = arith.mulf %11, %11 : vector<256x8xf32>
    %cst_7 = arith.constant dense<0.000000e+00> : vector<256xf32>
    %13 = vector.multi_reduction <add>, %12, %cst_7 [1] : vector<256x8xf32> to vector<256xf32>
    %14 = vector.shape_cast %13 : vector<256xf32> to vector<256x1xf32>
    %cst_8 = arith.constant 8.000000e+00 : f32
    %15 = vector.broadcast %cst_8 : f32 to vector<256x1xf32>
    %16 = arith.divf %14, %15 : vector<256x1xf32>
    %17 = vector.broadcast %9 : vector<256x1xf32> to vector<256x8xf32>
    %18 = arith.subf %5, %17 : vector<256x8xf32>
    %cst_9 = arith.constant 9.99999997E-7 : f32
    %19 = vector.broadcast %cst_9 : f32 to vector<256x1xf32>
    %20 = arith.addf %16, %19 : vector<256x1xf32>
    %21 = math.rsqrt %20 : vector<256x1xf32>
    %22 = vector.broadcast %21 : vector<256x1xf32> to vector<256x8xf32>
    %23 = arith.mulf %18, %22 : vector<256x8xf32>
    %c0_10 = arith.constant 0 : index
    %c0_11 = arith.constant 0 : index
    %24 = vector.load %arg4[%c0_10, %c0_11] : memref<1x8xf32, #tpu.memory_space<vmem>>, vector<1x8xf32>
    %25 = vector.broadcast %24 : vector<1x8xf32> to vector<256x8xf32>
    %26 = arith.mulf %23, %25 : vector<256x8xf32>
    %c0_12 = arith.constant 0 : index
    %c0_13 = arith.constant 0 : index
    %27 = vector.load %arg5[%c0_12, %c0_13] : memref<1x8xf32, #tpu.memory_space<vmem>>, vector<1x8xf32>
    %28 = vector.broadcast %27 : vector<1x8xf32> to vector<256x8xf32>
    %29 = arith.addf %26, %28 : vector<256x8xf32>
    %c0_14 = arith.constant 0 : index
    %c0_15 = arith.constant 0 : index
    %30 = vector.load %arg6[%c0_14, %c0_15] : memref<256x8xf32, #tpu.memory_space<vmem>>, vector<256x8xf32>
    tpu.vector_store %arg6[%c0_14, %c0_15], %29 {strides = array<i32>} : memref<256x8xf32, #tpu.memory_space<vmem>>, vector<256x8xf32>,
    return
  }
  func.func @transform_0(%arg0: i32) -> (i32, i32) {
    %c0_i32 = arith.constant 0 : i32
    %c0_i32_0 = arith.constant 0 : i32
    return %arg0, %c0_i32 : i32, i32
  }
  func.func @transform_1(%arg0: i32) -> (i32, i32) {
    %c0_i32 = arith.constant 0 : i32
    %c0_i32_0 = arith.constant 0 : i32
    %c0_i32_1 = arith.constant 0 : i32
    return %c0_i32, %c0_i32_0 : i32, i32
  }
  func.func @transform_2(%arg0: i32) -> (i32, i32) {
    %c0_i32 = arith.constant 0 : i32
    %c0_i32_0 = arith.constant 0 : i32
    %c0_i32_1 = arith.constant 0 : i32
    return %c0_i32, %c0_i32_0 : i32, i32
  }
  func.func @transform_3(%arg0: i32) -> (i32, i32) {
    %c0_i32 = arith.constant 0 : i32
    %c0_i32_0 = arith.constant 0 : i32
    %c0_i32_1 = arith.constant 0 : i32
    return %c0_i32, %c0_i32_0 : i32, i32
  }
  func.func @transform_4(%arg0: i32) -> (i32, i32) {
    %c0_i32 = arith.constant 0 : i32
    %c0_i32_0 = arith.constant 0 : i32
    %c0_i32_1 = arith.constant 0 : i32
    return %c0_i32, %c0_i32_0 : i32, i32
  }
  func.func @transform_5(%arg0: i32) -> (i32, i32) {
    %c0_i32 = arith.constant 0 : i32
    %c0_i32_0 = arith.constant 0 : i32
    return %arg0, %c0_i32 : i32, i32
  }
}

module attributes {stable_mosaic.version = 11 : i64} {
  func.func @_mm_fused_kernel(%arg0: i32, %arg1: memref<256x72xbf16, #tpu.memory_space<vmem>>, %arg2: memref<72x4xbf16, #tpu.memory_space<vmem>>, %arg3: memref<1x4xf32, #tpu.memory_space<vmem>>, %arg4: memref<256x4xf32, #tpu.memory_space<vmem>>, %arg5: memref<256x4xf32, #tpu.memory_space<vmem>>) attributes {dimension_semantics = [#tpu.dimension_semantics<parallel>], iteration_bounds = array<i64: 8>, scalar_prefetch = 0 : i64, scratch_operands = 0 : i64, tpu.core_type = #tpu.core_type<tc>, window_params = [{transform_indices = @transform_0, window_bounds = array<i64: 256, 72>}, {pipeline_mode = #tpu.pipeline_mode<synchronous>, transform_indices = @transform_1, window_bounds = array<i64: 72, 4>}, {pipeline_mode = #tpu.pipeline_mode<synchronous>, transform_indices = @transform_2, window_bounds = array<i64: 1, 4>}, {transform_indices = @transform_3, window_bounds = array<i64: 256, 4>}, {transform_indices = @transform_4, window_bounds = array<i64: 256, 4>}]} {
    %c0 = arith.constant 0 : index
    %c0_0 = arith.constant 0 : index
    %0 = vector.load %arg1[%c0, %c0_0] : memref<256x72xbf16, #tpu.memory_space<vmem>>, vector<256x72xbf16>
    %c0_1 = arith.constant 0 : index
    %c0_2 = arith.constant 0 : index
    %1 = vector.load %arg2[%c0_1, %c0_2] : memref<72x4xbf16, #tpu.memory_space<vmem>>, vector<72x4xbf16>
    %cst = arith.constant dense<0.000000e+00> : vector<256x4xf32>
    %2 = tpu.matmul %0, %1, %cst {dimension_numbers = #tpu.dot_dimension_numbers<[1], [0], [0], [1], [0, 0, 1, 1], [], []>} : vector<256x72xbf16>, vector<72x4xbf16>, vector<256x4xf32> -> vector<256x4xf32>
    %c0_3 = arith.constant 0 : index
    %c0_4 = arith.constant 0 : index
    %3 = vector.load %arg3[%c0_3, %c0_4] : memref<1x4xf32, #tpu.memory_space<vmem>>, vector<1x4xf32>
    %4 = vector.broadcast %3 : vector<1x4xf32> to vector<256x4xf32>
    %5 = arith.addf %2, %4 : vector<256x4xf32>
    %c0_5 = arith.constant 0 : index
    %c0_6 = arith.constant 0 : index
    %6 = vector.load %arg4[%c0_5, %c0_6] : memref<256x4xf32, #tpu.memory_space<vmem>>, vector<256x4xf32>
    %7 = arith.addf %5, %6 : vector<256x4xf32>
    %c0_7 = arith.constant 0 : index
    %c0_8 = arith.constant 0 : index
    %8 = vector.load %arg5[%c0_7, %c0_8] : memref<256x4xf32, #tpu.memory_space<vmem>>, vector<256x4xf32>
    tpu.vector_store %arg5[%c0_7, %c0_8], %7 {strides = array<i32>} : memref<256x4xf32, #tpu.memory_space<vmem>>, vector<256x4xf32>,
    return
  }
  func.func @transform_0(%arg0: i32) -> (i32, i32) {
    %c0_i32 = arith.constant 0 : i32
    %c0_i32_0 = arith.constant 0 : i32
    return %arg0, %c0_i32 : i32, i32
  }
  func.func @transform_1(%arg0: i32) -> (i32, i32) {
    %c0_i32 = arith.constant 0 : i32
    %c0_i32_0 = arith.constant 0 : i32
    %c0_i32_1 = arith.constant 0 : i32
    return %c0_i32, %c0_i32_0 : i32, i32
  }
  func.func @transform_2(%arg0: i32) -> (i32, i32) {
    %c0_i32 = arith.constant 0 : i32
    %c0_i32_0 = arith.constant 0 : i32
    %c0_i32_1 = arith.constant 0 : i32
    return %c0_i32, %c0_i32_0 : i32, i32
  }
  func.func @transform_3(%arg0: i32) -> (i32, i32) {
    %c0_i32 = arith.constant 0 : i32
    %c0_i32_0 = arith.constant 0 : i32
    return %arg0, %c0_i32 : i32, i32
  }
  func.func @transform_4(%arg0: i32) -> (i32, i32) {
    %c0_i32 = arith.constant 0 : i32
    %c0_i32_0 = arith.constant 0 : i32
    return %arg0, %c0_i32 : i32, i32
  }
}

module attributes {stable_mosaic.version = 11 : i64} {
  func.func @_mask_mm_kernel(%arg0: i32, %arg1: memref<1x5x4xf32, #tpu.memory_space<vmem>>, %arg2: memref<1x4x1024xf32, #tpu.memory_space<vmem>>, %arg3: memref<1x4x1024xf32, #tpu.memory_space<vmem>>, %arg4: memref<1x5x1024xf32, #tpu.memory_space<vmem>>) attributes {dimension_semantics = [#tpu.dimension_semantics<parallel>], iteration_bounds = array<i64: 2>, scalar_prefetch = 0 : i64, scratch_operands = 0 : i64, tpu.core_type = #tpu.core_type<tc>, window_params = [{transform_indices = @transform_0, window_bounds = array<i64: 1, 5, 4>}, {transform_indices = @transform_1, window_bounds = array<i64: 1, 4, 1024>}, {transform_indices = @transform_2, window_bounds = array<i64: 1, 4, 1024>}, {transform_indices = @transform_3, window_bounds = array<i64: 1, 5, 1024>}]} {
    %c0 = arith.constant 0 : index
    %c0_0 = arith.constant 0 : index
    %c0_1 = arith.constant 0 : index
    %0 = vector.load %arg1[%c0, %c0_0, %c0_1] : memref<1x5x4xf32, #tpu.memory_space<vmem>>, vector<1x5x4xf32>
    %1 = vector.shape_cast %0 : vector<1x5x4xf32> to vector<5x4xf32>
    %2 = vector.extract_strided_slice %1 {offsets = [0, 0], sizes = [4, 4], strides = [1, 1]} : vector<5x4xf32> to vector<4x4xf32>
    %c0_2 = arith.constant 0 : index
    %c0_3 = arith.constant 0 : index
    %c0_4 = arith.constant 0 : index
    %3 = vector.load %arg2[%c0_2, %c0_3, %c0_4] : memref<1x4x1024xf32, #tpu.memory_space<vmem>>, vector<1x4x1024xf32>
    %4 = vector.shape_cast %3 : vector<1x4x1024xf32> to vector<4x1024xf32>
    %cst = arith.constant dense<0.000000e+00> : vector<4x1024xf32>
    %5 = tpu.matmul %2, %4, %cst {dimension_numbers = #tpu.dot_dimension_numbers<[1], [0], [0], [1], [0, 0, 1, 1], [], []>} : vector<4x4xf32>, vector<4x1024xf32>, vector<4x1024xf32> -> vector<4x1024xf32>
    %6 = vector.extract_strided_slice %1 {offsets = [4, 0], sizes = [1, 4], strides = [1, 1]} : vector<5x4xf32> to vector<1x4xf32>
    %c0_5 = arith.constant 0 : index
    %c0_6 = arith.constant 0 : index
    %c0_7 = arith.constant 0 : index
    %7 = vector.load %arg3[%c0_5, %c0_6, %c0_7] : memref<1x4x1024xf32, #tpu.memory_space<vmem>>, vector<1x4x1024xf32>
    %8 = vector.shape_cast %7 : vector<1x4x1024xf32> to vector<4x1024xf32>
    %cst_8 = arith.constant dense<0.000000e+00> : vector<1x1024xf32>
    %9 = tpu.matmul %6, %8, %cst_8 {dimension_numbers = #tpu.dot_dimension_numbers<[1], [0], [0], [1], [0, 0, 1, 1], [], []>} : vector<1x4xf32>, vector<4x1024xf32>, vector<1x1024xf32> -> vector<1x1024xf32>
    %10 = tpu.concatenate %5, %9 in 0 : vector<4x1024xf32>, vector<1x1024xf32> -> vector<5x1024xf32>
    %c0_9 = arith.constant 0 : index
    %c0_10 = arith.constant 0 : index
    %c0_11 = arith.constant 0 : index
    %11 = vector.load %arg4[%c0_9, %c0_10, %c0_11] : memref<1x5x1024xf32, #tpu.memory_space<vmem>>, vector<1x5x1024xf32>
    %12 = vector.shape_cast %11 : vector<1x5x1024xf32> to vector<5x1024xf32>
    %13 = vector.shape_cast %10 : vector<5x1024xf32> to vector<1x5x1024xf32>
    tpu.vector_store %arg4[%c0_9, %c0_10, %c0_11], %13 {strides = array<i32>} : memref<1x5x1024xf32, #tpu.memory_space<vmem>>, vector<1x5x1024xf32>,
    return
  }
  func.func @transform_0(%arg0: i32) -> (i32, i32, i32) {
    %c0_i32 = arith.constant 0 : i32
    %c0_i32_0 = arith.constant 0 : i32
    %c0_i32_1 = arith.constant 0 : i32
    return %arg0, %c0_i32, %c0_i32_0 : i32, i32, i32
  }
  func.func @transform_1(%arg0: i32) -> (i32, i32, i32) {
    %c0_i32 = arith.constant 0 : i32
    %c0_i32_0 = arith.constant 0 : i32
    %c0_i32_1 = arith.constant 0 : i32
    return %arg0, %c0_i32, %c0_i32_0 : i32, i32, i32
  }
  func.func @transform_2(%arg0: i32) -> (i32, i32, i32) {
    %c0_i32 = arith.constant 0 : i32
    %c0_i32_0 = arith.constant 0 : i32
    %c0_i32_1 = arith.constant 0 : i32
    return %arg0, %c0_i32, %c0_i32_0 : i32, i32, i32
  }
  func.func @transform_3(%arg0: i32) -> (i32, i32, i32) {
    %c0_i32 = arith.constant 0 : i32
    %c0_i32_0 = arith.constant 0 : i32
    %c0_i32_1 = arith.constant 0 : i32
    return %arg0, %c0_i32, %c0_i32_0 : i32, i32, i32
  }
}

</mosaic_0001>

<bundles_post_ra>
// kernel: _forward_core.30
= control target key start
LH: loop header
LB: loop body
LE: loop exit
PB: predicated region body
PF: predicated region fallthrough
CT: control target
= control target key end

     0   :  { %10 = vsyncpa [#allocation3], 0  ;;  %s571_s0 = inlined_call_operand.vmem [shape: bf16[36,32], index: 0, kind: input, shape index: {}]   ;;  %s572_s1 = inlined_call_operand.hbm [shape: bf16[32,32], index: 1, kind: input, shape index: {}]   ;;  %s573_s2 = inlined_call_operand.hbm [shape: f32[1,32], index: 2, kind: input, shape index: {}]   ;;  %s574_s3 = inlined_call_operand.hbm [shape: f32[1,32], index: 3, kind: input, shape index: {}]   ;;  %s575_s4 = inlined_call_operand.hbm [shape: f32[1,32], index: 4, kind: input, shape index: {}]   ;;  %s576_s5 = inlined_call_operand.vmem [shape: f32[36,32], index: 5, kind: output, shape index: {}]  }
   0x1   :  { %11 = vsyncpa [#allocation5], 0 }
   0x2   :  { %12 = vsyncpa [#allocation8], 0  ;;  %s433_s18 = smov [#allocation4]   ;;  %s434_s20 = smov [#allocation2]  }
   0x3   :  { %s33_s19 = sshll.u32 %s433_s18, 4  ;;  %s20_s21 = sshll.u32 %s434_s20, 4  ;;  %s34_s19 = int_to_ptr.vmem [resolvable:$true] %s33_s19  ;;  %s471_s21 = int_to_ptr.vmem [resolvable:$true] %s20_s21 }
   0x4   :  { %s339_s24 = scalar_lea.hbm %s573_s2, 16 }
   0x5   :  { %p340_p0 = scmp.ne.s32.totalorder %s573_s2, %s339_s24  ;;  %p343_p1 = scmp.lt.u32.totalorder %s339_s24, %s573_s2 }
   0x7   :  { %p345_p2 = pnand %p343_p1, %p340_p0 }
   0x9   :  { %348 = shalt.err (!%p345_p2)
}
   0xa   :  { %s349_s29 = scalar_lea.vmem %s34_s19, 16  ;;  %s353_s30 = scalar_lea.vmem %s34_s19, 32 }
   0xb   :  { %p350_p3 = scmp.ne.s32.totalorder %s34_s19, %s349_s29  ;;  %p354_p4 = scmp.lt.s32.totalorder %s34_s19, %s34_s19 }
   0xc   :  { %p355_p5 = scmp.lt.s32.totalorder %s353_s30, %s349_s29 }
   0xe   :  { %p356_p6 = por %p355_p5, %p354_p4 }
  0x10   :  { %p357_p7 = pnand %p356_p6, %p350_p3 }
  0x12   :  { %360 = shalt.err (!%p357_p7)
}
  0x13   :  { %36 = dma.hbm_to_vmem [thread:$0]  %s573_s2, 16, %s34_s19, [#allocation5]  }
  0x14   :  { %s361_s10 = scalar_lea.hbm %s572_s1, 256 }
  0x15   :  { %p362_p8 = scmp.ne.s32.totalorder %s572_s1, %s361_s10  ;;  %p365_p9 = scmp.lt.u32.totalorder %s361_s10, %s572_s1 }
  0x17   :  { %p367_p10 = pnand %p365_p9, %p362_p8 }
  0x19   :  { %370 = shalt.err (!%p367_p10)
}
  0x1a   :  { %s371_s15 = scalar_lea.vmem %s471_s21, 256  ;;  %p376_p12 = scmp.lt.s32.totalorder %s471_s21, %s471_s21 }
  0x1b   :  { %p372_p11 = scmp.ne.s32.totalorder %s471_s21, %s371_s15  ;;  %p377_p13 = scmp.lt.s32.totalorder %s371_s15, %s371_s15 }
  0x1d   :  { %p378_p0 = por %p377_p13, %p376_p12 }
  0x1f   :  { %p379_p1 = pnand %p378_p0, %p372_p11 }
  0x21   :  { %382 = shalt.err (!%p379_p1)
}
  0x22   :  { %s435_s2 = smov 64   ;;  %s436_s16 = smov 4  }
  0x23   :  { %26 = dma.hbm_to_vmem [thread:$0]  %s572_s1, 256, %s471_s21, [#allocation3], %s435_s2, %s435_s2, %s436_s16  }
  0x24   :  { %s437_s19 = smov [#allocation6]   ;;  %s438_s22 = smov [#allocation7]  }
  0x25   :  { %s43_s20 = sshll.u32 %s437_s19, 4  ;;  %s53_s23 = sshll.u32 %s438_s22, 4  ;;  %s44_s20 = int_to_ptr.vmem [resolvable:$true] %s43_s20  ;;  %s54_s23 = int_to_ptr.vmem [resolvable:$true] %s53_s23 }
  0x26   :  { %s383_s26 = scalar_lea.hbm %s574_s3, 16 }
  0x27   :  { %p384_p2 = scmp.ne.s32.totalorder %s574_s3, %s383_s26  ;;  %p387_p3 = scmp.lt.u32.totalorder %s383_s26, %s574_s3 }
  0x29   :  { %p389_p4 = pnand %p387_p3, %p384_p2 }
  0x2b   :  { %392 = shalt.err (!%p389_p4)
}
  0x2c   :  { %s393_s1 = scalar_lea.vmem %s44_s20, 16  ;;  %s397_s21 = scalar_lea.vmem %s44_s20, 32 }
  0x2d   :  { %p394_p5 = scmp.ne.s32.totalorder %s44_s20, %s393_s1  ;;  %p398_p6 = scmp.lt.s32.totalorder %s44_s20, %s44_s20 }
  0x2e   :  { %p399_p7 = scmp.lt.s32.totalorder %s397_s21, %s393_s1 }
  0x30   :  { %p400_p8 = por %p399_p7, %p398_p6 }
  0x32   :  { %p401_p9 = pnand %p400_p8, %p394_p5 }
  0x34   :  { %404 = shalt.err (!%p401_p9)
}
  0x35   :  { %46 = dma.hbm_to_vmem [thread:$0]  %s574_s3, 16, %s44_s20, [#allocation5]  }
  0x36   :  { %s405_s10 = scalar_lea.hbm %s575_s4, 16 }
  0x37   :  { %p406_p10 = scmp.ne.s32.totalorder %s575_s4, %s405_s10  ;;  %p409_p11 = scmp.lt.u32.totalorder %s405_s10, %s575_s4 }
  0x39   :  { %p411_p12 = pnand %p409_p11, %p406_p10 }
  0x3b   :  { %414 = shalt.err (!%p411_p12)
}
  0x3c   :  { %s415_s15 = scalar_lea.vmem %s54_s23, 16  ;;  %s419_s2 = scalar_lea.vmem %s54_s23, 32 }
  0x3d   :  { %p416_p13 = scmp.ne.s32.totalorder %s54_s23, %s415_s15  ;;  %p420_p0 = scmp.lt.s32.totalorder %s54_s23, %s54_s23 }
  0x3e   :  { %p421_p1 = scmp.lt.s32.totalorder %s419_s2, %s415_s15 }
  0x40   :  { %p422_p2 = por %p421_p1, %p420_p0 }
  0x42   :  { %p423_p3 = pnand %p422_p2, %p416_p13 }
  0x44   :  { %426 = shalt.err (!%p423_p3)
}
  0x45   :  { %56 = dma.hbm_to_vmem [thread:$0]  %s575_s4, 16, %s54_s23, [#allocation8]  }
  0x46   :  { %427 = dma.done.wait [#allocation3], 256  }
  0x47   :  { %428 = vsyncadd [#allocation3], 4294967040 }
  0x48   :  { %429 = dma.done.wait [#allocation5], 32  }
  0x49   :  { %430 = vsyncadd [#allocation5], 4294967264 }
  0x4a   :  { %431 = dma.done.wait [#allocation8], 16  }
  0x4b   :  { %432 = vsyncadd [#allocation8], 4294967280  ;;  %v439_v0 = vmov 0.0   ;;  %vm440_vm0 = vmmov 0   ;;  %v324_v1 = vld [vmem:[#allocation2] sm:$0xff]   ;;  %v325_v2 = vld [vmem:[#allocation2 + $0x8] sm:$0xff]  }
  0x4c   :  { %296 = vmatprep.subr.bf16.mxu0 %v439_v0  ;;  %312 = vmatprep.subr.bf16.mxu1 %v439_v0  ;;  %v326_v3 = vld [vmem:[%s571_s0] sm:$0xff]   ;;  %v327_v4 = vld [vmem:[%s571_s0 + $0x8] sm:$0xff]   ;;  %vm111_vm1 = vcmask 261120   ;;  %v328_v5 = vld [vmem:[%s571_s0 + $0x10] ss:$0 sps:$4 sm:$0x33]  }
  0x4d   :  { %300 = vmatprep.mubr.msk.bf16.mxu0 %vm440_vm0, %v439_v0  ;;  %304 = vmatprep.mubr.msk.bf16.mxu1 %vm440_vm0, %v439_v0  ;;  %v280_v6 = vld [vmem:[#allocation4] ss:$0 sm:$0xff]  ;;  %vm189_vm2 = vcmask 257024  }
  0x4e   :  { %297 = vmatpush3.bf16.msra.mxu0 %v324_v1  ;;  %314 = vmatpush3.bf16.msra.mxu1 %v324_v1 }
  0x4f   :  { %298 = vmatprep.subr.bf16.mxu0 %v439_v0  ;;  %313 = vmatprep.subr.bf16.mxu1 %v439_v0 }
  0x52   :  { %299 = vmatpush3.bf16.msra.mxu0 %v325_v2  ;;  %315 = vmatpush3.bf16.msra.mxu1 %v325_v2 }
  0x55   :  { %301 = vmatmul.mubr.msk.bf16.vlgmr.msra.gmra.mrb[0].mxu0 %vm111_vm1, %v326_v3  ;;  %305 = vmatmul.mubr.msk.bf16.vlgmr.msra.gmra.mrb[0].mxu1 %vm111_vm1, %v327_v4 }
  0x56   :  { %308 = vmatprep.mubr.msk.bf16.mxu1 %vm440_vm0, %v439_v0 }
  0x5d   :  { %309 = vmatmul.mubr.msk.bf16.gmra.mrb[4].mxu1 %vm111_vm1, %v328_v5 }
 0x128   :  { %v155_v7 = vpop.f32.mrb[0].mxu0  ;;  %v163_v8 = vpop.f32.mrb[0].mxu1 }
 0x129   :  { %v156_v9 = vadd.f32 %v280_v6, %v155_v7  ;;  %v164_v10 = vadd.f32 %v280_v6, %v163_v8  ;;  %v302_v11 = vpop.f32.mrb[1].mxu0  ;;  %v306_v12 = vpop.f32.mrb[1].mxu1  ;;  %v290_v8 = vld [vmem:[#allocation7] ss:$0 sm:$0xff] }
 0x12a   :  { %v158_v13 = vpop.f32.mrb[2].mxu0  ;;  %v166_v14 = vpop.f32.mrb[2].mxu1 }
 0x12b   :  { %v159_v15 = vadd.f32 %v280_v6, %v158_v13  ;;  %v167_v16 = vadd.f32 %v280_v6, %v166_v14  ;;  %v303_v17 = vpop.f32.mrb[3].mxu0  ;;  %v307_v18 = vpop.f32.mrb[3].mxu1  ;;  %v183_v19 = vsel %vm111_vm1, %v164_v10, 0.0  ;;  %v177_v20 = vsel %vm111_vm1, %v156_v9, 0.0 }
 0x12c   :  { %184 = vadd.xlane.f32.xlu1 %v183_v19  ;;  %178 = vadd.xlane.f32.xlu0 %v177_v20 }
 0x12d   :  { %v186_v21 = vsel %vm111_vm1, %v167_v16, 0.0  ;;  %v180_v22 = vsel %vm111_vm1, %v159_v15, 0.0 }
 0x130   :  { %187 = vadd.xlane.f32.xlu1 %v186_v21  ;;  %v171_v23 = vpop.f32.mrb[4].mxu1  ;;  %181 = vadd.xlane.f32.xlu0 %v180_v22 }
 0x131   :  { %v172_v24 = vadd.f32 %v280_v6, %v171_v23  ;;  %v310_v25 = vpop.f32.mrb[5].mxu1  ;;  %v289_v6 = vld [vmem:[#allocation6] ss:$0 sm:$0xff] }
 0x132   :  { %v174_v26 = vpop.f32.mrb[6].mxu1 }
 0x133   :  { %v311_v27 = vpop.f32.mrb[7].mxu1  ;;  %v190_v28 = vsel %vm189_vm2, %v172_v24, 0.0 }
 0x134   :  { %191 = vadd.xlane.f32.xlu0 %v190_v28 }
 0x1b9   :  { %v185_v29 = vpop.xlane.xlu1 %184  ;;  %v179_v30 = vpop.xlane.xlu0 %178 }
 0x1ba   :  { %v196_v31 = vmul.f32 0.03125, %v185_v29  ;;  %v194_v32 = vmul.f32 0.03125, %v179_v30 }
 0x1bc   :  { %v201_v33 = vsub.f32 %v164_v10, %v196_v31  ;;  %v199_v34 = vsub.f32 %v156_v9, %v194_v32 }
 0x1bd   :  { %v188_v35 = vpop.xlane.xlu1 %187  ;;  %v182_v36 = vpop.xlane.xlu0 %181 }
 0x1be   :  { %v197_v37 = vmul.f32 0.03125, %v188_v35  ;;  %v195_v38 = vmul.f32 0.03125, %v182_v36  ;;  %v204_v39 = vmul.f32 %v199_v34, %v199_v34  ;;  %v206_v43 = vmul.f32 %v201_v33, %v201_v33 }
 0x1c0   :  { %v202_v40 = vsub.f32 %v167_v16, %v197_v37  ;;  %v200_v41 = vsub.f32 %v159_v15, %v195_v38  ;;  %v209_v42 = vsel %vm111_vm1, %v204_v39, 0.0  ;;  %v215_v48 = vsel %vm111_vm1, %v206_v43, 0.0 }
 0x1c1   :  { %210 = vadd.xlane.f32.xlu1 %v209_v42  ;;  %v192_v44 = vpop.xlane.xlu0 %191 }
 0x1c2   :  { %v198_v45 = vmul.f32 0.03125, %v192_v44  ;;  %v205_v46 = vmul.f32 %v200_v41, %v200_v41  ;;  %v207_v50 = vmul.f32 %v202_v40, %v202_v40 }
 0x1c4   :  { %v203_v47 = vsub.f32 %v172_v24, %v198_v45  ;;  %v212_v49 = vsel %vm111_vm1, %v205_v46, 0.0  ;;  %v218_v52 = vsel %vm111_vm1, %v207_v50, 0.0 }
 0x1c5   :  { %216 = vadd.xlane.f32.xlu1 %v215_v48  ;;  %213 = vadd.xlane.f32.xlu0 %v212_v49 }
 0x1c6   :  { %v208_v51 = vmul.f32 %v203_v47, %v203_v47 }
 0x1c8   :  { %v221_v53 = vsel %vm189_vm2, %v208_v51, 0.0 }
 0x1c9   :  { %219 = vadd.xlane.f32.xlu0 %v218_v52  ;;  %222 = vadd.xlane.f32.xlu1 %v221_v53 }
 0x24e   :  { %v211_v54 = vpop.xlane.xlu1 %210 }
 0x24f   :  { %v224_v55 = vmul.f32 0.03125, %v211_v54 }
 0x251   :  { %v229_v56 = vadd.f32 1e-05, %v224_v55 }
 0x252   :  { %v217_v57 = vpop.xlane.xlu1 %216  ;;  %v214_v58 = vpop.xlane.xlu0 %213 }
 0x253   :  { %329 = vrsqrt.f32 %v229_v56  ;;  %v226_v59 = vmul.f32 0.03125, %v217_v57  ;;  %v225_v60 = vmul.f32 0.03125, %v214_v58 }
 0x255   :  { %v231_v61 = vadd.f32 1e-05, %v226_v59  ;;  %v230_v62 = vadd.f32 1e-05, %v225_v60 }
 0x256   :  { %v223_v63 = vpop.xlane.xlu1 %222  ;;  %v220_v0 = vpop.xlane.xlu0 %219 }
 0x257   :  { %331 = vrsqrt.f32 %v231_v61  ;;  %v228_v1 = vmul.f32 0.03125, %v223_v63  ;;  %v227_v2 = vmul.f32 0.03125, %v220_v0 }
 0x258   :  { %333 = vrsqrt.f32 %v230_v62 }
 0x259   :  { %v233_v3 = vadd.f32 1e-05, %v228_v1  ;;  %v232_v4 = vadd.f32 1e-05, %v227_v2 }
 0x25b   :  { %335 = vrsqrt.f32 %v233_v3 }
 0x25c   :  { %337 = vrsqrt.f32 %v232_v4 }
 0x25d   :  { %v330_v5 = vpop.eup %329 }
 0x25e   :  { %v239_v7 = vmul.f32 %v330_v5, %v199_v34 }
 0x260   :  { %v251_v9 = vmul.f32 %v289_v6, %v239_v7 }
 0x261   :  { %v332_v10 = vpop.eup %331 }
 0x262   :  { %v334_v11 = vpop.eup %333  ;;  %v263_v12 = vadd.f32 %v290_v8, %v251_v9  ;;  %v241_v13 = vmul.f32 %v332_v10, %v201_v33 }
 0x263   :  { %v240_v14 = vmul.f32 %v334_v11, %v200_v41 }
 0x264   :  { %268 = vst.msk [vmem:[%s576_s5] sm:$0xff] %vm111_vm1, %v263_v12  ;;  %v253_v15 = vmul.f32 %v289_v6, %v241_v13 }
 0x265   :  { %v336_v16 = vpop.eup %335  ;;  %v252_v17 = vmul.f32 %v289_v6, %v240_v14 }
 0x266   :  { %v338_v18 = vpop.eup %337  ;;  %v265_v19 = vadd.f32 %v290_v8, %v253_v15  ;;  %v243_v20 = vmul.f32 %v336_v16, %v203_v47 }
 0x267   :  { %v264_v21 = vadd.f32 %v290_v8, %v252_v17  ;;  %v242_v22 = vmul.f32 %v338_v18, %v202_v40 }
 0x268   :  { %270 = vst.msk [vmem:[%s576_s5 + $0x10] sm:$0xff] %vm111_vm1, %v265_v19  ;;  %v255_v23 = vmul.f32 %v289_v6, %v243_v20 }
 0x269   :  { %269 = vst.msk [vmem:[%s576_s5 + $0x8] sm:$0xff] %vm111_vm1, %v264_v21  ;;  %v254_v24 = vmul.f32 %v289_v6, %v242_v22 }
 0x26a   :  { %v267_v25 = vadd.f32 %v290_v8, %v255_v23 }
 0x26b   :  { %v266_v26 = vadd.f32 %v290_v8, %v254_v24 }
 0x26c   :  { %272 = vst.msk [vmem:[%s576_s5 + $0x20] sm:$0xf] %vm189_vm2, %v267_v25 }
 0x26d   :  { %271 = vst.msk [vmem:[%s576_s5 + $0x18] sm:$0xff] %vm111_vm1, %v266_v26 }
 0x26e   :  { %277 = vsyncpa [#allocation3], 1 }
 0x26f   :  { %278 = vsyncpa [#allocation5], 1 }
 0x270   :  { %279 = vsyncpa [#allocation8], 1 }

// kernel: _forward_core.26
= control target key start
LH: loop header
LB: loop body
LE: loop exit
PB: predicated region body
PF: predicated region fallthrough
CT: control target
= control target key end

     0   :  { %8 = vsyncpa [#allocation3], 0  ;;  %s393_s0 = inlined_call_operand.vmem [shape: bf16[64,64], index: 0, kind: input, shape index: {}]   ;;  %s394_s1 = inlined_call_operand.hbm [shape: bf16[64,128], index: 1, kind: input, shape index: {}]   ;;  %s395_s2 = inlined_call_operand.hbm [shape: f32[1,128], index: 2, kind: input, shape index: {}]   ;;  %s396_s3 = inlined_call_operand.vmem [shape: f32[64,128], index: 3, kind: output, shape index: {}]  }
   0x1   :  { %9 = vsyncpa [#allocation5], 0  ;;  %s305_s12 = smov [#allocation2]   ;;  %s257_s16 = scalar_lea.hbm %s394_s1, 512 }
   0x2   :  { %s17_s13 = sshll.u32 %s305_s12, 4  ;;  %p258_p0 = scmp.ne.s32.totalorder %s394_s1, %s257_s16  ;;  %s18_s13 = int_to_ptr.vmem [resolvable:$true] %s17_s13 }
   0x3   :  { %p261_p1 = scmp.lt.u32.totalorder %s257_s16, %s394_s1 }
   0x5   :  { %p263_p2 = pnand %p261_p1, %p258_p0 }
   0x7   :  { %266 = shalt.err (!%p263_p2)
}
   0x8   :  { %s267_s21 = scalar_lea.vmem %s18_s13, 512  ;;  %p272_p4 = scmp.lt.s32.totalorder %s18_s13, %s18_s13 }
   0x9   :  { %p268_p3 = scmp.ne.s32.totalorder %s18_s13, %s267_s21  ;;  %p273_p5 = scmp.lt.s32.totalorder %s267_s21, %s267_s21 }
   0xb   :  { %p274_p6 = por %p273_p5, %p272_p4 }
   0xd   :  { %p275_p7 = pnand %p274_p6, %p268_p3 }
   0xf   :  { %278 = shalt.err (!%p275_p7)
}
  0x10   :  { %s306_s22 = smov 64   ;;  %s307_s23 = smov 4  }
  0x11   :  { %23 = dma.hbm_to_vmem [thread:$0]  %s394_s1, 512, %s18_s13, [#allocation3], %s306_s22, %s306_s22, %s307_s23  }
  0x12   :  { %s308_s26 = smov [#allocation4]   ;;  %s279_s30 = scalar_lea.hbm %s395_s2, 16 }
  0x13   :  { %s30_s27 = sshll.u32 %s308_s26, 4  ;;  %p280_p8 = scmp.ne.s32.totalorder %s395_s2, %s279_s30  ;;  %s31_s27 = int_to_ptr.vmem [resolvable:$true] %s30_s27 }
  0x14   :  { %p283_p9 = scmp.lt.u32.totalorder %s279_s30, %s395_s2 }
  0x16   :  { %p285_p10 = pnand %p283_p9, %p280_p8 }
  0x18   :  { %288 = shalt.err (!%p285_p10)
}
  0x19   :  { %s289_s8 = scalar_lea.vmem %s31_s27, 16  ;;  %s293_s1 = scalar_lea.vmem %s31_s27, 32 }
  0x1a   :  { %p290_p11 = scmp.ne.s32.totalorder %s31_s27, %s289_s8  ;;  %p294_p12 = scmp.lt.s32.totalorder %s31_s27, %s31_s27 }
  0x1b   :  { %p295_p13 = scmp.lt.s32.totalorder %s293_s1, %s289_s8 }
  0x1d   :  { %p296_p0 = por %p295_p13, %p294_p12 }
  0x1f   :  { %p297_p1 = pnand %p296_p0, %p290_p11 }
  0x21   :  { %300 = shalt.err (!%p297_p1)
}
  0x22   :  { %33 = dma.hbm_to_vmem [thread:$0]  %s395_s2, 16, %s31_s27, [#allocation5]  }
  0x23   :  { %301 = dma.done.wait [#allocation3], 512  }
  0x24   :  { %302 = vsyncadd [#allocation3], 4294966784 }
  0x25   :  { %303 = dma.done.wait [#allocation5], 16  }
  0x26   :  { %304 = vsyncadd [#allocation5], 4294967280  ;;  %v249_v0 = vld [vmem:[#allocation2] sm:$0xff]   ;;  %v250_v1 = vld [vmem:[#allocation2 + $0x8] sm:$0xff]   ;;  %vm108_vm0 = vcmask 523264  }
  0x27   :  { %221 = vmatprep.subr.bf16.mxu0 %v249_v0  ;;  %237 = vmatprep.subr.bf16.mxu1 %v249_v0  ;;  %v251_v2 = vld [vmem:[#allocation2 + $0x10] sm:$0xff]   ;;  %v253_v3 = vld [vmem:[%s393_s0] sm:$0xff]   ;;  %v252_v5 = vld [vmem:[#allocation2 + $0x18] sm:$0xff]  }
  0x28   :  { %222 = vmatpush3.bf16.msra.mxu0 %v249_v0  ;;  %241 = vmatpush3.bf16.msra.mxu1 %v249_v0  ;;  %v254_v4 = vld [vmem:[%s393_s0 + $0x10] sm:$0xff]   ;;  %v255_v6 = vld [vmem:[%s393_s0 + $0x8] sm:$0xff]   ;;  %v256_v7 = vld [vmem:[%s393_s0 + $0x18] sm:$0xff]  }
  0x29   :  { %223 = vmatprep.subr.bf16.mxu0 %v250_v1  ;;  %238 = vmatprep.subr.bf16.mxu1 %v250_v1  ;;  %v200_v8 = vld [vmem:[#allocation4] ss:$0 sm:$0xff] }
  0x2a   :  { %229 = vmatprep.mubr.msk.bf16.mxu0 %vm108_vm0, %v253_v3  ;;  %233 = vmatprep.mubr.msk.bf16.mxu1 %vm108_vm0, %v254_v4 }
  0x2c   :  { %224 = vmatpush3.bf16.msra.mxu0 %v250_v1  ;;  %242 = vmatpush3.bf16.msra.mxu1 %v250_v1 }
  0x2d   :  { %225 = vmatprep.subr.bf16.mxu0 %v251_v2  ;;  %239 = vmatprep.subr.bf16.mxu1 %v251_v2 }
  0x30   :  { %226 = vmatpush3.bf16.msra.mxu0 %v251_v2  ;;  %243 = vmatpush3.bf16.msra.mxu1 %v251_v2 }
  0x31   :  { %227 = vmatprep.subr.bf16.mxu0 %v252_v5  ;;  %240 = vmatprep.subr.bf16.mxu1 %v252_v5 }
  0x34   :  { %228 = vmatpush3.bf16.msra.mxu0 %v252_v5  ;;  %244 = vmatpush3.bf16.msra.mxu1 %v252_v5 }
  0x37   :  { %230 = vmatmul.mubr.msk.bf16.vlgmr.msra.gmra.mrb[0].mxu0 %vm108_vm0, %v255_v6  ;;  %234 = vmatmul.mubr.msk.bf16.vlgmr.msra.gmra.mrb[0].mxu1 %vm108_vm0, %v256_v7 }
 0x10a   :  { %v231_v9 = vpop.f32.mrb[0].mxu0  ;;  %v235_v10 = vpop.f32.mrb[0].mxu1 }
 0x10b   :  { %v164_v11 = vadd.f32 %v231_v9, %v200_v8  ;;  %v180_v12 = vadd.f32 %v235_v10, %v200_v8  ;;  %v155_v13 = vpop.f32.mrb[1].mxu0  ;;  %v171_v14 = vpop.f32.mrb[1].mxu1 }
 0x10c   :  { %v156_v15 = vadd.f32 %v200_v8, %v155_v13  ;;  %v172_v16 = vadd.f32 %v200_v8, %v171_v14  ;;  %v232_v17 = vpop.f32.mrb[2].mxu0  ;;  %v236_v18 = vpop.f32.mrb[2].mxu1 }
 0x10d   :  { %188 = vst [vmem:[%s396_s3 + $0x10] sm:$0xff] %v164_v11  ;;  %192 = vst [vmem:[%s396_s3 + $0x30] sm:$0xff] %v180_v12  ;;  %v167_v19 = vadd.f32 %v232_v17, %v200_v8  ;;  %v183_v20 = vadd.f32 %v236_v18, %v200_v8  ;;  %v158_v21 = vpop.f32.mrb[3].mxu0  ;;  %v174_v22 = vpop.f32.mrb[3].mxu1 }
 0x10e   :  { %186 = vst [vmem:[%s396_s3] sm:$0xff] %v156_v15  ;;  %190 = vst [vmem:[%s396_s3 + $0x20] sm:$0xff] %v172_v16  ;;  %v159_v23 = vadd.f32 %v200_v8, %v158_v21  ;;  %v175_v24 = vadd.f32 %v200_v8, %v174_v22 }
 0x10f   :  { %189 = vst [vmem:[%s396_s3 + $0x18] sm:$0xff] %v167_v19  ;;  %193 = vst [vmem:[%s396_s3 + $0x38] sm:$0xff] %v183_v20 }
 0x110   :  { %187 = vst [vmem:[%s396_s3 + $0x8] sm:$0xff] %v159_v23  ;;  %191 = vst [vmem:[%s396_s3 + $0x28] sm:$0xff] %v175_v24 }
 0x111   :  { %198 = vsyncpa [#allocation3], 1 }
 0x112   :  { %199 = vsyncpa [#allocation5], 1 }

// kernel: _forward_core.23
= control target key start
LH: loop header
LB: loop body
LE: loop exit
PB: predicated region body
PF: predicated region fallthrough
CT: control target
= control target key end

     0   :  { %8 = vsyncpa [#allocation3], 0  ;;  %s371_s0 = inlined_call_operand.vmem [shape: bf16[64,32], index: 0, kind: input, shape index: {}]   ;;  %s372_s1 = inlined_call_operand.hbm [shape: bf16[32,32], index: 1, kind: input, shape index: {}]   ;;  %s373_s2 = inlined_call_operand.hbm [shape: f32[1,32], index: 2, kind: input, shape index: {}]   ;;  %s374_s3 = inlined_call_operand.vmem [shape: f32[64,32], index: 3, kind: output, shape index: {}]  }
   0x1   :  { %9 = vsyncpa [#allocation5], 0  ;;  %s275_s12 = smov [#allocation2]   ;;  %s227_s16 = scalar_lea.hbm %s372_s1, 256 }
   0x2   :  { %s17_s13 = sshll.u32 %s275_s12, 4  ;;  %p228_p0 = scmp.ne.s32.totalorder %s372_s1, %s227_s16  ;;  %s18_s13 = int_to_ptr.vmem [resolvable:$true] %s17_s13 }
   0x3   :  { %p231_p1 = scmp.lt.u32.totalorder %s227_s16, %s372_s1 }
   0x5   :  { %p233_p2 = pnand %p231_p1, %p228_p0 }
   0x7   :  { %236 = shalt.err (!%p233_p2)
}
   0x8   :  { %s237_s21 = scalar_lea.vmem %s18_s13, 256  ;;  %p242_p4 = scmp.lt.s32.totalorder %s18_s13, %s18_s13 }
   0x9   :  { %p238_p3 = scmp.ne.s32.totalorder %s18_s13, %s237_s21  ;;  %p243_p5 = scmp.lt.s32.totalorder %s237_s21, %s237_s21 }
   0xb   :  { %p244_p6 = por %p243_p5, %p242_p4 }
   0xd   :  { %p245_p7 = pnand %p244_p6, %p238_p3 }
   0xf   :  { %248 = shalt.err (!%p245_p7)
}
  0x10   :  { %s276_s22 = smov 64   ;;  %s277_s23 = smov 4  }
  0x11   :  { %23 = dma.hbm_to_vmem [thread:$0]  %s372_s1, 256, %s18_s13, [#allocation3], %s276_s22, %s276_s22, %s277_s23  }
  0x12   :  { %s278_s26 = smov [#allocation4]   ;;  %s249_s30 = scalar_lea.hbm %s373_s2, 16 }
  0x13   :  { %s30_s27 = sshll.u32 %s278_s26, 4  ;;  %p250_p8 = scmp.ne.s32.totalorder %s373_s2, %s249_s30  ;;  %s31_s27 = int_to_ptr.vmem [resolvable:$true] %s30_s27 }
  0x14   :  { %p253_p9 = scmp.lt.u32.totalorder %s249_s30, %s373_s2 }
  0x16   :  { %p255_p10 = pnand %p253_p9, %p250_p8 }
  0x18   :  { %258 = shalt.err (!%p255_p10)
}
  0x19   :  { %s259_s8 = scalar_lea.vmem %s31_s27, 16  ;;  %s263_s1 = scalar_lea.vmem %s31_s27, 32 }
  0x1a   :  { %p260_p11 = scmp.ne.s32.totalorder %s31_s27, %s259_s8  ;;  %p264_p12 = scmp.lt.s32.totalorder %s31_s27, %s31_s27 }
  0x1b   :  { %p265_p13 = scmp.lt.s32.totalorder %s263_s1, %s259_s8 }
  0x1d   :  { %p266_p0 = por %p265_p13, %p264_p12 }
  0x1f   :  { %p267_p1 = pnand %p266_p0, %p260_p11 }
  0x21   :  { %270 = shalt.err (!%p267_p1)
}
  0x22   :  { %33 = dma.hbm_to_vmem [thread:$0]  %s373_s2, 16, %s31_s27, [#allocation5]  }
  0x23   :  { %271 = dma.done.wait [#allocation3], 256  }
  0x24   :  { %272 = vsyncadd [#allocation3], 4294967040 }
  0x25   :  { %273 = dma.done.wait [#allocation5], 16  }
  0x26   :  { %274 = vsyncadd [#allocation5], 4294967280  ;;  %v221_v0 = vld [vmem:[#allocation2] sm:$0xff]   ;;  %v222_v1 = vld [vmem:[#allocation2 + $0x8] sm:$0xff]   ;;  %vm92_vm0 = vcmask 261120  }
  0x27   :  { %201 = vmatprep.subr.bf16.mxu0 %v221_v0  ;;  %213 = vmatprep.subr.bf16.mxu1 %v221_v0  ;;  %v223_v2 = vld [vmem:[%s371_s0] sm:$0xff]   ;;  %v224_v3 = vld [vmem:[%s371_s0 + $0x10] sm:$0xff]   ;;  %v225_v4 = vld [vmem:[%s371_s0 + $0x8] sm:$0xff]  }
  0x28   :  { %202 = vmatpush3.bf16.msra.mxu0 %v221_v0  ;;  %215 = vmatpush3.bf16.msra.mxu1 %v221_v0  ;;  %v226_v5 = vld [vmem:[%s371_s0 + $0x18] sm:$0xff]   ;;  %v184_v6 = vld [vmem:[#allocation4] ss:$0 sm:$0xff] }
  0x29   :  { %203 = vmatprep.subr.bf16.mxu0 %v222_v1  ;;  %214 = vmatprep.subr.bf16.mxu1 %v222_v1 }
  0x2a   :  { %205 = vmatprep.mubr.msk.bf16.mxu0 %vm92_vm0, %v223_v2  ;;  %209 = vmatprep.mubr.msk.bf16.mxu1 %vm92_vm0, %v224_v3 }
  0x2c   :  { %204 = vmatpush3.bf16.msra.mxu0 %v222_v1  ;;  %216 = vmatpush3.bf16.msra.mxu1 %v222_v1 }
  0x2f   :  { %206 = vmatmul.mubr.msk.bf16.vlgmr.msra.gmra.mrb[0].mxu0 %vm92_vm0, %v225_v4  ;;  %210 = vmatmul.mubr.msk.bf16.vlgmr.msra.gmra.mrb[0].mxu1 %vm92_vm0, %v226_v5 }
 0x102   :  { %v207_v7 = vpop.f32.mrb[0].mxu0  ;;  %v211_v8 = vpop.f32.mrb[0].mxu1 }
 0x103   :  { %v148_v9 = vadd.f32 %v207_v7, %v184_v6  ;;  %v164_v10 = vadd.f32 %v211_v8, %v184_v6  ;;  %v139_v11 = vpop.f32.mrb[1].mxu0  ;;  %v155_v12 = vpop.f32.mrb[1].mxu1 }
 0x104   :  { %v140_v13 = vadd.f32 %v184_v6, %v139_v11  ;;  %v156_v14 = vadd.f32 %v184_v6, %v155_v12  ;;  %v208_v15 = vpop.f32.mrb[2].mxu0  ;;  %v212_v16 = vpop.f32.mrb[2].mxu1 }
 0x105   :  { %172 = vst.msk [vmem:[%s374_s3 + $0x10] sm:$0xff] %vm92_vm0, %v148_v9  ;;  %176 = vst.msk [vmem:[%s374_s3 + $0x30] sm:$0xff] %vm92_vm0, %v164_v10  ;;  %v151_v17 = vadd.f32 %v208_v15, %v184_v6  ;;  %v167_v18 = vadd.f32 %v212_v16, %v184_v6  ;;  %v142_v19 = vpop.f32.mrb[3].mxu0  ;;  %v158_v20 = vpop.f32.mrb[3].mxu1 }
 0x106   :  { %170 = vst.msk [vmem:[%s374_s3] sm:$0xff] %vm92_vm0, %v140_v13  ;;  %174 = vst.msk [vmem:[%s374_s3 + $0x20] sm:$0xff] %vm92_vm0, %v156_v14  ;;  %v143_v21 = vadd.f32 %v184_v6, %v142_v19  ;;  %v159_v22 = vadd.f32 %v184_v6, %v158_v20 }
 0x107   :  { %173 = vst.msk [vmem:[%s374_s3 + $0x18] sm:$0xff] %vm92_vm0, %v151_v17  ;;  %177 = vst.msk [vmem:[%s374_s3 + $0x38] sm:$0xff] %vm92_vm0, %v167_v18 }
 0x108   :  { %171 = vst.msk [vmem:[%s374_s3 + $0x8] sm:$0xff] %vm92_vm0, %v143_v21  ;;  %175 = vst.msk [vmem:[%s374_s3 + $0x28] sm:$0xff] %vm92_vm0, %v159_v22 }
 0x109   :  { %182 = vsyncpa [#allocation3], 1 }
 0x10a   :  { %183 = vsyncpa [#allocation5], 1 }

// kernel: _forward_core.31
= control target key start
LH: loop header
LB: loop body
LE: loop exit
PB: predicated region body
PF: predicated region fallthrough
CT: control target
= control target key end

     0   :  { %8 = vsyncpa [#allocation3], 0  ;;  %s337_s0 = inlined_call_operand.vmem [shape: bf16[36,32], index: 0, kind: input, shape index: {}]   ;;  %s338_s1 = inlined_call_operand.hbm [shape: bf16[32,32], index: 1, kind: input, shape index: {}]   ;;  %s339_s2 = inlined_call_operand.hbm [shape: f32[1,32], index: 2, kind: input, shape index: {}]   ;;  %s340_s3 = inlined_call_operand.vmem [shape: f32[36,32], index: 3, kind: output, shape index: {}]  }
   0x1   :  { %9 = vsyncpa [#allocation5], 0  ;;  %s253_s12 = smov [#allocation2]   ;;  %s205_s16 = scalar_lea.hbm %s338_s1, 256 }
   0x2   :  { %s17_s13 = sshll.u32 %s253_s12, 4  ;;  %p206_p0 = scmp.ne.s32.totalorder %s338_s1, %s205_s16  ;;  %s18_s13 = int_to_ptr.vmem [resolvable:$true] %s17_s13 }
   0x3   :  { %p209_p1 = scmp.lt.u32.totalorder %s205_s16, %s338_s1 }
   0x5   :  { %p211_p2 = pnand %p209_p1, %p206_p0 }
   0x7   :  { %214 = shalt.err (!%p211_p2)
}
   0x8   :  { %s215_s21 = scalar_lea.vmem %s18_s13, 256  ;;  %p220_p4 = scmp.lt.s32.totalorder %s18_s13, %s18_s13 }
   0x9   :  { %p216_p3 = scmp.ne.s32.totalorder %s18_s13, %s215_s21  ;;  %p221_p5 = scmp.lt.s32.totalorder %s215_s21, %s215_s21 }
   0xb   :  { %p222_p6 = por %p221_p5, %p220_p4 }
   0xd   :  { %p223_p7 = pnand %p222_p6, %p216_p3 }
   0xf   :  { %226 = shalt.err (!%p223_p7)
}
  0x10   :  { %s254_s22 = smov 64   ;;  %s255_s23 = smov 4  }
  0x11   :  { %23 = dma.hbm_to_vmem [thread:$0]  %s338_s1, 256, %s18_s13, [#allocation3], %s254_s22, %s254_s22, %s255_s23  }
  0x12   :  { %s256_s26 = smov [#allocation4]   ;;  %s227_s30 = scalar_lea.hbm %s339_s2, 16 }
  0x13   :  { %s30_s27 = sshll.u32 %s256_s26, 4  ;;  %p228_p8 = scmp.ne.s32.totalorder %s339_s2, %s227_s30  ;;  %s31_s27 = int_to_ptr.vmem [resolvable:$true] %s30_s27 }
  0x14   :  { %p231_p9 = scmp.lt.u32.totalorder %s227_s30, %s339_s2 }
  0x16   :  { %p233_p10 = pnand %p231_p9, %p228_p8 }
  0x18   :  { %236 = shalt.err (!%p233_p10)
}
  0x19   :  { %s237_s8 = scalar_lea.vmem %s31_s27, 16  ;;  %s241_s1 = scalar_lea.vmem %s31_s27, 32 }
  0x1a   :  { %p238_p11 = scmp.ne.s32.totalorder %s31_s27, %s237_s8  ;;  %p242_p12 = scmp.lt.s32.totalorder %s31_s27, %s31_s27 }
  0x1b   :  { %p243_p13 = scmp.lt.s32.totalorder %s241_s1, %s237_s8 }
  0x1d   :  { %p244_p0 = por %p243_p13, %p242_p12 }
  0x1f   :  { %p245_p1 = pnand %p244_p0, %p238_p11 }
  0x21   :  { %248 = shalt.err (!%p245_p1)
}
  0x22   :  { %33 = dma.hbm_to_vmem [thread:$0]  %s339_s2, 16, %s31_s27, [#allocation5]  }
  0x23   :  { %249 = dma.done.wait [#allocation3], 256  }
  0x24   :  { %250 = vsyncadd [#allocation3], 4294967040 }
  0x25   :  { %251 = dma.done.wait [#allocation5], 16  }
  0x26   :  { %252 = vsyncadd [#allocation5], 4294967280  ;;  %v257_v0 = vmov 0.0   ;;  %vm258_vm0 = vmmov 0   ;;  %v200_v1 = vld [vmem:[#allocation2] sm:$0xff]   ;;  %v201_v2 = vld [vmem:[#allocation2 + $0x8] sm:$0xff]  }
  0x27   :  { %190 = vmatprep.subr.bf16.mxu1 %v257_v0  ;;  %174 = vmatprep.subr.bf16.mxu0 %v257_v0  ;;  %v202_v3 = vld [vmem:[%s337_s0 + $0x8] sm:$0xff]   ;;  %v203_v4 = vld [vmem:[%s337_s0] sm:$0xff]   ;;  %vm82_vm1 = vcmask 261120   ;;  %v204_v5 = vld [vmem:[%s337_s0 + $0x10] ss:$0 sps:$4 sm:$0x33]  }
  0x28   :  { %182 = vmatprep.mubr.msk.bf16.mxu1 %vm258_vm0, %v257_v0  ;;  %178 = vmatprep.mubr.msk.bf16.mxu0 %vm258_vm0, %v257_v0  ;;  %v160_v6 = vld [vmem:[#allocation4] ss:$0 sm:$0xff]  ;;  %vm152_vm2 = vcmask 257024  }
  0x29   :  { %192 = vmatpush3.bf16.msra.mxu1 %v200_v1  ;;  %175 = vmatpush3.bf16.msra.mxu0 %v200_v1 }
  0x2a   :  { %191 = vmatprep.subr.bf16.mxu1 %v257_v0  ;;  %176 = vmatprep.subr.bf16.mxu0 %v257_v0 }
  0x2d   :  { %193 = vmatpush3.bf16.msra.mxu1 %v201_v2  ;;  %177 = vmatpush3.bf16.msra.mxu0 %v201_v2 }
  0x30   :  { %183 = vmatmul.mubr.msk.bf16.vlgmr.msra.gmra.mrb[0].mxu1 %vm82_vm1, %v202_v3  ;;  %179 = vmatmul.mubr.msk.bf16.vlgmr.msra.gmra.mrb[0].mxu0 %vm82_vm1, %v203_v4 }
  0x31   :  { %186 = vmatprep.mubr.msk.bf16.mxu1 %vm258_vm0, %v257_v0 }
  0x38   :  { %187 = vmatmul.mubr.msk.bf16.gmra.mrb[4].mxu1 %vm82_vm1, %v204_v5 }
 0x103   :  { %v134_v7 = vpop.f32.mrb[0].mxu1  ;;  %v126_v8 = vpop.f32.mrb[0].mxu0 }
 0x104   :  { %v135_v9 = vadd.f32 %v160_v6, %v134_v7  ;;  %v184_v10 = vpop.f32.mrb[1].mxu1  ;;  %v127_v11 = vadd.f32 %v160_v6, %v126_v8  ;;  %v180_v12 = vpop.f32.mrb[1].mxu0 }
 0x105   :  { %v137_v13 = vpop.f32.mrb[2].mxu1  ;;  %v129_v14 = vpop.f32.mrb[2].mxu0 }
 0x106   :  { %150 = vst.msk [vmem:[%s340_s3 + $0x10] sm:$0xff] %vm82_vm1, %v135_v9  ;;  %v138_v15 = vadd.f32 %v160_v6, %v137_v13  ;;  %148 = vst.msk [vmem:[%s340_s3] sm:$0xff] %vm82_vm1, %v127_v11  ;;  %v185_v16 = vpop.f32.mrb[3].mxu1  ;;  %v130_v17 = vadd.f32 %v160_v6, %v129_v14  ;;  %v181_v18 = vpop.f32.mrb[3].mxu0 }
 0x108   :  { %151 = vst.msk [vmem:[%s340_s3 + $0x18] sm:$0xff] %vm82_vm1, %v138_v15  ;;  %149 = vst.msk [vmem:[%s340_s3 + $0x8] sm:$0xff] %vm82_vm1, %v130_v17 }
 0x10b   :  { %v142_v19 = vpop.f32.mrb[4].mxu1 }
 0x10c   :  { %v143_v20 = vadd.f32 %v160_v6, %v142_v19  ;;  %v188_v21 = vpop.f32.mrb[5].mxu1 }
 0x10d   :  { %v145_v22 = vpop.f32.mrb[6].mxu1 }
 0x10e   :  { %153 = vst.msk [vmem:[%s340_s3 + $0x20] sm:$0xf] %vm152_vm2, %v143_v20  ;;  %v189_v23 = vpop.f32.mrb[7].mxu1 }
 0x10f   :  { %158 = vsyncpa [#allocation3], 1 }
 0x110   :  { %159 = vsyncpa [#allocation5], 1 }

// kernel: _forward_core.29
= control target key start
LH: loop header
LB: loop body
LE: loop exit
PB: predicated region body
PF: predicated region fallthrough
CT: control target
= control target key end

     0   :  { %10 = vsyncpa [#allocation3], 0  ;;  %s701_s0 = inlined_call_operand.vmem [shape: bf16[64,32], index: 0, kind: input, shape index: {}]   ;;  %s702_s1 = inlined_call_operand.hbm [shape: bf16[32,32], index: 1, kind: input, shape index: {}]   ;;  %s703_s2 = inlined_call_operand.hbm [shape: f32[1,32], index: 2, kind: input, shape index: {}]   ;;  %s704_s3 = inlined_call_operand.hbm [shape: f32[1,32], index: 3, kind: input, shape index: {}]   ;;  %s705_s4 = inlined_call_operand.hbm [shape: f32[1,32], index: 4, kind: input, shape index: {}]   ;;  %s706_s5 = inlined_call_operand.vmem [shape: f32[64,32], index: 5, kind: output, shape index: {}]  }
   0x1   :  { %11 = vsyncpa [#allocation5], 0 }
   0x2   :  { %12 = vsyncpa [#allocation8], 0  ;;  %s506_s18 = smov [#allocation4]   ;;  %s507_s20 = smov [#allocation2]  }
   0x3   :  { %s33_s19 = sshll.u32 %s506_s18, 4  ;;  %s20_s21 = sshll.u32 %s507_s20, 4  ;;  %s34_s19 = int_to_ptr.vmem [resolvable:$true] %s33_s19  ;;  %s542_s21 = int_to_ptr.vmem [resolvable:$true] %s20_s21 }
   0x4   :  { %s412_s24 = scalar_lea.hbm %s703_s2, 16 }
   0x5   :  { %p413_p0 = scmp.ne.s32.totalorder %s703_s2, %s412_s24  ;;  %p416_p1 = scmp.lt.u32.totalorder %s412_s24, %s703_s2 }
   0x7   :  { %p418_p2 = pnand %p416_p1, %p413_p0 }
   0x9   :  { %421 = shalt.err (!%p418_p2)
}
   0xa   :  { %s422_s29 = scalar_lea.vmem %s34_s19, 16  ;;  %s426_s30 = scalar_lea.vmem %s34_s19, 32 }
   0xb   :  { %p423_p3 = scmp.ne.s32.totalorder %s34_s19, %s422_s29  ;;  %p427_p4 = scmp.lt.s32.totalorder %s34_s19, %s34_s19 }
   0xc   :  { %p428_p5 = scmp.lt.s32.totalorder %s426_s30, %s422_s29 }
   0xe   :  { %p429_p6 = por %p428_p5, %p427_p4 }
  0x10   :  { %p430_p7 = pnand %p429_p6, %p423_p3 }
  0x12   :  { %433 = shalt.err (!%p430_p7)
}
  0x13   :  { %36 = dma.hbm_to_vmem [thread:$0]  %s703_s2, 16, %s34_s19, [#allocation5]  }
  0x14   :  { %s434_s10 = scalar_lea.hbm %s702_s1, 256 }
  0x15   :  { %p435_p8 = scmp.ne.s32.totalorder %s702_s1, %s434_s10  ;;  %p438_p9 = scmp.lt.u32.totalorder %s434_s10, %s702_s1 }
  0x17   :  { %p440_p10 = pnand %p438_p9, %p435_p8 }
  0x19   :  { %443 = shalt.err (!%p440_p10)
}
  0x1a   :  { %s444_s15 = scalar_lea.vmem %s542_s21, 256  ;;  %p449_p12 = scmp.lt.s32.totalorder %s542_s21, %s542_s21 }
  0x1b   :  { %p445_p11 = scmp.ne.s32.totalorder %s542_s21, %s444_s15  ;;  %p450_p13 = scmp.lt.s32.totalorder %s444_s15, %s444_s15 }
  0x1d   :  { %p451_p0 = por %p450_p13, %p449_p12 }
  0x1f   :  { %p452_p1 = pnand %p451_p0, %p445_p11 }
  0x21   :  { %455 = shalt.err (!%p452_p1)
}
  0x22   :  { %s508_s2 = smov 64   ;;  %s509_s16 = smov 4  }
  0x23   :  { %26 = dma.hbm_to_vmem [thread:$0]  %s702_s1, 256, %s542_s21, [#allocation3], %s508_s2, %s508_s2, %s509_s16  }
  0x24   :  { %s510_s19 = smov [#allocation6]   ;;  %s511_s22 = smov [#allocation7]  }
  0x25   :  { %s43_s20 = sshll.u32 %s510_s19, 4  ;;  %s53_s23 = sshll.u32 %s511_s22, 4  ;;  %s44_s20 = int_to_ptr.vmem [resolvable:$true] %s43_s20  ;;  %s54_s23 = int_to_ptr.vmem [resolvable:$true] %s53_s23 }
  0x26   :  { %s456_s26 = scalar_lea.hbm %s704_s3, 16 }
  0x27   :  { %p457_p2 = scmp.ne.s32.totalorder %s704_s3, %s456_s26  ;;  %p460_p3 = scmp.lt.u32.totalorder %s456_s26, %s704_s3 }
  0x29   :  { %p462_p4 = pnand %p460_p3, %p457_p2 }
  0x2b   :  { %465 = shalt.err (!%p462_p4)
}
  0x2c   :  { %s466_s1 = scalar_lea.vmem %s44_s20, 16  ;;  %s470_s21 = scalar_lea.vmem %s44_s20, 32 }
  0x2d   :  { %p467_p5 = scmp.ne.s32.totalorder %s44_s20, %s466_s1  ;;  %p471_p6 = scmp.lt.s32.totalorder %s44_s20, %s44_s20 }
  0x2e   :  { %p472_p7 = scmp.lt.s32.totalorder %s470_s21, %s466_s1 }
  0x30   :  { %p473_p8 = por %p472_p7, %p471_p6 }
  0x32   :  { %p474_p9 = pnand %p473_p8, %p467_p5 }
  0x34   :  { %477 = shalt.err (!%p474_p9)
}
  0x35   :  { %46 = dma.hbm_to_vmem [thread:$0]  %s704_s3, 16, %s44_s20, [#allocation5]  }
  0x36   :  { %s478_s10 = scalar_lea.hbm %s705_s4, 16 }
  0x37   :  { %p479_p10 = scmp.ne.s32.totalorder %s705_s4, %s478_s10  ;;  %p482_p11 = scmp.lt.u32.totalorder %s478_s10, %s705_s4 }
  0x39   :  { %p484_p12 = pnand %p482_p11, %p479_p10 }
  0x3b   :  { %487 = shalt.err (!%p484_p12)
}
  0x3c   :  { %s488_s15 = scalar_lea.vmem %s54_s23, 16  ;;  %s492_s2 = scalar_lea.vmem %s54_s23, 32 }
  0x3d   :  { %p489_p13 = scmp.ne.s32.totalorder %s54_s23, %s488_s15  ;;  %p493_p0 = scmp.lt.s32.totalorder %s54_s23, %s54_s23 }
  0x3e   :  { %p494_p1 = scmp.lt.s32.totalorder %s492_s2, %s488_s15 }
  0x40   :  { %p495_p2 = por %p494_p1, %p493_p0 }
  0x42   :  { %p496_p3 = pnand %p495_p2, %p489_p13 }
  0x44   :  { %499 = shalt.err (!%p496_p3)
}
  0x45   :  { %56 = dma.hbm_to_vmem [thread:$0]  %s705_s4, 16, %s54_s23, [#allocation8]  }
  0x46   :  { %500 = dma.done.wait [#allocation3], 256  }
  0x47   :  { %501 = vsyncadd [#allocation3], 4294967040 }
  0x48   :  { %502 = dma.done.wait [#allocation5], 32  }
  0x49   :  { %503 = vsyncadd [#allocation5], 4294967264 }
  0x4a   :  { %504 = dma.done.wait [#allocation8], 16  }
  0x4b   :  { %505 = vsyncadd [#allocation8], 4294967280  ;;  %v390_v0 = vld [vmem:[#allocation2] sm:$0xff]   ;;  %v391_v1 = vld [vmem:[#allocation2 + $0x8] sm:$0xff]   ;;  %vm121_vm0 = vcmask 261120  }
  0x4c   :  { %368 = vmatprep.subr.bf16.mxu0 %v390_v0  ;;  %380 = vmatprep.subr.bf16.mxu1 %v390_v0  ;;  %v392_v2 = vld [vmem:[%s701_s0] sm:$0xff]   ;;  %v394_v3 = vld [vmem:[%s701_s0 + $0x10] sm:$0xff]   ;;  %v393_v4 = vld [vmem:[%s701_s0 + $0x8] sm:$0xff]  }
  0x4d   :  { %369 = vmatpush3.bf16.msra.mxu0 %v390_v0  ;;  %382 = vmatpush3.bf16.msra.mxu1 %v390_v0  ;;  %v395_v5 = vld [vmem:[%s701_s0 + $0x18] sm:$0xff]   ;;  %v349_v6 = vld [vmem:[#allocation4] ss:$0 sm:$0xff] }
  0x4e   :  { %370 = vmatprep.subr.bf16.mxu0 %v391_v1  ;;  %381 = vmatprep.subr.bf16.mxu1 %v391_v1 }
  0x4f   :  { %372 = vmatprep.mubr.msk.bf16.mxu0 %vm121_vm0, %v392_v2  ;;  %376 = vmatprep.mubr.msk.bf16.mxu1 %vm121_vm0, %v394_v3 }
  0x51   :  { %371 = vmatpush3.bf16.msra.mxu0 %v391_v1  ;;  %383 = vmatpush3.bf16.msra.mxu1 %v391_v1 }
  0x54   :  { %373 = vmatmul.mubr.msk.bf16.vlgmr.msra.gmra.mrb[0].mxu0 %vm121_vm0, %v393_v4  ;;  %377 = vmatmul.mubr.msk.bf16.vlgmr.msra.gmra.mrb[0].mxu1 %vm121_vm0, %v395_v5 }
 0x127   :  { %v374_v7 = vpop.f32.mrb[0].mxu0  ;;  %v378_v8 = vpop.f32.mrb[0].mxu1 }
 0x128   :  { %v177_v9 = vadd.f32 %v374_v7, %v349_v6  ;;  %v168_v10 = vpop.f32.mrb[1].mxu0  ;;  %v184_v11 = vpop.f32.mrb[1].mxu1  ;;  %v193_v27 = vadd.f32 %v378_v8, %v349_v6 }
 0x129   :  { %v169_v12 = vadd.f32 %v349_v6, %v168_v10  ;;  %v375_v13 = vpop.f32.mrb[2].mxu0  ;;  %v185_v14 = vadd.f32 %v349_v6, %v184_v11  ;;  %v379_v15 = vpop.f32.mrb[2].mxu1 }
 0x12a   :  { %v180_v16 = vadd.f32 %v375_v13, %v349_v6  ;;  %v171_v17 = vpop.f32.mrb[3].mxu0  ;;  %v187_v18 = vpop.f32.mrb[3].mxu1  ;;  %v205_v19 = vsel %vm121_vm0, %v177_v9, 0.0  ;;  %v196_v25 = vadd.f32 %v379_v15, %v349_v6  ;;  %v217_v30 = vsel %vm121_vm0, %v193_v27, 0.0 }
 0x12b   :  { %206 = vadd.xlane.f32.xlu1 %v205_v19  ;;  %v199_v20 = vsel %vm121_vm0, %v169_v12, 0.0  ;;  %v211_v21 = vsel %vm121_vm0, %v185_v14, 0.0  ;;  %v188_v22 = vadd.f32 %v349_v6, %v187_v18  ;;  %v172_v24 = vadd.f32 %v349_v6, %v171_v17 }
 0x12c   :  { %200 = vadd.xlane.f32.xlu0 %v199_v20  ;;  %v208_v23 = vsel %vm121_vm0, %v180_v16, 0.0  ;;  %v220_v29 = vsel %vm121_vm0, %v196_v25, 0.0 }
 0x12d   :  { %v214_v26 = vsel %vm121_vm0, %v188_v22, 0.0  ;;  %v202_v28 = vsel %vm121_vm0, %v172_v24, 0.0 }
 0x12f   :  { %209 = vadd.xlane.f32.xlu1 %v208_v23 }
 0x130   :  { %212 = vadd.xlane.f32.xlu0 %v211_v21 }
 0x133   :  { %215 = vadd.xlane.f32.xlu1 %v214_v26 }
 0x134   :  { %203 = vadd.xlane.f32.xlu0 %v202_v28 }
 0x137   :  { %221 = vadd.xlane.f32.xlu1 %v220_v29 }
 0x138   :  { %218 = vadd.xlane.f32.xlu0 %v217_v30 }
 0x1b8   :  { %v207_v31 = vpop.xlane.xlu1 %206 }
 0x1b9   :  { %v226_v32 = vmul.f32 0.03125, %v207_v31  ;;  %v201_v33 = vpop.xlane.xlu0 %200  ;;  %v361_v31 = vld [vmem:[#allocation7] ss:$0 sm:$0xff] }
 0x1ba   :  { %v224_v34 = vmul.f32 0.03125, %v201_v33 }
 0x1bb   :  { %v621_v35 = vsub.f32 %v177_v9, %v226_v32 }
 0x1bc   :  { %v623_v36 = vsub.f32 %v169_v12, %v224_v34  ;;  %v210_v37 = vpop.xlane.xlu1 %209 }
 0x1bd   :  { %v227_v38 = vmul.f32 0.03125, %v210_v37  ;;  %v213_v39 = vpop.xlane.xlu0 %212  ;;  %v242_v40 = vmul.f32 %v621_v35, %v621_v35 }
 0x1be   :  { %v228_v41 = vmul.f32 0.03125, %v213_v39  ;;  %v240_v44 = vmul.f32 %v623_v36, %v623_v36 }
 0x1bf   :  { %v627_v42 = vsub.f32 %v180_v16, %v227_v38  ;;  %v254_v43 = vsel %vm121_vm0, %v242_v40, 0.0 }
 0x1c0   :  { %v632_v45 = vsub.f32 %v185_v14, %v228_v41  ;;  %v216_v46 = vpop.xlane.xlu1 %215  ;;  %255 = vadd.xlane.f32.xlu0 %v254_v43  ;;  %v248_v52 = vsel %vm121_vm0, %v240_v44, 0.0 }
 0x1c1   :  { %v229_v47 = vmul.f32 0.03125, %v216_v46  ;;  %v204_v48 = vpop.xlane.xlu0 %203  ;;  %v243_v49 = vmul.f32 %v627_v42, %v627_v42 }
 0x1c2   :  { %v225_v50 = vmul.f32 0.03125, %v204_v48  ;;  %v244_v53 = vmul.f32 %v632_v45, %v632_v45 }
 0x1c3   :  { %v257_v51 = vsel %vm121_vm0, %v243_v49, 0.0  ;;  %v640_v54 = vsub.f32 %v188_v22, %v229_v47 }
 0x1c4   :  { %v642_v55 = vsub.f32 %v172_v24, %v225_v50  ;;  %258 = vadd.xlane.f32.xlu1 %v257_v51  ;;  %v222_v56 = vpop.xlane.xlu1 %221  ;;  %249 = vadd.xlane.f32.xlu0 %v248_v52  ;;  %v260_v61 = vsel %vm121_vm0, %v244_v53, 0.0 }
 0x1c5   :  { %v231_v57 = vmul.f32 0.03125, %v222_v56  ;;  %v219_v58 = vpop.xlane.xlu0 %218  ;;  %v245_v1 = vmul.f32 %v640_v54, %v640_v54 }
 0x1c6   :  { %v230_v59 = vmul.f32 0.03125, %v219_v58  ;;  %v241_v60 = vmul.f32 %v642_v55, %v642_v55 }
 0x1c7   :  { %v647_v62 = vsub.f32 %v196_v25, %v231_v57  ;;  %v263_v3 = vsel %vm121_vm0, %v245_v1, 0.0 }
 0x1c8   :  { %v649_v63 = vsub.f32 %v193_v27, %v230_v59  ;;  %261 = vadd.xlane.f32.xlu0 %v260_v61  ;;  %v251_v0 = vsel %vm121_vm0, %v241_v60, 0.0  ;;  %v360_v27 = vld [vmem:[#allocation6] ss:$0 sm:$0xff] }
 0x1c9   :  { %252 = vadd.xlane.f32.xlu1 %v251_v0  ;;  %v247_v5 = vmul.f32 %v647_v62, %v647_v62 }
 0x1ca   :  { %v246_v2 = vmul.f32 %v649_v63, %v649_v63 }
 0x1cb   :  { %v269_v6 = vsel %vm121_vm0, %v247_v5, 0.0 }
 0x1cc   :  { %v266_v4 = vsel %vm121_vm0, %v246_v2, 0.0 }
 0x1cd   :  { %264 = vadd.xlane.f32.xlu1 %v263_v3  ;;  %267 = vadd.xlane.f32.xlu0 %v266_v4 }
 0x1d1   :  { %270 = vadd.xlane.f32.xlu1 %v269_v6 }
 0x24d   :  { %v256_v7 = vpop.xlane.xlu0 %255 }
 0x24e   :  { %v274_v8 = vmul.f32 0.03125, %v256_v7 }
 0x250   :  { %v282_v9 = vadd.f32 1e-05, %v274_v8 }
 0x251   :  { %v259_v10 = vpop.xlane.xlu1 %258  ;;  %v250_v11 = vpop.xlane.xlu0 %249 }
 0x252   :  { %396 = vrsqrt.f32 %v282_v9  ;;  %v275_v12 = vmul.f32 0.03125, %v259_v10  ;;  %v272_v13 = vmul.f32 0.03125, %v250_v11 }
 0x254   :  { %v283_v14 = vadd.f32 1e-05, %v275_v12  ;;  %v280_v15 = vadd.f32 1e-05, %v272_v13 }
 0x255   :  { %v262_v16 = vpop.xlane.xlu0 %261 }
 0x256   :  { %398 = vrsqrt.f32 %v283_v14  ;;  %v276_v17 = vmul.f32 0.03125, %v262_v16  ;;  %v253_v18 = vpop.xlane.xlu1 %252 }
 0x257   :  { %400 = vrsqrt.f32 %v280_v15  ;;  %v273_v19 = vmul.f32 0.03125, %v253_v18 }
 0x258   :  { %v284_v20 = vadd.f32 1e-05, %v276_v17 }
 0x259   :  { %v281_v21 = vadd.f32 1e-05, %v273_v19 }
 0x25a   :  { %402 = vrsqrt.f32 %v284_v20  ;;  %v265_v22 = vpop.xlane.xlu1 %264  ;;  %v268_v23 = vpop.xlane.xlu0 %267 }
 0x25b   :  { %404 = vrsqrt.f32 %v281_v21  ;;  %v277_v24 = vmul.f32 0.03125, %v265_v22  ;;  %v278_v25 = vmul.f32 0.03125, %v268_v23 }
 0x25c   :  { %v397_v26 = vpop.eup %396 }
 0x25d   :  { %v298_v28 = vmul.f32 %v397_v26, %v621_v35  ;;  %v285_v29 = vadd.f32 1e-05, %v277_v24  ;;  %v286_v30 = vadd.f32 1e-05, %v278_v25 }
 0x25e   :  { %v271_v32 = vpop.xlane.xlu1 %270 }
 0x25f   :  { %v313_v33 = vmul.f32 %v360_v27, %v298_v28  ;;  %406 = vrsqrt.f32 %v285_v29  ;;  %v279_v34 = vmul.f32 0.03125, %v271_v32 }
 0x260   :  { %v399_v37 = vpop.eup %398  ;;  %408 = vrsqrt.f32 %v286_v30 }
 0x261   :  { %v401_v38 = vpop.eup %400  ;;  %v328_v39 = vadd.f32 %v361_v31, %v313_v33  ;;  %v299_v40 = vmul.f32 %v399_v37, %v627_v42  ;;  %v287_v41 = vadd.f32 1e-05, %v279_v34 }
 0x262   :  { %v296_v43 = vmul.f32 %v401_v38, %v623_v36 }
 0x263   :  { %336 = vst.msk [vmem:[%s706_s5 + $0x10] sm:$0xff] %vm121_vm0, %v328_v39  ;;  %v314_v35 = vmul.f32 %v360_v27, %v299_v40  ;;  %410 = vrsqrt.f32 %v287_v41 }
 0x264   :  { %v403_v44 = vpop.eup %402  ;;  %v311_v46 = vmul.f32 %v360_v27, %v296_v43 }
 0x265   :  { %v405_v47 = vpop.eup %404  ;;  %v329_v48 = vadd.f32 %v361_v31, %v314_v35  ;;  %v300_v49 = vmul.f32 %v403_v44, %v632_v45 }
 0x266   :  { %v326_v50 = vadd.f32 %v361_v31, %v311_v46  ;;  %v297_v51 = vmul.f32 %v405_v47, %v642_v55 }
 0x267   :  { %337 = vst.msk [vmem:[%s706_s5 + $0x18] sm:$0xff] %vm121_vm0, %v329_v48  ;;  %v315_v36 = vmul.f32 %v360_v27, %v300_v49 }
 0x268   :  { %334 = vst.msk [vmem:[%s706_s5] sm:$0xff] %vm121_vm0, %v326_v50  ;;  %v312_v42 = vmul.f32 %v360_v27, %v297_v51 }
 0x269   :  { %v407_v52 = vpop.eup %406  ;;  %v330_v53 = vadd.f32 %v361_v31, %v315_v36 }
 0x26a   :  { %v409_v56 = vpop.eup %408  ;;  %v327_v57 = vadd.f32 %v361_v31, %v312_v42  ;;  %v301_v45 = vmul.f32 %v407_v52, %v640_v54 }
 0x26b   :  { %338 = vst.msk [vmem:[%s706_s5 + $0x20] sm:$0xff] %vm121_vm0, %v330_v53  ;;  %v302_v55 = vmul.f32 %v409_v56, %v649_v63 }
 0x26c   :  { %335 = vst.msk [vmem:[%s706_s5 + $0x8] sm:$0xff] %vm121_vm0, %v327_v57  ;;  %v316_v58 = vmul.f32 %v360_v27, %v301_v45 }
 0x26d   :  { %v411_v59 = vpop.eup %410  ;;  %v317_v60 = vmul.f32 %v360_v27, %v302_v55 }
 0x26e   :  { %v331_v61 = vadd.f32 %v361_v31, %v316_v58  ;;  %v303_v0 = vmul.f32 %v411_v59, %v647_v62 }
 0x26f   :  { %v332_v1 = vadd.f32 %v361_v31, %v317_v60 }
 0x270   :  { %339 = vst.msk [vmem:[%s706_s5 + $0x28] sm:$0xff] %vm121_vm0, %v331_v61  ;;  %v318_v54 = vmul.f32 %v360_v27, %v303_v0 }
 0x271   :  { %340 = vst.msk [vmem:[%s706_s5 + $0x30] sm:$0xff] %vm121_vm0, %v332_v1 }
 0x272   :  { %v333_v63 = vadd.f32 %v361_v31, %v318_v54 }
 0x274   :  { %341 = vst.msk [vmem:[%s706_s5 + $0x38] sm:$0xff] %vm121_vm0, %v333_v63 }
 0x275   :  { %346 = vsyncpa [#allocation3], 1 }
 0x276   :  { %347 = vsyncpa [#allocation5], 1 }
 0x277   :  { %348 = vsyncpa [#allocation8], 1 }

// kernel: _forward_core.25
= control target key start
LH: loop header
LB: loop body
LE: loop exit
PB: predicated region body
PF: predicated region fallthrough
CT: control target
= control target key end

     0   :  { %vm184_vm0 = vcmask 1043456   ;;  %vm135_vm1 = vcmask 64512   ;;  %vm349_vm2 = vcmask 130048   ;;  %s742_s1 = inlined_call_operand.vmem [shape: bf16[8,16], index: 1, kind: input, shape index: {}]   ;;  %s743_s0 = inlined_call_operand.vmem [shape: bf16[256,8], index: 0, kind: input, shape index: {}]   ;;  %s744_s2 = inlined_call_operand.vmem [shape: f32[1,16], index: 2, kind: input, shape index: {}]   ;;  %s745_s3 = inlined_call_operand.vmem [shape: f32[256,16], index: 3, kind: output, shape index: {}]  }
   0x1   :  { %v47_v0 = vld [vmem:[%s742_s1] sm:$0xf]  ;;  %v476_v4 = vld [vmem:[%s743_s0 + $0x8] sm:$0xff]   ;;  %v478_v6 = vld [vmem:[%s743_s0 + $0x10] sm:$0xff]  }
   0x2   :  { %472 = vmatprep.subr.msk.bf16.mxu0 %vm184_vm0, %v47_v0  ;;  %473 = vmatprep.subr.msk.bf16.mxu1 %vm184_vm0, %v47_v0  ;;  %v186_v1 = vsel %vm184_vm0, %v47_v0, 0  ;;  %v474_v2 = vld [vmem:[%s743_s0] sm:$0xff]   ;;  %v477_v5 = vld [vmem:[%s743_s0 + $0x48] sm:$0xff]   ;;  %v479_v7 = vld [vmem:[%s743_s0 + $0x50] sm:$0xff]  }
   0x3   :  { %437 = vmatpush3.bf16.msra.mxu0 %v186_v1  ;;  %471 = vmatpush3.bf16.msra.mxu1 %v186_v1  ;;  %v475_v3 = vld [vmem:[%s743_s0 + $0x40] sm:$0xff]   ;;  %v480_v8 = vld [vmem:[%s743_s0 + $0x18] sm:$0xff]   ;;  %v484_v12 = vld [vmem:[%s743_s0 + $0x28] sm:$0xff]  }
   0x4   :  { %438 = vmatprep.mubr.msk.bf16.mxu0 %vm135_vm1, %v474_v2  ;;  %454 = vmatprep.mubr.msk.bf16.mxu1 %vm135_vm1, %v475_v3  ;;  %v481_v9 = vld [vmem:[%s743_s0 + $0x58] sm:$0xff]   ;;  %v482_v10 = vld [vmem:[%s743_s0 + $0x20] sm:$0xff]   ;;  %v485_v13 = vld [vmem:[%s743_s0 + $0x68] sm:$0xff]  }
   0x5   :  { %v483_v11 = vld [vmem:[%s743_s0 + $0x60] sm:$0xff]   ;;  %v486_v14 = vld [vmem:[%s743_s0 + $0x30] sm:$0xff]   ;;  %v488_v16 = vld [vmem:[%s743_s0 + $0x38] sm:$0xff]  }
   0x6   :  { %439 = vmatmul.mubr.msk.bf16.vlgmr.msra.gmra.mrb[0].mxu0 %vm135_vm1, %v476_v4  ;;  %455 = vmatmul.mubr.msk.bf16.vlgmr.msra.gmra.mrb[0].mxu1 %vm135_vm1, %v477_v5  ;;  %v487_v15 = vld [vmem:[%s743_s0 + $0x70] sm:$0xff]   ;;  %v489_v17 = vld [vmem:[%s743_s0 + $0x78] sm:$0xff]   ;;  %v580_v18 = vld [vmem:[%s744_s2] ss:$0 sm:$0xff] }
   0x7   :  { %442 = vmatprep.mubr.msk.bf16.mxu0 %vm135_vm1, %v478_v6  ;;  %458 = vmatprep.mubr.msk.bf16.mxu1 %vm135_vm1, %v479_v7 }
   0xe   :  { %443 = vmatmul.mubr.msk.bf16.gmra.mrb[4].mxu0 %vm135_vm1, %v480_v8  ;;  %459 = vmatmul.mubr.msk.bf16.gmra.mrb[4].mxu1 %vm135_vm1, %v481_v9 }
   0xf   :  { %446 = vmatprep.mubr.msk.bf16.mxu0 %vm135_vm1, %v482_v10  ;;  %462 = vmatprep.mubr.msk.bf16.mxu1 %vm135_vm1, %v483_v11 }
  0x16   :  { %447 = vmatmul.mubr.msk.bf16.gmra.mrb[8].mxu0 %vm135_vm1, %v484_v12  ;;  %463 = vmatmul.mubr.msk.bf16.gmra.mrb[8].mxu1 %vm135_vm1, %v485_v13 }
  0x17   :  { %450 = vmatprep.mubr.msk.bf16.mxu0 %vm135_vm1, %v486_v14  ;;  %466 = vmatprep.mubr.msk.bf16.mxu1 %vm135_vm1, %v487_v15 }
  0x1e   :  { %451 = vmatmul.mubr.msk.bf16.gmra.mrb[12].mxu0 %vm135_vm1, %v488_v16  ;;  %467 = vmatmul.mubr.msk.bf16.gmra.mrb[12].mxu1 %vm135_vm1, %v489_v17 }
  0xd9   :  { %v440_v19 = vpop.f32.mrb[0].mxu0  ;;  %v456_v21 = vpop.f32.mrb[0].mxu1 }
  0xda   :  { %v231_v20 = vadd.f32 %v440_v19, %v580_v18  ;;  %v222_v22 = vpop.f32.mrb[1].mxu0  ;;  %v295_v23 = vadd.f32 %v456_v21, %v580_v18  ;;  %v286_v25 = vpop.f32.mrb[1].mxu1 }
  0xdb   :  { %v223_v24 = vadd.f32 %v580_v18, %v222_v22  ;;  %v441_v26 = vpop.f32.mrb[2].mxu0  ;;  %v287_v27 = vadd.f32 %v580_v18, %v286_v25  ;;  %v457_v29 = vpop.f32.mrb[2].mxu1 }
  0xdc   :  { %352 = vst.msk [vmem:[%s745_s3 + $0x10] sm:$0xff] %vm349_vm2, %v231_v20  ;;  %v234_v28 = vadd.f32 %v441_v26, %v580_v18  ;;  %v225_v30 = vpop.f32.mrb[3].mxu0  ;;  %368 = vst.msk [vmem:[%s745_s3 + $0x90] sm:$0xff] %vm349_vm2, %v295_v23  ;;  %v298_v31 = vadd.f32 %v457_v29, %v580_v18  ;;  %v289_v33 = vpop.f32.mrb[3].mxu1 }
  0xdd   :  { %350 = vst.msk [vmem:[%s745_s3] sm:$0xff] %vm349_vm2, %v223_v24  ;;  %v226_v32 = vadd.f32 %v580_v18, %v225_v30  ;;  %366 = vst.msk [vmem:[%s745_s3 + $0x80] sm:$0xff] %vm349_vm2, %v287_v27  ;;  %v290_v34 = vadd.f32 %v580_v18, %v289_v33 }
  0xde   :  { %353 = vst.msk [vmem:[%s745_s3 + $0x18] sm:$0xff] %vm349_vm2, %v234_v28  ;;  %369 = vst.msk [vmem:[%s745_s3 + $0x98] sm:$0xff] %vm349_vm2, %v298_v31 }
  0xdf   :  { %351 = vst.msk [vmem:[%s745_s3 + $0x8] sm:$0xff] %vm349_vm2, %v226_v32  ;;  %367 = vst.msk [vmem:[%s745_s3 + $0x88] sm:$0xff] %vm349_vm2, %v290_v34 }
  0xe1   :  { %v444_v35 = vpop.f32.mrb[4].mxu0  ;;  %v460_v37 = vpop.f32.mrb[4].mxu1 }
  0xe2   :  { %v247_v36 = vadd.f32 %v444_v35, %v580_v18  ;;  %v238_v38 = vpop.f32.mrb[5].mxu0  ;;  %v311_v39 = vadd.f32 %v460_v37, %v580_v18  ;;  %v302_v41 = vpop.f32.mrb[5].mxu1 }
  0xe3   :  { %v239_v40 = vadd.f32 %v580_v18, %v238_v38  ;;  %v445_v42 = vpop.f32.mrb[6].mxu0  ;;  %v303_v43 = vadd.f32 %v580_v18, %v302_v41  ;;  %v461_v45 = vpop.f32.mrb[6].mxu1 }
  0xe4   :  { %356 = vst.msk [vmem:[%s745_s3 + $0x30] sm:$0xff] %vm349_vm2, %v247_v36  ;;  %v250_v44 = vadd.f32 %v445_v42, %v580_v18  ;;  %v241_v46 = vpop.f32.mrb[7].mxu0  ;;  %372 = vst.msk [vmem:[%s745_s3 + $0xb0] sm:$0xff] %vm349_vm2, %v311_v39  ;;  %v314_v47 = vadd.f32 %v461_v45, %v580_v18  ;;  %v305_v49 = vpop.f32.mrb[7].mxu1 }
  0xe5   :  { %354 = vst.msk [vmem:[%s745_s3 + $0x20] sm:$0xff] %vm349_vm2, %v239_v40  ;;  %v242_v48 = vadd.f32 %v580_v18, %v241_v46  ;;  %370 = vst.msk [vmem:[%s745_s3 + $0xa0] sm:$0xff] %vm349_vm2, %v303_v43  ;;  %v306_v50 = vadd.f32 %v580_v18, %v305_v49 }
  0xe6   :  { %357 = vst.msk [vmem:[%s745_s3 + $0x38] sm:$0xff] %vm349_vm2, %v250_v44  ;;  %373 = vst.msk [vmem:[%s745_s3 + $0xb8] sm:$0xff] %vm349_vm2, %v314_v47 }
  0xe7   :  { %355 = vst.msk [vmem:[%s745_s3 + $0x28] sm:$0xff] %vm349_vm2, %v242_v48  ;;  %371 = vst.msk [vmem:[%s745_s3 + $0xa8] sm:$0xff] %vm349_vm2, %v306_v50 }
  0xe9   :  { %v448_v51 = vpop.f32.mrb[8].mxu0  ;;  %v464_v53 = vpop.f32.mrb[8].mxu1 }
  0xea   :  { %v263_v52 = vadd.f32 %v448_v51, %v580_v18  ;;  %v254_v54 = vpop.f32.mrb[9].mxu0  ;;  %v327_v55 = vadd.f32 %v464_v53, %v580_v18  ;;  %v318_v57 = vpop.f32.mrb[9].mxu1 }
  0xeb   :  { %v255_v56 = vadd.f32 %v580_v18, %v254_v54  ;;  %v449_v58 = vpop.f32.mrb[10].mxu0  ;;  %v319_v59 = vadd.f32 %v580_v18, %v318_v57  ;;  %v465_v61 = vpop.f32.mrb[10].mxu1 }
  0xec   :  { %360 = vst.msk [vmem:[%s745_s3 + $0x50] sm:$0xff] %vm349_vm2, %v263_v52  ;;  %v266_v60 = vadd.f32 %v449_v58, %v580_v18  ;;  %v257_v62 = vpop.f32.mrb[11].mxu0  ;;  %376 = vst.msk [vmem:[%s745_s3 + $0xd0] sm:$0xff] %vm349_vm2, %v327_v55  ;;  %v330_v63 = vadd.f32 %v465_v61, %v580_v18  ;;  %v321_v1 = vpop.f32.mrb[11].mxu1 }
  0xed   :  { %358 = vst.msk [vmem:[%s745_s3 + $0x40] sm:$0xff] %vm349_vm2, %v255_v56  ;;  %v258_v0 = vadd.f32 %v580_v18, %v257_v62  ;;  %374 = vst.msk [vmem:[%s745_s3 + $0xc0] sm:$0xff] %vm349_vm2, %v319_v59  ;;  %v322_v2 = vadd.f32 %v580_v18, %v321_v1 }
  0xee   :  { %361 = vst.msk [vmem:[%s745_s3 + $0x58] sm:$0xff] %vm349_vm2, %v266_v60  ;;  %377 = vst.msk [vmem:[%s745_s3 + $0xd8] sm:$0xff] %vm349_vm2, %v330_v63 }
  0xef   :  { %359 = vst.msk [vmem:[%s745_s3 + $0x48] sm:$0xff] %vm349_vm2, %v258_v0  ;;  %375 = vst.msk [vmem:[%s745_s3 + $0xc8] sm:$0xff] %vm349_vm2, %v322_v2 }
  0xf1   :  { %v452_v3 = vpop.f32.mrb[12].mxu0  ;;  %v468_v5 = vpop.f32.mrb[12].mxu1 }
  0xf2   :  { %v279_v4 = vadd.f32 %v452_v3, %v580_v18  ;;  %v270_v6 = vpop.f32.mrb[13].mxu0  ;;  %v343_v7 = vadd.f32 %v468_v5, %v580_v18  ;;  %v334_v9 = vpop.f32.mrb[13].mxu1 }
  0xf3   :  { %v271_v8 = vadd.f32 %v580_v18, %v270_v6  ;;  %v453_v10 = vpop.f32.mrb[14].mxu0  ;;  %v335_v11 = vadd.f32 %v580_v18, %v334_v9  ;;  %v469_v13 = vpop.f32.mrb[14].mxu1 }
  0xf4   :  { %364 = vst.msk [vmem:[%s745_s3 + $0x70] sm:$0xff] %vm349_vm2, %v279_v4  ;;  %v282_v12 = vadd.f32 %v453_v10, %v580_v18  ;;  %v273_v14 = vpop.f32.mrb[15].mxu0  ;;  %380 = vst.msk [vmem:[%s745_s3 + $0xf0] sm:$0xff] %vm349_vm2, %v343_v7  ;;  %v346_v15 = vadd.f32 %v469_v13, %v580_v18  ;;  %v337_v17 = vpop.f32.mrb[15].mxu1 }
  0xf5   :  { %362 = vst.msk [vmem:[%s745_s3 + $0x60] sm:$0xff] %vm349_vm2, %v271_v8  ;;  %v274_v16 = vadd.f32 %v580_v18, %v273_v14  ;;  %378 = vst.msk [vmem:[%s745_s3 + $0xe0] sm:$0xff] %vm349_vm2, %v335_v11  ;;  %v338_v19 = vadd.f32 %v580_v18, %v337_v17 }
  0xf6   :  { %365 = vst.msk [vmem:[%s745_s3 + $0x78] sm:$0xff] %vm349_vm2, %v282_v12  ;;  %381 = vst.msk [vmem:[%s745_s3 + $0xf8] sm:$0xff] %vm349_vm2, %v346_v15 }
  0xf7   :  { %363 = vst.msk [vmem:[%s745_s3 + $0x68] sm:$0xff] %vm349_vm2, %v274_v16  ;;  %379 = vst.msk [vmem:[%s745_s3 + $0xe8] sm:$0xff] %vm349_vm2, %v338_v19 }

// kernel: _forward_core.24
= control target key start
LH: loop header
LB: loop body
LE: loop exit
PB: predicated region body
PF: predicated region fallthrough
CT: control target
= control target key end

     0   :  { %vm46_vm0 = vcmask 64512   ;;  %s1314_s0 = inlined_call_operand.vmem [shape: f32[256,8], index: 0, kind: input, shape index: {}]   ;;  %s1315_s1 = inlined_call_operand.vmem [shape: f32[1,8], index: 1, kind: input, shape index: {}]   ;;  %s1316_s2 = inlined_call_operand.vmem [shape: f32[1,8], index: 2, kind: input, shape index: {}]   ;;  %s1317_s3 = inlined_call_operand.vmem [shape: f32[256,8], index: 3, kind: output, shape index: {}]  }
   0x1   :  { %v667_v0 = vld [vmem:[%s1314_s0] sm:$0xff]  ;;  %v672_v1 = vld [vmem:[%s1314_s0 + $0x10] sm:$0xff]  ;;  %v677_v2 = vld [vmem:[%s1314_s0 + $0x8] sm:$0xff] }
   0x2   :  { %v47_v3 = vsel %vm46_vm0, %v667_v0, 0.0  ;;  %v53_v4 = vsel %vm46_vm0, %v672_v1, 0.0  ;;  %v686_v5 = vld [vmem:[%s1314_s0 + $0x18] sm:$0xff]  ;;  %v50_v6 = vsel %vm46_vm0, %v677_v2, 0.0  ;;  %v695_v8 = vld [vmem:[%s1314_s0 + $0x20] sm:$0xff]  ;;  %v700_v9 = vld [vmem:[%s1314_s0 + $0x28] sm:$0xff] }
   0x3   :  { %48 = vadd.xlane.f32.xlu0 %v47_v3  ;;  %54 = vadd.xlane.f32.xlu1 %v53_v4  ;;  %v56_v7 = vsel %vm46_vm0, %v686_v5, 0.0  ;;  %v59_v10 = vsel %vm46_vm0, %v695_v8, 0.0  ;;  %v62_v11 = vsel %vm46_vm0, %v700_v9, 0.0  ;;  %v709_v12 = vld [vmem:[%s1314_s0 + $0x30] sm:$0xff]  ;;  %v714_v13 = vld [vmem:[%s1314_s0 + $0x38] sm:$0xff]  ;;  %v723_v16 = vld [vmem:[%s1314_s0 + $0x40] sm:$0xff] }
   0x4   :  { %v65_v14 = vsel %vm46_vm0, %v709_v12, 0.0  ;;  %v68_v15 = vsel %vm46_vm0, %v714_v13, 0.0  ;;  %v728_v17 = vld [vmem:[%s1314_s0 + $0x48] sm:$0xff]  ;;  %v71_v18 = vsel %vm46_vm0, %v723_v16, 0.0  ;;  %v737_v20 = vld [vmem:[%s1314_s0 + $0x50] sm:$0xff]  ;;  %v742_v21 = vld [vmem:[%s1314_s0 + $0x58] sm:$0xff] }
   0x5   :  { %v74_v19 = vsel %vm46_vm0, %v728_v17, 0.0  ;;  %v77_v22 = vsel %vm46_vm0, %v737_v20, 0.0  ;;  %v80_v23 = vsel %vm46_vm0, %v742_v21, 0.0  ;;  %v751_v24 = vld [vmem:[%s1314_s0 + $0x60] sm:$0xff]  ;;  %v756_v25 = vld [vmem:[%s1314_s0 + $0x68] sm:$0xff]  ;;  %v765_v28 = vld [vmem:[%s1314_s0 + $0x70] sm:$0xff] }
   0x6   :  { %v83_v26 = vsel %vm46_vm0, %v751_v24, 0.0  ;;  %v86_v27 = vsel %vm46_vm0, %v756_v25, 0.0  ;;  %v770_v29 = vld [vmem:[%s1314_s0 + $0x78] sm:$0xff]  ;;  %v89_v30 = vsel %vm46_vm0, %v765_v28, 0.0  ;;  %v779_v32 = vld [vmem:[%s1314_s0 + $0x80] sm:$0xff]  ;;  %v784_v33 = vld [vmem:[%s1314_s0 + $0x88] sm:$0xff] }
   0x7   :  { %51 = vadd.xlane.f32.xlu0 %v50_v6  ;;  %57 = vadd.xlane.f32.xlu1 %v56_v7  ;;  %v92_v31 = vsel %vm46_vm0, %v770_v29, 0.0  ;;  %v95_v34 = vsel %vm46_vm0, %v779_v32, 0.0  ;;  %v98_v35 = vsel %vm46_vm0, %v784_v33, 0.0  ;;  %v793_v36 = vld [vmem:[%s1314_s0 + $0x90] sm:$0xff]  ;;  %v798_v37 = vld [vmem:[%s1314_s0 + $0x98] sm:$0xff]  ;;  %v807_v40 = vld [vmem:[%s1314_s0 + $0xa0] sm:$0xff] }
   0x8   :  { %v101_v38 = vsel %vm46_vm0, %v793_v36, 0.0  ;;  %v104_v39 = vsel %vm46_vm0, %v798_v37, 0.0  ;;  %v812_v41 = vld [vmem:[%s1314_s0 + $0xa8] sm:$0xff]  ;;  %v107_v42 = vsel %vm46_vm0, %v807_v40, 0.0  ;;  %v821_v44 = vld [vmem:[%s1314_s0 + $0xb0] sm:$0xff]  ;;  %v826_v45 = vld [vmem:[%s1314_s0 + $0xb8] sm:$0xff] }
   0x9   :  { %v110_v43 = vsel %vm46_vm0, %v812_v41, 0.0  ;;  %v113_v46 = vsel %vm46_vm0, %v821_v44, 0.0  ;;  %v116_v47 = vsel %vm46_vm0, %v826_v45, 0.0  ;;  %v835_v48 = vld [vmem:[%s1314_s0 + $0xc0] sm:$0xff]  ;;  %v840_v49 = vld [vmem:[%s1314_s0 + $0xc8] sm:$0xff]  ;;  %v849_v52 = vld [vmem:[%s1314_s0 + $0xd0] sm:$0xff] }
   0xa   :  { %v119_v50 = vsel %vm46_vm0, %v835_v48, 0.0  ;;  %v122_v51 = vsel %vm46_vm0, %v840_v49, 0.0  ;;  %v854_v53 = vld [vmem:[%s1314_s0 + $0xd8] sm:$0xff]  ;;  %v125_v54 = vsel %vm46_vm0, %v849_v52, 0.0  ;;  %v863_v56 = vld [vmem:[%s1314_s0 + $0xe0] sm:$0xff]  ;;  %v868_v57 = vld [vmem:[%s1314_s0 + $0xe8] sm:$0xff] }
   0xb   :  { %60 = vadd.xlane.f32.xlu0 %v59_v10  ;;  %63 = vadd.xlane.f32.xlu1 %v62_v11  ;;  %v128_v55 = vsel %vm46_vm0, %v854_v53, 0.0  ;;  %v131_v58 = vsel %vm46_vm0, %v863_v56, 0.0  ;;  %v134_v59 = vsel %vm46_vm0, %v868_v57, 0.0  ;;  %v877_v60 = vld [vmem:[%s1314_s0 + $0xf0] sm:$0xff]  ;;  %v882_v61 = vld [vmem:[%s1314_s0 + $0xf8] sm:$0xff] }
   0xc   :  { %v137_v62 = vsel %vm46_vm0, %v877_v60, 0.0  ;;  %v140_v63 = vsel %vm46_vm0, %v882_v61, 0.0 }
   0xf   :  { %66 = vadd.xlane.f32.xlu0 %v65_v14  ;;  %69 = vadd.xlane.f32.xlu1 %v68_v15 }
  0x13   :  { %72 = vadd.xlane.f32.xlu0 %v71_v18  ;;  %75 = vadd.xlane.f32.xlu1 %v74_v19 }
  0x17   :  { %78 = vadd.xlane.f32.xlu0 %v77_v22  ;;  %81 = vadd.xlane.f32.xlu1 %v80_v23 }
  0x1b   :  { %84 = vadd.xlane.f32.xlu0 %v83_v26  ;;  %87 = vadd.xlane.f32.xlu1 %v86_v27 }
  0x1f   :  { %90 = vadd.xlane.f32.xlu0 %v89_v30  ;;  %93 = vadd.xlane.f32.xlu1 %v92_v31 }
  0x23   :  { %96 = vadd.xlane.f32.xlu0 %v95_v34  ;;  %99 = vadd.xlane.f32.xlu1 %v98_v35 }
  0x27   :  { %102 = vadd.xlane.f32.xlu0 %v101_v38  ;;  %105 = vadd.xlane.f32.xlu1 %v104_v39 }
  0x2b   :  { %108 = vadd.xlane.f32.xlu0 %v107_v42  ;;  %111 = vadd.xlane.f32.xlu1 %v110_v43 }
  0x2f   :  { %114 = vadd.xlane.f32.xlu0 %v113_v46  ;;  %117 = vadd.xlane.f32.xlu1 %v116_v47 }
  0x33   :  { %120 = vadd.xlane.f32.xlu0 %v119_v50  ;;  %123 = vadd.xlane.f32.xlu1 %v122_v51 }
  0x37   :  { %126 = vadd.xlane.f32.xlu0 %v125_v54  ;;  %129 = vadd.xlane.f32.xlu1 %v128_v55 }
  0x3b   :  { %132 = vadd.xlane.f32.xlu0 %v131_v58  ;;  %135 = vadd.xlane.f32.xlu1 %v134_v59 }
  0x3f   :  { %138 = vadd.xlane.f32.xlu0 %v137_v62  ;;  %141 = vadd.xlane.f32.xlu1 %v140_v63 }
  0x90   :  { %v49_v3 = vpop.xlane.xlu0 %48  ;;  %v55_v4 = vpop.xlane.xlu1 %54 }
  0x91   :  { %v144_v6 = vmul.f32 0.125, %v49_v3  ;;  %v146_v7 = vmul.f32 0.125, %v55_v4 }
  0x93   :  { %v889_v10 = vsub.f32 %v667_v0, %v144_v6  ;;  %v892_v11 = vsub.f32 %v672_v1, %v146_v7 }
  0x94   :  { %v52_v14 = vpop.xlane.xlu0 %51  ;;  %v58_v15 = vpop.xlane.xlu1 %57 }
  0x95   :  { %v145_v18 = vmul.f32 0.125, %v52_v14  ;;  %v147_v19 = vmul.f32 0.125, %v58_v15  ;;  %v208_v22 = vmul.f32 %v889_v10, %v889_v10  ;;  %v210_v23 = vmul.f32 %v892_v11, %v892_v11 }
  0x97   :  { %v899_v26 = vsub.f32 %v677_v2, %v145_v18  ;;  %v902_v27 = vsub.f32 %v686_v5, %v147_v19  ;;  %v240_v0 = vsel %vm46_vm0, %v208_v22, 0.0  ;;  %v246_v31 = vsel %vm46_vm0, %v210_v23, 0.0 }
  0x98   :  { %241 = vadd.xlane.f32.xlu0 %v240_v0  ;;  %v61_v1 = vpop.xlane.xlu0 %60  ;;  %v64_v30 = vpop.xlane.xlu1 %63 }
  0x99   :  { %v148_v34 = vmul.f32 0.125, %v61_v1  ;;  %v149_v35 = vmul.f32 0.125, %v64_v30  ;;  %v209_v38 = vmul.f32 %v899_v26, %v899_v26  ;;  %v211_v39 = vmul.f32 %v902_v27, %v902_v27 }
  0x9b   :  { %v911_v2 = vsub.f32 %v695_v8, %v148_v34  ;;  %v914_v5 = vsub.f32 %v700_v9, %v149_v35  ;;  %v243_v42 = vsel %vm46_vm0, %v209_v38, 0.0  ;;  %v249_v47 = vsel %vm46_vm0, %v211_v39, 0.0 }
  0x9c   :  { %247 = vadd.xlane.f32.xlu0 %v246_v31  ;;  %244 = vadd.xlane.f32.xlu1 %v243_v42  ;;  %v67_v43 = vpop.xlane.xlu0 %66  ;;  %v70_v46 = vpop.xlane.xlu1 %69 }
  0x9d   :  { %v150_v50 = vmul.f32 0.125, %v67_v43  ;;  %v151_v51 = vmul.f32 0.125, %v70_v46  ;;  %v212_v54 = vmul.f32 %v911_v2, %v911_v2  ;;  %v213_v8 = vmul.f32 %v914_v5, %v914_v5 }
  0x9f   :  { %v923_v55 = vsub.f32 %v709_v12, %v150_v50  ;;  %v926_v9 = vsub.f32 %v714_v13, %v151_v51  ;;  %v252_v58 = vsel %vm46_vm0, %v212_v54, 0.0  ;;  %v255_v63 = vsel %vm46_vm0, %v213_v8, 0.0 }
  0xa0   :  { %250 = vadd.xlane.f32.xlu1 %v249_v47  ;;  %253 = vadd.xlane.f32.xlu0 %v252_v58  ;;  %v73_v59 = vpop.xlane.xlu0 %72  ;;  %v76_v62 = vpop.xlane.xlu1 %75 }
  0xa1   :  { %v152_v3 = vmul.f32 0.125, %v73_v59  ;;  %v153_v4 = vmul.f32 0.125, %v76_v62  ;;  %v214_v6 = vmul.f32 %v923_v55, %v923_v55  ;;  %v215_v12 = vmul.f32 %v926_v9, %v926_v9 }
  0xa3   :  { %v935_v7 = vsub.f32 %v723_v16, %v152_v3  ;;  %v938_v13 = vsub.f32 %v728_v17, %v153_v4  ;;  %v258_v14 = vsel %vm46_vm0, %v214_v6, 0.0  ;;  %v261_v19 = vsel %vm46_vm0, %v215_v12, 0.0 }
  0xa4   :  { %256 = vadd.xlane.f32.xlu1 %v255_v63  ;;  %259 = vadd.xlane.f32.xlu0 %v258_v14  ;;  %v79_v15 = vpop.xlane.xlu0 %78  ;;  %v82_v18 = vpop.xlane.xlu1 %81 }
  0xa5   :  { %v154_v22 = vmul.f32 0.125, %v79_v15  ;;  %v155_v23 = vmul.f32 0.125, %v82_v18  ;;  %v216_v0 = vmul.f32 %v935_v7, %v935_v7  ;;  %v217_v16 = vmul.f32 %v938_v13, %v938_v13 }
  0xa7   :  { %v947_v1 = vsub.f32 %v737_v20, %v154_v22  ;;  %v950_v17 = vsub.f32 %v742_v21, %v155_v23  ;;  %v264_v30 = vsel %vm46_vm0, %v216_v0, 0.0  ;;  %v267_v35 = vsel %vm46_vm0, %v217_v16, 0.0 }
  0xa8   :  { %262 = vadd.xlane.f32.xlu1 %v261_v19  ;;  %265 = vadd.xlane.f32.xlu0 %v264_v30  ;;  %v85_v31 = vpop.xlane.xlu0 %84  ;;  %v88_v34 = vpop.xlane.xlu1 %87 }
  0xa9   :  { %v156_v38 = vmul.f32 0.125, %v85_v31  ;;  %v157_v39 = vmul.f32 0.125, %v88_v34  ;;  %v218_v42 = vmul.f32 %v947_v1, %v947_v1  ;;  %v219_v20 = vmul.f32 %v950_v17, %v950_v17 }
  0xab   :  { %v959_v43 = vsub.f32 %v751_v24, %v156_v38  ;;  %v962_v21 = vsub.f32 %v756_v25, %v157_v39  ;;  %v270_v46 = vsel %vm46_vm0, %v218_v42, 0.0  ;;  %v273_v51 = vsel %vm46_vm0, %v219_v20, 0.0 }
  0xac   :  { %268 = vadd.xlane.f32.xlu1 %v267_v35  ;;  %271 = vadd.xlane.f32.xlu0 %v270_v46  ;;  %v91_v47 = vpop.xlane.xlu0 %90  ;;  %v94_v50 = vpop.xlane.xlu1 %93 }
  0xad   :  { %v158_v54 = vmul.f32 0.125, %v91_v47  ;;  %v159_v8 = vmul.f32 0.125, %v94_v50  ;;  %v220_v58 = vmul.f32 %v959_v43, %v959_v43  ;;  %v221_v24 = vmul.f32 %v962_v21, %v962_v21 }
  0xaf   :  { %v971_v59 = vsub.f32 %v765_v28, %v158_v54  ;;  %v974_v25 = vsub.f32 %v770_v29, %v159_v8  ;;  %v276_v62 = vsel %vm46_vm0, %v220_v58, 0.0  ;;  %v279_v4 = vsel %vm46_vm0, %v221_v24, 0.0 }
  0xb0   :  { %274 = vadd.xlane.f32.xlu1 %v273_v51  ;;  %277 = vadd.xlane.f32.xlu0 %v276_v62  ;;  %v97_v63 = vpop.xlane.xlu0 %96  ;;  %v100_v3 = vpop.xlane.xlu1 %99 }
  0xb1   :  { %v160_v6 = vmul.f32 0.125, %v97_v63  ;;  %v161_v12 = vmul.f32 0.125, %v100_v3  ;;  %v222_v14 = vmul.f32 %v971_v59, %v971_v59  ;;  %v223_v28 = vmul.f32 %v974_v25, %v974_v25 }
  0xb3   :  { %v983_v15 = vsub.f32 %v779_v32, %v160_v6  ;;  %v986_v29 = vsub.f32 %v784_v33, %v161_v12  ;;  %v282_v18 = vsel %vm46_vm0, %v222_v14, 0.0  ;;  %v285_v23 = vsel %vm46_vm0, %v223_v28, 0.0 }
  0xb4   :  { %280 = vadd.xlane.f32.xlu1 %v279_v4  ;;  %283 = vadd.xlane.f32.xlu0 %v282_v18  ;;  %v103_v19 = vpop.xlane.xlu0 %102  ;;  %v106_v22 = vpop.xlane.xlu1 %105 }
  0xb5   :  { %v162_v0 = vmul.f32 0.125, %v103_v19  ;;  %v163_v16 = vmul.f32 0.125, %v106_v22  ;;  %v224_v30 = vmul.f32 %v983_v15, %v983_v15  ;;  %v225_v32 = vmul.f32 %v986_v29, %v986_v29 }
  0xb7   :  { %v995_v31 = vsub.f32 %v793_v36, %v162_v0  ;;  %v998_v33 = vsub.f32 %v798_v37, %v163_v16  ;;  %v288_v34 = vsel %vm46_vm0, %v224_v30, 0.0  ;;  %v291_v39 = vsel %vm46_vm0, %v225_v32, 0.0 }
  0xb8   :  { %286 = vadd.xlane.f32.xlu1 %v285_v23  ;;  %289 = vadd.xlane.f32.xlu0 %v288_v34  ;;  %v109_v35 = vpop.xlane.xlu0 %108  ;;  %v112_v38 = vpop.xlane.xlu1 %111 }
  0xb9   :  { %v164_v42 = vmul.f32 0.125, %v109_v35  ;;  %v165_v20 = vmul.f32 0.125, %v112_v38  ;;  %v226_v46 = vmul.f32 %v995_v31, %v995_v31  ;;  %v227_v36 = vmul.f32 %v998_v33, %v998_v33 }
  0xbb   :  { %v1007_v47 = vsub.f32 %v807_v40, %v164_v42  ;;  %v1010_v37 = vsub.f32 %v812_v41, %v165_v20  ;;  %v294_v50 = vsel %vm46_vm0, %v226_v46, 0.0  ;;  %v297_v8 = vsel %vm46_vm0, %v227_v36, 0.0 }
  0xbc   :  { %292 = vadd.xlane.f32.xlu1 %v291_v39  ;;  %295 = vadd.xlane.f32.xlu0 %v294_v50  ;;  %v115_v51 = vpop.xlane.xlu0 %114  ;;  %v118_v54 = vpop.xlane.xlu1 %117 }
  0xbd   :  { %v166_v58 = vmul.f32 0.125, %v115_v51  ;;  %v167_v24 = vmul.f32 0.125, %v118_v54  ;;  %v228_v62 = vmul.f32 %v1007_v47, %v1007_v47  ;;  %v229_v40 = vmul.f32 %v1010_v37, %v1010_v37 }
  0xbf   :  { %v1019_v63 = vsub.f32 %v821_v44, %v166_v58  ;;  %v1022_v41 = vsub.f32 %v826_v45, %v167_v24  ;;  %v300_v3 = vsel %vm46_vm0, %v228_v62, 0.0  ;;  %v303_v12 = vsel %vm46_vm0, %v229_v40, 0.0 }
  0xc0   :  { %298 = vadd.xlane.f32.xlu1 %v297_v8  ;;  %301 = vadd.xlane.f32.xlu0 %v300_v3  ;;  %v121_v4 = vpop.xlane.xlu0 %120  ;;  %v124_v6 = vpop.xlane.xlu1 %123 }
  0xc1   :  { %v168_v14 = vmul.f32 0.125, %v121_v4  ;;  %v169_v28 = vmul.f32 0.125, %v124_v6  ;;  %v230_v18 = vmul.f32 %v1019_v63, %v1019_v63  ;;  %v231_v44 = vmul.f32 %v1022_v41, %v1022_v41 }
  0xc3   :  { %v1031_v19 = vsub.f32 %v835_v48, %v168_v14  ;;  %v1034_v45 = vsub.f32 %v840_v49, %v169_v28  ;;  %v306_v22 = vsel %vm46_vm0, %v230_v18, 0.0  ;;  %v309_v16 = vsel %vm46_vm0, %v231_v44, 0.0 }
  0xc4   :  { %304 = vadd.xlane.f32.xlu1 %v303_v12  ;;  %307 = vadd.xlane.f32.xlu0 %v306_v22  ;;  %v127_v23 = vpop.xlane.xlu0 %126  ;;  %v130_v0 = vpop.xlane.xlu1 %129 }
  0xc5   :  { %v170_v30 = vmul.f32 0.125, %v127_v23  ;;  %v171_v32 = vmul.f32 0.125, %v130_v0  ;;  %v232_v34 = vmul.f32 %v1031_v19, %v1031_v19  ;;  %v233_v48 = vmul.f32 %v1034_v45, %v1034_v45 }
  0xc7   :  { %v1043_v35 = vsub.f32 %v849_v52, %v170_v30  ;;  %v1046_v49 = vsub.f32 %v854_v53, %v171_v32  ;;  %v312_v38 = vsel %vm46_vm0, %v232_v34, 0.0  ;;  %v315_v20 = vsel %vm46_vm0, %v233_v48, 0.0 }
  0xc8   :  { %310 = vadd.xlane.f32.xlu1 %v309_v16  ;;  %313 = vadd.xlane.f32.xlu0 %v312_v38  ;;  %v133_v39 = vpop.xlane.xlu0 %132  ;;  %v136_v42 = vpop.xlane.xlu1 %135 }
  0xc9   :  { %v172_v46 = vmul.f32 0.125, %v133_v39  ;;  %v173_v36 = vmul.f32 0.125, %v136_v42  ;;  %v234_v50 = vmul.f32 %v1043_v35, %v1043_v35  ;;  %v235_v52 = vmul.f32 %v1046_v49, %v1046_v49 }
  0xcb   :  { %v1055_v51 = vsub.f32 %v863_v56, %v172_v46  ;;  %v1058_v53 = vsub.f32 %v868_v57, %v173_v36  ;;  %v318_v54 = vsel %vm46_vm0, %v234_v50, 0.0  ;;  %v321_v24 = vsel %vm46_vm0, %v235_v52, 0.0 }
  0xcc   :  { %316 = vadd.xlane.f32.xlu1 %v315_v20  ;;  %319 = vadd.xlane.f32.xlu0 %v318_v54  ;;  %v139_v8 = vpop.xlane.xlu0 %138  ;;  %v142_v58 = vpop.xlane.xlu1 %141 }
  0xcd   :  { %v174_v62 = vmul.f32 0.125, %v139_v8  ;;  %v175_v40 = vmul.f32 0.125, %v142_v58  ;;  %v236_v3 = vmul.f32 %v1055_v51, %v1055_v51  ;;  %v237_v56 = vmul.f32 %v1058_v53, %v1058_v53  ;;  %v1083_v58 = vld [vmem:[%s1315_s1] ss:$0 sm:$0xff] }
  0xcf   :  { %v1067_v4 = vsub.f32 %v877_v60, %v174_v62  ;;  %v1070_v57 = vsub.f32 %v882_v61, %v175_v40  ;;  %v324_v6 = vsel %vm46_vm0, %v236_v3, 0.0  ;;  %v327_v12 = vsel %vm46_vm0, %v237_v56, 0.0 }
  0xd0   :  { %322 = vadd.xlane.f32.xlu1 %v321_v24  ;;  %325 = vadd.xlane.f32.xlu0 %v324_v6  ;;  %v1089_v6 = vld [vmem:[%s1316_s2] ss:$0 sm:$0xff] }
  0xd1   :  { %v238_v14 = vmul.f32 %v1067_v4, %v1067_v4  ;;  %v239_v28 = vmul.f32 %v1070_v57, %v1070_v57 }
  0xd3   :  { %v330_v18 = vsel %vm46_vm0, %v238_v14, 0.0  ;;  %v333_v60 = vsel %vm46_vm0, %v239_v28, 0.0 }
  0xd4   :  { %328 = vadd.xlane.f32.xlu1 %v327_v12  ;;  %331 = vadd.xlane.f32.xlu0 %v330_v18 }
  0xd8   :  { %334 = vadd.xlane.f32.xlu1 %v333_v60 }
 0x125   :  { %v242_v61 = vpop.xlane.xlu0 %241 }
 0x126   :  { %v336_v44 = vmul.f32 0.125, %v242_v61 }
 0x128   :  { %v368_v22 = vadd.f32 1e-06, %v336_v44 }
 0x129   :  { %v245_v23 = vpop.xlane.xlu1 %244  ;;  %v248_v0 = vpop.xlane.xlu0 %247 }
 0x12a   :  { %580 = vrsqrt.f32 %v368_v22  ;;  %v337_v16 = vmul.f32 0.125, %v245_v23  ;;  %v338_v30 = vmul.f32 0.125, %v248_v0 }
 0x12c   :  { %v369_v32 = vadd.f32 1e-06, %v337_v16  ;;  %v370_v34 = vadd.f32 1e-06, %v338_v30 }
 0x12d   :  { %v251_v48 = vpop.xlane.xlu1 %250  ;;  %v254_v38 = vpop.xlane.xlu0 %253 }
 0x12e   :  { %582 = vrsqrt.f32 %v369_v32  ;;  %v339_v39 = vmul.f32 0.125, %v251_v48  ;;  %v340_v42 = vmul.f32 0.125, %v254_v38 }
 0x12f   :  { %584 = vrsqrt.f32 %v370_v34 }
 0x130   :  { %v371_v20 = vadd.f32 1e-06, %v339_v39  ;;  %v372_v46 = vadd.f32 1e-06, %v340_v42 }
 0x131   :  { %v257_v36 = vpop.xlane.xlu1 %256  ;;  %v260_v50 = vpop.xlane.xlu0 %259 }
 0x132   :  { %586 = vrsqrt.f32 %v371_v20  ;;  %v341_v52 = vmul.f32 0.125, %v257_v36  ;;  %v342_v54 = vmul.f32 0.125, %v260_v50 }
 0x133   :  { %588 = vrsqrt.f32 %v372_v46 }
 0x134   :  { %v581_v8 = vpop.eup %580  ;;  %v373_v24 = vadd.f32 1e-06, %v341_v52  ;;  %v374_v62 = vadd.f32 1e-06, %v342_v54 }
 0x135   :  { %v432_v40 = vmul.f32 %v581_v8, %v889_v10  ;;  %v263_v3 = vpop.xlane.xlu1 %262  ;;  %v266_v56 = vpop.xlane.xlu0 %265 }
 0x136   :  { %590 = vrsqrt.f32 %v373_v24  ;;  %v343_v12 = vmul.f32 0.125, %v263_v3  ;;  %v344_v14 = vmul.f32 0.125, %v266_v56 }
 0x137   :  { %v471_v28 = vmul.f32 %v1083_v58, %v432_v40  ;;  %592 = vrsqrt.f32 %v374_v62 }
 0x138   :  { %v583_v18 = vpop.eup %582  ;;  %v375_v60 = vadd.f32 1e-06, %v343_v12  ;;  %v376_v61 = vadd.f32 1e-06, %v344_v14 }
 0x139   :  { %v585_v44 = vpop.eup %584  ;;  %v510_v22 = vadd.f32 %v1089_v6, %v471_v28  ;;  %v433_v10 = vmul.f32 %v583_v18, %v899_v26  ;;  %v269_v23 = vpop.xlane.xlu1 %268 }
 0x13a   :  { %v272_v0 = vpop.xlane.xlu0 %271  ;;  %v434_v16 = vmul.f32 %v585_v44, %v892_v11  ;;  %594 = vrsqrt.f32 %v375_v60  ;;  %v345_v30 = vmul.f32 0.125, %v269_v23 }
 0x13b   :  { %v346_v32 = vmul.f32 0.125, %v272_v0  ;;  %542 = vst.msk [vmem:[%s1317_s3] sm:$0xff] %vm46_vm0, %v510_v22  ;;  %v472_v34 = vmul.f32 %v1083_v58, %v433_v10  ;;  %596 = vrsqrt.f32 %v376_v61 }
 0x13c   :  { %v587_v48 = vpop.eup %586  ;;  %v473_v38 = vmul.f32 %v1083_v58, %v434_v16  ;;  %v377_v39 = vadd.f32 1e-06, %v345_v30 }
 0x13d   :  { %v378_v26 = vadd.f32 1e-06, %v346_v32  ;;  %v589_v42 = vpop.eup %588  ;;  %v511_v20 = vadd.f32 %v1089_v6, %v472_v34  ;;  %v435_v11 = vmul.f32 %v587_v48, %v902_v27  ;;  %v275_v46 = vpop.xlane.xlu1 %274 }
 0x13e   :  { %v278_v36 = vpop.xlane.xlu0 %277  ;;  %v512_v50 = vadd.f32 %v1089_v6, %v473_v38  ;;  %v436_v52 = vmul.f32 %v589_v42, %v911_v2  ;;  %598 = vrsqrt.f32 %v377_v39  ;;  %v347_v54 = vmul.f32 0.125, %v275_v46 }
 0x13f   :  { %543 = vst.msk [vmem:[%s1317_s3 + $0x8] sm:$0xff] %vm46_vm0, %v511_v20  ;;  %v474_v8 = vmul.f32 %v1083_v58, %v435_v11  ;;  %600 = vrsqrt.f32 %v378_v26  ;;  %v348_v24 = vmul.f32 0.125, %v278_v36 }
 0x140   :  { %v591_v62 = vpop.eup %590  ;;  %544 = vst.msk [vmem:[%s1317_s3 + $0x10] sm:$0xff] %vm46_vm0, %v512_v50  ;;  %v475_v27 = vmul.f32 %v1083_v58, %v436_v52  ;;  %v379_v2 = vadd.f32 1e-06, %v347_v54 }
 0x141   :  { %v593_v40 = vpop.eup %592  ;;  %v513_v3 = vadd.f32 %v1089_v6, %v474_v8  ;;  %v437_v56 = vmul.f32 %v591_v62, %v914_v5  ;;  %v380_v12 = vadd.f32 1e-06, %v348_v24  ;;  %v281_v14 = vpop.xlane.xlu1 %280 }
 0x142   :  { %v284_v28 = vpop.xlane.xlu0 %283  ;;  %v514_v18 = vadd.f32 %v1089_v6, %v475_v27  ;;  %v438_v60 = vmul.f32 %v593_v40, %v923_v55  ;;  %602 = vrsqrt.f32 %v379_v2  ;;  %v349_v61 = vmul.f32 0.125, %v281_v14 }
 0x143   :  { %545 = vst.msk [vmem:[%s1317_s3 + $0x18] sm:$0xff] %vm46_vm0, %v513_v3  ;;  %v476_v44 = vmul.f32 %v1083_v58, %v437_v56  ;;  %604 = vrsqrt.f32 %v380_v12  ;;  %v350_v22 = vmul.f32 0.125, %v284_v28 }
 0x144   :  { %v595_v10 = vpop.eup %594  ;;  %546 = vst.msk [vmem:[%s1317_s3 + $0x20] sm:$0xff] %vm46_vm0, %v514_v18  ;;  %v477_v5 = vmul.f32 %v1083_v58, %v438_v60  ;;  %v381_v55 = vadd.f32 1e-06, %v349_v61 }
 0x145   :  { %v597_v23 = vpop.eup %596  ;;  %v515_v0 = vadd.f32 %v1089_v6, %v476_v44  ;;  %v439_v16 = vmul.f32 %v595_v10, %v926_v9  ;;  %v382_v30 = vadd.f32 1e-06, %v350_v22  ;;  %v287_v32 = vpop.xlane.xlu1 %286 }
 0x146   :  { %v290_v34 = vpop.xlane.xlu0 %289  ;;  %v516_v48 = vadd.f32 %v1089_v6, %v477_v5  ;;  %v440_v38 = vmul.f32 %v597_v23, %v935_v7  ;;  %606 = vrsqrt.f32 %v381_v55  ;;  %v351_v39 = vmul.f32 0.125, %v287_v32 }
 0x147   :  { %547 = vst.msk [vmem:[%s1317_s3 + $0x28] sm:$0xff] %vm46_vm0, %v515_v0  ;;  %v478_v26 = vmul.f32 %v1083_v58, %v439_v16  ;;  %608 = vrsqrt.f32 %v382_v30  ;;  %v352_v42 = vmul.f32 0.125, %v290_v34 }
 0x148   :  { %v599_v20 = vpop.eup %598  ;;  %548 = vst.msk [vmem:[%s1317_s3 + $0x30] sm:$0xff] %vm46_vm0, %v516_v48  ;;  %v479_v9 = vmul.f32 %v1083_v58, %v440_v38  ;;  %v383_v7 = vadd.f32 1e-06, %v351_v39 }
 0x149   :  { %v601_v11 = vpop.eup %600  ;;  %v517_v46 = vadd.f32 %v1089_v6, %v478_v26  ;;  %v441_v36 = vmul.f32 %v599_v20, %v938_v13  ;;  %v384_v50 = vadd.f32 1e-06, %v352_v42  ;;  %v293_v52 = vpop.xlane.xlu1 %292 }
 0x14a   :  { %v296_v54 = vpop.xlane.xlu0 %295  ;;  %v518_v8 = vadd.f32 %v1089_v6, %v479_v9  ;;  %v442_v24 = vmul.f32 %v601_v11, %v947_v1  ;;  %610 = vrsqrt.f32 %v383_v7  ;;  %v353_v62 = vmul.f32 0.125, %v293_v52 }
 0x14b   :  { %549 = vst.msk [vmem:[%s1317_s3 + $0x38] sm:$0xff] %vm46_vm0, %v517_v46  ;;  %v480_v27 = vmul.f32 %v1083_v58, %v441_v36  ;;  %612 = vrsqrt.f32 %v384_v50  ;;  %v354_v2 = vmul.f32 0.125, %v296_v54 }
 0x14c   :  { %v603_v40 = vpop.eup %602  ;;  %550 = vst.msk [vmem:[%s1317_s3 + $0x40] sm:$0xff] %vm46_vm0, %v518_v8  ;;  %v481_v13 = vmul.f32 %v1083_v58, %v442_v24  ;;  %v385_v1 = vadd.f32 1e-06, %v353_v62 }
 0x14d   :  { %v605_v3 = vpop.eup %604  ;;  %v519_v56 = vadd.f32 %v1089_v6, %v480_v27  ;;  %v443_v12 = vmul.f32 %v603_v40, %v950_v17  ;;  %v386_v14 = vadd.f32 1e-06, %v354_v2  ;;  %v299_v28 = vpop.xlane.xlu1 %298 }
 0x14e   :  { %v302_v18 = vpop.xlane.xlu0 %301  ;;  %v520_v60 = vadd.f32 %v1089_v6, %v481_v13  ;;  %v444_v61 = vmul.f32 %v605_v3, %v959_v43  ;;  %614 = vrsqrt.f32 %v385_v1  ;;  %v355_v44 = vmul.f32 0.125, %v299_v28 }
 0x14f   :  { %551 = vst.msk [vmem:[%s1317_s3 + $0x48] sm:$0xff] %vm46_vm0, %v519_v56  ;;  %v482_v22 = vmul.f32 %v1083_v58, %v443_v12  ;;  %616 = vrsqrt.f32 %v386_v14  ;;  %v356_v10 = vmul.f32 0.125, %v302_v18 }
 0x150   :  { %v607_v5 = vpop.eup %606  ;;  %552 = vst.msk [vmem:[%s1317_s3 + $0x50] sm:$0xff] %vm46_vm0, %v520_v60  ;;  %v483_v17 = vmul.f32 %v1083_v58, %v444_v61  ;;  %v387_v43 = vadd.f32 1e-06, %v355_v44 }
 0x151   :  { %v609_v55 = vpop.eup %608  ;;  %v521_v23 = vadd.f32 %v1089_v6, %v482_v22  ;;  %v445_v0 = vmul.f32 %v607_v5, %v962_v21  ;;  %v388_v16 = vadd.f32 1e-06, %v356_v10  ;;  %v305_v30 = vpop.xlane.xlu1 %304 }
 0x152   :  { %v308_v32 = vpop.xlane.xlu0 %307  ;;  %v522_v34 = vadd.f32 %v1089_v6, %v483_v17  ;;  %v446_v48 = vmul.f32 %v609_v55, %v971_v59  ;;  %618 = vrsqrt.f32 %v387_v43  ;;  %v357_v38 = vmul.f32 0.125, %v305_v30 }
 0x153   :  { %553 = vst.msk [vmem:[%s1317_s3 + $0x58] sm:$0xff] %vm46_vm0, %v521_v23  ;;  %v484_v39 = vmul.f32 %v1083_v58, %v445_v0  ;;  %620 = vrsqrt.f32 %v388_v16  ;;  %v358_v26 = vmul.f32 0.125, %v308_v32 }
 0x154   :  { %v611_v42 = vpop.eup %610  ;;  %554 = vst.msk [vmem:[%s1317_s3 + $0x60] sm:$0xff] %vm46_vm0, %v522_v34  ;;  %v485_v21 = vmul.f32 %v1083_v58, %v446_v48  ;;  %v389_v59 = vadd.f32 1e-06, %v357_v38 }
 0x155   :  { %v613_v20 = vpop.eup %612  ;;  %v523_v9 = vadd.f32 %v1089_v6, %v484_v39  ;;  %v447_v7 = vmul.f32 %v611_v42, %v974_v25  ;;  %v390_v11 = vadd.f32 1e-06, %v358_v26  ;;  %v311_v46 = vpop.xlane.xlu1 %310 }
 0x156   :  { %v314_v36 = vpop.xlane.xlu0 %313  ;;  %v524_v50 = vadd.f32 %v1089_v6, %v485_v21  ;;  %v448_v52 = vmul.f32 %v613_v20, %v983_v15  ;;  %622 = vrsqrt.f32 %v389_v59  ;;  %v359_v54 = vmul.f32 0.125, %v311_v46 }
 0x157   :  { %555 = vst.msk [vmem:[%s1317_s3 + $0x68] sm:$0xff] %vm46_vm0, %v523_v9  ;;  %v486_v8 = vmul.f32 %v1083_v58, %v447_v7  ;;  %624 = vrsqrt.f32 %v390_v11  ;;  %v360_v24 = vmul.f32 0.125, %v314_v36 }
 0x158   :  { %v615_v62 = vpop.eup %614  ;;  %556 = vst.msk [vmem:[%s1317_s3 + $0x70] sm:$0xff] %vm46_vm0, %v524_v50  ;;  %v487_v25 = vmul.f32 %v1083_v58, %v448_v52  ;;  %v391_v15 = vadd.f32 1e-06, %v359_v54 }
 0x159   :  { %v617_v27 = vpop.eup %616  ;;  %v525_v2 = vadd.f32 %v1089_v6, %v486_v8  ;;  %v449_v40 = vmul.f32 %v615_v62, %v986_v29  ;;  %v392_v13 = vadd.f32 1e-06, %v360_v24  ;;  %v317_v1 = vpop.xlane.xlu1 %316 }
 0x15a   :  { %v320_v3 = vpop.xlane.xlu0 %319  ;;  %v526_v56 = vadd.f32 %v1089_v6, %v487_v25  ;;  %v450_v12 = vmul.f32 %v617_v27, %v995_v31  ;;  %626 = vrsqrt.f32 %v391_v15  ;;  %v361_v14 = vmul.f32 0.125, %v317_v1 }
 0x15b   :  { %557 = vst.msk [vmem:[%s1317_s3 + $0x78] sm:$0xff] %vm46_vm0, %v525_v2  ;;  %v488_v28 = vmul.f32 %v1083_v58, %v449_v40  ;;  %628 = vrsqrt.f32 %v392_v13  ;;  %v362_v18 = vmul.f32 0.125, %v320_v3 }
 0x15c   :  { %v619_v60 = vpop.eup %618  ;;  %558 = vst.msk [vmem:[%s1317_s3 + $0x80] sm:$0xff] %vm46_vm0, %v526_v56  ;;  %v489_v29 = vmul.f32 %v1083_v58, %v450_v12  ;;  %v393_v31 = vadd.f32 1e-06, %v361_v14 }
 0x15d   :  { %v621_v61 = vpop.eup %620  ;;  %v527_v44 = vadd.f32 %v1089_v6, %v488_v28  ;;  %v451_v22 = vmul.f32 %v619_v60, %v998_v33  ;;  %v394_v10 = vadd.f32 1e-06, %v362_v18  ;;  %v323_v5 = vpop.xlane.xlu1 %322 }
 0x15e   :  { %v326_v17 = vpop.xlane.xlu0 %325  ;;  %v528_v43 = vadd.f32 %v1089_v6, %v489_v29  ;;  %v452_v55 = vmul.f32 %v621_v61, %v1007_v47  ;;  %630 = vrsqrt.f32 %v393_v31  ;;  %v363_v23 = vmul.f32 0.125, %v323_v5 }
 0x15f   :  { %559 = vst.msk [vmem:[%s1317_s3 + $0x88] sm:$0xff] %vm46_vm0, %v527_v44  ;;  %v490_v0 = vmul.f32 %v1083_v58, %v451_v22  ;;  %632 = vrsqrt.f32 %v394_v10  ;;  %v364_v16 = vmul.f32 0.125, %v326_v17 }
 0x160   :  { %v623_v30 = vpop.eup %622  ;;  %560 = vst.msk [vmem:[%s1317_s3 + $0x90] sm:$0xff] %vm46_vm0, %v528_v43  ;;  %v491_v33 = vmul.f32 %v1083_v58, %v452_v55  ;;  %v395_v47 = vadd.f32 1e-06, %v363_v23 }
 0x161   :  { %v625_v32 = vpop.eup %624  ;;  %v529_v34 = vadd.f32 %v1089_v6, %v490_v0  ;;  %v453_v48 = vmul.f32 %v623_v30, %v1010_v37  ;;  %v396_v38 = vadd.f32 1e-06, %v364_v16  ;;  %v329_v39 = vpop.xlane.xlu1 %328 }
 0x162   :  { %v332_v26 = vpop.xlane.xlu0 %331  ;;  %v530_v42 = vadd.f32 %v1089_v6, %v491_v33  ;;  %v454_v21 = vmul.f32 %v625_v32, %v1019_v63  ;;  %634 = vrsqrt.f32 %v395_v47  ;;  %v365_v59 = vmul.f32 0.125, %v329_v39 }
 0x163   :  { %561 = vst.msk [vmem:[%s1317_s3 + $0x98] sm:$0xff] %vm46_vm0, %v529_v34  ;;  %v492_v20 = vmul.f32 %v1083_v58, %v453_v48  ;;  %636 = vrsqrt.f32 %v396_v38  ;;  %v366_v9 = vmul.f32 0.125, %v332_v26 }
 0x164   :  { %v627_v7 = vpop.eup %626  ;;  %562 = vst.msk [vmem:[%s1317_s3 + $0xa0] sm:$0xff] %vm46_vm0, %v530_v42  ;;  %v493_v37 = vmul.f32 %v1083_v58, %v454_v21  ;;  %v397_v63 = vadd.f32 1e-06, %v365_v59 }
 0x165   :  { %v629_v11 = vpop.eup %628  ;;  %v531_v46 = vadd.f32 %v1089_v6, %v492_v20  ;;  %v455_v36 = vmul.f32 %v627_v7, %v1022_v41  ;;  %v398_v50 = vadd.f32 1e-06, %v366_v9  ;;  %v335_v52 = vpop.xlane.xlu1 %334 }
 0x166   :  { %v532_v54 = vadd.f32 %v1089_v6, %v493_v37  ;;  %v456_v8 = vmul.f32 %v629_v11, %v1031_v19  ;;  %638 = vrsqrt.f32 %v397_v63  ;;  %v367_v24 = vmul.f32 0.125, %v335_v52 }
 0x167   :  { %563 = vst.msk [vmem:[%s1317_s3 + $0xa8] sm:$0xff] %vm46_vm0, %v531_v46  ;;  %v494_v62 = vmul.f32 %v1083_v58, %v455_v36  ;;  %640 = vrsqrt.f32 %v398_v50 }
 0x168   :  { %v631_v25 = vpop.eup %630  ;;  %564 = vst.msk [vmem:[%s1317_s3 + $0xb0] sm:$0xff] %vm46_vm0, %v532_v54  ;;  %v495_v41 = vmul.f32 %v1083_v58, %v456_v8  ;;  %v399_v15 = vadd.f32 1e-06, %v367_v24 }
 0x169   :  { %v633_v19 = vpop.eup %632  ;;  %v533_v27 = vadd.f32 %v1089_v6, %v494_v62  ;;  %v457_v2 = vmul.f32 %v631_v25, %v1034_v45 }
 0x16a   :  { %v534_v40 = vadd.f32 %v1089_v6, %v495_v41  ;;  %v458_v13 = vmul.f32 %v633_v19, %v1043_v35  ;;  %642 = vrsqrt.f32 %v399_v15 }
 0x16b   :  { %565 = vst.msk [vmem:[%s1317_s3 + $0xb8] sm:$0xff] %vm46_vm0, %v533_v27  ;;  %v496_v1 = vmul.f32 %v1083_v58, %v457_v2 }
 0x16c   :  { %v635_v3 = vpop.eup %634  ;;  %566 = vst.msk [vmem:[%s1317_s3 + $0xc0] sm:$0xff] %vm46_vm0, %v534_v40  ;;  %v497_v45 = vmul.f32 %v1083_v58, %v458_v13 }
 0x16d   :  { %v637_v56 = vpop.eup %636  ;;  %v535_v12 = vadd.f32 %v1089_v6, %v496_v1  ;;  %v459_v35 = vmul.f32 %v635_v3, %v1046_v49 }
 0x16e   :  { %v536_v14 = vadd.f32 %v1089_v6, %v497_v45  ;;  %v460_v28 = vmul.f32 %v637_v56, %v1055_v51 }
 0x16f   :  { %567 = vst.msk [vmem:[%s1317_s3 + $0xc8] sm:$0xff] %vm46_vm0, %v535_v12  ;;  %v498_v18 = vmul.f32 %v1083_v58, %v459_v35 }
 0x170   :  { %v639_v60 = vpop.eup %638  ;;  %568 = vst.msk [vmem:[%s1317_s3 + $0xd0] sm:$0xff] %vm46_vm0, %v536_v14  ;;  %v499_v29 = vmul.f32 %v1083_v58, %v460_v28 }
 0x171   :  { %v641_v49 = vpop.eup %640  ;;  %v537_v31 = vadd.f32 %v1089_v6, %v498_v18  ;;  %v461_v51 = vmul.f32 %v639_v60, %v1058_v53 }
 0x172   :  { %v538_v61 = vadd.f32 %v1089_v6, %v499_v29  ;;  %v462_v44 = vmul.f32 %v641_v49, %v1067_v4 }
 0x173   :  { %569 = vst.msk [vmem:[%s1317_s3 + $0xd8] sm:$0xff] %vm46_vm0, %v537_v31  ;;  %v500_v22 = vmul.f32 %v1083_v58, %v461_v51 }
 0x174   :  { %v643_v10 = vpop.eup %642  ;;  %570 = vst.msk [vmem:[%s1317_s3 + $0xe0] sm:$0xff] %vm46_vm0, %v538_v61  ;;  %v501_v5 = vmul.f32 %v1083_v58, %v462_v44 }
 0x175   :  { %v539_v53 = vadd.f32 %v1089_v6, %v500_v22  ;;  %v463_v17 = vmul.f32 %v643_v10, %v1070_v57 }
 0x176   :  { %v540_v4 = vadd.f32 %v1089_v6, %v501_v5 }
 0x177   :  { %571 = vst.msk [vmem:[%s1317_s3 + $0xe8] sm:$0xff] %vm46_vm0, %v539_v53  ;;  %v502_v43 = vmul.f32 %v1083_v58, %v463_v17 }
 0x178   :  { %572 = vst.msk [vmem:[%s1317_s3 + $0xf0] sm:$0xff] %vm46_vm0, %v540_v4 }
 0x179   :  { %v541_v55 = vadd.f32 %v1089_v6, %v502_v43 }
 0x17b   :  { %573 = vst.msk [vmem:[%s1317_s3 + $0xf8] sm:$0xff] %vm46_vm0, %v541_v55 }

// kernel: _forward_core.27
= control target key start
LH: loop header
LB: loop body
LE: loop exit
PB: predicated region body
PF: predicated region fallthrough
CT: control target
= control target key end

     0   :  { %vm46_vm0 = vcmask 261120   ;;  %s1314_s0 = inlined_call_operand.vmem [shape: f32[256,32], index: 0, kind: input, shape index: {}]   ;;  %s1315_s1 = inlined_call_operand.vmem [shape: f32[1,32], index: 1, kind: input, shape index: {}]   ;;  %s1316_s2 = inlined_call_operand.vmem [shape: f32[1,32], index: 2, kind: input, shape index: {}]   ;;  %s1317_s3 = inlined_call_operand.vmem [shape: f32[256,32], index: 3, kind: output, shape index: {}]  }
   0x1   :  { %v667_v0 = vld [vmem:[%s1314_s0] sm:$0xff]  ;;  %v672_v1 = vld [vmem:[%s1314_s0 + $0x10] sm:$0xff]  ;;  %v677_v2 = vld [vmem:[%s1314_s0 + $0x8] sm:$0xff] }
   0x2   :  { %v47_v3 = vsel %vm46_vm0, %v667_v0, 0.0  ;;  %v53_v4 = vsel %vm46_vm0, %v672_v1, 0.0  ;;  %v686_v5 = vld [vmem:[%s1314_s0 + $0x18] sm:$0xff]  ;;  %v50_v6 = vsel %vm46_vm0, %v677_v2, 0.0  ;;  %v695_v8 = vld [vmem:[%s1314_s0 + $0x20] sm:$0xff]  ;;  %v700_v9 = vld [vmem:[%s1314_s0 + $0x28] sm:$0xff] }
   0x3   :  { %48 = vadd.xlane.f32.xlu0 %v47_v3  ;;  %54 = vadd.xlane.f32.xlu1 %v53_v4  ;;  %v56_v7 = vsel %vm46_vm0, %v686_v5, 0.0  ;;  %v59_v10 = vsel %vm46_vm0, %v695_v8, 0.0  ;;  %v62_v11 = vsel %vm46_vm0, %v700_v9, 0.0  ;;  %v709_v12 = vld [vmem:[%s1314_s0 + $0x30] sm:$0xff]  ;;  %v714_v13 = vld [vmem:[%s1314_s0 + $0x38] sm:$0xff]  ;;  %v723_v16 = vld [vmem:[%s1314_s0 + $0x40] sm:$0xff] }
   0x4   :  { %v65_v14 = vsel %vm46_vm0, %v709_v12, 0.0  ;;  %v68_v15 = vsel %vm46_vm0, %v714_v13, 0.0  ;;  %v728_v17 = vld [vmem:[%s1314_s0 + $0x48] sm:$0xff]  ;;  %v71_v18 = vsel %vm46_vm0, %v723_v16, 0.0  ;;  %v737_v20 = vld [vmem:[%s1314_s0 + $0x50] sm:$0xff]  ;;  %v742_v21 = vld [vmem:[%s1314_s0 + $0x58] sm:$0xff] }
   0x5   :  { %v74_v19 = vsel %vm46_vm0, %v728_v17, 0.0  ;;  %v77_v22 = vsel %vm46_vm0, %v737_v20, 0.0  ;;  %v80_v23 = vsel %vm46_vm0, %v742_v21, 0.0  ;;  %v751_v24 = vld [vmem:[%s1314_s0 + $0x60] sm:$0xff]  ;;  %v756_v25 = vld [vmem:[%s1314_s0 + $0x68] sm:$0xff]  ;;  %v765_v28 = vld [vmem:[%s1314_s0 + $0x70] sm:$0xff] }
   0x6   :  { %v83_v26 = vsel %vm46_vm0, %v751_v24, 0.0  ;;  %v86_v27 = vsel %vm46_vm0, %v756_v25, 0.0  ;;  %v770_v29 = vld [vmem:[%s1314_s0 + $0x78] sm:$0xff]  ;;  %v89_v30 = vsel %vm46_vm0, %v765_v28, 0.0  ;;  %v779_v32 = vld [vmem:[%s1314_s0 + $0x80] sm:$0xff]  ;;  %v784_v33 = vld [vmem:[%s1314_s0 + $0x88] sm:$0xff] }
   0x7   :  { %51 = vadd.xlane.f32.xlu0 %v50_v6  ;;  %57 = vadd.xlane.f32.xlu1 %v56_v7  ;;  %v92_v31 = vsel %vm46_vm0, %v770_v29, 0.0  ;;  %v95_v34 = vsel %vm46_vm0, %v779_v32, 0.0  ;;  %v98_v35 = vsel %vm46_vm0, %v784_v33, 0.0  ;;  %v793_v36 = vld [vmem:[%s1314_s0 + $0x90] sm:$0xff]  ;;  %v798_v37 = vld [vmem:[%s1314_s0 + $0x98] sm:$0xff]  ;;  %v807_v40 = vld [vmem:[%s1314_s0 + $0xa0] sm:$0xff] }
   0x8   :  { %v101_v38 = vsel %vm46_vm0, %v793_v36, 0.0  ;;  %v104_v39 = vsel %vm46_vm0, %v798_v37, 0.0  ;;  %v812_v41 = vld [vmem:[%s1314_s0 + $0xa8] sm:$0xff]  ;;  %v107_v42 = vsel %vm46_vm0, %v807_v40, 0.0  ;;  %v821_v44 = vld [vmem:[%s1314_s0 + $0xb0] sm:$0xff]  ;;  %v826_v45 = vld [vmem:[%s1314_s0 + $0xb8] sm:$0xff] }
   0x9   :  { %v110_v43 = vsel %vm46_vm0, %v812_v41, 0.0  ;;  %v113_v46 = vsel %vm46_vm0, %v821_v44, 0.0  ;;  %v116_v47 = vsel %vm46_vm0, %v826_v45, 0.0  ;;  %v835_v48 = vld [vmem:[%s1314_s0 + $0xc0] sm:$0xff]  ;;  %v840_v49 = vld [vmem:[%s1314_s0 + $0xc8] sm:$0xff]  ;;  %v849_v52 = vld [vmem:[%s1314_s0 + $0xd0] sm:$0xff] }
   0xa   :  { %v119_v50 = vsel %vm46_vm0, %v835_v48, 0.0  ;;  %v122_v51 = vsel %vm46_vm0, %v840_v49, 0.0  ;;  %v854_v53 = vld [vmem:[%s1314_s0 + $0xd8] sm:$0xff]  ;;  %v125_v54 = vsel %vm46_vm0, %v849_v52, 0.0  ;;  %v863_v56 = vld [vmem:[%s1314_s0 + $0xe0] sm:$0xff]  ;;  %v868_v57 = vld [vmem:[%s1314_s0 + $0xe8] sm:$0xff] }
   0xb   :  { %60 = vadd.xlane.f32.xlu0 %v59_v10  ;;  %63 = vadd.xlane.f32.xlu1 %v62_v11  ;;  %v128_v55 = vsel %vm46_vm0, %v854_v53, 0.0  ;;  %v131_v58 = vsel %vm46_vm0, %v863_v56, 0.0  ;;  %v134_v59 = vsel %vm46_vm0, %v868_v57, 0.0  ;;  %v877_v60 = vld [vmem:[%s1314_s0 + $0xf0] sm:$0xff]  ;;  %v882_v61 = vld [vmem:[%s1314_s0 + $0xf8] sm:$0xff] }
   0xc   :  { %v137_v62 = vsel %vm46_vm0, %v877_v60, 0.0  ;;  %v140_v63 = vsel %vm46_vm0, %v882_v61, 0.0 }
   0xf   :  { %66 = vadd.xlane.f32.xlu0 %v65_v14  ;;  %69 = vadd.xlane.f32.xlu1 %v68_v15 }
  0x13   :  { %72 = vadd.xlane.f32.xlu0 %v71_v18  ;;  %75 = vadd.xlane.f32.xlu1 %v74_v19 }
  0x17   :  { %78 = vadd.xlane.f32.xlu0 %v77_v22  ;;  %81 = vadd.xlane.f32.xlu1 %v80_v23 }
  0x1b   :  { %84 = vadd.xlane.f32.xlu0 %v83_v26  ;;  %87 = vadd.xlane.f32.xlu1 %v86_v27 }
  0x1f   :  { %90 = vadd.xlane.f32.xlu0 %v89_v30  ;;  %93 = vadd.xlane.f32.xlu1 %v92_v31 }
  0x23   :  { %96 = vadd.xlane.f32.xlu0 %v95_v34  ;;  %99 = vadd.xlane.f32.xlu1 %v98_v35 }
  0x27   :  { %102 = vadd.xlane.f32.xlu0 %v101_v38  ;;  %105 = vadd.xlane.f32.xlu1 %v104_v39 }
  0x2b   :  { %108 = vadd.xlane.f32.xlu0 %v107_v42  ;;  %111 = vadd.xlane.f32.xlu1 %v110_v43 }
  0x2f   :  { %114 = vadd.xlane.f32.xlu0 %v113_v46  ;;  %117 = vadd.xlane.f32.xlu1 %v116_v47 }
  0x33   :  { %120 = vadd.xlane.f32.xlu0 %v119_v50  ;;  %123 = vadd.xlane.f32.xlu1 %v122_v51 }
  0x37   :  { %126 = vadd.xlane.f32.xlu0 %v125_v54  ;;  %129 = vadd.xlane.f32.xlu1 %v128_v55 }
  0x3b   :  { %132 = vadd.xlane.f32.xlu0 %v131_v58  ;;  %135 = vadd.xlane.f32.xlu1 %v134_v59 }
  0x3f   :  { %138 = vadd.xlane.f32.xlu0 %v137_v62  ;;  %141 = vadd.xlane.f32.xlu1 %v140_v63 }
  0x90   :  { %v49_v3 = vpop.xlane.xlu0 %48  ;;  %v55_v4 = vpop.xlane.xlu1 %54 }
  0x91   :  { %v144_v6 = vmul.f32 0.03125, %v49_v3  ;;  %v146_v7 = vmul.f32 0.03125, %v55_v4 }
  0x93   :  { %v889_v10 = vsub.f32 %v667_v0, %v144_v6  ;;  %v892_v11 = vsub.f32 %v672_v1, %v146_v7 }
  0x94   :  { %v52_v14 = vpop.xlane.xlu0 %51  ;;  %v58_v15 = vpop.xlane.xlu1 %57 }
  0x95   :  { %v145_v18 = vmul.f32 0.03125, %v52_v14  ;;  %v147_v19 = vmul.f32 0.03125, %v58_v15  ;;  %v208_v22 = vmul.f32 %v889_v10, %v889_v10  ;;  %v210_v23 = vmul.f32 %v892_v11, %v892_v11 }
  0x97   :  { %v899_v26 = vsub.f32 %v677_v2, %v145_v18  ;;  %v902_v27 = vsub.f32 %v686_v5, %v147_v19  ;;  %v240_v0 = vsel %vm46_vm0, %v208_v22, 0.0  ;;  %v246_v31 = vsel %vm46_vm0, %v210_v23, 0.0 }
  0x98   :  { %241 = vadd.xlane.f32.xlu0 %v240_v0  ;;  %v61_v1 = vpop.xlane.xlu0 %60  ;;  %v64_v30 = vpop.xlane.xlu1 %63 }
  0x99   :  { %v148_v34 = vmul.f32 0.03125, %v61_v1  ;;  %v149_v35 = vmul.f32 0.03125, %v64_v30  ;;  %v209_v38 = vmul.f32 %v899_v26, %v899_v26  ;;  %v211_v39 = vmul.f32 %v902_v27, %v902_v27 }
  0x9b   :  { %v911_v2 = vsub.f32 %v695_v8, %v148_v34  ;;  %v914_v5 = vsub.f32 %v700_v9, %v149_v35  ;;  %v243_v42 = vsel %vm46_vm0, %v209_v38, 0.0  ;;  %v249_v47 = vsel %vm46_vm0, %v211_v39, 0.0 }
  0x9c   :  { %247 = vadd.xlane.f32.xlu0 %v246_v31  ;;  %244 = vadd.xlane.f32.xlu1 %v243_v42  ;;  %v67_v43 = vpop.xlane.xlu0 %66  ;;  %v70_v46 = vpop.xlane.xlu1 %69 }
  0x9d   :  { %v150_v50 = vmul.f32 0.03125, %v67_v43  ;;  %v151_v51 = vmul.f32 0.03125, %v70_v46  ;;  %v212_v54 = vmul.f32 %v911_v2, %v911_v2  ;;  %v213_v8 = vmul.f32 %v914_v5, %v914_v5 }
  0x9f   :  { %v923_v55 = vsub.f32 %v709_v12, %v150_v50  ;;  %v926_v9 = vsub.f32 %v714_v13, %v151_v51  ;;  %v252_v58 = vsel %vm46_vm0, %v212_v54, 0.0  ;;  %v255_v63 = vsel %vm46_vm0, %v213_v8, 0.0 }
  0xa0   :  { %250 = vadd.xlane.f32.xlu1 %v249_v47  ;;  %253 = vadd.xlane.f32.xlu0 %v252_v58  ;;  %v73_v59 = vpop.xlane.xlu0 %72  ;;  %v76_v62 = vpop.xlane.xlu1 %75 }
  0xa1   :  { %v152_v3 = vmul.f32 0.03125, %v73_v59  ;;  %v153_v4 = vmul.f32 0.03125, %v76_v62  ;;  %v214_v6 = vmul.f32 %v923_v55, %v923_v55  ;;  %v215_v12 = vmul.f32 %v926_v9, %v926_v9 }
  0xa3   :  { %v935_v7 = vsub.f32 %v723_v16, %v152_v3  ;;  %v938_v13 = vsub.f32 %v728_v17, %v153_v4  ;;  %v258_v14 = vsel %vm46_vm0, %v214_v6, 0.0  ;;  %v261_v19 = vsel %vm46_vm0, %v215_v12, 0.0 }
  0xa4   :  { %256 = vadd.xlane.f32.xlu1 %v255_v63  ;;  %259 = vadd.xlane.f32.xlu0 %v258_v14  ;;  %v79_v15 = vpop.xlane.xlu0 %78  ;;  %v82_v18 = vpop.xlane.xlu1 %81 }
  0xa5   :  { %v154_v22 = vmul.f32 0.03125, %v79_v15  ;;  %v155_v23 = vmul.f32 0.03125, %v82_v18  ;;  %v216_v0 = vmul.f32 %v935_v7, %v935_v7  ;;  %v217_v16 = vmul.f32 %v938_v13, %v938_v13 }
  0xa7   :  { %v947_v1 = vsub.f32 %v737_v20, %v154_v22  ;;  %v950_v17 = vsub.f32 %v742_v21, %v155_v23  ;;  %v264_v30 = vsel %vm46_vm0, %v216_v0, 0.0  ;;  %v267_v35 = vsel %vm46_vm0, %v217_v16, 0.0 }
  0xa8   :  { %262 = vadd.xlane.f32.xlu1 %v261_v19  ;;  %265 = vadd.xlane.f32.xlu0 %v264_v30  ;;  %v85_v31 = vpop.xlane.xlu0 %84  ;;  %v88_v34 = vpop.xlane.xlu1 %87 }
  0xa9   :  { %v156_v38 = vmul.f32 0.03125, %v85_v31  ;;  %v157_v39 = vmul.f32 0.03125, %v88_v34  ;;  %v218_v42 = vmul.f32 %v947_v1, %v947_v1  ;;  %v219_v20 = vmul.f32 %v950_v17, %v950_v17 }
  0xab   :  { %v959_v43 = vsub.f32 %v751_v24, %v156_v38  ;;  %v962_v21 = vsub.f32 %v756_v25, %v157_v39  ;;  %v270_v46 = vsel %vm46_vm0, %v218_v42, 0.0  ;;  %v273_v51 = vsel %vm46_vm0, %v219_v20, 0.0 }
  0xac   :  { %268 = vadd.xlane.f32.xlu1 %v267_v35  ;;  %271 = vadd.xlane.f32.xlu0 %v270_v46  ;;  %v91_v47 = vpop.xlane.xlu0 %90  ;;  %v94_v50 = vpop.xlane.xlu1 %93 }
  0xad   :  { %v158_v54 = vmul.f32 0.03125, %v91_v47  ;;  %v159_v8 = vmul.f32 0.03125, %v94_v50  ;;  %v220_v58 = vmul.f32 %v959_v43, %v959_v43  ;;  %v221_v24 = vmul.f32 %v962_v21, %v962_v21 }
  0xaf   :  { %v971_v59 = vsub.f32 %v765_v28, %v158_v54  ;;  %v974_v25 = vsub.f32 %v770_v29, %v159_v8  ;;  %v276_v62 = vsel %vm46_vm0, %v220_v58, 0.0  ;;  %v279_v4 = vsel %vm46_vm0, %v221_v24, 0.0 }
  0xb0   :  { %274 = vadd.xlane.f32.xlu1 %v273_v51  ;;  %277 = vadd.xlane.f32.xlu0 %v276_v62  ;;  %v97_v63 = vpop.xlane.xlu0 %96  ;;  %v100_v3 = vpop.xlane.xlu1 %99 }
  0xb1   :  { %v160_v6 = vmul.f32 0.03125, %v97_v63  ;;  %v161_v12 = vmul.f32 0.03125, %v100_v3  ;;  %v222_v14 = vmul.f32 %v971_v59, %v971_v59  ;;  %v223_v28 = vmul.f32 %v974_v25, %v974_v25 }
  0xb3   :  { %v983_v15 = vsub.f32 %v779_v32, %v160_v6  ;;  %v986_v29 = vsub.f32 %v784_v33, %v161_v12  ;;  %v282_v18 = vsel %vm46_vm0, %v222_v14, 0.0  ;;  %v285_v23 = vsel %vm46_vm0, %v223_v28, 0.0 }
  0xb4   :  { %280 = vadd.xlane.f32.xlu1 %v279_v4  ;;  %283 = vadd.xlane.f32.xlu0 %v282_v18  ;;  %v103_v19 = vpop.xlane.xlu0 %102  ;;  %v106_v22 = vpop.xlane.xlu1 %105 }
  0xb5   :  { %v162_v0 = vmul.f32 0.03125, %v103_v19  ;;  %v163_v16 = vmul.f32 0.03125, %v106_v22  ;;  %v224_v30 = vmul.f32 %v983_v15, %v983_v15  ;;  %v225_v32 = vmul.f32 %v986_v29, %v986_v29 }
  0xb7   :  { %v995_v31 = vsub.f32 %v793_v36, %v162_v0  ;;  %v998_v33 = vsub.f32 %v798_v37, %v163_v16  ;;  %v288_v34 = vsel %vm46_vm0, %v224_v30, 0.0  ;;  %v291_v39 = vsel %vm46_vm0, %v225_v32, 0.0 }
  0xb8   :  { %286 = vadd.xlane.f32.xlu1 %v285_v23  ;;  %289 = vadd.xlane.f32.xlu0 %v288_v34  ;;  %v109_v35 = vpop.xlane.xlu0 %108  ;;  %v112_v38 = vpop.xlane.xlu1 %111 }
  0xb9   :  { %v164_v42 = vmul.f32 0.03125, %v109_v35  ;;  %v165_v20 = vmul.f32 0.03125, %v112_v38  ;;  %v226_v46 = vmul.f32 %v995_v31, %v995_v31  ;;  %v227_v36 = vmul.f32 %v998_v33, %v998_v33 }
  0xbb   :  { %v1007_v47 = vsub.f32 %v807_v40, %v164_v42  ;;  %v1010_v37 = vsub.f32 %v812_v41, %v165_v20  ;;  %v294_v50 = vsel %vm46_vm0, %v226_v46, 0.0  ;;  %v297_v8 = vsel %vm46_vm0, %v227_v36, 0.0 }
  0xbc   :  { %292 = vadd.xlane.f32.xlu1 %v291_v39  ;;  %295 = vadd.xlane.f32.xlu0 %v294_v50  ;;  %v115_v51 = vpop.xlane.xlu0 %114  ;;  %v118_v54 = vpop.xlane.xlu1 %117 }
  0xbd   :  { %v166_v58 = vmul.f32 0.03125, %v115_v51  ;;  %v167_v24 = vmul.f32 0.03125, %v118_v54  ;;  %v228_v62 = vmul.f32 %v1007_v47, %v1007_v47  ;;  %v229_v40 = vmul.f32 %v1010_v37, %v1010_v37 }
  0xbf   :  { %v1019_v63 = vsub.f32 %v821_v44, %v166_v58  ;;  %v1022_v41 = vsub.f32 %v826_v45, %v167_v24  ;;  %v300_v3 = vsel %vm46_vm0, %v228_v62, 0.0  ;;  %v303_v12 = vsel %vm46_vm0, %v229_v40, 0.0 }
  0xc0   :  { %298 = vadd.xlane.f32.xlu1 %v297_v8  ;;  %301 = vadd.xlane.f32.xlu0 %v300_v3  ;;  %v121_v4 = vpop.xlane.xlu0 %120  ;;  %v124_v6 = vpop.xlane.xlu1 %123 }
  0xc1   :  { %v168_v14 = vmul.f32 0.03125, %v121_v4  ;;  %v169_v28 = vmul.f32 0.03125, %v124_v6  ;;  %v230_v18 = vmul.f32 %v1019_v63, %v1019_v63  ;;  %v231_v44 = vmul.f32 %v1022_v41, %v1022_v41 }
  0xc3   :  { %v1031_v19 = vsub.f32 %v835_v48, %v168_v14  ;;  %v1034_v45 = vsub.f32 %v840_v49, %v169_v28  ;;  %v306_v22 = vsel %vm46_vm0, %v230_v18, 0.0  ;;  %v309_v16 = vsel %vm46_vm0, %v231_v44, 0.0 }
  0xc4   :  { %304 = vadd.xlane.f32.xlu1 %v303_v12  ;;  %307 = vadd.xlane.f32.xlu0 %v306_v22  ;;  %v127_v23 = vpop.xlane.xlu0 %126  ;;  %v130_v0 = vpop.xlane.xlu1 %129 }
  0xc5   :  { %v170_v30 = vmul.f32 0.03125, %v127_v23  ;;  %v171_v32 = vmul.f32 0.03125, %v130_v0  ;;  %v232_v34 = vmul.f32 %v1031_v19, %v1031_v19  ;;  %v233_v48 = vmul.f32 %v1034_v45, %v1034_v45 }
  0xc7   :  { %v1043_v35 = vsub.f32 %v849_v52, %v170_v30  ;;  %v1046_v49 = vsub.f32 %v854_v53, %v171_v32  ;;  %v312_v38 = vsel %vm46_vm0, %v232_v34, 0.0  ;;  %v315_v20 = vsel %vm46_vm0, %v233_v48, 0.0 }
  0xc8   :  { %310 = vadd.xlane.f32.xlu1 %v309_v16  ;;  %313 = vadd.xlane.f32.xlu0 %v312_v38  ;;  %v133_v39 = vpop.xlane.xlu0 %132  ;;  %v136_v42 = vpop.xlane.xlu1 %135 }
  0xc9   :  { %v172_v46 = vmul.f32 0.03125, %v133_v39  ;;  %v173_v36 = vmul.f32 0.03125, %v136_v42  ;;  %v234_v50 = vmul.f32 %v1043_v35, %v1043_v35  ;;  %v235_v52 = vmul.f32 %v1046_v49, %v1046_v49 }
  0xcb   :  { %v1055_v51 = vsub.f32 %v863_v56, %v172_v46  ;;  %v1058_v53 = vsub.f32 %v868_v57, %v173_v36  ;;  %v318_v54 = vsel %vm46_vm0, %v234_v50, 0.0  ;;  %v321_v24 = vsel %vm46_vm0, %v235_v52, 0.0 }
  0xcc   :  { %316 = vadd.xlane.f32.xlu1 %v315_v20  ;;  %319 = vadd.xlane.f32.xlu0 %v318_v54  ;;  %v139_v8 = vpop.xlane.xlu0 %138  ;;  %v142_v58 = vpop.xlane.xlu1 %141 }
  0xcd   :  { %v174_v62 = vmul.f32 0.03125, %v139_v8  ;;  %v175_v40 = vmul.f32 0.03125, %v142_v58  ;;  %v236_v3 = vmul.f32 %v1055_v51, %v1055_v51  ;;  %v237_v56 = vmul.f32 %v1058_v53, %v1058_v53  ;;  %v1083_v58 = vld [vmem:[%s1315_s1] ss:$0 sm:$0xff] }
  0xcf   :  { %v1067_v4 = vsub.f32 %v877_v60, %v174_v62  ;;  %v1070_v57 = vsub.f32 %v882_v61, %v175_v40  ;;  %v324_v6 = vsel %vm46_vm0, %v236_v3, 0.0  ;;  %v327_v12 = vsel %vm46_vm0, %v237_v56, 0.0 }
  0xd0   :  { %322 = vadd.xlane.f32.xlu1 %v321_v24  ;;  %325 = vadd.xlane.f32.xlu0 %v324_v6  ;;  %v1089_v6 = vld [vmem:[%s1316_s2] ss:$0 sm:$0xff] }
  0xd1   :  { %v238_v14 = vmul.f32 %v1067_v4, %v1067_v4  ;;  %v239_v28 = vmul.f32 %v1070_v57, %v1070_v57 }
  0xd3   :  { %v330_v18 = vsel %vm46_vm0, %v238_v14, 0.0  ;;  %v333_v60 = vsel %vm46_vm0, %v239_v28, 0.0 }
  0xd4   :  { %328 = vadd.xlane.f32.xlu1 %v327_v12  ;;  %331 = vadd.xlane.f32.xlu0 %v330_v18 }
  0xd8   :  { %334 = vadd.xlane.f32.xlu1 %v333_v60 }
 0x125   :  { %v242_v61 = vpop.xlane.xlu0 %241 }
 0x126   :  { %v336_v44 = vmul.f32 0.03125, %v242_v61 }
 0x128   :  { %v368_v22 = vadd.f32 1e-06, %v336_v44 }
 0x129   :  { %v245_v23 = vpop.xlane.xlu1 %244  ;;  %v248_v0 = vpop.xlane.xlu0 %247 }
 0x12a   :  { %580 = vrsqrt.f32 %v368_v22  ;;  %v337_v16 = vmul.f32 0.03125, %v245_v23  ;;  %v338_v30 = vmul.f32 0.03125, %v248_v0 }
 0x12c   :  { %v369_v32 = vadd.f32 1e-06, %v337_v16  ;;  %v370_v34 = vadd.f32 1e-06, %v338_v30 }
 0x12d   :  { %v251_v48 = vpop.xlane.xlu1 %250  ;;  %v254_v38 = vpop.xlane.xlu0 %253 }
 0x12e   :  { %582 = vrsqrt.f32 %v369_v32  ;;  %v339_v39 = vmul.f32 0.03125, %v251_v48  ;;  %v340_v42 = vmul.f32 0.03125, %v254_v38 }
 0x12f   :  { %584 = vrsqrt.f32 %v370_v34 }
 0x130   :  { %v371_v20 = vadd.f32 1e-06, %v339_v39  ;;  %v372_v46 = vadd.f32 1e-06, %v340_v42 }
 0x131   :  { %v257_v36 = vpop.xlane.xlu1 %256  ;;  %v260_v50 = vpop.xlane.xlu0 %259 }
 0x132   :  { %586 = vrsqrt.f32 %v371_v20  ;;  %v341_v52 = vmul.f32 0.03125, %v257_v36  ;;  %v342_v54 = vmul.f32 0.03125, %v260_v50 }
 0x133   :  { %588 = vrsqrt.f32 %v372_v46 }
 0x134   :  { %v581_v8 = vpop.eup %580  ;;  %v373_v24 = vadd.f32 1e-06, %v341_v52  ;;  %v374_v62 = vadd.f32 1e-06, %v342_v54 }
 0x135   :  { %v432_v40 = vmul.f32 %v581_v8, %v889_v10  ;;  %v263_v3 = vpop.xlane.xlu1 %262  ;;  %v266_v56 = vpop.xlane.xlu0 %265 }
 0x136   :  { %590 = vrsqrt.f32 %v373_v24  ;;  %v343_v12 = vmul.f32 0.03125, %v263_v3  ;;  %v344_v14 = vmul.f32 0.03125, %v266_v56 }
 0x137   :  { %v471_v28 = vmul.f32 %v1083_v58, %v432_v40  ;;  %592 = vrsqrt.f32 %v374_v62 }
 0x138   :  { %v583_v18 = vpop.eup %582  ;;  %v375_v60 = vadd.f32 1e-06, %v343_v12  ;;  %v376_v61 = vadd.f32 1e-06, %v344_v14 }
 0x139   :  { %v585_v44 = vpop.eup %584  ;;  %v510_v22 = vadd.f32 %v1089_v6, %v471_v28  ;;  %v433_v10 = vmul.f32 %v583_v18, %v899_v26  ;;  %v269_v23 = vpop.xlane.xlu1 %268 }
 0x13a   :  { %v272_v0 = vpop.xlane.xlu0 %271  ;;  %v434_v16 = vmul.f32 %v585_v44, %v892_v11  ;;  %594 = vrsqrt.f32 %v375_v60  ;;  %v345_v30 = vmul.f32 0.03125, %v269_v23 }
 0x13b   :  { %v346_v32 = vmul.f32 0.03125, %v272_v0  ;;  %542 = vst.msk [vmem:[%s1317_s3] sm:$0xff] %vm46_vm0, %v510_v22  ;;  %v472_v34 = vmul.f32 %v1083_v58, %v433_v10  ;;  %596 = vrsqrt.f32 %v376_v61 }
 0x13c   :  { %v587_v48 = vpop.eup %586  ;;  %v473_v38 = vmul.f32 %v1083_v58, %v434_v16  ;;  %v377_v39 = vadd.f32 1e-06, %v345_v30 }
 0x13d   :  { %v378_v26 = vadd.f32 1e-06, %v346_v32  ;;  %v589_v42 = vpop.eup %588  ;;  %v511_v20 = vadd.f32 %v1089_v6, %v472_v34  ;;  %v435_v11 = vmul.f32 %v587_v48, %v902_v27  ;;  %v275_v46 = vpop.xlane.xlu1 %274 }
 0x13e   :  { %v278_v36 = vpop.xlane.xlu0 %277  ;;  %v512_v50 = vadd.f32 %v1089_v6, %v473_v38  ;;  %v436_v52 = vmul.f32 %v589_v42, %v911_v2  ;;  %598 = vrsqrt.f32 %v377_v39  ;;  %v347_v54 = vmul.f32 0.03125, %v275_v46 }
 0x13f   :  { %543 = vst.msk [vmem:[%s1317_s3 + $0x8] sm:$0xff] %vm46_vm0, %v511_v20  ;;  %v474_v8 = vmul.f32 %v1083_v58, %v435_v11  ;;  %600 = vrsqrt.f32 %v378_v26  ;;  %v348_v24 = vmul.f32 0.03125, %v278_v36 }
 0x140   :  { %v591_v62 = vpop.eup %590  ;;  %544 = vst.msk [vmem:[%s1317_s3 + $0x10] sm:$0xff] %vm46_vm0, %v512_v50  ;;  %v475_v27 = vmul.f32 %v1083_v58, %v436_v52  ;;  %v379_v2 = vadd.f32 1e-06, %v347_v54 }
 0x141   :  { %v593_v40 = vpop.eup %592  ;;  %v513_v3 = vadd.f32 %v1089_v6, %v474_v8  ;;  %v437_v56 = vmul.f32 %v591_v62, %v914_v5  ;;  %v380_v12 = vadd.f32 1e-06, %v348_v24  ;;  %v281_v14 = vpop.xlane.xlu1 %280 }
 0x142   :  { %v284_v28 = vpop.xlane.xlu0 %283  ;;  %v514_v18 = vadd.f32 %v1089_v6, %v475_v27  ;;  %v438_v60 = vmul.f32 %v593_v40, %v923_v55  ;;  %602 = vrsqrt.f32 %v379_v2  ;;  %v349_v61 = vmul.f32 0.03125, %v281_v14 }
 0x143   :  { %545 = vst.msk [vmem:[%s1317_s3 + $0x18] sm:$0xff] %vm46_vm0, %v513_v3  ;;  %v476_v44 = vmul.f32 %v1083_v58, %v437_v56  ;;  %604 = vrsqrt.f32 %v380_v12  ;;  %v350_v22 = vmul.f32 0.03125, %v284_v28 }
 0x144   :  { %v595_v10 = vpop.eup %594  ;;  %546 = vst.msk [vmem:[%s1317_s3 + $0x20] sm:$0xff] %vm46_vm0, %v514_v18  ;;  %v477_v5 = vmul.f32 %v1083_v58, %v438_v60  ;;  %v381_v55 = vadd.f32 1e-06, %v349_v61 }
 0x145   :  { %v597_v23 = vpop.eup %596  ;;  %v515_v0 = vadd.f32 %v1089_v6, %v476_v44  ;;  %v439_v16 = vmul.f32 %v595_v10, %v926_v9  ;;  %v382_v30 = vadd.f32 1e-06, %v350_v22  ;;  %v287_v32 = vpop.xlane.xlu1 %286 }
 0x146   :  { %v290_v34 = vpop.xlane.xlu0 %289  ;;  %v516_v48 = vadd.f32 %v1089_v6, %v477_v5  ;;  %v440_v38 = vmul.f32 %v597_v23, %v935_v7  ;;  %606 = vrsqrt.f32 %v381_v55  ;;  %v351_v39 = vmul.f32 0.03125, %v287_v32 }
 0x147   :  { %547 = vst.msk [vmem:[%s1317_s3 + $0x28] sm:$0xff] %vm46_vm0, %v515_v0  ;;  %v478_v26 = vmul.f32 %v1083_v58, %v439_v16  ;;  %608 = vrsqrt.f32 %v382_v30  ;;  %v352_v42 = vmul.f32 0.03125, %v290_v34 }
 0x148   :  { %v599_v20 = vpop.eup %598  ;;  %548 = vst.msk [vmem:[%s1317_s3 + $0x30] sm:$0xff] %vm46_vm0, %v516_v48  ;;  %v479_v9 = vmul.f32 %v1083_v58, %v440_v38  ;;  %v383_v7 = vadd.f32 1e-06, %v351_v39 }
 0x149   :  { %v601_v11 = vpop.eup %600  ;;  %v517_v46 = vadd.f32 %v1089_v6, %v478_v26  ;;  %v441_v36 = vmul.f32 %v599_v20, %v938_v13  ;;  %v384_v50 = vadd.f32 1e-06, %v352_v42  ;;  %v293_v52 = vpop.xlane.xlu1 %292 }
 0x14a   :  { %v296_v54 = vpop.xlane.xlu0 %295  ;;  %v518_v8 = vadd.f32 %v1089_v6, %v479_v9  ;;  %v442_v24 = vmul.f32 %v601_v11, %v947_v1  ;;  %610 = vrsqrt.f32 %v383_v7  ;;  %v353_v62 = vmul.f32 0.03125, %v293_v52 }
 0x14b   :  { %549 = vst.msk [vmem:[%s1317_s3 + $0x38] sm:$0xff] %vm46_vm0, %v517_v46  ;;  %v480_v27 = vmul.f32 %v1083_v58, %v441_v36  ;;  %612 = vrsqrt.f32 %v384_v50  ;;  %v354_v2 = vmul.f32 0.03125, %v296_v54 }
 0x14c   :  { %v603_v40 = vpop.eup %602  ;;  %550 = vst.msk [vmem:[%s1317_s3 + $0x40] sm:$0xff] %vm46_vm0, %v518_v8  ;;  %v481_v13 = vmul.f32 %v1083_v58, %v442_v24  ;;  %v385_v1 = vadd.f32 1e-06, %v353_v62 }
 0x14d   :  { %v605_v3 = vpop.eup %604  ;;  %v519_v56 = vadd.f32 %v1089_v6, %v480_v27  ;;  %v443_v12 = vmul.f32 %v603_v40, %v950_v17  ;;  %v386_v14 = vadd.f32 1e-06, %v354_v2  ;;  %v299_v28 = vpop.xlane.xlu1 %298 }
 0x14e   :  { %v302_v18 = vpop.xlane.xlu0 %301  ;;  %v520_v60 = vadd.f32 %v1089_v6, %v481_v13  ;;  %v444_v61 = vmul.f32 %v605_v3, %v959_v43  ;;  %614 = vrsqrt.f32 %v385_v1  ;;  %v355_v44 = vmul.f32 0.03125, %v299_v28 }
 0x14f   :  { %551 = vst.msk [vmem:[%s1317_s3 + $0x48] sm:$0xff] %vm46_vm0, %v519_v56  ;;  %v482_v22 = vmul.f32 %v1083_v58, %v443_v12  ;;  %616 = vrsqrt.f32 %v386_v14  ;;  %v356_v10 = vmul.f32 0.03125, %v302_v18 }
 0x150   :  { %v607_v5 = vpop.eup %606  ;;  %552 = vst.msk [vmem:[%s1317_s3 + $0x50] sm:$0xff] %vm46_vm0, %v520_v60  ;;  %v483_v17 = vmul.f32 %v1083_v58, %v444_v61  ;;  %v387_v43 = vadd.f32 1e-06, %v355_v44 }
 0x151   :  { %v609_v55 = vpop.eup %608  ;;  %v521_v23 = vadd.f32 %v1089_v6, %v482_v22  ;;  %v445_v0 = vmul.f32 %v607_v5, %v962_v21  ;;  %v388_v16 = vadd.f32 1e-06, %v356_v10  ;;  %v305_v30 = vpop.xlane.xlu1 %304 }
 0x152   :  { %v308_v32 = vpop.xlane.xlu0 %307  ;;  %v522_v34 = vadd.f32 %v1089_v6, %v483_v17  ;;  %v446_v48 = vmul.f32 %v609_v55, %v971_v59  ;;  %618 = vrsqrt.f32 %v387_v43  ;;  %v357_v38 = vmul.f32 0.03125, %v305_v30 }
 0x153   :  { %553 = vst.msk [vmem:[%s1317_s3 + $0x58] sm:$0xff] %vm46_vm0, %v521_v23  ;;  %v484_v39 = vmul.f32 %v1083_v58, %v445_v0  ;;  %620 = vrsqrt.f32 %v388_v16  ;;  %v358_v26 = vmul.f32 0.03125, %v308_v32 }
 0x154   :  { %v611_v42 = vpop.eup %610  ;;  %554 = vst.msk [vmem:[%s1317_s3 + $0x60] sm:$0xff] %vm46_vm0, %v522_v34  ;;  %v485_v21 = vmul.f32 %v1083_v58, %v446_v48  ;;  %v389_v59 = vadd.f32 1e-06, %v357_v38 }
 0x155   :  { %v613_v20 = vpop.eup %612  ;;  %v523_v9 = vadd.f32 %v1089_v6, %v484_v39  ;;  %v447_v7 = vmul.f32 %v611_v42, %v974_v25  ;;  %v390_v11 = vadd.f32 1e-06, %v358_v26  ;;  %v311_v46 = vpop.xlane.xlu1 %310 }
 0x156   :  { %v314_v36 = vpop.xlane.xlu0 %313  ;;  %v524_v50 = vadd.f32 %v1089_v6, %v485_v21  ;;  %v448_v52 = vmul.f32 %v613_v20, %v983_v15  ;;  %622 = vrsqrt.f32 %v389_v59  ;;  %v359_v54 = vmul.f32 0.03125, %v311_v46 }
 0x157   :  { %555 = vst.msk [vmem:[%s1317_s3 + $0x68] sm:$0xff] %vm46_vm0, %v523_v9  ;;  %v486_v8 = vmul.f32 %v1083_v58, %v447_v7  ;;  %624 = vrsqrt.f32 %v390_v11  ;;  %v360_v24 = vmul.f32 0.03125, %v314_v36 }
 0x158   :  { %v615_v62 = vpop.eup %614  ;;  %556 = vst.msk [vmem:[%s1317_s3 + $0x70] sm:$0xff] %vm46_vm0, %v524_v50  ;;  %v487_v25 = vmul.f32 %v1083_v58, %v448_v52  ;;  %v391_v15 = vadd.f32 1e-06, %v359_v54 }
 0x159   :  { %v617_v27 = vpop.eup %616  ;;  %v525_v2 = vadd.f32 %v1089_v6, %v486_v8  ;;  %v449_v40 = vmul.f32 %v615_v62, %v986_v29  ;;  %v392_v13 = vadd.f32 1e-06, %v360_v24  ;;  %v317_v1 = vpop.xlane.xlu1 %316 }
 0x15a   :  { %v320_v3 = vpop.xlane.xlu0 %319  ;;  %v526_v56 = vadd.f32 %v1089_v6, %v487_v25  ;;  %v450_v12 = vmul.f32 %v617_v27, %v995_v31  ;;  %626 = vrsqrt.f32 %v391_v15  ;;  %v361_v14 = vmul.f32 0.03125, %v317_v1 }
 0x15b   :  { %557 = vst.msk [vmem:[%s1317_s3 + $0x78] sm:$0xff] %vm46_vm0, %v525_v2  ;;  %v488_v28 = vmul.f32 %v1083_v58, %v449_v40  ;;  %628 = vrsqrt.f32 %v392_v13  ;;  %v362_v18 = vmul.f32 0.03125, %v320_v3 }
 0x15c   :  { %v619_v60 = vpop.eup %618  ;;  %558 = vst.msk [vmem:[%s1317_s3 + $0x80] sm:$0xff] %vm46_vm0, %v526_v56  ;;  %v489_v29 = vmul.f32 %v1083_v58, %v450_v12  ;;  %v393_v31 = vadd.f32 1e-06, %v361_v14 }
 0x15d   :  { %v621_v61 = vpop.eup %620  ;;  %v527_v44 = vadd.f32 %v1089_v6, %v488_v28  ;;  %v451_v22 = vmul.f32 %v619_v60, %v998_v33  ;;  %v394_v10 = vadd.f32 1e-06, %v362_v18  ;;  %v323_v5 = vpop.xlane.xlu1 %322 }
 0x15e   :  { %v326_v17 = vpop.xlane.xlu0 %325  ;;  %v528_v43 = vadd.f32 %v1089_v6, %v489_v29  ;;  %v452_v55 = vmul.f32 %v621_v61, %v1007_v47  ;;  %630 = vrsqrt.f32 %v393_v31  ;;  %v363_v23 = vmul.f32 0.03125, %v323_v5 }
 0x15f   :  { %559 = vst.msk [vmem:[%s1317_s3 + $0x88] sm:$0xff] %vm46_vm0, %v527_v44  ;;  %v490_v0 = vmul.f32 %v1083_v58, %v451_v22  ;;  %632 = vrsqrt.f32 %v394_v10  ;;  %v364_v16 = vmul.f32 0.03125, %v326_v17 }
 0x160   :  { %v623_v30 = vpop.eup %622  ;;  %560 = vst.msk [vmem:[%s1317_s3 + $0x90] sm:$0xff] %vm46_vm0, %v528_v43  ;;  %v491_v33 = vmul.f32 %v1083_v58, %v452_v55  ;;  %v395_v47 = vadd.f32 1e-06, %v363_v23 }
 0x161   :  { %v625_v32 = vpop.eup %624  ;;  %v529_v34 = vadd.f32 %v1089_v6, %v490_v0  ;;  %v453_v48 = vmul.f32 %v623_v30, %v1010_v37  ;;  %v396_v38 = vadd.f32 1e-06, %v364_v16  ;;  %v329_v39 = vpop.xlane.xlu1 %328 }
 0x162   :  { %v332_v26 = vpop.xlane.xlu0 %331  ;;  %v530_v42 = vadd.f32 %v1089_v6, %v491_v33  ;;  %v454_v21 = vmul.f32 %v625_v32, %v1019_v63  ;;  %634 = vrsqrt.f32 %v395_v47  ;;  %v365_v59 = vmul.f32 0.03125, %v329_v39 }
 0x163   :  { %561 = vst.msk [vmem:[%s1317_s3 + $0x98] sm:$0xff] %vm46_vm0, %v529_v34  ;;  %v492_v20 = vmul.f32 %v1083_v58, %v453_v48  ;;  %636 = vrsqrt.f32 %v396_v38  ;;  %v366_v9 = vmul.f32 0.03125, %v332_v26 }
 0x164   :  { %v627_v7 = vpop.eup %626  ;;  %562 = vst.msk [vmem:[%s1317_s3 + $0xa0] sm:$0xff] %vm46_vm0, %v530_v42  ;;  %v493_v37 = vmul.f32 %v1083_v58, %v454_v21  ;;  %v397_v63 = vadd.f32 1e-06, %v365_v59 }
 0x165   :  { %v629_v11 = vpop.eup %628  ;;  %v531_v46 = vadd.f32 %v1089_v6, %v492_v20  ;;  %v455_v36 = vmul.f32 %v627_v7, %v1022_v41  ;;  %v398_v50 = vadd.f32 1e-06, %v366_v9  ;;  %v335_v52 = vpop.xlane.xlu1 %334 }
 0x166   :  { %v532_v54 = vadd.f32 %v1089_v6, %v493_v37  ;;  %v456_v8 = vmul.f32 %v629_v11, %v1031_v19  ;;  %638 = vrsqrt.f32 %v397_v63  ;;  %v367_v24 = vmul.f32 0.03125, %v335_v52 }
 0x167   :  { %563 = vst.msk [vmem:[%s1317_s3 + $0xa8] sm:$0xff] %vm46_vm0, %v531_v46  ;;  %v494_v62 = vmul.f32 %v1083_v58, %v455_v36  ;;  %640 = vrsqrt.f32 %v398_v50 }
 0x168   :  { %v631_v25 = vpop.eup %630  ;;  %564 = vst.msk [vmem:[%s1317_s3 + $0xb0] sm:$0xff] %vm46_vm0, %v532_v54  ;;  %v495_v41 = vmul.f32 %v1083_v58, %v456_v8  ;;  %v399_v15 = vadd.f32 1e-06, %v367_v24 }
 0x169   :  { %v633_v19 = vpop.eup %632  ;;  %v533_v27 = vadd.f32 %v1089_v6, %v494_v62  ;;  %v457_v2 = vmul.f32 %v631_v25, %v1034_v45 }
 0x16a   :  { %v534_v40 = vadd.f32 %v1089_v6, %v495_v41  ;;  %v458_v13 = vmul.f32 %v633_v19, %v1043_v35  ;;  %642 = vrsqrt.f32 %v399_v15 }
 0x16b   :  { %565 = vst.msk [vmem:[%s1317_s3 + $0xb8] sm:$0xff] %vm46_vm0, %v533_v27  ;;  %v496_v1 = vmul.f32 %v1083_v58, %v457_v2 }
 0x16c   :  { %v635_v3 = vpop.eup %634  ;;  %566 = vst.msk [vmem:[%s1317_s3 + $0xc0] sm:$0xff] %vm46_vm0, %v534_v40  ;;  %v497_v45 = vmul.f32 %v1083_v58, %v458_v13 }
 0x16d   :  { %v637_v56 = vpop.eup %636  ;;  %v535_v12 = vadd.f32 %v1089_v6, %v496_v1  ;;  %v459_v35 = vmul.f32 %v635_v3, %v1046_v49 }
 0x16e   :  { %v536_v14 = vadd.f32 %v1089_v6, %v497_v45  ;;  %v460_v28 = vmul.f32 %v637_v56, %v1055_v51 }
 0x16f   :  { %567 = vst.msk [vmem:[%s1317_s3 + $0xc8] sm:$0xff] %vm46_vm0, %v535_v12  ;;  %v498_v18 = vmul.f32 %v1083_v58, %v459_v35 }
 0x170   :  { %v639_v60 = vpop.eup %638  ;;  %568 = vst.msk [vmem:[%s1317_s3 + $0xd0] sm:$0xff] %vm46_vm0, %v536_v14  ;;  %v499_v29 = vmul.f32 %v1083_v58, %v460_v28 }
 0x171   :  { %v641_v49 = vpop.eup %640  ;;  %v537_v31 = vadd.f32 %v1089_v6, %v498_v18  ;;  %v461_v51 = vmul.f32 %v639_v60, %v1058_v53 }
 0x172   :  { %v538_v61 = vadd.f32 %v1089_v6, %v499_v29  ;;  %v462_v44 = vmul.f32 %v641_v49, %v1067_v4 }
 0x173   :  { %569 = vst.msk [vmem:[%s1317_s3 + $0xd8] sm:$0xff] %vm46_vm0, %v537_v31  ;;  %v500_v22 = vmul.f32 %v1083_v58, %v461_v51 }
 0x174   :  { %v643_v10 = vpop.eup %642  ;;  %570 = vst.msk [vmem:[%s1317_s3 + $0xe0] sm:$0xff] %vm46_vm0, %v538_v61  ;;  %v501_v5 = vmul.f32 %v1083_v58, %v462_v44 }
 0x175   :  { %v539_v53 = vadd.f32 %v1089_v6, %v500_v22  ;;  %v463_v17 = vmul.f32 %v643_v10, %v1070_v57 }
 0x176   :  { %v540_v4 = vadd.f32 %v1089_v6, %v501_v5 }
 0x177   :  { %571 = vst.msk [vmem:[%s1317_s3 + $0xe8] sm:$0xff] %vm46_vm0, %v539_v53  ;;  %v502_v43 = vmul.f32 %v1083_v58, %v463_v17 }
 0x178   :  { %572 = vst.msk [vmem:[%s1317_s3 + $0xf0] sm:$0xff] %vm46_vm0, %v540_v4 }
 0x179   :  { %v541_v55 = vadd.f32 %v1089_v6, %v502_v43 }
 0x17b   :  { %573 = vst.msk [vmem:[%s1317_s3 + $0xf8] sm:$0xff] %vm46_vm0, %v541_v55 }

// kernel: _forward_core.28
= control target key start
LH: loop header
LB: loop body
LE: loop exit
PB: predicated region body
PF: predicated region fallthrough
CT: control target
= control target key end

     0   :  { %vm150_vm0 = vcmask 261120   ;;  %vm360_vm1 = vcmask 130048   ;;  %s763_s1 = inlined_call_operand.vmem [shape: bf16[32,16], index: 1, kind: input, shape index: {}]   ;;  %s764_s0 = inlined_call_operand.vmem [shape: bf16[256,32], index: 0, kind: input, shape index: {}]   ;;  %s765_s2 = inlined_call_operand.vmem [shape: f32[1,16], index: 2, kind: input, shape index: {}]   ;;  %s766_s3 = inlined_call_operand.vmem [shape: f32[256,16], index: 3, kind: output, shape index: {}]  }
   0x1   :  { %v490_v0 = vld [vmem:[%s763_s1] sm:$0xff]   ;;  %v491_v1 = vld [vmem:[%s763_s1 + $0x8] sm:$0xff]   ;;  %v496_v6 = vld [vmem:[%s764_s0 + $0x10] sm:$0xff]  }
   0x2   :  { %450 = vmatprep.subr.bf16.mxu0 %v490_v0  ;;  %486 = vmatprep.subr.bf16.mxu1 %v490_v0  ;;  %v492_v2 = vld [vmem:[%s764_s0] sm:$0xff]   ;;  %v494_v4 = vld [vmem:[%s764_s0 + $0x8] sm:$0xff]   ;;  %v497_v7 = vld [vmem:[%s764_s0 + $0x50] sm:$0xff]  }
   0x3   :  { %451 = vmatpush3.bf16.msra.mxu0 %v490_v0  ;;  %488 = vmatpush3.bf16.msra.mxu1 %v490_v0  ;;  %v493_v3 = vld [vmem:[%s764_s0 + $0x40] sm:$0xff]   ;;  %v495_v5 = vld [vmem:[%s764_s0 + $0x48] sm:$0xff]   ;;  %v498_v8 = vld [vmem:[%s764_s0 + $0x18] sm:$0xff]  }
   0x4   :  { %452 = vmatprep.subr.bf16.mxu0 %v491_v1  ;;  %487 = vmatprep.subr.bf16.mxu1 %v491_v1  ;;  %v499_v9 = vld [vmem:[%s764_s0 + $0x58] sm:$0xff]   ;;  %v500_v10 = vld [vmem:[%s764_s0 + $0x20] sm:$0xff]   ;;  %v502_v12 = vld [vmem:[%s764_s0 + $0x28] sm:$0xff]  }
   0x5   :  { %454 = vmatprep.mubr.msk.bf16.mxu0 %vm150_vm0, %v492_v2  ;;  %470 = vmatprep.mubr.msk.bf16.mxu1 %vm150_vm0, %v493_v3  ;;  %v501_v11 = vld [vmem:[%s764_s0 + $0x60] sm:$0xff]   ;;  %v503_v13 = vld [vmem:[%s764_s0 + $0x68] sm:$0xff]   ;;  %v504_v14 = vld [vmem:[%s764_s0 + $0x30] sm:$0xff]  }
   0x6   :  { %v505_v15 = vld [vmem:[%s764_s0 + $0x70] sm:$0xff]   ;;  %v506_v16 = vld [vmem:[%s764_s0 + $0x38] sm:$0xff]   ;;  %v601_v18 = vld [vmem:[%s765_s2] ss:$0 sm:$0xff] }
   0x7   :  { %453 = vmatpush3.bf16.msra.mxu0 %v491_v1  ;;  %489 = vmatpush3.bf16.msra.mxu1 %v491_v1  ;;  %v507_v17 = vld [vmem:[%s764_s0 + $0x78] sm:$0xff]  }
   0xa   :  { %455 = vmatmul.mubr.msk.bf16.vlgmr.msra.gmra.mrb[0].mxu0 %vm150_vm0, %v494_v4  ;;  %471 = vmatmul.mubr.msk.bf16.vlgmr.msra.gmra.mrb[0].mxu1 %vm150_vm0, %v495_v5 }
   0xb   :  { %458 = vmatprep.mubr.msk.bf16.mxu0 %vm150_vm0, %v496_v6  ;;  %474 = vmatprep.mubr.msk.bf16.mxu1 %vm150_vm0, %v497_v7 }
  0x12   :  { %459 = vmatmul.mubr.msk.bf16.gmra.mrb[4].mxu0 %vm150_vm0, %v498_v8  ;;  %475 = vmatmul.mubr.msk.bf16.gmra.mrb[4].mxu1 %vm150_vm0, %v499_v9 }
  0x13   :  { %462 = vmatprep.mubr.msk.bf16.mxu0 %vm150_vm0, %v500_v10  ;;  %478 = vmatprep.mubr.msk.bf16.mxu1 %vm150_vm0, %v501_v11 }
  0x1a   :  { %463 = vmatmul.mubr.msk.bf16.gmra.mrb[8].mxu0 %vm150_vm0, %v502_v12  ;;  %479 = vmatmul.mubr.msk.bf16.gmra.mrb[8].mxu1 %vm150_vm0, %v503_v13 }
  0x1b   :  { %466 = vmatprep.mubr.msk.bf16.mxu0 %vm150_vm0, %v504_v14  ;;  %482 = vmatprep.mubr.msk.bf16.mxu1 %vm150_vm0, %v505_v15 }
  0x22   :  { %467 = vmatmul.mubr.msk.bf16.gmra.mrb[12].mxu0 %vm150_vm0, %v506_v16  ;;  %483 = vmatmul.mubr.msk.bf16.gmra.mrb[12].mxu1 %vm150_vm0, %v507_v17 }
  0xdd   :  { %v456_v19 = vpop.f32.mrb[0].mxu0  ;;  %v472_v20 = vpop.f32.mrb[0].mxu1 }
  0xde   :  { %v242_v21 = vadd.f32 %v456_v19, %v601_v18  ;;  %v306_v22 = vadd.f32 %v472_v20, %v601_v18  ;;  %v233_v23 = vpop.f32.mrb[1].mxu0  ;;  %v297_v24 = vpop.f32.mrb[1].mxu1 }
  0xdf   :  { %v234_v25 = vadd.f32 %v601_v18, %v233_v23  ;;  %v298_v26 = vadd.f32 %v601_v18, %v297_v24  ;;  %v457_v27 = vpop.f32.mrb[2].mxu0  ;;  %v473_v28 = vpop.f32.mrb[2].mxu1 }
  0xe0   :  { %363 = vst.msk [vmem:[%s766_s3 + $0x10] sm:$0xff] %vm360_vm1, %v242_v21  ;;  %379 = vst.msk [vmem:[%s766_s3 + $0x90] sm:$0xff] %vm360_vm1, %v306_v22  ;;  %v245_v29 = vadd.f32 %v457_v27, %v601_v18  ;;  %v309_v30 = vadd.f32 %v473_v28, %v601_v18  ;;  %v236_v31 = vpop.f32.mrb[3].mxu0  ;;  %v300_v32 = vpop.f32.mrb[3].mxu1 }
  0xe1   :  { %361 = vst.msk [vmem:[%s766_s3] sm:$0xff] %vm360_vm1, %v234_v25  ;;  %377 = vst.msk [vmem:[%s766_s3 + $0x80] sm:$0xff] %vm360_vm1, %v298_v26  ;;  %v237_v33 = vadd.f32 %v601_v18, %v236_v31  ;;  %v301_v34 = vadd.f32 %v601_v18, %v300_v32 }
  0xe2   :  { %364 = vst.msk [vmem:[%s766_s3 + $0x18] sm:$0xff] %vm360_vm1, %v245_v29  ;;  %380 = vst.msk [vmem:[%s766_s3 + $0x98] sm:$0xff] %vm360_vm1, %v309_v30 }
  0xe3   :  { %362 = vst.msk [vmem:[%s766_s3 + $0x8] sm:$0xff] %vm360_vm1, %v237_v33  ;;  %378 = vst.msk [vmem:[%s766_s3 + $0x88] sm:$0xff] %vm360_vm1, %v301_v34 }
  0xe5   :  { %v460_v35 = vpop.f32.mrb[4].mxu0  ;;  %v476_v36 = vpop.f32.mrb[4].mxu1 }
  0xe6   :  { %v258_v37 = vadd.f32 %v460_v35, %v601_v18  ;;  %v322_v38 = vadd.f32 %v476_v36, %v601_v18  ;;  %v249_v39 = vpop.f32.mrb[5].mxu0  ;;  %v313_v40 = vpop.f32.mrb[5].mxu1 }
  0xe7   :  { %v250_v41 = vadd.f32 %v601_v18, %v249_v39  ;;  %v314_v42 = vadd.f32 %v601_v18, %v313_v40  ;;  %v461_v43 = vpop.f32.mrb[6].mxu0  ;;  %v477_v44 = vpop.f32.mrb[6].mxu1 }
  0xe8   :  { %367 = vst.msk [vmem:[%s766_s3 + $0x30] sm:$0xff] %vm360_vm1, %v258_v37  ;;  %383 = vst.msk [vmem:[%s766_s3 + $0xb0] sm:$0xff] %vm360_vm1, %v322_v38  ;;  %v261_v45 = vadd.f32 %v461_v43, %v601_v18  ;;  %v325_v46 = vadd.f32 %v477_v44, %v601_v18  ;;  %v252_v47 = vpop.f32.mrb[7].mxu0  ;;  %v316_v48 = vpop.f32.mrb[7].mxu1 }
  0xe9   :  { %365 = vst.msk [vmem:[%s766_s3 + $0x20] sm:$0xff] %vm360_vm1, %v250_v41  ;;  %381 = vst.msk [vmem:[%s766_s3 + $0xa0] sm:$0xff] %vm360_vm1, %v314_v42  ;;  %v253_v49 = vadd.f32 %v601_v18, %v252_v47  ;;  %v317_v50 = vadd.f32 %v601_v18, %v316_v48 }
  0xea   :  { %368 = vst.msk [vmem:[%s766_s3 + $0x38] sm:$0xff] %vm360_vm1, %v261_v45  ;;  %384 = vst.msk [vmem:[%s766_s3 + $0xb8] sm:$0xff] %vm360_vm1, %v325_v46 }
  0xeb   :  { %366 = vst.msk [vmem:[%s766_s3 + $0x28] sm:$0xff] %vm360_vm1, %v253_v49  ;;  %382 = vst.msk [vmem:[%s766_s3 + $0xa8] sm:$0xff] %vm360_vm1, %v317_v50 }
  0xed   :  { %v464_v51 = vpop.f32.mrb[8].mxu0  ;;  %v480_v52 = vpop.f32.mrb[8].mxu1 }
  0xee   :  { %v274_v53 = vadd.f32 %v464_v51, %v601_v18  ;;  %v338_v54 = vadd.f32 %v480_v52, %v601_v18  ;;  %v265_v55 = vpop.f32.mrb[9].mxu0  ;;  %v329_v56 = vpop.f32.mrb[9].mxu1 }
  0xef   :  { %v266_v57 = vadd.f32 %v601_v18, %v265_v55  ;;  %v330_v58 = vadd.f32 %v601_v18, %v329_v56  ;;  %v465_v59 = vpop.f32.mrb[10].mxu0  ;;  %v481_v60 = vpop.f32.mrb[10].mxu1 }
  0xf0   :  { %371 = vst.msk [vmem:[%s766_s3 + $0x50] sm:$0xff] %vm360_vm1, %v274_v53  ;;  %387 = vst.msk [vmem:[%s766_s3 + $0xd0] sm:$0xff] %vm360_vm1, %v338_v54  ;;  %v277_v61 = vadd.f32 %v465_v59, %v601_v18  ;;  %v341_v62 = vadd.f32 %v481_v60, %v601_v18  ;;  %v268_v63 = vpop.f32.mrb[11].mxu0  ;;  %v332_v0 = vpop.f32.mrb[11].mxu1 }
  0xf1   :  { %369 = vst.msk [vmem:[%s766_s3 + $0x40] sm:$0xff] %vm360_vm1, %v266_v57  ;;  %385 = vst.msk [vmem:[%s766_s3 + $0xc0] sm:$0xff] %vm360_vm1, %v330_v58  ;;  %v269_v1 = vadd.f32 %v601_v18, %v268_v63  ;;  %v333_v2 = vadd.f32 %v601_v18, %v332_v0 }
  0xf2   :  { %372 = vst.msk [vmem:[%s766_s3 + $0x58] sm:$0xff] %vm360_vm1, %v277_v61  ;;  %388 = vst.msk [vmem:[%s766_s3 + $0xd8] sm:$0xff] %vm360_vm1, %v341_v62 }
  0xf3   :  { %370 = vst.msk [vmem:[%s766_s3 + $0x48] sm:$0xff] %vm360_vm1, %v269_v1  ;;  %386 = vst.msk [vmem:[%s766_s3 + $0xc8] sm:$0xff] %vm360_vm1, %v333_v2 }
  0xf5   :  { %v468_v3 = vpop.f32.mrb[12].mxu0  ;;  %v484_v4 = vpop.f32.mrb[12].mxu1 }
  0xf6   :  { %v290_v5 = vadd.f32 %v468_v3, %v601_v18  ;;  %v354_v6 = vadd.f32 %v484_v4, %v601_v18  ;;  %v281_v7 = vpop.f32.mrb[13].mxu0  ;;  %v345_v8 = vpop.f32.mrb[13].mxu1 }
  0xf7   :  { %v282_v9 = vadd.f32 %v601_v18, %v281_v7  ;;  %v346_v10 = vadd.f32 %v601_v18, %v345_v8  ;;  %v469_v11 = vpop.f32.mrb[14].mxu0  ;;  %v485_v12 = vpop.f32.mrb[14].mxu1 }
  0xf8   :  { %375 = vst.msk [vmem:[%s766_s3 + $0x70] sm:$0xff] %vm360_vm1, %v290_v5  ;;  %391 = vst.msk [vmem:[%s766_s3 + $0xf0] sm:$0xff] %vm360_vm1, %v354_v6  ;;  %v293_v13 = vadd.f32 %v469_v11, %v601_v18  ;;  %v357_v14 = vadd.f32 %v485_v12, %v601_v18  ;;  %v284_v15 = vpop.f32.mrb[15].mxu0  ;;  %v348_v16 = vpop.f32.mrb[15].mxu1 }
  0xf9   :  { %373 = vst.msk [vmem:[%s766_s3 + $0x60] sm:$0xff] %vm360_vm1, %v282_v9  ;;  %389 = vst.msk [vmem:[%s766_s3 + $0xe0] sm:$0xff] %vm360_vm1, %v346_v10  ;;  %v285_v17 = vadd.f32 %v601_v18, %v284_v15  ;;  %v349_v19 = vadd.f32 %v601_v18, %v348_v16 }
  0xfa   :  { %376 = vst.msk [vmem:[%s766_s3 + $0x78] sm:$0xff] %vm360_vm1, %v293_v13  ;;  %392 = vst.msk [vmem:[%s766_s3 + $0xf8] sm:$0xff] %vm360_vm1, %v357_v14 }
  0xfb   :  { %374 = vst.msk [vmem:[%s766_s3 + $0x68] sm:$0xff] %vm360_vm1, %v285_v17  ;;  %390 = vst.msk [vmem:[%s766_s3 + $0xe8] sm:$0xff] %vm360_vm1, %v349_v19 }

// kernel: div.13
= control target key start
LH: loop header
LB: loop body
LE: loop exit
PB: predicated region body
PF: predicated region fallthrough
CT: control target
= control target key end

     0   :  { %vm3_vm0 = vcmask 64512   ;;  %s84_s8 = smov 104   ;;  %s85_s13 = smov 112   ;;  %s167_s0 = inlined_call_operand.vmem [shape: f32[8,64], index: 0, kind: input, shape index: {}]   ;;  %s168_s1 = inlined_call_operand.vmem [shape: f32[8,8,8], index: 1, kind: output, shape index: {}]  }
   0x1   :  { %v6_v0 = vld [vmem:[%s167_s0] sm:$0xff]   ;;  %s83_s0 = smov 120   ;;  %s86_s14 = smov 96  }
   0x2   :  { %7 = vrot.lane.b32.xlu0 %v6_v0, %s83_s0  ;;  %23 = vrot.lane.b32.xlu1 %v6_v0, %s84_s8  ;;  %4 = vst.msk [vmem:[%s168_s1] ss:$8 sm:$0xf] %vm3_vm0, %v6_v0   ;;  %5 = vst.msk [vmem:[%s168_s1] ss:$8 sm:$0xf0] %vm3_vm0, %v6_v0  }
   0x3   :  { %s87_s15 = smov 88   ;;  %s88_s16 = smov 80  }
   0x4   :  { %s89_s17 = smov 72  }
   0x6   :  { %15 = vrot.lane.b32.xlu0 %v6_v0, %s85_s13  ;;  %31 = vrot.lane.b32.xlu1 %v6_v0, %s86_s14 }
   0xa   :  { %39 = vrot.lane.b32.xlu0 %v6_v0, %s87_s15  ;;  %47 = vrot.lane.b32.xlu1 %v6_v0, %s88_s16 }
   0xe   :  { %55 = vrot.lane.b32.xlu0 %v6_v0, %s89_s17 }
  0x74   :  { %v8_v1 = vpop.permute.xlu0 %7   ;;  %v24_v2 = vpop.permute.xlu1 %23  }
  0x75   :  { %62 = vst.msk [vmem:[%s168_s1 + $0x1] ss:$8 sm:$0xf] %vm3_vm0, %v8_v1   ;;  %63 = vst.msk [vmem:[%s168_s1 + $0x1] ss:$8 sm:$0xf0] %vm3_vm0, %v8_v1  }
  0x76   :  { %66 = vst.msk [vmem:[%s168_s1 + $0x3] ss:$8 sm:$0xf] %vm3_vm0, %v24_v2   ;;  %67 = vst.msk [vmem:[%s168_s1 + $0x3] ss:$8 sm:$0xf0] %vm3_vm0, %v24_v2  }
  0x78   :  { %v16_v3 = vpop.permute.xlu0 %15   ;;  %v32_v4 = vpop.permute.xlu1 %31  }
  0x79   :  { %64 = vst.msk [vmem:[%s168_s1 + $0x2] ss:$8 sm:$0xf] %vm3_vm0, %v16_v3   ;;  %65 = vst.msk [vmem:[%s168_s1 + $0x2] ss:$8 sm:$0xf0] %vm3_vm0, %v16_v3  }
  0x7a   :  { %68 = vst.msk [vmem:[%s168_s1 + $0x4] ss:$8 sm:$0xf] %vm3_vm0, %v32_v4   ;;  %69 = vst.msk [vmem:[%s168_s1 + $0x4] ss:$8 sm:$0xf0] %vm3_vm0, %v32_v4  }
  0x7c   :  { %v40_v5 = vpop.permute.xlu0 %39   ;;  %v48_v6 = vpop.permute.xlu1 %47  }
  0x7d   :  { %70 = vst.msk [vmem:[%s168_s1 + $0x5] ss:$8 sm:$0xf] %vm3_vm0, %v40_v5   ;;  %71 = vst.msk [vmem:[%s168_s1 + $0x5] ss:$8 sm:$0xf0] %vm3_vm0, %v40_v5  }
  0x7e   :  { %72 = vst.msk [vmem:[%s168_s1 + $0x6] ss:$8 sm:$0xf] %vm3_vm0, %v48_v6   ;;  %73 = vst.msk [vmem:[%s168_s1 + $0x6] ss:$8 sm:$0xf0] %vm3_vm0, %v48_v6  }
  0x80   :  { %v56_v7 = vpop.permute.xlu0 %55  }
  0x81   :  { %74 = vst.msk [vmem:[%s168_s1 + $0x7] ss:$8 sm:$0xf] %vm3_vm0, %v56_v7   ;;  %75 = vst.msk [vmem:[%s168_s1 + $0x7] ss:$8 sm:$0xf0] %vm3_vm0, %v56_v7  }

// kernel: _forward_core.32
= control target key start
LH: loop header
LB: loop body
LE: loop exit
PB: predicated region body
PF: predicated region fallthrough
CT: control target
= control target key end

     0   :  { %s491_s9 = smov 0   ;;  %s545_s0 = inlined_call_operand.vmem [shape: f32[8,64,36], index: 0, kind: input, shape index: {}]   ;;  %s546_s1 = inlined_call_operand.vmem [shape: f32[8,36,4], index: 1, kind: input, shape index: {}]   ;;  %s547_s2 = inlined_call_operand.vmem [shape: f32[8,64,4], index: 2, kind: output, shape index: {}]  }
   0x1 LB: > { %s387_s10 = sadd.s32 4294967295, %s474_s9   ;;  %p391_p0 = scmp.ge.s32.totalorder %s474_s9, 1  ;;  %s474_s9 = sphi %s491_s9, %s12_s9  }
   0x2   : > { %p122_p1 = scmp.lt.s32.totalorder %s474_s9, 9 }
   0x4   : > { %p123_p2 = pnand %p391_p0, %p122_p1 }
   0x5   : > { %p149_p3 = scmp.lt.s32.totalorder (!%p123_p2), %s387_s10, 7  ;;  %vm177_vm0 = vcmask (!%p123_p2), 293888   ;;  %vm202_vm1 = vcmask (!%p123_p2), 1043456   ;;  %vm311_vm2 = vcmask (!%p123_p2), 31744  }
   0x6   : > { %126 = sbr.rel (%p123_p2) target bundleno = 249 (0xf9), region = 28 }
   0xd   : > { %s549_s10 = smov (!%p149_p3, %s387_s10), 7 }
   0xe   : > { %s459_s11 = smul.u32 40, %s549_s10  ;;  %s408_s12 = sshll.u32 %s549_s10, 6 }
   0xf   : > { %s508_s15 = scalar_lea.vmem %s545_s0, %s408_s12  ;;  %s163_s21 = scalar_lea.vmem %s547_s2, %s408_s12 }
  0x10   : > { %s158_s18 = scalar_lea.vmem %s546_s1, %s459_s11  ;;  %v164_v0 = vld [vmem:[%s508_s15] sm:$0xff]  ;;  %v165_v9 = vld [vmem:[%s508_s15 + $0x8] sm:$0xff]  ;;  %v166_v11 = vld [vmem:[%s508_s15 + $0x10] sm:$0xff] }
  0x11   : > { %v168_v1 = vld [vmem:[%s508_s15 + $0x20] sm:$0xff]  ;;  %v173_v3 = vld [vmem:[%s158_s18 + $0x8] sm:$0xff]  ;;  %v174_v4 = vld [vmem:[%s158_s18 + $0x10] sm:$0xff]  ;;  %433 = vmatprep.mubr.msk.f32.mxu0 %vm177_vm0, %v164_v0 }
  0x12   : > { %v172_v2 = vld [vmem:[%s158_s18] sm:$0xff]  ;;  %439 = vmatprep.mubr.msk.f32.mxu1 %vm177_vm0, %v168_v1  ;;  %v175_v6 = vld [vmem:[%s158_s18 + $0x18] sm:$0xff]  ;;  %v169_v10 = vld [vmem:[%s508_s15 + $0x28] sm:$0xff] }
  0x13   : > { %v445_v5 = vpack.c.bf16 %v173_v3, %v172_v2  ;;  %v449_v7 = vpack.c.bf16 %v175_v6, %v174_v4  ;;  %v176_v8 = vld [vmem:[%s158_s18 + $0x20] sm:$0xf]  ;;  %v170_v12 = vld [vmem:[%s508_s15 + $0x30] sm:$0xff]  ;;  %v167_v13 = vld [vmem:[%s508_s15 + $0x18] sm:$0xff] }
  0x14   : > { %v171_v14 = vld [vmem:[%s508_s15 + $0x38] sm:$0xff] }
  0x15   : > { %446 = vmatprep.subr.bf16.mxu0 %v445_v5  ;;  %453 = vmatprep.subr.bf16.mxu1 %v445_v5 }
  0x16   : > { %448 = vmatpush3.bf16.msra.mxu0 %v445_v5  ;;  %456 = vmatpush3.bf16.msra.mxu1 %v445_v5 }
  0x17   : > { %450 = vmatprep.subr.bf16.mxu0 %v449_v7  ;;  %454 = vmatprep.subr.bf16.mxu1 %v449_v7 }
  0x1a   : > { %452 = vmatpush3.bf16.msra.mxu0 %v449_v7  ;;  %457 = vmatpush3.bf16.msra.mxu1 %v449_v7 }
  0x1b   : > { %431 = vmatprep.subr.msk.mxu0 %vm202_vm1, %v176_v8  ;;  %455 = vmatprep.subr.msk.mxu1 %vm202_vm1, %v176_v8 }
  0x1e   : > { %432 = vmatpush3.msk.msra.mxu0 %vm202_vm1, %v176_v8  ;;  %458 = vmatpush3.msk.msra.mxu1 %vm202_vm1, %v176_v8 }
  0x1f   : > { %434 = vmatmul.mubr.msk.f32.vlgmr.msra.gmra.mrb[0].mxu0 %vm177_vm0, %v165_v9  ;;  %440 = vmatmul.mubr.msk.f32.vlgmr.msra.gmra.mrb[0].mxu1 %vm177_vm0, %v169_v10 }
  0x20   : > { %436 = vmatprep.mubr.msk.f32.mxu0 %vm177_vm0, %v166_v11  ;;  %442 = vmatprep.mubr.msk.f32.mxu1 %vm177_vm0, %v170_v12 }
  0x23   : > { %437 = vmatmul.mubr.msk.f32.gmra.mrb[2].mxu0 %vm177_vm0, %v167_v13  ;;  %443 = vmatmul.mubr.msk.f32.gmra.mrb[2].mxu1 %vm177_vm0, %v171_v14 }
  0xf2   : > { %v435_v15 = vpop.f32.mrb[0].mxu0  ;;  %v441_v16 = vpop.f32.mrb[0].mxu1 }
  0xf3   : > { %313 = vst.msk [vmem:[%s163_s21 + $0x8] sm:$0xff] %vm311_vm2, %v435_v15  ;;  %317 = vst.msk [vmem:[%s163_s21 + $0x28] sm:$0xff] %vm311_vm2, %v441_v16  ;;  %v272_v17 = vpop.f32.mrb[1].mxu0  ;;  %v292_v18 = vpop.f32.mrb[1].mxu1 }
  0xf4   : > { %312 = vst.msk [vmem:[%s163_s21] sm:$0xff] %vm311_vm2, %v272_v17  ;;  %316 = vst.msk [vmem:[%s163_s21 + $0x20] sm:$0xff] %vm311_vm2, %v292_v18 }
  0xf6   : > { %v438_v19 = vpop.f32.mrb[2].mxu0  ;;  %v444_v20 = vpop.f32.mrb[2].mxu1 }
  0xf7   : > { %315 = vst.msk [vmem:[%s163_s21 + $0x18] sm:$0xff] %vm311_vm2, %v438_v19  ;;  %319 = vst.msk [vmem:[%s163_s21 + $0x38] sm:$0xff] %vm311_vm2, %v444_v20  ;;  %v282_v21 = vpop.f32.mrb[3].mxu0  ;;  %v302_v22 = vpop.f32.mrb[3].mxu1 }
  0xf8   : > { %314 = vst.msk [vmem:[%s163_s21 + $0x10] sm:$0xff] %vm311_vm2, %v282_v21  ;;  %318 = vst.msk [vmem:[%s163_s21 + $0x30] sm:$0xff] %vm311_vm2, %v302_v22 }
  0xf9 PF: > { %s12_s9 = sadd.s32 1, %s474_s9  }
  0xfa   : > { %p9_p4 = scmp.ge.s32.totalorder %s12_s9, 10  }
  0xfc   :  { %11 = sbr.rel (!%p9_p4) target bundleno = 1 (0x1), region = 61 }

// kernel: _forward_core.34
= control target key start
LH: loop header
LB: loop body
LE: loop exit
PB: predicated region body
PF: predicated region fallthrough
CT: control target
= control target key end

     0   :  { %vm75_vm0 = vcmask 261120   ;;  %s551_s1 = inlined_call_operand.vmem [shape: bf16[32,32], index: 1, kind: input, shape index: {}]   ;;  %s552_s0 = inlined_call_operand.vmem [shape: bf16[64,32], index: 0, kind: input, shape index: {}]   ;;  %s553_s2 = inlined_call_operand.vmem [shape: f32[1,32], index: 2, kind: input, shape index: {}]   ;;  %s554_s3 = inlined_call_operand.vmem [shape: f32[64,32], index: 3, kind: input, shape index: {}]   ;;  %s555_s4 = inlined_call_operand.vmem [shape: f32[1,32], index: 4, kind: input, shape index: {}]   ;;  %s556_s5 = inlined_call_operand.vmem [shape: f32[1,32], index: 5, kind: input, shape index: {}]   ;;  %s557_s6 = inlined_call_operand.vmem [shape: f32[64,32], index: 6, kind: output, shape index: {}]  }
   0x1   :  { %v351_v0 = vld [vmem:[%s551_s1] sm:$0xff]   ;;  %v352_v1 = vld [vmem:[%s551_s1 + $0x8] sm:$0xff]   ;;  %v355_v3 = vld [vmem:[%s552_s0 + $0x10] sm:$0xff]  }
   0x2   :  { %335 = vmatprep.subr.bf16.mxu0 %v351_v0  ;;  %347 = vmatprep.subr.bf16.mxu1 %v351_v0  ;;  %v353_v2 = vld [vmem:[%s552_s0] sm:$0xff]   ;;  %v354_v4 = vld [vmem:[%s552_s0 + $0x8] sm:$0xff]   ;;  %v356_v5 = vld [vmem:[%s552_s0 + $0x18] sm:$0xff]  }
   0x3   :  { %336 = vmatpush3.bf16.msra.mxu0 %v351_v0  ;;  %349 = vmatpush3.bf16.msra.mxu1 %v351_v0  ;;  %v316_v6 = vld [vmem:[%s553_s2] ss:$0 sm:$0xff]  ;;  %v155_v9 = vld [vmem:[%s554_s3 + $0x10] sm:$0xff]  ;;  %v156_v19 = vld [vmem:[%s554_s3 + $0x18] sm:$0xff] }
   0x4   :  { %337 = vmatprep.subr.bf16.mxu0 %v352_v1  ;;  %348 = vmatprep.subr.bf16.mxu1 %v352_v1  ;;  %v153_v13 = vld [vmem:[%s554_s3] sm:$0xff]  ;;  %v158_v31 = vld [vmem:[%s554_s3 + $0x28] sm:$0xff]  ;;  %v160_v39 = vld [vmem:[%s554_s3 + $0x38] sm:$0xff] }
   0x5   :  { %339 = vmatprep.mubr.msk.bf16.mxu0 %vm75_vm0, %v353_v2  ;;  %343 = vmatprep.mubr.msk.bf16.mxu1 %vm75_vm0, %v355_v3  ;;  %v157_v14 = vld [vmem:[%s554_s3 + $0x20] sm:$0xff]  ;;  %v154_v32 = vld [vmem:[%s554_s3 + $0x8] sm:$0xff]  ;;  %v159_v40 = vld [vmem:[%s554_s3 + $0x30] sm:$0xff] }
   0x7   :  { %338 = vmatpush3.bf16.msra.mxu0 %v352_v1  ;;  %350 = vmatpush3.bf16.msra.mxu1 %v352_v1 }
   0xa   :  { %340 = vmatmul.mubr.msk.bf16.vlgmr.msra.gmra.mrb[0].mxu0 %vm75_vm0, %v354_v4  ;;  %344 = vmatmul.mubr.msk.bf16.vlgmr.msra.gmra.mrb[0].mxu1 %vm75_vm0, %v356_v5 }
  0xdd   :  { %v341_v7 = vpop.f32.mrb[0].mxu0  ;;  %v345_v8 = vpop.f32.mrb[0].mxu1 }
  0xde   :  { %v131_v10 = vadd.f32 %v341_v7, %v316_v6  ;;  %v122_v11 = vpop.f32.mrb[1].mxu0  ;;  %v138_v12 = vpop.f32.mrb[1].mxu1  ;;  %v147_v37 = vadd.f32 %v345_v8, %v316_v6 }
  0xdf   :  { %v123_v15 = vadd.f32 %v316_v6, %v122_v11  ;;  %v342_v16 = vpop.f32.mrb[2].mxu0  ;;  %v139_v17 = vadd.f32 %v316_v6, %v138_v12  ;;  %v346_v18 = vpop.f32.mrb[2].mxu1 }
  0xe0   :  { %v134_v20 = vadd.f32 %v342_v16, %v316_v6  ;;  %v125_v21 = vpop.f32.mrb[3].mxu0  ;;  %v141_v22 = vpop.f32.mrb[3].mxu1  ;;  %v163_v23 = vadd.f32 %v155_v9, %v131_v10  ;;  %v150_v34 = vadd.f32 %v346_v18, %v316_v6  ;;  %v167_v44 = vadd.f32 %v159_v40, %v147_v37 }
  0xe1   :  { %v161_v24 = vadd.f32 %v153_v13, %v123_v15  ;;  %v165_v25 = vadd.f32 %v157_v14, %v139_v17  ;;  %v142_v26 = vadd.f32 %v316_v6, %v141_v22  ;;  %v126_v29 = vadd.f32 %v316_v6, %v125_v21 }
  0xe2   :  { %v175_v27 = vsel %vm75_vm0, %v163_v23, 0.0  ;;  %v164_v28 = vadd.f32 %v156_v19, %v134_v20  ;;  %v168_v42 = vadd.f32 %v160_v39, %v150_v34  ;;  %v187_v46 = vsel %vm75_vm0, %v167_v44, 0.0 }
  0xe3   :  { %176 = vadd.xlane.f32.xlu1 %v175_v27  ;;  %v169_v30 = vsel %vm75_vm0, %v161_v24, 0.0  ;;  %v181_v33 = vsel %vm75_vm0, %v165_v25, 0.0  ;;  %v166_v36 = vadd.f32 %v158_v31, %v142_v26  ;;  %v162_v38 = vadd.f32 %v154_v32, %v126_v29 }
  0xe4   :  { %170 = vadd.xlane.f32.xlu0 %v169_v30  ;;  %v178_v35 = vsel %vm75_vm0, %v164_v28, 0.0  ;;  %v190_v45 = vsel %vm75_vm0, %v168_v42, 0.0 }
  0xe5   :  { %v184_v41 = vsel %vm75_vm0, %v166_v36, 0.0  ;;  %v172_v43 = vsel %vm75_vm0, %v162_v38, 0.0 }
  0xe7   :  { %179 = vadd.xlane.f32.xlu1 %v178_v35 }
  0xe8   :  { %182 = vadd.xlane.f32.xlu0 %v181_v33 }
  0xeb   :  { %185 = vadd.xlane.f32.xlu1 %v184_v41 }
  0xec   :  { %173 = vadd.xlane.f32.xlu0 %v172_v43  ;;  %v327_v43 = vld [vmem:[%s555_s4] ss:$0 sm:$0xff] }
  0xef   :  { %191 = vadd.xlane.f32.xlu1 %v190_v45 }
  0xf0   :  { %188 = vadd.xlane.f32.xlu0 %v187_v46 }
 0x170   :  { %v177_v47 = vpop.xlane.xlu1 %176 }
 0x171   :  { %v196_v48 = vmul.f32 0.03125, %v177_v47  ;;  %v171_v49 = vpop.xlane.xlu0 %170  ;;  %v328_v47 = vld [vmem:[%s556_s5] ss:$0 sm:$0xff] }
 0x172   :  { %v194_v50 = vmul.f32 0.03125, %v171_v49 }
 0x173   :  { %v465_v51 = vsub.f32 %v163_v23, %v196_v48 }
 0x174   :  { %v467_v52 = vsub.f32 %v161_v24, %v194_v50  ;;  %v180_v53 = vpop.xlane.xlu1 %179 }
 0x175   :  { %v197_v54 = vmul.f32 0.03125, %v180_v53  ;;  %v183_v55 = vpop.xlane.xlu0 %182  ;;  %v212_v56 = vmul.f32 %v465_v51, %v465_v51 }
 0x176   :  { %v198_v57 = vmul.f32 0.03125, %v183_v55  ;;  %v210_v60 = vmul.f32 %v467_v52, %v467_v52 }
 0x177   :  { %v471_v58 = vsub.f32 %v164_v28, %v197_v54  ;;  %v224_v59 = vsel %vm75_vm0, %v212_v56, 0.0 }
 0x178   :  { %v476_v61 = vsub.f32 %v165_v25, %v198_v57  ;;  %v186_v62 = vpop.xlane.xlu1 %185  ;;  %225 = vadd.xlane.f32.xlu0 %v224_v59  ;;  %v218_v4 = vsel %vm75_vm0, %v210_v60, 0.0 }
 0x179   :  { %v199_v63 = vmul.f32 0.03125, %v186_v62  ;;  %v174_v0 = vpop.xlane.xlu0 %173  ;;  %v213_v1 = vmul.f32 %v471_v58, %v471_v58 }
 0x17a   :  { %v195_v2 = vmul.f32 0.03125, %v174_v0  ;;  %v214_v5 = vmul.f32 %v476_v61, %v476_v61 }
 0x17b   :  { %v227_v3 = vsel %vm75_vm0, %v213_v1, 0.0  ;;  %v484_v6 = vsub.f32 %v166_v36, %v199_v63 }
 0x17c   :  { %v486_v7 = vsub.f32 %v162_v38, %v195_v2  ;;  %228 = vadd.xlane.f32.xlu1 %v227_v3  ;;  %v192_v8 = vpop.xlane.xlu1 %191  ;;  %219 = vadd.xlane.f32.xlu0 %v218_v4  ;;  %v230_v13 = vsel %vm75_vm0, %v214_v5, 0.0 }
 0x17d   :  { %v201_v9 = vmul.f32 0.03125, %v192_v8  ;;  %v189_v10 = vpop.xlane.xlu0 %188  ;;  %v215_v17 = vmul.f32 %v484_v6, %v484_v6 }
 0x17e   :  { %v200_v11 = vmul.f32 0.03125, %v189_v10  ;;  %v211_v12 = vmul.f32 %v486_v7, %v486_v7 }
 0x17f   :  { %v491_v14 = vsub.f32 %v168_v42, %v201_v9  ;;  %v233_v19 = vsel %vm75_vm0, %v215_v17, 0.0 }
 0x180   :  { %v493_v15 = vsub.f32 %v167_v44, %v200_v11  ;;  %231 = vadd.xlane.f32.xlu0 %v230_v13  ;;  %v221_v16 = vsel %vm75_vm0, %v211_v12, 0.0 }
 0x181   :  { %222 = vadd.xlane.f32.xlu1 %v221_v16  ;;  %v217_v21 = vmul.f32 %v491_v14, %v491_v14 }
 0x182   :  { %v216_v18 = vmul.f32 %v493_v15, %v493_v15 }
 0x183   :  { %v239_v22 = vsel %vm75_vm0, %v217_v21, 0.0 }
 0x184   :  { %v236_v20 = vsel %vm75_vm0, %v216_v18, 0.0 }
 0x185   :  { %234 = vadd.xlane.f32.xlu1 %v233_v19  ;;  %237 = vadd.xlane.f32.xlu0 %v236_v20 }
 0x189   :  { %240 = vadd.xlane.f32.xlu1 %v239_v22 }
 0x205   :  { %v226_v23 = vpop.xlane.xlu0 %225 }
 0x206   :  { %v244_v24 = vmul.f32 0.03125, %v226_v23 }
 0x208   :  { %v252_v25 = vadd.f32 1e-05, %v244_v24 }
 0x209   :  { %v229_v26 = vpop.xlane.xlu1 %228  ;;  %v220_v27 = vpop.xlane.xlu0 %219 }
 0x20a   :  { %357 = vrsqrt.f32 %v252_v25  ;;  %v245_v28 = vmul.f32 0.03125, %v229_v26  ;;  %v242_v29 = vmul.f32 0.03125, %v220_v27 }
 0x20c   :  { %v253_v30 = vadd.f32 1e-05, %v245_v28  ;;  %v250_v31 = vadd.f32 1e-05, %v242_v29 }
 0x20d   :  { %v232_v32 = vpop.xlane.xlu0 %231 }
 0x20e   :  { %359 = vrsqrt.f32 %v253_v30  ;;  %v246_v33 = vmul.f32 0.03125, %v232_v32  ;;  %v223_v34 = vpop.xlane.xlu1 %222 }
 0x20f   :  { %361 = vrsqrt.f32 %v250_v31  ;;  %v243_v35 = vmul.f32 0.03125, %v223_v34 }
 0x210   :  { %v254_v36 = vadd.f32 1e-05, %v246_v33 }
 0x211   :  { %v251_v37 = vadd.f32 1e-05, %v243_v35 }
 0x212   :  { %363 = vrsqrt.f32 %v254_v36  ;;  %v235_v38 = vpop.xlane.xlu1 %234  ;;  %v238_v39 = vpop.xlane.xlu0 %237 }
 0x213   :  { %365 = vrsqrt.f32 %v251_v37  ;;  %v247_v40 = vmul.f32 0.03125, %v235_v38  ;;  %v248_v41 = vmul.f32 0.03125, %v238_v39 }
 0x214   :  { %v358_v42 = vpop.eup %357 }
 0x215   :  { %v268_v44 = vmul.f32 %v358_v42, %v465_v51  ;;  %v255_v45 = vadd.f32 1e-05, %v247_v40  ;;  %v256_v46 = vadd.f32 1e-05, %v248_v41 }
 0x216   :  { %v241_v48 = vpop.xlane.xlu1 %240 }
 0x217   :  { %v283_v49 = vmul.f32 %v327_v43, %v268_v44  ;;  %367 = vrsqrt.f32 %v255_v45  ;;  %v249_v50 = vmul.f32 0.03125, %v241_v48 }
 0x218   :  { %v360_v53 = vpop.eup %359  ;;  %369 = vrsqrt.f32 %v256_v46 }
 0x219   :  { %v362_v54 = vpop.eup %361  ;;  %v298_v55 = vadd.f32 %v328_v47, %v283_v49  ;;  %v269_v56 = vmul.f32 %v360_v53, %v471_v58  ;;  %v257_v57 = vadd.f32 1e-05, %v249_v50 }
 0x21a   :  { %v266_v59 = vmul.f32 %v362_v54, %v467_v52 }
 0x21b   :  { %306 = vst.msk [vmem:[%s557_s6 + $0x10] sm:$0xff] %vm75_vm0, %v298_v55  ;;  %v284_v51 = vmul.f32 %v327_v43, %v269_v56  ;;  %371 = vrsqrt.f32 %v257_v57 }
 0x21c   :  { %v364_v60 = vpop.eup %363  ;;  %v281_v62 = vmul.f32 %v327_v43, %v266_v59 }
 0x21d   :  { %v366_v63 = vpop.eup %365  ;;  %v299_v0 = vadd.f32 %v328_v47, %v284_v51  ;;  %v270_v1 = vmul.f32 %v364_v60, %v476_v61 }
 0x21e   :  { %v296_v2 = vadd.f32 %v328_v47, %v281_v62  ;;  %v267_v3 = vmul.f32 %v366_v63, %v486_v7 }
 0x21f   :  { %307 = vst.msk [vmem:[%s557_s6 + $0x18] sm:$0xff] %vm75_vm0, %v299_v0  ;;  %v285_v52 = vmul.f32 %v327_v43, %v270_v1 }
 0x220   :  { %304 = vst.msk [vmem:[%s557_s6] sm:$0xff] %vm75_vm0, %v296_v2  ;;  %v282_v58 = vmul.f32 %v327_v43, %v267_v3 }
 0x221   :  { %v368_v4 = vpop.eup %367  ;;  %v300_v5 = vadd.f32 %v328_v47, %v285_v52 }
 0x222   :  { %v370_v8 = vpop.eup %369  ;;  %v297_v9 = vadd.f32 %v328_v47, %v282_v58  ;;  %v271_v61 = vmul.f32 %v368_v4, %v484_v6 }
 0x223   :  { %308 = vst.msk [vmem:[%s557_s6 + $0x20] sm:$0xff] %vm75_vm0, %v300_v5  ;;  %v272_v7 = vmul.f32 %v370_v8, %v493_v15 }
 0x224   :  { %305 = vst.msk [vmem:[%s557_s6 + $0x8] sm:$0xff] %vm75_vm0, %v297_v9  ;;  %v286_v10 = vmul.f32 %v327_v43, %v271_v61 }
 0x225   :  { %v372_v11 = vpop.eup %371  ;;  %v287_v12 = vmul.f32 %v327_v43, %v272_v7 }
 0x226   :  { %v301_v13 = vadd.f32 %v328_v47, %v286_v10  ;;  %v273_v16 = vmul.f32 %v372_v11, %v491_v14 }
 0x227   :  { %v302_v17 = vadd.f32 %v328_v47, %v287_v12 }
 0x228   :  { %309 = vst.msk [vmem:[%s557_s6 + $0x28] sm:$0xff] %vm75_vm0, %v301_v13  ;;  %v288_v6 = vmul.f32 %v327_v43, %v273_v16 }
 0x229   :  { %310 = vst.msk [vmem:[%s557_s6 + $0x30] sm:$0xff] %vm75_vm0, %v302_v17 }
 0x22a   :  { %v303_v15 = vadd.f32 %v328_v47, %v288_v6 }
 0x22c   :  { %311 = vst.msk [vmem:[%s557_s6 + $0x38] sm:$0xff] %vm75_vm0, %v303_v15 }

// kernel: _forward_core.35
= control target key start
LH: loop header
LB: loop body
LE: loop exit
PB: predicated region body
PF: predicated region fallthrough
CT: control target
= control target key end

     0   :  { %vm242_vm0 = vcmask 261120   ;;  %s705_s1 = inlined_call_operand.vmem [shape: bf16[288,128], index: 1, kind: input, shape index: {}]   ;;  %s706_s0 = inlined_call_operand.vmem [shape: bf16[64,288], index: 0, kind: input, shape index: {}]   ;;  %s707_s2 = inlined_call_operand.vmem [shape: f32[1,128], index: 2, kind: input, shape index: {}]   ;;  %s708_s3 = inlined_call_operand.vmem [shape: f32[64,128], index: 3, kind: output, shape index: {}]  }
   0x1   :  { %v530_v0 = vld [vmem:[%s705_s1 + $0x40] sm:$0xff]   ;;  %v532_v2 = vld [vmem:[%s705_s1 + $0x48] sm:$0xff]   ;;  %v534_v4 = vld [vmem:[%s705_s1 + $0x50] sm:$0xff]  }
   0x2   :  { %v531_v1 = vld [vmem:[%s705_s1] sm:$0xff]   ;;  %456 = vmatprep.subr.bf16.mxu0 %v530_v0  ;;  %514 = vmatprep.subr.bf16.mxu1 %v530_v0  ;;  %v533_v3 = vld [vmem:[%s705_s1 + $0x8] sm:$0xff]   ;;  %v535_v5 = vld [vmem:[%s705_s1 + $0x10] sm:$0xff]  }
   0x3   :  { %457 = vmatpush3.bf16.msra.mxu0 %v531_v1  ;;  %522 = vmatpush3.bf16.msra.mxu1 %v531_v1  ;;  %v536_v6 = vld [vmem:[%s705_s1 + $0x58] sm:$0xff]   ;;  %v538_v8 = vld [vmem:[%s705_s1 + $0x60] sm:$0xff]   ;;  %v540_v10 = vld [vmem:[%s705_s1 + $0x68] sm:$0xff]  }
   0x4   :  { %458 = vmatprep.subr.bf16.mxu0 %v532_v2  ;;  %515 = vmatprep.subr.bf16.mxu1 %v532_v2  ;;  %v537_v7 = vld [vmem:[%s705_s1 + $0x18] sm:$0xff]   ;;  %v539_v9 = vld [vmem:[%s705_s1 + $0x20] sm:$0xff]   ;;  %v541_v13 = vld [vmem:[%s705_s1 + $0x28] sm:$0xff]  }
   0x5   :  { %v548_v11 = vld [vmem:[%s706_s0 + $0x4] ss:$12 sps:$4 sm:$0xff]   ;;  %v551_v12 = vld [vmem:[%s706_s0 + $0x4c] ss:$12 sps:$4 sm:$0xff]   ;;  %v549_v20 = vld [vmem:[%s706_s0 + $0x48] ss:$12 sps:$4 sm:$0xff]  }
   0x6   :  { %v542_v14 = vld [vmem:[%s705_s1 + $0x70] sm:$0xff]   ;;  %287 = vmatprep.mubr.bf16.mxu0 %v548_v11  ;;  %311 = vmatprep.mubr.bf16.mxu1 %v551_v12  ;;  %v544_v16 = vld [vmem:[%s705_s1 + $0x78] sm:$0xff]   ;;  %v552_v18 = vld [vmem:[%s705_s1 + $0x80] sm:$0xff]  }
   0x7   :  { %459 = vmatpush3.bf16.msra.mxu0 %v533_v3  ;;  %523 = vmatpush3.bf16.msra.mxu1 %v533_v3  ;;  %v543_v15 = vld [vmem:[%s705_s1 + $0x30] sm:$0xff]   ;;  %v545_v17 = vld [vmem:[%s705_s1 + $0x38] sm:$0xff]   ;;  %v546_v19 = vld [vmem:[%s706_s0] ss:$12 sps:$4 sm:$0xff]  }
   0x8   :  { %460 = vmatprep.subr.bf16.mxu0 %v534_v4  ;;  %516 = vmatprep.subr.bf16.mxu1 %v534_v4  ;;  %v554_v21 = vld [vmem:[%s706_s0 + $0x1c] ss:$12 sps:$4 sm:$0xff]   ;;  %v557_v24 = vld [vmem:[%s706_s0 + $0x18] ss:$12 sps:$4 sm:$0xff]   ;;  %v558_v25 = vld [vmem:[%s706_s0 + $0x20] ss:$12 sps:$4 sm:$0xff]  }
   0x9   :  { %v553_v22 = vld [vmem:[%s705_s1 + $0x88] sm:$0xff]   ;;  %v559_v26 = vld [vmem:[%s706_s0 + $0x34] ss:$12 sps:$4 sm:$0xff]   ;;  %v561_v27 = vld [vmem:[%s706_s0 + $0x38] ss:$12 sps:$4 sm:$0xff]  }
   0xa   :  { %v556_v23 = vld [vmem:[%s706_s0 + $0x8] ss:$12 sps:$4 sm:$0xff]   ;;  %v562_v28 = vld [vmem:[%s706_s0 + $0x30] ss:$12 sps:$4 sm:$0xff]   ;;  %v421_v42 = vld [vmem:[%s707_s2] ss:$0 sm:$0xff] }
   0xb   :  { %461 = vmatpush3.bf16.msra.mxu0 %v535_v5  ;;  %524 = vmatpush3.bf16.msra.mxu1 %v535_v5  ;;  %v563_v29 = vld [vmem:[%s706_s0 + $0x50] ss:$12 sps:$4 sm:$0xff]  }
   0xc   :  { %462 = vmatprep.subr.bf16.mxu0 %v536_v6  ;;  %517 = vmatprep.subr.bf16.mxu1 %v536_v6 }
   0xf   :  { %463 = vmatpush3.bf16.msra.mxu0 %v537_v7  ;;  %525 = vmatpush3.bf16.msra.mxu1 %v537_v7 }
  0x10   :  { %464 = vmatprep.subr.bf16.mxu0 %v538_v8  ;;  %518 = vmatprep.subr.bf16.mxu1 %v538_v8 }
  0x13   :  { %465 = vmatpush3.bf16.msra.mxu0 %v539_v9  ;;  %526 = vmatpush3.bf16.msra.mxu1 %v539_v9 }
  0x14   :  { %466 = vmatprep.subr.bf16.mxu0 %v540_v10  ;;  %519 = vmatprep.subr.bf16.mxu1 %v540_v10 }
  0x17   :  { %467 = vmatpush3.bf16.msra.mxu0 %v541_v13  ;;  %527 = vmatpush3.bf16.msra.mxu1 %v541_v13 }
  0x18   :  { %468 = vmatprep.subr.bf16.mxu0 %v542_v14  ;;  %520 = vmatprep.subr.bf16.mxu1 %v542_v14 }
  0x1b   :  { %469 = vmatpush3.bf16.msra.mxu0 %v543_v15  ;;  %528 = vmatpush3.bf16.msra.mxu1 %v543_v15 }
  0x1c   :  { %470 = vmatprep.subr.bf16.mxu0 %v544_v16  ;;  %521 = vmatprep.subr.bf16.mxu1 %v544_v16 }
  0x1f   :  { %471 = vmatpush3.bf16.msra.mxu0 %v545_v17  ;;  %529 = vmatpush3.bf16.msra.mxu1 %v545_v17 }
  0x20   :  { %502 = vmatprep.subr.bf16.mxu1 %v552_v18 }
  0x22   :  { %288 = vmatmul.mubr.bf16.vlgmr.msra.gmra.mrb[0].mxu0 %v546_v19  ;;  %312 = vmatmul.mubr.bf16.vlgmr.msra.gmra.mrb[0].mxu1 %v549_v20 }
  0x23   :  { %503 = vmatpush3.bf16.msra.mxu1 %v552_v18  ;;  %295 = vmatprep.mubr.bf16.mxu0 %v554_v21 }
  0x24   :  { %504 = vmatprep.subr.bf16.mxu1 %v553_v22  ;;  %506 = vmatprep.mubr.msk.bf16.mxu1 %vm242_vm0, %v556_v23 }
  0x27   :  { %505 = vmatpush3.bf16.msra.mxu1 %v553_v22 }
  0x2a   :  { %296 = vmatmul.mubr.bf16.gmra.mrb[4].mxu0 %v557_v24  ;;  %507 = vmatmul.mubr.msk.bf16.vlgmr.msra.gmra.mrb[4].mxu1 %vm242_vm0, %v558_v25 }
  0x2b   :  { %303 = vmatprep.mubr.bf16.mxu0 %v559_v26  ;;  %510 = vmatprep.mubr.msk.bf16.mxu1 %vm242_vm0, %v561_v27 }
  0x32   :  { %304 = vmatmul.mubr.bf16.gmra.mrb[8].mxu0 %v562_v28  ;;  %511 = vmatmul.mubr.msk.bf16.gmra.mrb[8].mxu1 %vm242_vm0, %v563_v29 }
  0xf5   :  { %v472_v30 = vpop.f32.mrb[0].mxu0  ;;  %v490_v31 = vpop.f32.mrb[0].mxu1 }
  0xf6   :  { %v473_v32 = vpop.f32.mrb[1].mxu0  ;;  %v491_v33 = vpop.f32.mrb[1].mxu1 }
  0xf7   :  { %v474_v34 = vadd.f32 %v473_v32, %v472_v30  ;;  %v475_v35 = vpop.f32.mrb[2].mxu0  ;;  %v492_v36 = vadd.f32 %v491_v33, %v490_v31  ;;  %v493_v37 = vpop.f32.mrb[2].mxu1 }
  0xf8   :  { %v476_v38 = vpop.f32.mrb[3].mxu0  ;;  %v494_v39 = vpop.f32.mrb[3].mxu1 }
  0xf9   :  { %v477_v40 = vadd.f32 %v476_v38, %v475_v35  ;;  %v495_v41 = vadd.f32 %v494_v39, %v493_v37  ;;  %v290_v45 = vadd.f32 %v474_v34, %v421_v42  ;;  %v314_v63 = vadd.f32 %v492_v36, %v421_v42 }
  0xfb   :  { %v293_v53 = vadd.f32 %v477_v40, %v421_v42  ;;  %v317_v8 = vadd.f32 %v495_v41, %v421_v42 }
  0xfd   :  { %v478_v43 = vpop.f32.mrb[4].mxu0  ;;  %v508_v44 = vpop.f32.mrb[4].mxu1 }
  0xfe   :  { %v479_v46 = vpop.f32.mrb[5].mxu0  ;;  %v354_v47 = vpop.f32.mrb[5].mxu1 }
  0xff   :  { %v480_v48 = vadd.f32 %v479_v46, %v478_v43  ;;  %v355_v49 = vadd.f32 %v354_v47, %v290_v45  ;;  %v481_v50 = vpop.f32.mrb[6].mxu0  ;;  %v509_v51 = vpop.f32.mrb[6].mxu1 }
 0x100   :  { %v482_v52 = vpop.f32.mrb[7].mxu0  ;;  %v357_v54 = vpop.f32.mrb[7].mxu1 }
 0x101   :  { %v298_v55 = vadd.f32 %v480_v48, %v421_v42  ;;  %vm385_vm1 = vcmp.ge.f32.partialorder %v355_v49, 0.0  ;;  %v393_v56 = vmul.f32 0.01, %v355_v49  ;;  %v483_v57 = vadd.f32 %v482_v52, %v481_v50 }
 0x102   :  { %v358_v58 = vadd.f32 %v357_v54, %v293_v53 }
 0x103   :  { %v363_v59 = vadd.f32 %v508_v44, %v298_v55  ;;  %v401_v60 = vsel %vm385_vm1, %v355_v49, %v393_v56  ;;  %v301_v61 = vadd.f32 %v483_v57, %v421_v42 }
 0x104   :  { %409 = vst [vmem:[%s708_s3] sm:$0xff] %v401_v60  ;;  %vm386_vm2 = vcmp.ge.f32.partialorder %v358_v58, 0.0  ;;  %v394_v62 = vmul.f32 0.01, %v358_v58 }
 0x105   :  { %vm387_vm3 = vcmp.ge.f32.partialorder %v363_v59, 0.0  ;;  %v395_v0 = vmul.f32 0.01, %v363_v59  ;;  %v366_v1 = vadd.f32 %v509_v51, %v301_v61  ;;  %v484_v2 = vpop.f32.mrb[8].mxu0  ;;  %v512_v3 = vpop.f32.mrb[8].mxu1 }
 0x106   :  { %v402_v4 = vsel %vm386_vm2, %v358_v58, %v394_v62  ;;  %v379_v5 = vadd.f32 %v512_v3, %v314_v63  ;;  %v485_v6 = vpop.f32.mrb[9].mxu0  ;;  %v370_v7 = vpop.f32.mrb[9].mxu1 }
 0x107   :  { %v403_v9 = vsel %vm387_vm3, %v363_v59, %v395_v0  ;;  %vm388_vm4 = vcmp.ge.f32.partialorder %v366_v1, 0.0  ;;  %v396_v10 = vmul.f32 0.01, %v366_v1  ;;  %410 = vst [vmem:[%s708_s3 + $0x8] sm:$0xff] %v402_v4  ;;  %v486_v11 = vadd.f32 %v485_v6, %v484_v2  ;;  %v487_v12 = vpop.f32.mrb[10].mxu0  ;;  %v513_v13 = vpop.f32.mrb[10].mxu1 }
 0x108   :  { %411 = vst [vmem:[%s708_s3 + $0x10] sm:$0xff] %v403_v9  ;;  %vm391_vm5 = vcmp.ge.f32.partialorder %v379_v5, 0.0  ;;  %v399_v14 = vmul.f32 0.01, %v379_v5  ;;  %v382_v15 = vadd.f32 %v513_v13, %v317_v8  ;;  %v488_v16 = vpop.f32.mrb[11].mxu0  ;;  %v373_v17 = vpop.f32.mrb[11].mxu1 }
 0x109   :  { %v404_v18 = vsel %vm388_vm4, %v366_v1, %v396_v10  ;;  %v306_v19 = vadd.f32 %v486_v11, %v421_v42  ;;  %v489_v20 = vadd.f32 %v488_v16, %v487_v12 }
 0x10a   :  { %412 = vst [vmem:[%s708_s3 + $0x18] sm:$0xff] %v404_v18  ;;  %v407_v21 = vsel %vm391_vm5, %v379_v5, %v399_v14  ;;  %vm392_vm6 = vcmp.ge.f32.partialorder %v382_v15, 0.0  ;;  %v400_v22 = vmul.f32 0.01, %v382_v15 }
 0x10b   :  { %415 = vst [vmem:[%s708_s3 + $0x30] sm:$0xff] %v407_v21  ;;  %v371_v23 = vadd.f32 %v370_v7, %v306_v19  ;;  %v309_v24 = vadd.f32 %v489_v20, %v421_v42 }
 0x10c   :  { %v408_v25 = vsel %vm392_vm6, %v382_v15, %v400_v22 }
 0x10d   :  { %vm389_vm7 = vcmp.ge.f32.partialorder %v371_v23, 0.0  ;;  %v397_v26 = vmul.f32 0.01, %v371_v23  ;;  %416 = vst [vmem:[%s708_s3 + $0x38] sm:$0xff] %v408_v25  ;;  %v374_v27 = vadd.f32 %v373_v17, %v309_v24 }
 0x10f   :  { %v405_v28 = vsel %vm389_vm7, %v371_v23, %v397_v26  ;;  %vm390_vm8 = vcmp.ge.f32.partialorder %v374_v27, 0.0  ;;  %v398_v29 = vmul.f32 0.01, %v374_v27 }
 0x110   :  { %413 = vst [vmem:[%s708_s3 + $0x20] sm:$0xff] %v405_v28 }
 0x111   :  { %v406_v30 = vsel %vm390_vm8, %v374_v27, %v398_v29 }
 0x112   :  { %414 = vst [vmem:[%s708_s3 + $0x28] sm:$0xff] %v406_v30 }

// kernel: _forward_core.37
= control target key start
LH: loop header
LB: loop body
LE: loop exit
PB: predicated region body
PF: predicated region fallthrough
CT: control target
= control target key end

     0   :  { %s2449_s21 = smov 0   ;;  %s2786_s0 = inlined_call_operand.vmem [shape: f32[2,8,32], index: 0, kind: input, shape index: {}]   ;;  %s2787_s1 = inlined_call_operand.vmem [shape: f32[2,64,32], index: 1, kind: input, shape index: {}]   ;;  %s2788_s2 = inlined_call_operand.vmem [shape: f32[2,64,32], index: 2, kind: input, shape index: {}]   ;;  %s2789_s3 = inlined_call_operand.vmem [shape: f32[32,32], index: 3, kind: input, shape index: {}]   ;;  %s2790_s4 = inlined_call_operand.vmem [shape: f32[1,32], index: 4, kind: input, shape index: {}]   ;;  %s2791_s5 = inlined_call_operand.vmem [shape: f32[32,32], index: 5, kind: input, shape index: {}]   ;;  %s2792_s6 = inlined_call_operand.vmem [shape: f32[1,32], index: 6, kind: input, shape index: {}]   ;;  %s2793_s7 = inlined_call_operand.vmem [shape: f32[32,32], index: 7, kind: input, shape index: {}]   ;;  %s2794_s8 = inlined_call_operand.vmem [shape: f32[1,32], index: 8, kind: input, shape index: {}]   ;;  %s2795_s9 = inlined_call_operand.vmem [shape: f32[32,32], index: 9, kind: input, shape index: {}]   ;;  %s2796_s10 = inlined_call_operand.vmem [shape: f32[1,32], index: 10, kind: input, shape index: {}]   ;;  %s2797_s11 = inlined_call_operand.vmem [shape: f32[32,32], index: 11, kind: input, shape index: {}]   ;;  %s2798_s12 = inlined_call_operand.vmem [shape: f32[1,32], index: 12, kind: input, shape index: {}]   ;;  %s2799_s13 = inlined_call_operand.vmem [shape: f32[32,32], index: 13, kind: input, shape index: {}]   ;;  %s2800_s14 = inlined_call_operand.vmem [shape: f32[1,32], index: 14, kind: input, shape index: {}]   ;;  %s2801_s15 = inlined_call_operand.vmem [shape: f32[2,8,32], index: 15, kind: output, shape index: {0}]   ;;  %s2802_s16 = inlined_call_operand.vmem [shape: f32[2,64,32], index: 16, kind: output, shape index: {1}]  }
   0x1   :  { %2803 = sst [smem:[#allocation2_spill]] %s2786_s0 }
   0x2 LB: > { %s1910_s22 = sadd.s32 4294967295, %s2359_s21   ;;  %p1914_p0 = scmp.ge.s32.totalorder %s2359_s21, 1  ;;  %s2359_s21 = sphi %s2449_s21, %s27_s21  }
   0x3   : > { %p484_p1 = scmp.lt.s32.totalorder %s2359_s21, 3 }
   0x5   : > { %p485_p2 = pnand %p1914_p0, %p484_p1 }
   0x6   : > { %v680_v0 = vld [vmem:[%s2791_s5] sm:$0xff] (!%p485_p2)  ;;  %v681_v1 = vld [vmem:[%s2791_s5 + $0x8] sm:$0xff] (!%p485_p2)  ;;  %v682_v2 = vld [vmem:[%s2791_s5 + $0x10] sm:$0xff] (!%p485_p2)  ;;  %p547_p3 = scmp.lt.s32.totalorder (!%p485_p2), %s1910_s22, 1  ;;  %v2361_v5 = vmov (!%p485_p2), 0.0|0.0   ;;  %vm2362_vm0 = vmmov (!%p485_p2), 0  }
   0x7   : > { %488 = sbr.rel (%p485_p2) target bundleno = 1992 (0x7c8), region = 80  ;;  %v2240_v3 = vpack.c.bf16 (!%p485_p2), %v681_v1, %v680_v0  ;;  %v683_v4 = vld [vmem:[%s2791_s5 + $0x18] sm:$0xff] (!%p485_p2)  ;;  %2234 = vmatprep.subr.bf16.mxu0 (!%p485_p2), %v2361_v5  ;;  %v595_v6 = vld [vmem:[%s2789_s3] sm:$0xff] (!%p485_p2)  ;;  %v596_v7 = vld [vmem:[%s2789_s3 + $0x8] sm:$0xff] (!%p485_p2)  ;;  %v2363_v12 = vmov (!%p485_p2), 0.0   ;;  %vm606_vm1 = vcmask (!%p485_p2), 261120  }
   0x8   : > { %v2244_v8 = vpack.c.bf16 (!%p485_p2), %v683_v4, %v682_v2  ;;  %v2235_v9 = vpack.c.bf16 (!%p485_p2), %v596_v7, %v595_v6  ;;  %v597_v10 = vld [vmem:[%s2789_s3 + $0x10] sm:$0xff] (!%p485_p2)  ;;  %v598_v11 = vld [vmem:[%s2789_s3 + $0x18] sm:$0xff] (!%p485_p2)  ;;  %2083 = vmatprep.mubr.msk.f32.mxu0 (!%p485_p2), %vm2362_vm0, %v2363_v12  ;;  %s2804_s23 = sld [smem:[#allocation2_spill]] (!%p485_p2)  ;;  %v1925_v39 = vld [vmem:[%s2792_s6] ss:$0 sm:$0xff] (!%p485_p2)  ;;  %vm1058_vm3 = vcmask (!%p485_p2), 523264  }
   0x9   : > { %2241 = vmatprep.subr.bf16.mxu1 (!%p485_p2), %v2240_v3  ;;  %v2238_v13 = vpack.c.bf16 (!%p485_p2), %v598_v11, %v597_v10  ;;  %vm2594_vm2 = vmpackc.low (!%p485_p2), %vm606_vm1, %vm606_vm1  ;;  %v1923_v63 = vld [vmem:[%s2790_s4] ss:$0 sm:$0xff] (!%p485_p2)  ;;  %v821_v2 = vld [vmem:[%s2793_s7 + $0x8] sm:$0xff] (!%p485_p2)  ;;  %vm1565_vm4 = vcmask (!%p485_p2), 64512  }
   0xa   : > { %2243 = vmatpush3.bf16.msra.mxu1 (!%p485_p2), %v2240_v3  ;;  %2236 = vmatpush3.bf16.msra.mxu0 (!%p485_p2), %v2235_v9  ;;  %v820_v1 = vld [vmem:[%s2793_s7] sm:$0xff] (!%p485_p2)  ;;  %v822_v3 = vld [vmem:[%s2793_s7 + $0x10] sm:$0xff] (!%p485_p2)  ;;  %v823_v6 = vld [vmem:[%s2793_s7 + $0x18] sm:$0xff] (!%p485_p2) }
   0xb   : > { %2245 = vmatprep.subr.bf16.mxu1 (!%p485_p2), %v2244_v8  ;;  %2237 = vmatprep.subr.bf16.mxu0 (!%p485_p2), %v2361_v5  ;;  %v2248_v4 = vpack.c.bf16 (!%p485_p2), %v821_v2, %v820_v1  ;;  %v2252_v7 = vpack.c.bf16 (!%p485_p2), %v823_v6, %v822_v3  ;;  %v1345_v6 = vld [vmem:[%s2799_s13 + $0x8] sm:$0xff] (!%p485_p2) }
   0xe   : > { %s2808_s22 = smov (!%p547_p3, %s1910_s22), 1  ;;  %2247 = vmatpush3.bf16.msra.mxu1 %v2244_v8  ;;  %2239 = vmatpush3.bf16.msra.mxu0 %v2238_v13  ;;  %v1934_v13 = vld [vmem:[%s2794_s8] ss:$0 sm:$0xff] }
   0xf   : > { %s2487_s26 = sshll.u32 %s2808_s22, 6  ;;  %s1915_s27 = sshll.u32 %s2808_s22, 3  ;;  %2256 = vmatprep.subr.bf16.mxu1 %v2361_v5  ;;  %2249 = vmatprep.subr.bf16.mxu0 %v2248_v4 }
  0x10   : > { %s2494_s30 = scalar_lea.vmem %s2787_s1, %s2487_s26  ;;  %s2500_s18 = scalar_lea.vmem %s2788_s2, %s2487_s26 }
  0x11   : > { %v2504_v14 = vld [vmem:[%s2494_s30] sm:$0xff]  ;;  %v2508_v16 = vld [vmem:[%s2494_s30 + $0x8] sm:$0xff]  ;;  %v2515_v19 = vld [vmem:[%s2494_s30 + $0x10] sm:$0xff]  ;;  %s550_s24 = scalar_lea.vmem %s2804_s23, %s1915_s27  ;;  %s564_s19 = scalar_lea.vmem %s2801_s15, %s1915_s27 }
  0x12   : > { %v579_v15 = vld [vmem:[%s2500_s18] sm:$0xff]  ;;  %v580_v18 = vld [vmem:[%s2500_s18 + $0x8] sm:$0xff]  ;;  %v581_v20 = vld [vmem:[%s2500_s18 + $0x10] sm:$0xff] }
  0x13   : > { %v2511_v17 = vadd.f32 %v579_v15, %v2504_v14  ;;  %v2519_v21 = vadd.f32 %v580_v18, %v2508_v16  ;;  %v2522_v22 = vadd.f32 %v581_v20, %v2515_v19  ;;  %v2525_v23 = vld [vmem:[%s2494_s30 + $0x18] sm:$0xff]  ;;  %v2536_v25 = vld [vmem:[%s2494_s30 + $0x20] sm:$0xff]  ;;  %v2553_v30 = vld [vmem:[%s2494_s30 + $0x28] sm:$0xff] }
  0x14   : > { %v582_v24 = vld [vmem:[%s2500_s18 + $0x18] sm:$0xff]  ;;  %v583_v26 = vld [vmem:[%s2500_s18 + $0x20] sm:$0xff]  ;;  %v584_v31 = vld [vmem:[%s2500_s18 + $0x28] sm:$0xff] }
  0x15   : > { %2094 = vmatprep.mubr.msk.f32.mxu1 %vm606_vm1, %v2511_v17  ;;  %v2543_v27 = vadd.f32 %v582_v24, %v2525_v23  ;;  %v2545_v28 = vld [vmem:[%s550_s24] sm:$0xff]  ;;  %v2550_v29 = vadd.f32 %v583_v26, %v2536_v25  ;;  %v2559_v32 = vld [vmem:[%s2494_s30 + $0x30] sm:$0xff]  ;;  %v2567_v34 = vadd.f32 %v584_v31, %v2553_v30  ;;  %v2575_v36 = vld [vmem:[%s2494_s30 + $0x38] sm:$0xff]  ;;  %s569_s30 = scalar_lea.vmem %s2802_s16, %s2487_s26 }
  0x16   : > { %2095 = vmatmul.mubr.msk.f32.vlgmr.msra.gmra.mrb[0].mxu1 %vm606_vm1, %v2519_v21  ;;  %2084 = vmatmul.mubr.msk.f32.vlgmr.msra.gmra.mrb[0].mxu0 %vm606_vm1, %v2545_v28  ;;  %v585_v33 = vld [vmem:[%s2500_s18 + $0x30] sm:$0xff]  ;;  %v586_v37 = vld [vmem:[%s2500_s18 + $0x38] sm:$0xff] }
  0x17   : > { %2097 = vmatprep.mubr.msk.f32.mxu1 %vm606_vm1, %v2522_v22  ;;  %2114 = vmatprep.mubr.msk.f32.mxu0 %vm606_vm1, %v2504_v14  ;;  %v2572_v35 = vadd.f32 %v585_v33, %v2559_v32  ;;  %v2581_v38 = vadd.f32 %v586_v37, %v2575_v36 }
  0x18   : > { %2251 = vmatpush3.bf16.msra.mxu0 %v2248_v4  ;;  %v1344_v4 = vld [vmem:[%s2799_s13] sm:$0xff] }
  0x19   : > { %2253 = vmatprep.subr.bf16.mxu0 %v2252_v7 }
  0x1a   : > { %2098 = vmatmul.mubr.msk.f32.gmra.mrb[2].mxu1 %vm606_vm1, %v2543_v27 }
  0x1b   : > { %2100 = vmatprep.mubr.msk.f32.mxu1 %vm606_vm1, %v2550_v29 }
  0x1c   : > { %2255 = vmatpush3.bf16.msra.mxu0 %v2252_v7  ;;  %v2299_v7 = vpack.c.bf16 %v1345_v6, %v1344_v4 }
  0x1d   : > { %2272 = vmatprep.subr.bf16.mxu0 %v2361_v5 }
  0x1e   : > { %2101 = vmatmul.mubr.msk.f32.gmra.mrb[4].mxu1 %vm606_vm1, %v2567_v34 }
  0x1f   : > { %2103 = vmatprep.mubr.msk.f32.mxu1 %vm606_vm1, %v2572_v35  ;;  %2115 = vmatmul.mubr.msk.f32.vlgmr.msra.gmra.mrb[2].mxu0 %vm606_vm1, %v2508_v16 }
  0x20   : > { %2117 = vmatprep.mubr.msk.f32.mxu0 %vm606_vm1, %v2515_v19 }
  0x22   : > { %2104 = vmatmul.mubr.msk.f32.gmra.mrb[6].mxu1 %vm606_vm1, %v2581_v38 }
  0x23   : > { %2142 = vmatprep.mubr.msk.f32.mxu1 %vm2362_vm0, %v2363_v12  ;;  %2118 = vmatmul.mubr.msk.f32.gmra.mrb[4].mxu0 %vm606_vm1, %v2525_v23 }
  0x24   : > { %2120 = vmatprep.mubr.msk.f32.mxu0 %vm606_vm1, %v2536_v25 }
  0x27   : > { %2121 = vmatmul.mubr.msk.f32.gmra.mrb[6].mxu0 %vm606_vm1, %v2553_v30 }
  0x28   : > { %2123 = vmatprep.mubr.msk.f32.mxu0 %vm606_vm1, %v2559_v32 }
  0x2b   : > { %2124 = vmatmul.mubr.msk.f32.gmra.mrb[8].mxu0 %vm606_vm1, %v2575_v36 }
  0x2c   : > { %2161 = vmatprep.mubr.msk.f32.mxu0 %vm2362_vm0, %v2363_v12 }
  0xe9   : > { %v2096_v40 = vpop.f32.mrb[0].mxu1  ;;  %v676_v43 = vpop.f32.mrb[0].mxu0 }
  0xea   : > { %v787_v41 = vadd.f32 %v2096_v40, %v1925_v39  ;;  %v781_v42 = vpop.f32.mrb[1].mxu1  ;;  %v2085_v45 = vpop.f32.mrb[1].mxu0  ;;  %v677_v0 = vadd.f32 %v1923_v63, %v676_v43  ;;  %v1146_v63 = vld [vmem:[%s2795_s9 + $0x10] sm:$0xff] }
  0xeb   : > { %v782_v44 = vadd.f32 %v1925_v39, %v781_v42 }
  0xed   : > { %v2257_v47 = vpack.c.bf16 %v787_v41, %v782_v44  ;;  %v2099_v48 = vpop.f32.mrb[2].mxu1 }
  0xee   : > { %v797_v49 = vadd.f32 %v2099_v48, %v1925_v39  ;;  %v791_v50 = vpop.f32.mrb[3].mxu1 }
  0xef   : > { %2259 = vmatpush3.bf16.xpose.msk.msra.mxu1 %vm2594_vm2, %v2257_v47  ;;  %v792_v51 = vadd.f32 %v1925_v39, %v791_v50 }
  0xf0   : > { %2260 = vmatprep.subr.bf16.mxu1 %v2361_v5 }
  0xf1   : > { %v2261_v52 = vpack.c.bf16 %v797_v49, %v792_v51  ;;  %v2102_v53 = vpop.f32.mrb[4].mxu1 }
  0xf2   : > { %v807_v54 = vadd.f32 %v2102_v53, %v1925_v39  ;;  %v801_v55 = vpop.f32.mrb[5].mxu1  ;;  %v2116_v15 = vpop.f32.mrb[2].mxu0 }
  0xf3   : > { %v802_v56 = vadd.f32 %v1925_v39, %v801_v55  ;;  %v927_v18 = vadd.f32 %v2116_v15, %v1934_v13  ;;  %v921_v20 = vpop.f32.mrb[3].mxu0 }
  0xf4   : > { %v922_v24 = vadd.f32 %v1934_v13, %v921_v20 }
  0xf5   : > { %v2265_v57 = vpack.c.bf16 %v807_v54, %v802_v56  ;;  %v2105_v58 = vpop.f32.mrb[6].mxu1  ;;  %v1144_v56 = vld [vmem:[%s2795_s9] sm:$0xff] }
  0xf6   : > { %v817_v59 = vadd.f32 %v2105_v58, %v1925_v39  ;;  %v811_v60 = vpop.f32.mrb[7].mxu1  ;;  %v2273_v26 = vpack.c.bf16 %v927_v18, %v922_v24  ;;  %v2119_v31 = vpop.f32.mrb[4].mxu0 }
  0xf7   : > { %2263 = vmatpush3.bf16.xpose.msk.msra.mxu1 %vm2594_vm2, %v2261_v52  ;;  %v812_v61 = vadd.f32 %v1925_v39, %v811_v60  ;;  %v937_v33 = vadd.f32 %v2119_v31, %v1934_v13  ;;  %v931_v37 = vpop.f32.mrb[5].mxu0  ;;  %v1261_v60 = vld [vmem:[%s2797_s11 + $0x8] sm:$0xff] }
  0xf8   : > { %2264 = vmatprep.subr.bf16.mxu1 %v2361_v5  ;;  %v932_v39 = vadd.f32 %v1934_v13, %v931_v37  ;;  %2274 = vmatpush3.bf16.msra.mxu0 %v2273_v26 }
  0xf9   : > { %v2269_v62 = vpack.c.bf16 %v817_v59, %v812_v61  ;;  %2275 = vmatprep.subr.bf16.mxu0 %v2361_v5  ;;  %v1260_v59 = vld [vmem:[%s2797_s11] sm:$0xff] }
  0xfa   : > { %v2276_v40 = vpack.c.bf16 %v937_v33, %v932_v39  ;;  %v2122_v46 = vpop.f32.mrb[6].mxu0  ;;  %v2293_v61 = vpack.c.bf16 %v1261_v60, %v1260_v59 }
  0xfb   : > { %v941_v47 = vpop.f32.mrb[7].mxu0  ;;  %v947_v48 = vadd.f32 %v2122_v46, %v1934_v13 }
  0xfc   : > { %2277 = vmatpush3.bf16.msra.mxu0 %v2276_v40  ;;  %v942_v49 = vadd.f32 %v1934_v13, %v941_v47 }
  0xfd   : > { %2278 = vmatprep.subr.bf16.mxu0 %v2361_v5 }
  0xfe   : > { %v2279_v50 = vpack.c.bf16 %v947_v48, %v942_v49  ;;  %v2125_v51 = vpop.f32.mrb[8].mxu0 }
  0xff   : > { %2267 = vmatpush3.bf16.xpose.msk.msra.mxu1 %vm2594_vm2, %v2265_v57  ;;  %v951_v52 = vpop.f32.mrb[9].mxu0  ;;  %v957_v53 = vadd.f32 %v2125_v51, %v1934_v13  ;;  %v1145_v57 = vld [vmem:[%s2795_s9 + $0x8] sm:$0xff] }
 0x100   : > { %2268 = vmatprep.subr.bf16.mxu1 %v2361_v5  ;;  %v952_v54 = vadd.f32 %v1934_v13, %v951_v52  ;;  %2280 = vmatpush3.bf16.msra.mxu0 %v2279_v50  ;;  %v2284_v58 = vpack.c.bf16 %v1145_v57, %v1144_v56 }
 0x101   : > { %2281 = vmatprep.subr.bf16.mxu0 %v2361_v5 }
 0x102   : > { %v2282_v55 = vpack.c.bf16 %v957_v53, %v952_v54 }
 0x104   : > { %2283 = vmatpush3.bf16.msra.mxu0 %v2282_v55 }
 0x105   : > { %2285 = vmatprep.subr.bf16.mxu0 %v2284_v58 }
 0x107   : > { %2271 = vmatpush3.bf16.xpose.msk.msra.mxu1 %vm2594_vm2, %v2269_v62 }
 0x108   : > { %2292 = vmatprep.subr.bf16.mxu1 %v2361_v5 }
 0x10e   : > { %2143 = vmatmul.mubr.msk.f32.vlgmr.msra.gmra.mrb[8].mxu1 %vm606_vm1, %v677_v0  ;;  %v1147_v0 = vld [vmem:[%s2795_s9 + $0x18] sm:$0xff] }
 0x10f   : > { %2192 = vmatprep.mubr.msk.f32.mxu1 %vm2362_vm0, %v2363_v12  ;;  %2294 = vmatpush3.bf16.msra.mxu1 %v2293_v61  ;;  %v2288_v3 = vpack.c.bf16 %v1147_v0, %v1146_v63 }
 0x110   : > { %2295 = vmatprep.subr.bf16.mxu1 %v2361_v5 }
 0x1e1   : > { %v1053_v8 = vpop.f32.mrb[8].mxu1 }
 0x1e2   : > { %v1057_v9 = vmul.f32 0.17677669, %v1053_v8  ;;  %v2144_v10 = vpop.f32.mrb[9].mxu1 }
 0x1e4   : > { %v1059_v11 = vsel %vm1058_vm3, %v1057_v9, -inf }
 0x1e5   : > { %1060 = vmax.xlane.f32.xlu0 %v1059_v11 }
 0x272   : > { %v1061_v41 = vpop.xlane.xlu0 %1060 }
 0x273   : > { %v1062_v42 = vsub.f32 %v1057_v9, %v1061_v41  ;;  %v1962_v41 = vld [vmem:[%s2798_s12] ss:$0 sm:$0xff] }
 0x275   : > { %v1063_v43 = vmul.f32 1.442695, %v1062_v42  ;;  %v1964_v42 = vld [vmem:[%s2800_s14] ss:$0 sm:$0xff] }
 0x277   : > { %2317 = vpow2.f32 %v1063_v43 }
 0x281   : > { %v2318_v44 = vpop.eup %2317 }
 0x282   : > { %v1065_v45 = vsel %vm1058_vm3, %v2318_v44, 0.0 }
 0x283   : > { %1066 = vadd.xlane.f32.xlu0 %v1065_v45 }
 0x310   : > { %v1067_v62 = vpop.xlane.xlu0 %1066 }
 0x311   : > { %2319 = vrcp.f32 %v1067_v62 }
 0x31b   : > { %v2320_v1 = vpop.eup %2319 }
 0x31c   : > { %v1069_v2 = vmul.f32 %v2320_v1, %v2318_v44 }
 0x31e   : > { %2162 = vmatmul.mubr.msk.f32.vlgmr.msra.gmra.mrb[10].mxu0 %vm1058_vm3, %v1069_v2 }
 0x31f   : > { %2287 = vmatpush3.bf16.msra.mxu0 %v2284_v58  ;;  %2172 = vmatprep.mubr.msk.f32.mxu0 %vm606_vm1, %v2511_v17  ;;  %v1263_v17 = vld [vmem:[%s2797_s11 + $0x18] sm:$0xff] }
 0x320   : > { %2289 = vmatprep.subr.bf16.mxu0 %v2288_v3 }
 0x323   : > { %2291 = vmatpush3.bf16.msra.mxu0 %v2288_v3 }
 0x324   : > { %2298 = vmatprep.subr.bf16.mxu0 %v2361_v5 }
 0x326   : > { %2173 = vmatmul.mubr.msk.f32.vlgmr.msra.gmra.mrb[12].mxu0 %vm606_vm1, %v2519_v21  ;;  %v1346_v21 = vld [vmem:[%s2799_s13 + $0x10] sm:$0xff] }
 0x327   : > { %2175 = vmatprep.mubr.msk.f32.mxu0 %vm606_vm1, %v2522_v22  ;;  %2300 = vmatpush3.bf16.msra.mxu0 %v2299_v7 }
 0x328   : > { %2301 = vmatprep.subr.bf16.mxu0 %v2361_v5  ;;  %v1262_v5 = vld [vmem:[%s2797_s11 + $0x10] sm:$0xff] }
 0x329   : > { %v2296_v22 = vpack.c.bf16 %v1263_v17, %v1262_v5 }
 0x32a   : > { %2176 = vmatmul.mubr.msk.f32.gmra.mrb[14].mxu0 %vm606_vm1, %v2543_v27  ;;  %v1347_v27 = vld [vmem:[%s2799_s13 + $0x18] sm:$0xff] }
 0x32b   : > { %2178 = vmatprep.mubr.msk.f32.mxu0 %vm606_vm1, %v2550_v29  ;;  %v2302_v29 = vpack.c.bf16 %v1347_v27, %v1346_v21  ;;  %2297 = vmatpush3.bf16.msra.mxu1 %v2296_v22 }
 0x32d   : > { %2303 = vmatpush3.bf16.msra.mxu0 %v2302_v29 }
 0x32e   : > { %2179 = vmatmul.mubr.msk.f32.gmra.mrb[16].mxu0 %vm606_vm1, %v2567_v34 }
 0x32f   : > { %2181 = vmatprep.mubr.msk.f32.mxu0 %vm606_vm1, %v2572_v35 }
 0x332   : > { %2182 = vmatmul.mubr.msk.f32.gmra.mrb[18].mxu0 %vm606_vm1, %v2581_v38  ;;  %v1953_v38 = vld [vmem:[%s2796_s10] ss:$0 sm:$0xff] }
 0x333   : > { %2203 = vmatprep.mubr.msk.f32.mxu0 %vm2362_vm0, %v2363_v12 }
 0x3f1   : > { %v1139_v12 = vpop.f32.mrb[10].mxu0 }
 0x3f2   : > { %v1143_v34 = vadd.f32 %v1139_v12, %v2545_v28  ;;  %v2163_v35 = vpop.f32.mrb[11].mxu0 }
 0x3f4   : > { %1799 = vst.msk [vmem:[%s564_s19] sm:$0xff] %vm606_vm1, %v1143_v34  ;;  %2193 = vmatmul.mubr.msk.f32.vlgmr.msra.gmra.mrb[10].mxu1 %vm606_vm1, %v1143_v34  ;;  %2204 = vmatmul.mubr.msk.f32.vlgmr.msra.gmra.mrb[20].mxu0 %vm606_vm1, %v1143_v34 }
 0x3f9   : > { %v2174_v8 = vpop.f32.mrb[12].mxu0 }
 0x3fa   : > { %v1227_v9 = vadd.f32 %v2174_v8, %v1953_v38  ;;  %v1221_v10 = vpop.f32.mrb[13].mxu0 }
 0x3fb   : > { %v1222_v11 = vadd.f32 %v1953_v38, %v1221_v10 }
 0x3fd   : > { %v2177_v13 = vpop.f32.mrb[14].mxu0  ;;  %2208 = vmatprep.mubr.msk.f32.mxu1 %vm606_vm1, %v1222_v11 }
 0x3fe   : > { %v1237_v15 = vadd.f32 %v2177_v13, %v1953_v38  ;;  %v1231_v28 = vpop.f32.mrb[15].mxu0 }
 0x3ff   : > { %v1232_v18 = vadd.f32 %v1953_v38, %v1231_v28 }
 0x401   : > { %v2180_v20 = vpop.f32.mrb[16].mxu0 }
 0x402   : > { %v1247_v24 = vadd.f32 %v2180_v20, %v1953_v38  ;;  %v1241_v26 = vpop.f32.mrb[17].mxu0 }
 0x403   : > { %v1242_v31 = vadd.f32 %v1953_v38, %v1241_v26 }
 0x405   : > { %v2183_v33 = vpop.f32.mrb[18].mxu0 }
 0x406   : > { %v1257_v37 = vadd.f32 %v2183_v33, %v1953_v38  ;;  %v1251_v39 = vpop.f32.mrb[19].mxu0 }
 0x407   : > { %v1252_v40 = vadd.f32 %v1953_v38, %v1251_v39 }
 0x4c7   : > { %v1340_v43 = vpop.f32.mrb[10].mxu1  ;;  %v1421_v44 = vpop.f32.mrb[20].mxu0 }
 0x4c8   : > { %v1341_v45 = vadd.f32 %v1962_v41, %v1340_v43  ;;  %v1422_v46 = vadd.f32 %v1964_v42, %v1421_v44  ;;  %v2194_v47 = vpop.f32.mrb[11].mxu1  ;;  %v2205_v48 = vpop.f32.mrb[21].mxu0 }
 0x4ca   : > { %2206 = vmatprep.subr.msk.mxu1 %vm606_vm1, %v1341_v45  ;;  %2220 = vmatprep.subr.mxu0 %v1422_v46 }
 0x4cb   : > { %2207 = vmatpush3.xpose.msk.msra.mxu1 %vm606_vm1, %v1341_v45  ;;  %2221 = vmatpush3.msra.mxu0 %v1422_v46 }
 0x4cc   : > { %2304 = vmatprep.subr.mxu1 %v1422_v46 }
 0x4ce   : > { %2209 = vmatmul.mubr.msk.f32.vlgmr.msra.gmra.mrb[12].mxu1 %vm606_vm1, %v1227_v9 }
 0x4cf   : > { %2305 = vmatpush3.msra.mxu1 %v1422_v46  ;;  %2211 = vmatprep.mubr.msk.f32.mxu1 %vm606_vm1, %v1232_v18 }
 0x4d2   : > { %2212 = vmatmul.mubr.msk.f32.gmra.mrb[14].mxu1 %vm606_vm1, %v1237_v15 }
 0x4d3   : > { %2214 = vmatprep.mubr.msk.f32.mxu1 %vm606_vm1, %v1242_v31 }
 0x4d6   : > { %2215 = vmatmul.mubr.msk.f32.gmra.mrb[16].mxu1 %vm606_vm1, %v1247_v24 }
 0x4d7   : > { %2217 = vmatprep.mubr.msk.f32.mxu1 %vm606_vm1, %v1252_v40 }
 0x4da   : > { %2218 = vmatmul.mubr.msk.f32.gmra.mrb[18].mxu1 %vm606_vm1, %v1257_v37 }
 0x5a1   : > { %v2210_v49 = vpop.f32.mrb[12].mxu1 }
 0x5a2   : > { %v1558_v50 = vmul.f32 0.17677669, %v2210_v49  ;;  %v1518_v51 = vpop.f32.mrb[13].mxu1 }
 0x5a3   : > { %v1557_v52 = vmul.f32 0.17677669, %v1518_v51 }
 0x5a4   : > { %v1569_v53 = vsel %vm1565_vm4, %v1558_v50, -inf }
 0x5a5   : > { %1570 = vmax.xlane.f32.xlu1 %v1569_v53  ;;  %v2213_v54 = vpop.f32.mrb[14].mxu1  ;;  %v1566_v58 = vsel %vm1565_vm4, %v1557_v52, -inf }
 0x5a6   : > { %v1528_v55 = vpop.f32.mrb[15].mxu1  ;;  %v1560_v57 = vmul.f32 0.17677669, %v2213_v54 }
 0x5a7   : > { %v1559_v56 = vmul.f32 0.17677669, %v1528_v55 }
 0x5a8   : > { %v1575_v63 = vsel %vm1565_vm4, %v1560_v57, -inf }
 0x5a9   : > { %1567 = vmax.xlane.f32.xlu1 %v1566_v58  ;;  %v2216_v59 = vpop.f32.mrb[16].mxu1  ;;  %v1572_v60 = vsel %vm1565_vm4, %v1559_v56, -inf }
 0x5aa   : > { %1573 = vmax.xlane.f32.xlu0 %v1572_v60  ;;  %v1538_v61 = vpop.f32.mrb[17].mxu1  ;;  %v1562_v0 = vmul.f32 0.17677669, %v2216_v59 }
 0x5ab   : > { %v1561_v62 = vmul.f32 0.17677669, %v1538_v61 }
 0x5ac   : > { %v1581_v7 = vsel %vm1565_vm4, %v1562_v0, -inf }
 0x5ad   : > { %1576 = vmax.xlane.f32.xlu1 %v1575_v63  ;;  %v2219_v1 = vpop.f32.mrb[18].mxu1  ;;  %v1578_v2 = vsel %vm1565_vm4, %v1561_v62, -inf }
 0x5ae   : > { %1579 = vmax.xlane.f32.xlu0 %v1578_v2  ;;  %v1548_v3 = vpop.f32.mrb[19].mxu1  ;;  %v1564_v6 = vmul.f32 0.17677669, %v2219_v1 }
 0x5af   : > { %v1563_v4 = vmul.f32 0.17677669, %v1548_v3 }
 0x5b0   : > { %v1587_v17 = vsel %vm1565_vm4, %v1564_v6, -inf }
 0x5b1   : > { %v1584_v5 = vsel %vm1565_vm4, %v1563_v4, -inf }
 0x5b2   : > { %1582 = vmax.xlane.f32.xlu0 %v1581_v7  ;;  %1585 = vmax.xlane.f32.xlu1 %v1584_v5 }
 0x5b6   : > { %1588 = vmax.xlane.f32.xlu1 %v1587_v17 }
 0x632   : > { %v1571_v21 = vpop.xlane.xlu1 %1570 }
 0x633   : > { %v1591_v22 = vsub.f32 %v1558_v50, %v1571_v21 }
 0x635   : > { %v1600_v27 = vmul.f32 1.442695, %v1591_v22 }
 0x636   : > { %v1568_v29 = vpop.xlane.xlu1 %1567 }
 0x637   : > { %2321 = vpow2.f32 %v1600_v27  ;;  %v1590_v12 = vsub.f32 %v1557_v52, %v1568_v29  ;;  %v1574_v34 = vpop.xlane.xlu0 %1573 }
 0x638   : > { %v1592_v35 = vsub.f32 %v1559_v56, %v1574_v34 }
 0x639   : > { %v1598_v38 = vmul.f32 1.442695, %v1590_v12 }
 0x63a   : > { %v1602_v8 = vmul.f32 1.442695, %v1592_v35  ;;  %v1577_v9 = vpop.xlane.xlu1 %1576 }
 0x63b   : > { %2323 = vpow2.f32 %v1598_v38  ;;  %v1593_v10 = vsub.f32 %v1560_v57, %v1577_v9  ;;  %v1580_v11 = vpop.xlane.xlu0 %1579 }
 0x63c   : > { %v1594_v13 = vsub.f32 %v1561_v62, %v1580_v11  ;;  %2325 = vpow2.f32 %v1602_v8 }
 0x63d   : > { %v1604_v15 = vmul.f32 1.442695, %v1593_v10 }
 0x63e   : > { %v1606_v28 = vmul.f32 1.442695, %v1594_v13 }
 0x63f   : > { %2327 = vpow2.f32 %v1604_v15  ;;  %v1583_v18 = vpop.xlane.xlu0 %1582  ;;  %v1586_v20 = vpop.xlane.xlu1 %1585 }
 0x640   : > { %v1595_v24 = vsub.f32 %v1562_v0, %v1583_v18  ;;  %v1596_v26 = vsub.f32 %v1563_v4, %v1586_v20  ;;  %2329 = vpow2.f32 %v1606_v28 }
 0x641   : > { %v2322_v31 = vpop.eup %2321 }
 0x642   : > { %v1608_v33 = vmul.f32 1.442695, %v1595_v24  ;;  %v1610_v37 = vmul.f32 1.442695, %v1596_v26  ;;  %v1617_v39 = vsel %vm1565_vm4, %v2322_v31, 0.0 }
 0x643   : > { %1618 = vadd.xlane.f32.xlu1 %v1617_v39  ;;  %v1589_v40 = vpop.xlane.xlu1 %1588 }
 0x644   : > { %2331 = vpow2.f32 %v1608_v33  ;;  %v1597_v41 = vsub.f32 %v1564_v6, %v1589_v40 }
 0x645   : > { %v2324_v42 = vpop.eup %2323  ;;  %2333 = vpow2.f32 %v1610_v37 }
 0x646   : > { %v1612_v43 = vmul.f32 1.442695, %v1597_v41  ;;  %v1614_v44 = vsel %vm1565_vm4, %v2324_v42, 0.0  ;;  %v2326_v45 = vpop.eup %2325 }
 0x647   : > { %1615 = vadd.xlane.f32.xlu0 %v1614_v44  ;;  %v1620_v47 = vsel %vm1565_vm4, %v2326_v45, 0.0 }
 0x648   : > { %2335 = vpow2.f32 %v1612_v43 }
 0x649   : > { %v2328_v46 = vpop.eup %2327 }
 0x64a   : > { %v1623_v48 = vsel %vm1565_vm4, %v2328_v46, 0.0  ;;  %v2330_v49 = vpop.eup %2329 }
 0x64b   : > { %1621 = vadd.xlane.f32.xlu0 %v1620_v47  ;;  %1624 = vadd.xlane.f32.xlu1 %v1623_v48  ;;  %v1626_v51 = vsel %vm1565_vm4, %v2330_v49, 0.0 }
 0x64e   : > { %v2332_v50 = vpop.eup %2331 }
 0x64f   : > { %v2334_v52 = vpop.eup %2333  ;;  %1627 = vadd.xlane.f32.xlu0 %v1626_v51  ;;  %v1629_v55 = vsel %vm1565_vm4, %v2332_v50, 0.0 }
 0x650   : > { %v1632_v53 = vsel %vm1565_vm4, %v2334_v52, 0.0 }
 0x651   : > { %1633 = vadd.xlane.f32.xlu1 %v1632_v53 }
 0x652   : > { %v2336_v54 = vpop.eup %2335 }
 0x653   : > { %1630 = vadd.xlane.f32.xlu0 %v1629_v55  ;;  %v1635_v56 = vsel %vm1565_vm4, %v2336_v54, 0.0 }
 0x655   : > { %1636 = vadd.xlane.f32.xlu1 %v1635_v56 }
 0x6d0   : > { %v1619_v57 = vpop.xlane.xlu1 %1618 }
 0x6d1   : > { %2337 = vrcp.f32 %v1619_v57 }
 0x6d4   : > { %v1616_v58 = vpop.xlane.xlu0 %1615 }
 0x6d5   : > { %2339 = vrcp.f32 %v1616_v58 }
 0x6d8   : > { %v1622_v59 = vpop.xlane.xlu0 %1621  ;;  %v1625_v60 = vpop.xlane.xlu1 %1624 }
 0x6d9   : > { %2341 = vrcp.f32 %v1622_v59 }
 0x6da   : > { %2343 = vrcp.f32 %v1625_v60 }
 0x6db   : > { %v2338_v62 = vpop.eup %2337 }
 0x6dc   : > { %v1628_v61 = vpop.xlane.xlu0 %1627  ;;  %v1641_v3 = vmul.f32 %v2338_v62, %v2322_v31 }
 0x6dd   : > { %2345 = vrcp.f32 %v1628_v61 }
 0x6de   : > { %v1634_v63 = vpop.xlane.xlu1 %1633 }
 0x6df   : > { %v2340_v0 = vpop.eup %2339  ;;  %2347 = vrcp.f32 %v1634_v63 }
 0x6e0   : > { %v1631_v1 = vpop.xlane.xlu0 %1630  ;;  %v1639_v2 = vmul.f32 %v2340_v0, %v2324_v42 }
 0x6e1   : > { %2349 = vrcp.f32 %v1631_v1 }
 0x6e2   : > { %v1637_v4 = vpop.xlane.xlu1 %1636  ;;  %2222 = vmatprep.mubr.msk.f32.mxu0 %vm1565_vm4, %v1639_v2 }
 0x6e3   : > { %v2342_v6 = vpop.eup %2341  ;;  %2351 = vrcp.f32 %v1637_v4  ;;  %2223 = vmatmul.mubr.msk.f32.vlgmr.msra.gmra.mrb[22].mxu0 %vm1565_vm4, %v1641_v3 }
 0x6e4   : > { %v2344_v7 = vpop.eup %2343  ;;  %v1643_v5 = vmul.f32 %v2342_v6, %v2326_v45 }
 0x6e5   : > { %v1645_v17 = vmul.f32 %v2344_v7, %v2328_v46 }
 0x6e6   : > { %2225 = vmatprep.mubr.msk.f32.mxu0 %vm1565_vm4, %v1643_v5 }
 0x6e7   : > { %v2346_v21 = vpop.eup %2345  ;;  %2226 = vmatmul.mubr.msk.f32.gmra.mrb[24].mxu0 %vm1565_vm4, %v1645_v17 }
 0x6e8   : > { %v1647_v22 = vmul.f32 %v2346_v21, %v2330_v49 }
 0x6e9   : > { %v2348_v27 = vpop.eup %2347 }
 0x6ea   : > { %2228 = vmatprep.mubr.msk.f32.mxu0 %vm1565_vm4, %v1647_v22  ;;  %v1651_v29 = vmul.f32 %v2348_v27, %v2334_v52 }
 0x6eb   : > { %v2350_v12 = vpop.eup %2349 }
 0x6ec   : > { %2231 = vmatprep.mubr.msk.f32.mxu1 %vm1565_vm4, %v1651_v29  ;;  %v1649_v34 = vmul.f32 %v2350_v12, %v2332_v50 }
 0x6ed   : > { %v2352_v35 = vpop.eup %2351 }
 0x6ee   : > { %v1653_v38 = vmul.f32 %v2352_v35, %v2336_v54  ;;  %2229 = vmatmul.mubr.msk.f32.gmra.mrb[26].mxu0 %vm1565_vm4, %v1649_v34 }
 0x6f0   : > { %2232 = vmatmul.mubr.msk.f32.vlgmr.msra.gmra.mrb[20].mxu1 %vm1565_vm4, %v1653_v38 }
 0x7b6   : > { %v2224_v8 = vpop.f32.mrb[22].mxu0 }
 0x7b7   : > { %v1784_v9 = vadd.f32 %v2224_v8, %v2508_v16  ;;  %v1744_v10 = vpop.f32.mrb[23].mxu0 }
 0x7b8   : > { %v1783_v11 = vadd.f32 %v1744_v10, %v2504_v14 }
 0x7b9   : > { %1792 = vst.msk [vmem:[%s569_s30 + $0x8] sm:$0xff] %vm606_vm1, %v1784_v9 }
 0x7ba   : > { %1791 = vst.msk [vmem:[%s569_s30] sm:$0xff] %vm606_vm1, %v1783_v11  ;;  %v2227_v13 = vpop.f32.mrb[24].mxu0 }
 0x7bb   : > { %v1786_v15 = vadd.f32 %v2227_v13, %v2525_v23  ;;  %v1754_v28 = vpop.f32.mrb[25].mxu0 }
 0x7bc   : > { %v1785_v18 = vadd.f32 %v1754_v28, %v2515_v19 }
 0x7bd   : > { %1794 = vst.msk [vmem:[%s569_s30 + $0x18] sm:$0xff] %vm606_vm1, %v1786_v15 }
 0x7be   : > { %1793 = vst.msk [vmem:[%s569_s30 + $0x10] sm:$0xff] %vm606_vm1, %v1785_v18 }
 0x7c1   : > { %v2230_v20 = vpop.f32.mrb[26].mxu0 }
 0x7c2   : > { %v1788_v16 = vadd.f32 %v2230_v20, %v2553_v30  ;;  %v1764_v24 = vpop.f32.mrb[27].mxu0 }
 0x7c3   : > { %v1787_v14 = vadd.f32 %v1764_v24, %v2536_v25  ;;  %v2233_v26 = vpop.f32.mrb[20].mxu1 }
 0x7c4   : > { %1796 = vst.msk [vmem:[%s569_s30 + $0x28] sm:$0xff] %vm606_vm1, %v1788_v16  ;;  %v1790_v31 = vadd.f32 %v2233_v26, %v2575_v36  ;;  %v1774_v33 = vpop.f32.mrb[21].mxu1 }
 0x7c5   : > { %1795 = vst.msk [vmem:[%s569_s30 + $0x20] sm:$0xff] %vm606_vm1, %v1787_v14  ;;  %v1789_v19 = vadd.f32 %v1774_v33, %v2559_v32 }
 0x7c6   : > { %1798 = vst.msk [vmem:[%s569_s30 + $0x38] sm:$0xff] %vm606_vm1, %v1790_v31 }
 0x7c7   : > { %1797 = vst.msk [vmem:[%s569_s30 + $0x30] sm:$0xff] %vm606_vm1, %v1789_v19 }
 0x7c8 PF: > { %s27_s21 = sadd.s32 1, %s2359_s21  }
 0x7c9   : > { %p24_p4 = scmp.ge.s32.totalorder %s27_s21, 4  }
 0x7cb   :  { %26 = sbr.rel (!%p24_p4) target bundleno = 2 (0x2), region = 128 }

// kernel: _forward_core.36
= control target key start
LH: loop header
LB: loop body
LE: loop exit
PB: predicated region body
PF: predicated region fallthrough
CT: control target
= control target key end

     0   :  { %vm1172_vm0 = vcmask 261120   ;;  %s2266_s1 = inlined_call_operand.vmem [shape: bf16[1152,32], index: 1, kind: input, shape index: {}]   ;;  %s2267_s0 = inlined_call_operand.vmem [shape: bf16[64,1152], index: 0, kind: input, shape index: {}]   ;;  %s2268_s2 = inlined_call_operand.vmem [shape: f32[1,32], index: 2, kind: input, shape index: {}]   ;;  %s2269_s3 = inlined_call_operand.vmem [shape: f32[64,32], index: 3, kind: input, shape index: {}]   ;;  %s2270_s4 = inlined_call_operand.vmem [shape: f32[1,32], index: 4, kind: input, shape index: {}]   ;;  %s2271_s5 = inlined_call_operand.vmem [shape: f32[1,32], index: 5, kind: input, shape index: {}]   ;;  %s2272_s6 = inlined_call_operand.vmem [shape: f32[64,32], index: 6, kind: output, shape index: {}]  }
   0x1   :  { %v1643_v0 = vld [vmem:[%s2266_s1 + $0x40] sm:$0xff]   ;;  %v1647_v4 = vld [vmem:[%s2266_s1 + $0x48] sm:$0xff]   ;;  %v1651_v8 = vld [vmem:[%s2266_s1 + $0x50] sm:$0xff]  }
   0x2   :  { %v1644_v1 = vld [vmem:[%s2266_s1 + $0xc0] sm:$0xff]   ;;  %1431 = vmatprep.subr.bf16.mxu0 %v1643_v0  ;;  %v1648_v5 = vld [vmem:[%s2266_s1 + $0xc8] sm:$0xff]   ;;  %v1652_v9 = vld [vmem:[%s2266_s1 + $0xd0] sm:$0xff]  }
   0x3   :  { %v1645_v2 = vld [vmem:[%s2266_s1] sm:$0xff]   ;;  %1471 = vmatprep.subr.bf16.mxu1 %v1644_v1  ;;  %v1649_v6 = vld [vmem:[%s2266_s1 + $0x8] sm:$0xff]   ;;  %v1653_v10 = vld [vmem:[%s2266_s1 + $0x10] sm:$0xff]  }
   0x4   :  { %v1646_v3 = vld [vmem:[%s2266_s1 + $0x80] sm:$0xff]   ;;  %1432 = vmatpush3.bf16.msra.mxu0 %v1645_v2  ;;  %v1650_v7 = vld [vmem:[%s2266_s1 + $0x88] sm:$0xff]   ;;  %v1654_v11 = vld [vmem:[%s2266_s1 + $0x90] sm:$0xff]  }
   0x5   :  { %1472 = vmatpush3.bf16.msra.mxu1 %v1646_v3  ;;  %1433 = vmatprep.subr.bf16.mxu0 %v1647_v4  ;;  %v1655_v12 = vld [vmem:[%s2266_s1 + $0x58] sm:$0xff]   ;;  %v1659_v16 = vld [vmem:[%s2266_s1 + $0x60] sm:$0xff]   ;;  %v1663_v20 = vld [vmem:[%s2266_s1 + $0x68] sm:$0xff]  }
   0x6   :  { %1473 = vmatprep.subr.bf16.mxu1 %v1648_v5  ;;  %v1656_v13 = vld [vmem:[%s2266_s1 + $0xd8] sm:$0xff]   ;;  %v1660_v17 = vld [vmem:[%s2266_s1 + $0xe0] sm:$0xff]   ;;  %v1664_v21 = vld [vmem:[%s2266_s1 + $0xe8] sm:$0xff]  }
   0x7   :  { %v1657_v14 = vld [vmem:[%s2266_s1 + $0x18] sm:$0xff]   ;;  %v1661_v18 = vld [vmem:[%s2266_s1 + $0x20] sm:$0xff]   ;;  %v1665_v22 = vld [vmem:[%s2266_s1 + $0x28] sm:$0xff]  }
   0x8   :  { %1434 = vmatpush3.bf16.msra.mxu0 %v1649_v6  ;;  %v1658_v15 = vld [vmem:[%s2266_s1 + $0x98] sm:$0xff]   ;;  %v1662_v19 = vld [vmem:[%s2266_s1 + $0xa0] sm:$0xff]   ;;  %v1666_v23 = vld [vmem:[%s2266_s1 + $0xa8] sm:$0xff]  }
   0x9   :  { %1474 = vmatpush3.bf16.msra.mxu1 %v1650_v7  ;;  %1435 = vmatprep.subr.bf16.mxu0 %v1651_v8  ;;  %v1667_v24 = vld [vmem:[%s2266_s1 + $0x70] sm:$0xff]   ;;  %v1671_v28 = vld [vmem:[%s2266_s1 + $0x78] sm:$0xff]   ;;  %v1675_v32 = vld [vmem:[%s2267_s0] ss:$36 sps:$4 sm:$0xff]  }
   0xa   :  { %1475 = vmatprep.subr.bf16.mxu1 %v1652_v9  ;;  %v1668_v25 = vld [vmem:[%s2266_s1 + $0xf0] sm:$0xff]   ;;  %v1672_v29 = vld [vmem:[%s2266_s1 + $0xf8] sm:$0xff]   ;;  %v1677_v33 = vld [vmem:[%s2267_s0 + $0x4] ss:$36 sps:$4 sm:$0xff]  }
   0xb   :  { %v1669_v26 = vld [vmem:[%s2266_s1 + $0x30] sm:$0xff]   ;;  %v1673_v30 = vld [vmem:[%s2266_s1 + $0x38] sm:$0xff]   ;;  %v1678_v34 = vld [vmem:[%s2267_s0 + $0x8] ss:$36 sps:$4 sm:$0xff]   ;;  %863 = vmatprep.mubr.bf16.mxu0 %v1677_v33 }
   0xc   :  { %1436 = vmatpush3.bf16.msra.mxu0 %v1653_v10  ;;  %v1670_v27 = vld [vmem:[%s2266_s1 + $0xb0] sm:$0xff]   ;;  %v1674_v31 = vld [vmem:[%s2266_s1 + $0xb8] sm:$0xff]   ;;  %v1681_v36 = vld [vmem:[%s2266_s1 + $0x140] sm:$0xff]  }
   0xd   :  { %1476 = vmatpush3.bf16.msra.mxu1 %v1654_v11  ;;  %1437 = vmatprep.subr.bf16.mxu0 %v1655_v12  ;;  %v1680_v35 = vld [vmem:[%s2267_s0 + $0xc] ss:$36 sps:$4 sm:$0xff]   ;;  %v1682_v37 = vld [vmem:[%s2266_s1 + $0x1c0] sm:$0xff]   ;;  %v1691_v45 = vld [vmem:[%s2267_s0 + $0x54] ss:$36 sps:$4 sm:$0xff]  }
   0xe   :  { %1477 = vmatprep.subr.bf16.mxu1 %v1656_v13  ;;  %928 = vmatprep.mubr.bf16.mxu1 %v1680_v35  ;;  %v1683_v38 = vld [vmem:[%s2266_s1 + $0x100] sm:$0xff]   ;;  %v1685_v40 = vld [vmem:[%s2266_s1 + $0x148] sm:$0xff]   ;;  %v1694_v47 = vld [vmem:[%s2267_s0 + $0x50] ss:$36 sps:$4 sm:$0xff]  }
   0xf   :  { %v1684_v39 = vld [vmem:[%s2266_s1 + $0x180] sm:$0xff]   ;;  %v1686_v41 = vld [vmem:[%s2266_s1 + $0x1c8] sm:$0xff]   ;;  %v1695_v48 = vld [vmem:[%s2266_s1 + $0x150] sm:$0xff]  }
  0x10   :  { %1438 = vmatpush3.bf16.msra.mxu0 %v1657_v14  ;;  %v1687_v42 = vld [vmem:[%s2266_s1 + $0x108] sm:$0xff]   ;;  %v1696_v49 = vld [vmem:[%s2266_s1 + $0x1d0] sm:$0xff]   ;;  %v1699_v52 = vld [vmem:[%s2266_s1 + $0x158] sm:$0xff]  }
  0x11   :  { %1478 = vmatpush3.bf16.msra.mxu1 %v1658_v15  ;;  %1439 = vmatprep.subr.bf16.mxu0 %v1659_v16  ;;  %v1688_v43 = vld [vmem:[%s2266_s1 + $0x188] sm:$0xff]   ;;  %v1697_v50 = vld [vmem:[%s2266_s1 + $0x110] sm:$0xff]   ;;  %v1700_v53 = vld [vmem:[%s2266_s1 + $0x1d8] sm:$0xff]  }
  0x12   :  { %1479 = vmatprep.subr.bf16.mxu1 %v1660_v17  ;;  %v1689_v44 = vld [vmem:[%s2267_s0 + $0x4c] ss:$36 sps:$4 sm:$0xff]   ;;  %v1701_v54 = vld [vmem:[%s2266_s1 + $0x118] sm:$0xff]   ;;  %v1709_v60 = vld [vmem:[%s2266_s1 + $0x160] sm:$0xff]  }
  0x13   :  { %v1693_v46 = vld [vmem:[%s2267_s0 + $0x48] ss:$36 sps:$4 sm:$0xff]   ;;  %v1698_v51 = vld [vmem:[%s2266_s1 + $0x190] sm:$0xff]   ;;  %v1702_v55 = vld [vmem:[%s2266_s1 + $0x198] sm:$0xff]  }
  0x14   :  { %1440 = vmatpush3.bf16.msra.mxu0 %v1661_v18  ;;  %v1703_v56 = vld [vmem:[%s2267_s0 + $0x94] ss:$36 sps:$4 sm:$0xff]   ;;  %v1705_v57 = vld [vmem:[%s2267_s0 + $0x9c] ss:$36 sps:$4 sm:$0xff]   ;;  %v1713_v0 = vld [vmem:[%s2266_s1 + $0x168] sm:$0xff]  }
  0x15   :  { %1480 = vmatpush3.bf16.msra.mxu1 %v1662_v19  ;;  %1441 = vmatprep.subr.bf16.mxu0 %v1663_v20  ;;  %v1707_v58 = vld [vmem:[%s2267_s0 + $0x90] ss:$36 sps:$4 sm:$0xff]   ;;  %v1708_v59 = vld [vmem:[%s2267_s0 + $0x98] ss:$36 sps:$4 sm:$0xff]   ;;  %v1710_v61 = vld [vmem:[%s2266_s1 + $0x1e0] sm:$0xff]  }
  0x16   :  { %1481 = vmatprep.subr.bf16.mxu1 %v1664_v21  ;;  %v1711_v62 = vld [vmem:[%s2266_s1 + $0x120] sm:$0xff]   ;;  %v1714_v1 = vld [vmem:[%s2266_s1 + $0x1e8] sm:$0xff]   ;;  %v1721_v6 = vld [vmem:[%s2267_s0 + $0xd8] ss:$36 sps:$4 sm:$0xff]  }
  0x17   :  { %v1712_v63 = vld [vmem:[%s2266_s1 + $0x1a0] sm:$0xff]   ;;  %v1715_v2 = vld [vmem:[%s2266_s1 + $0x128] sm:$0xff]   ;;  %v1723_v8 = vld [vmem:[%s2266_s1 + $0x170] sm:$0xff]  }
  0x18   :  { %1442 = vmatpush3.bf16.msra.mxu0 %v1665_v22  ;;  %v1716_v3 = vld [vmem:[%s2266_s1 + $0x1a8] sm:$0xff]   ;;  %v1717_v4 = vld [vmem:[%s2267_s0 + $0xdc] ss:$36 sps:$4 sm:$0xff]   ;;  %v1724_v9 = vld [vmem:[%s2266_s1 + $0x1f0] sm:$0xff]  }
  0x19   :  { %1482 = vmatpush3.bf16.msra.mxu1 %v1666_v23  ;;  %1443 = vmatprep.subr.bf16.mxu0 %v1667_v24  ;;  %v1719_v5 = vld [vmem:[%s2267_s0 + $0xe4] ss:$36 sps:$4 sm:$0xff]   ;;  %v1725_v10 = vld [vmem:[%s2266_s1 + $0x130] sm:$0xff]   ;;  %v1727_v12 = vld [vmem:[%s2266_s1 + $0x178] sm:$0xff]  }
  0x1a   :  { %1483 = vmatprep.subr.bf16.mxu1 %v1668_v25  ;;  %v1722_v7 = vld [vmem:[%s2267_s0 + $0xe0] ss:$36 sps:$4 sm:$0xff]   ;;  %v1726_v11 = vld [vmem:[%s2266_s1 + $0x1b0] sm:$0xff]   ;;  %v1728_v13 = vld [vmem:[%s2266_s1 + $0x1f8] sm:$0xff]  }
  0x1b   :  { %v1729_v14 = vld [vmem:[%s2266_s1 + $0x138] sm:$0xff]   ;;  %v1731_v16 = vld [vmem:[%s2267_s0 + $0x10] ss:$36 sps:$4 sm:$0xff]   ;;  %v1737_v20 = vld [vmem:[%s2266_s1 + $0x200] sm:$0xff]  }
  0x1c   :  { %1444 = vmatpush3.bf16.msra.mxu0 %v1669_v26  ;;  %v1730_v15 = vld [vmem:[%s2266_s1 + $0x1b8] sm:$0xff]   ;;  %v1738_v21 = vld [vmem:[%s2266_s1 + $0x208] sm:$0xff]   ;;  %v1744_v25 = vld [vmem:[%s2267_s0 + $0x60] ss:$36 sps:$4 sm:$0xff]  }
  0x1d   :  { %1484 = vmatpush3.bf16.msra.mxu1 %v1670_v27  ;;  %1445 = vmatprep.subr.bf16.mxu0 %v1671_v28  ;;  %v1733_v17 = vld [vmem:[%s2267_s0 + $0x14] ss:$36 sps:$4 sm:$0xff]   ;;  %v1736_v19 = vld [vmem:[%s2267_s0 + $0x1c] ss:$36 sps:$4 sm:$0xff]   ;;  %v1741_v23 = vld [vmem:[%s2267_s0 + $0x64] ss:$36 sps:$4 sm:$0xff]  }
  0x1e   :  { %1485 = vmatprep.subr.bf16.mxu1 %v1672_v29  ;;  %v1734_v18 = vld [vmem:[%s2267_s0 + $0x18] ss:$36 sps:$4 sm:$0xff]   ;;  %v1745_v26 = vld [vmem:[%s2266_s1 + $0x210] sm:$0xff]   ;;  %v1747_v27 = vld [vmem:[%s2267_s0 + $0xa4] ss:$36 sps:$4 sm:$0xff]  }
  0x1f   :  { %v1739_v22 = vld [vmem:[%s2267_s0 + $0x5c] ss:$36 sps:$4 sm:$0xff]   ;;  %v1749_v28 = vld [vmem:[%s2267_s0 + $0xac] ss:$36 sps:$4 sm:$0xff]  }
  0x20   :  { %1446 = vmatpush3.bf16.msra.mxu0 %v1673_v30  ;;  %v1743_v24 = vld [vmem:[%s2267_s0 + $0x58] ss:$36 sps:$4 sm:$0xff]   ;;  %v1751_v30 = vld [vmem:[%s2267_s0 + $0xa0] ss:$36 sps:$4 sm:$0xff]   ;;  %v1755_v33 = vld [vmem:[%s2267_s0 + $0xec] ss:$36 sps:$4 sm:$0xff]  }
  0x21   :  { %1486 = vmatpush3.bf16.msra.mxu1 %v1674_v31  ;;  %1511 = vmatprep.subr.bf16.mxu0 %v1681_v36  ;;  %v1746_v29 = vld [vmem:[%s2266_s1 + $0x218] sm:$0xff]   ;;  %v1752_v31 = vld [vmem:[%s2267_s0 + $0xa8] ss:$36 sps:$4 sm:$0xff]  }
  0x22   :  { %1551 = vmatprep.subr.bf16.mxu1 %v1682_v37  ;;  %v1754_v35 = vld [vmem:[%s2266_s1 + $0x228] sm:$0xff]   ;;  %v1761_v37 = vld [vmem:[%s2266_s1 + $0x230] sm:$0xff]  }
  0x23   :  { %864 = vmatmul.mubr.bf16.vlgmr.msra.gmra.mrb[0].mxu0 %v1675_v32  ;;  %v1753_v32 = vld [vmem:[%s2266_s1 + $0x220] sm:$0xff]   ;;  %v1759_v36 = vld [vmem:[%s2267_s0 + $0xe8] ss:$36 sps:$4 sm:$0xff]  }
  0x24   :  { %929 = vmatmul.mubr.bf16.vlgmr.msra.gmra.mrb[0].mxu1 %v1678_v34  ;;  %1512 = vmatpush3.bf16.msra.mxu0 %v1683_v38  ;;  %v1757_v34 = vld [vmem:[%s2267_s0 + $0xf4] ss:$36 sps:$4 sm:$0xff]  }
  0x25   :  { %1552 = vmatpush3.bf16.msra.mxu1 %v1684_v39  ;;  %1513 = vmatprep.subr.bf16.mxu0 %v1685_v40  ;;  %v1760_v38 = vld [vmem:[%s2267_s0 + $0xf0] ss:$36 sps:$4 sm:$0xff]   ;;  %v1763_v39 = vld [vmem:[%s2267_s0 + $0x20] ss:$36 sps:$4 sm:$0xff]  }
  0x26   :  { %1553 = vmatprep.subr.bf16.mxu1 %v1686_v41  ;;  %871 = vmatprep.mubr.bf16.mxu0 %v1689_v44  ;;  %v1764_v40 = vld [vmem:[%s2267_s0 + $0xb0] ss:$36 sps:$4 sm:$0xff]   ;;  %v1762_v41 = vld [vmem:[%s2266_s1 + $0x238] sm:$0xff]  }
  0x27   :  { %936 = vmatprep.mubr.bf16.mxu1 %v1691_v45  ;;  %v1320_v45 = vld [vmem:[%s2268_s2] ss:$0 sm:$0xff] }
  0x28   :  { %1514 = vmatpush3.bf16.msra.mxu0 %v1687_v42  ;;  %v1765_v42 = vld [vmem:[%s2267_s0 + $0x68] ss:$36 sps:$4 sm:$0xff]  }
  0x29   :  { %1554 = vmatpush3.bf16.msra.mxu1 %v1688_v43  ;;  %1515 = vmatprep.subr.bf16.mxu0 %v1695_v48  ;;  %v1766_v43 = vld [vmem:[%s2267_s0 + $0xf8] ss:$36 sps:$4 sm:$0xff]  }
  0x2a   :  { %1555 = vmatprep.subr.bf16.mxu1 %v1696_v49 }
  0x2b   :  { %872 = vmatmul.mubr.bf16.gmra.mrb[4].mxu0 %v1693_v46 }
  0x2c   :  { %937 = vmatmul.mubr.bf16.gmra.mrb[4].mxu1 %v1694_v47  ;;  %1516 = vmatpush3.bf16.msra.mxu0 %v1697_v50 }
  0x2d   :  { %1556 = vmatpush3.bf16.msra.mxu1 %v1698_v51  ;;  %1517 = vmatprep.subr.bf16.mxu0 %v1699_v52 }
  0x2e   :  { %1557 = vmatprep.subr.bf16.mxu1 %v1700_v53  ;;  %879 = vmatprep.mubr.bf16.mxu0 %v1703_v56 }
  0x2f   :  { %944 = vmatprep.mubr.bf16.mxu1 %v1705_v57 }
  0x30   :  { %1518 = vmatpush3.bf16.msra.mxu0 %v1701_v54 }
  0x31   :  { %1558 = vmatpush3.bf16.msra.mxu1 %v1702_v55  ;;  %1519 = vmatprep.subr.bf16.mxu0 %v1709_v60 }
  0x32   :  { %1559 = vmatprep.subr.bf16.mxu1 %v1710_v61 }
  0x33   :  { %880 = vmatmul.mubr.bf16.gmra.mrb[8].mxu0 %v1707_v58 }
  0x34   :  { %945 = vmatmul.mubr.bf16.gmra.mrb[8].mxu1 %v1708_v59  ;;  %1520 = vmatpush3.bf16.msra.mxu0 %v1711_v62 }
  0x35   :  { %1560 = vmatpush3.bf16.msra.mxu1 %v1712_v63  ;;  %1521 = vmatprep.subr.bf16.mxu0 %v1713_v0 }
  0x36   :  { %1561 = vmatprep.subr.bf16.mxu1 %v1714_v1  ;;  %887 = vmatprep.mubr.bf16.mxu0 %v1717_v4 }
  0x37   :  { %952 = vmatprep.mubr.bf16.mxu1 %v1719_v5 }
  0x38   :  { %1522 = vmatpush3.bf16.msra.mxu0 %v1715_v2 }
  0x39   :  { %1562 = vmatpush3.bf16.msra.mxu1 %v1716_v3  ;;  %1523 = vmatprep.subr.bf16.mxu0 %v1723_v8 }
  0x3a   :  { %1563 = vmatprep.subr.bf16.mxu1 %v1724_v9 }
  0x3b   :  { %888 = vmatmul.mubr.bf16.gmra.mrb[12].mxu0 %v1721_v6 }
  0x3c   :  { %953 = vmatmul.mubr.bf16.gmra.mrb[12].mxu1 %v1722_v7  ;;  %1524 = vmatpush3.bf16.msra.mxu0 %v1725_v10 }
  0x3d   :  { %1564 = vmatpush3.bf16.msra.mxu1 %v1726_v11  ;;  %1525 = vmatprep.subr.bf16.mxu0 %v1727_v12 }
  0x3e   :  { %1565 = vmatprep.subr.bf16.mxu1 %v1728_v13  ;;  %993 = vmatprep.mubr.bf16.mxu0 %v1733_v17 }
  0x3f   :  { %1058 = vmatprep.mubr.bf16.mxu1 %v1736_v19 }
  0x40   :  { %1526 = vmatpush3.bf16.msra.mxu0 %v1729_v14 }
  0x41   :  { %1566 = vmatpush3.bf16.msra.mxu1 %v1730_v15  ;;  %1603 = vmatprep.subr.bf16.mxu0 %v1737_v20 }
  0x42   :  { %1627 = vmatprep.subr.bf16.mxu1 %v1737_v20 }
  0x43   :  { %994 = vmatmul.mubr.bf16.vlgmr.msra.gmra.mrb[16].mxu0 %v1731_v16 }
  0x44   :  { %1059 = vmatmul.mubr.bf16.vlgmr.msra.gmra.mrb[16].mxu1 %v1734_v18  ;;  %1604 = vmatpush3.bf16.msra.mxu0 %v1737_v20 }
  0x45   :  { %1635 = vmatpush3.bf16.msra.mxu1 %v1737_v20  ;;  %1605 = vmatprep.subr.bf16.mxu0 %v1738_v21 }
  0x46   :  { %1628 = vmatprep.subr.bf16.mxu1 %v1738_v21  ;;  %1001 = vmatprep.mubr.bf16.mxu0 %v1739_v22 }
  0x47   :  { %1066 = vmatprep.mubr.bf16.mxu1 %v1741_v23 }
  0x48   :  { %1606 = vmatpush3.bf16.msra.mxu0 %v1738_v21 }
  0x49   :  { %1636 = vmatpush3.bf16.msra.mxu1 %v1738_v21  ;;  %1607 = vmatprep.subr.bf16.mxu0 %v1745_v26 }
  0x4a   :  { %1629 = vmatprep.subr.bf16.mxu1 %v1745_v26 }
  0x4b   :  { %1002 = vmatmul.mubr.bf16.gmra.mrb[20].mxu0 %v1743_v24 }
  0x4c   :  { %1067 = vmatmul.mubr.bf16.gmra.mrb[20].mxu1 %v1744_v25  ;;  %1009 = vmatprep.mubr.bf16.mxu0 %v1747_v27 }
  0x4d   :  { %1608 = vmatpush3.bf16.msra.mxu0 %v1745_v26  ;;  %1074 = vmatprep.mubr.bf16.mxu1 %v1749_v28 }
  0x4e   :  { %1637 = vmatpush3.bf16.msra.mxu1 %v1745_v26  ;;  %1609 = vmatprep.subr.bf16.mxu0 %v1746_v29 }
  0x4f   :  { %1630 = vmatprep.subr.bf16.mxu1 %v1746_v29 }
  0x51   :  { %1610 = vmatpush3.bf16.msra.mxu0 %v1746_v29 }
  0x52   :  { %1638 = vmatpush3.bf16.msra.mxu1 %v1746_v29  ;;  %1611 = vmatprep.subr.bf16.mxu0 %v1753_v32 }
  0x53   :  { %1010 = vmatmul.mubr.bf16.gmra.mrb[24].mxu0 %v1751_v30  ;;  %1631 = vmatprep.subr.bf16.mxu1 %v1753_v32 }
  0x54   :  { %1075 = vmatmul.mubr.bf16.gmra.mrb[24].mxu1 %v1752_v31  ;;  %1017 = vmatprep.mubr.bf16.mxu0 %v1755_v33 }
  0x55   :  { %1612 = vmatpush3.bf16.msra.mxu0 %v1753_v32  ;;  %1082 = vmatprep.mubr.bf16.mxu1 %v1757_v34 }
  0x56   :  { %1639 = vmatpush3.bf16.msra.mxu1 %v1753_v32  ;;  %1613 = vmatprep.subr.bf16.mxu0 %v1754_v35 }
  0x57   :  { %1632 = vmatprep.subr.bf16.mxu1 %v1754_v35 }
  0x59   :  { %1614 = vmatpush3.bf16.msra.mxu0 %v1754_v35 }
  0x5a   :  { %1640 = vmatpush3.bf16.msra.mxu1 %v1754_v35  ;;  %1615 = vmatprep.subr.bf16.mxu0 %v1761_v37 }
  0x5b   :  { %1018 = vmatmul.mubr.bf16.gmra.mrb[28].mxu0 %v1759_v36  ;;  %1633 = vmatprep.subr.bf16.mxu1 %v1761_v37 }
  0x5c   :  { %1083 = vmatmul.mubr.bf16.gmra.mrb[28].mxu1 %v1760_v38  ;;  %1619 = vmatprep.mubr.bf16.mxu0 %v1763_v39 }
  0x5d   :  { %1616 = vmatpush3.bf16.msra.mxu0 %v1761_v37  ;;  %1623 = vmatprep.mubr.bf16.mxu1 %v1764_v40 }
  0x5e   :  { %1641 = vmatpush3.bf16.msra.mxu1 %v1761_v37  ;;  %1617 = vmatprep.subr.bf16.mxu0 %v1762_v41 }
  0x5f   :  { %1634 = vmatprep.subr.bf16.mxu1 %v1762_v41 }
  0x61   :  { %1618 = vmatpush3.bf16.msra.mxu0 %v1762_v41 }
  0x62   :  { %1642 = vmatpush3.bf16.msra.mxu1 %v1762_v41 }
  0x64   :  { %1620 = vmatmul.mubr.bf16.vlgmr.msra.gmra.mrb[32].mxu0 %v1765_v42 }
  0x65   :  { %1624 = vmatmul.mubr.bf16.vlgmr.msra.gmra.mrb[32].mxu1 %v1766_v43 }
  0xf6   :  { %v1447_v44 = vpop.f32.mrb[0].mxu0 }
  0xf7   :  { %v1448_v46 = vpop.f32.mrb[1].mxu0  ;;  %v1487_v47 = vpop.f32.mrb[0].mxu1 }
  0xf8   :  { %v1449_v48 = vadd.f32 %v1448_v46, %v1447_v44  ;;  %v1450_v49 = vpop.f32.mrb[2].mxu0  ;;  %v1488_v50 = vpop.f32.mrb[1].mxu1 }
  0xf9   :  { %v1451_v51 = vpop.f32.mrb[3].mxu0  ;;  %v1489_v52 = vadd.f32 %v1488_v50, %v1487_v47  ;;  %v1490_v53 = vpop.f32.mrb[2].mxu1 }
  0xfa   :  { %v866_v54 = vadd.f32 %v1449_v48, %v1320_v45  ;;  %v1452_v55 = vadd.f32 %v1451_v51, %v1450_v49  ;;  %v1491_v56 = vpop.f32.mrb[3].mxu1 }
  0xfb   :  { %v1492_v57 = vadd.f32 %v1491_v56, %v1490_v53 }
  0xfc   :  { %v869_v58 = vadd.f32 %v1452_v55, %v1320_v45  ;;  %v931_v59 = vadd.f32 %v1489_v52, %v866_v54 }
  0xfe   :  { %v934_v60 = vadd.f32 %v1492_v57, %v869_v58  ;;  %v1453_v61 = vpop.f32.mrb[4].mxu0 }
  0xff   :  { %v1454_v62 = vpop.f32.mrb[5].mxu0  ;;  %v1493_v63 = vpop.f32.mrb[4].mxu1 }
 0x100   :  { %v1455_v0 = vadd.f32 %v1454_v62, %v1453_v61  ;;  %v1456_v1 = vpop.f32.mrb[6].mxu0  ;;  %v1494_v2 = vpop.f32.mrb[5].mxu1 }
 0x101   :  { %v1457_v3 = vpop.f32.mrb[7].mxu0  ;;  %v1495_v4 = vadd.f32 %v1494_v2, %v1493_v63  ;;  %v1496_v5 = vpop.f32.mrb[6].mxu1 }
 0x102   :  { %v874_v6 = vadd.f32 %v1455_v0, %v1320_v45  ;;  %v1458_v7 = vadd.f32 %v1457_v3, %v1456_v1  ;;  %v1497_v8 = vpop.f32.mrb[7].mxu1 }
 0x103   :  { %v1498_v9 = vadd.f32 %v1497_v8, %v1496_v5 }
 0x104   :  { %v877_v10 = vadd.f32 %v1458_v7, %v1320_v45  ;;  %v939_v11 = vadd.f32 %v1495_v4, %v874_v6 }
 0x106   :  { %v942_v12 = vadd.f32 %v1498_v9, %v877_v10  ;;  %v1459_v13 = vpop.f32.mrb[8].mxu0 }
 0x107   :  { %v1460_v14 = vpop.f32.mrb[9].mxu0  ;;  %v1499_v15 = vpop.f32.mrb[8].mxu1 }
 0x108   :  { %v1461_v16 = vadd.f32 %v1460_v14, %v1459_v13  ;;  %v1462_v17 = vpop.f32.mrb[10].mxu0  ;;  %v1500_v18 = vpop.f32.mrb[9].mxu1 }
 0x109   :  { %v1463_v19 = vpop.f32.mrb[11].mxu0  ;;  %v1501_v20 = vadd.f32 %v1500_v18, %v1499_v15  ;;  %v1502_v21 = vpop.f32.mrb[10].mxu1 }
 0x10a   :  { %v882_v22 = vadd.f32 %v1461_v16, %v1320_v45  ;;  %v1464_v23 = vadd.f32 %v1463_v19, %v1462_v17  ;;  %v1503_v24 = vpop.f32.mrb[11].mxu1 }
 0x10b   :  { %v1504_v25 = vadd.f32 %v1503_v24, %v1502_v21 }
 0x10c   :  { %v885_v26 = vadd.f32 %v1464_v23, %v1320_v45  ;;  %v947_v27 = vadd.f32 %v1501_v20, %v882_v22 }
 0x10e   :  { %v950_v28 = vadd.f32 %v1504_v25, %v885_v26  ;;  %v1465_v29 = vpop.f32.mrb[12].mxu0 }
 0x10f   :  { %v1505_v30 = vpop.f32.mrb[12].mxu1  ;;  %v1466_v31 = vpop.f32.mrb[13].mxu0 }
 0x110   :  { %v1506_v32 = vpop.f32.mrb[13].mxu1  ;;  %v1467_v33 = vadd.f32 %v1466_v31, %v1465_v29  ;;  %v1468_v34 = vpop.f32.mrb[14].mxu0 }
 0x111   :  { %v1507_v35 = vadd.f32 %v1506_v32, %v1505_v30  ;;  %v1508_v36 = vpop.f32.mrb[14].mxu1  ;;  %v1469_v37 = vpop.f32.mrb[15].mxu0 }
 0x112   :  { %v1509_v38 = vpop.f32.mrb[15].mxu1  ;;  %v890_v39 = vadd.f32 %v1467_v33, %v1320_v45  ;;  %v1470_v40 = vadd.f32 %v1469_v37, %v1468_v34 }
 0x113   :  { %v1510_v41 = vadd.f32 %v1509_v38, %v1508_v36 }
 0x114   :  { %v893_v42 = vadd.f32 %v1470_v40, %v1320_v45  ;;  %v955_v43 = vadd.f32 %v1507_v35, %v890_v39 }
 0x116   :  { %v958_v44 = vadd.f32 %v1510_v41, %v893_v42  ;;  %v1527_v46 = vpop.f32.mrb[16].mxu0 }
 0x117   :  { %v1528_v47 = vpop.f32.mrb[17].mxu0  ;;  %v1567_v50 = vpop.f32.mrb[16].mxu1 }
 0x118   :  { %v1529_v48 = vadd.f32 %v1528_v47, %v1527_v46  ;;  %v1530_v49 = vpop.f32.mrb[18].mxu0  ;;  %v1568_v52 = vpop.f32.mrb[17].mxu1 }
 0x119   :  { %v1531_v51 = vpop.f32.mrb[19].mxu0  ;;  %v1569_v55 = vadd.f32 %v1568_v52, %v1567_v50  ;;  %v1570_v56 = vpop.f32.mrb[18].mxu1 }
 0x11a   :  { %v996_v53 = vadd.f32 %v1529_v48, %v931_v59  ;;  %v1532_v54 = vadd.f32 %v1531_v51, %v1530_v49  ;;  %v1571_v57 = vpop.f32.mrb[19].mxu1  ;;  %v1158_v49 = vld [vmem:[%s2269_s3 + $0x10] sm:$0xff] }
 0x11b   :  { %v1572_v61 = vadd.f32 %v1571_v57, %v1570_v56 }
 0x11c   :  { %v999_v58 = vadd.f32 %v1532_v54, %v934_v60  ;;  %v1061_v62 = vadd.f32 %v1569_v55, %v996_v53 }
 0x11e   :  { %v1533_v63 = vpop.f32.mrb[20].mxu0  ;;  %v2145_v0 = vadd.f32 %v1572_v61, %v999_v58 }
 0x11f   :  { %v1534_v45 = vpop.f32.mrb[21].mxu0  ;;  %v1573_v3 = vpop.f32.mrb[20].mxu1 }
 0x120   :  { %v1535_v1 = vadd.f32 %v1534_v45, %v1533_v63  ;;  %v1536_v2 = vpop.f32.mrb[22].mxu0  ;;  %v1574_v5 = vpop.f32.mrb[21].mxu1 }
 0x121   :  { %v1537_v4 = vpop.f32.mrb[23].mxu0  ;;  %v1575_v8 = vadd.f32 %v1574_v5, %v1573_v3  ;;  %v1576_v59 = vpop.f32.mrb[22].mxu1 }
 0x122   :  { %v1004_v6 = vadd.f32 %v1535_v1, %v939_v11  ;;  %v1538_v7 = vadd.f32 %v1537_v4, %v1536_v2  ;;  %v1577_v9 = vpop.f32.mrb[23].mxu1  ;;  %v1160_v1 = vld [vmem:[%s2269_s3 + $0x20] sm:$0xff] }
 0x123   :  { %v1578_v13 = vadd.f32 %v1577_v9, %v1576_v59  ;;  %v1161_v9 = vld [vmem:[%s2269_s3 + $0x28] sm:$0xff] }
 0x124   :  { %v1007_v10 = vadd.f32 %v1538_v7, %v942_v12  ;;  %v1069_v14 = vadd.f32 %v1575_v8, %v1004_v6 }
 0x126   :  { %v1539_v60 = vpop.f32.mrb[24].mxu0  ;;  %v1072_v15 = vadd.f32 %v1578_v13, %v1007_v10  ;;  %v1157_v10 = vld [vmem:[%s2269_s3 + $0x8] sm:$0xff] }
 0x127   :  { %v1540_v16 = vpop.f32.mrb[25].mxu0  ;;  %v1579_v19 = vpop.f32.mrb[24].mxu1 }
 0x128   :  { %v1541_v17 = vadd.f32 %v1540_v16, %v1539_v60  ;;  %v1542_v18 = vpop.f32.mrb[26].mxu0  ;;  %v1580_v21 = vpop.f32.mrb[25].mxu1  ;;  %v1162_v16 = vld [vmem:[%s2269_s3 + $0x30] sm:$0xff] }
 0x129   :  { %v1543_v20 = vpop.f32.mrb[27].mxu0  ;;  %v1581_v24 = vadd.f32 %v1580_v21, %v1579_v19  ;;  %v1582_v25 = vpop.f32.mrb[26].mxu1 }
 0x12a   :  { %v1012_v22 = vadd.f32 %v1541_v17, %v947_v27  ;;  %v1544_v23 = vadd.f32 %v1543_v20, %v1542_v18  ;;  %v1583_v11 = vpop.f32.mrb[27].mxu1 }
 0x12b   :  { %v1584_v29 = vadd.f32 %v1583_v11, %v1582_v25 }
 0x12c   :  { %v1015_v26 = vadd.f32 %v1544_v23, %v950_v28  ;;  %v1077_v30 = vadd.f32 %v1581_v24, %v1012_v22 }
 0x12e   :  { %v1545_v31 = vpop.f32.mrb[28].mxu0  ;;  %v1080_v12 = vadd.f32 %v1584_v29, %v1015_v26 }
 0x12f   :  { %v1546_v32 = vpop.f32.mrb[29].mxu0  ;;  %v1585_v35 = vpop.f32.mrb[28].mxu1 }
 0x130   :  { %v1547_v33 = vadd.f32 %v1546_v32, %v1545_v31  ;;  %v1548_v34 = vpop.f32.mrb[30].mxu0  ;;  %v1586_v37 = vpop.f32.mrb[29].mxu1 }
 0x131   :  { %v1549_v36 = vpop.f32.mrb[31].mxu0  ;;  %v1587_v40 = vadd.f32 %v1586_v37, %v1585_v35  ;;  %v1588_v41 = vpop.f32.mrb[30].mxu1 }
 0x132   :  { %v1020_v38 = vadd.f32 %v1547_v33, %v955_v43  ;;  %v1550_v39 = vadd.f32 %v1549_v36, %v1548_v34  ;;  %v1589_v27 = vpop.f32.mrb[31].mxu1  ;;  %v1156_v43 = vld [vmem:[%s2269_s3] sm:$0xff] }
 0x133   :  { %v1590_v46 = vadd.f32 %v1589_v27, %v1588_v41 }
 0x134   :  { %v1023_v42 = vadd.f32 %v1550_v39, %v958_v44  ;;  %v1085_v47 = vadd.f32 %v1587_v40, %v1020_v38  ;;  %v1159_v44 = vld [vmem:[%s2269_s3 + $0x18] sm:$0xff] }
 0x136   :  { %v1088_v48 = vadd.f32 %v1590_v46, %v1023_v42 }
 0x137   :  { %v1621_v28 = vpop.f32.mrb[32].mxu0 }
 0x138   :  { %v1134_v50 = vadd.f32 %v1621_v28, %v1069_v14  ;;  %v1625_v51 = vpop.f32.mrb[32].mxu1  ;;  %v1125_v52 = vpop.f32.mrb[33].mxu0 }
 0x139   :  { %v1150_v53 = vadd.f32 %v1625_v51, %v1085_v47  ;;  %v1126_v54 = vadd.f32 %v1125_v52, %v1061_v62  ;;  %v1141_v55 = vpop.f32.mrb[33].mxu1  ;;  %v1622_v56 = vpop.f32.mrb[34].mxu0 }
 0x13a   :  { %v1142_v57 = vadd.f32 %v1141_v55, %v1077_v30  ;;  %v1137_v58 = vadd.f32 %v1622_v56, %v1072_v15  ;;  %v1626_v61 = vpop.f32.mrb[34].mxu1  ;;  %v1128_v63 = vpop.f32.mrb[35].mxu0  ;;  %v1166_v45 = vadd.f32 %v1158_v49, %v1134_v50  ;;  %v1163_v15 = vld [vmem:[%s2269_s3 + $0x38] sm:$0xff] }
 0x13b   :  { %v1153_v2 = vadd.f32 %v1626_v61, %v1088_v48  ;;  %v1129_v3 = vadd.f32 %v1128_v63, %v2145_v0  ;;  %v1144_v62 = vpop.f32.mrb[35].mxu1  ;;  %v1164_v4 = vadd.f32 %v1156_v43, %v1126_v54  ;;  %v1170_v20 = vadd.f32 %v1162_v16, %v1150_v53 }
 0x13c   :  { %v1145_v5 = vadd.f32 %v1144_v62, %v1080_v12  ;;  %v1179_v6 = vsel %vm1172_vm0, %v1166_v45, 0.0  ;;  %v1167_v7 = vadd.f32 %v1159_v44, %v1137_v58  ;;  %v1168_v59 = vadd.f32 %v1160_v1, %v1142_v57 }
 0x13d   :  { %1180 = vadd.xlane.f32.xlu1 %v1179_v6  ;;  %v1173_v8 = vsel %vm1172_vm0, %v1164_v4, 0.0  ;;  %v1165_v60 = vadd.f32 %v1157_v10, %v1129_v3  ;;  %v1171_v18 = vadd.f32 %v1163_v15, %v1153_v2  ;;  %v1191_v22 = vsel %vm1172_vm0, %v1170_v20, 0.0 }
 0x13e   :  { %1174 = vadd.xlane.f32.xlu0 %v1173_v8  ;;  %v1182_v0 = vsel %vm1172_vm0, %v1167_v7, 0.0  ;;  %v1169_v13 = vadd.f32 %v1161_v9, %v1145_v5  ;;  %v1185_v14 = vsel %vm1172_vm0, %v1168_v59, 0.0 }
 0x13f   :  { %v1176_v19 = vsel %vm1172_vm0, %v1165_v60, 0.0  ;;  %v1194_v21 = vsel %vm1172_vm0, %v1171_v18, 0.0 }
 0x140   :  { %v1188_v17 = vsel %vm1172_vm0, %v1169_v13, 0.0 }
 0x141   :  { %1183 = vadd.xlane.f32.xlu1 %v1182_v0 }
 0x142   :  { %1186 = vadd.xlane.f32.xlu0 %v1185_v14 }
 0x145   :  { %1189 = vadd.xlane.f32.xlu1 %v1188_v17 }
 0x146   :  { %1177 = vadd.xlane.f32.xlu0 %v1176_v19  ;;  %v1429_v19 = vld [vmem:[%s2270_s4] ss:$0 sm:$0xff] }
 0x149   :  { %1195 = vadd.xlane.f32.xlu1 %v1194_v21 }
 0x14a   :  { %1192 = vadd.xlane.f32.xlu0 %v1191_v22 }
 0x1ca   :  { %v1181_v23 = vpop.xlane.xlu1 %1180 }
 0x1cb   :  { %v1200_v24 = vmul.f32 0.03125, %v1181_v23  ;;  %v1175_v25 = vpop.xlane.xlu0 %1174  ;;  %v1430_v23 = vld [vmem:[%s2271_s5] ss:$0 sm:$0xff] }
 0x1cc   :  { %v1198_v11 = vmul.f32 0.03125, %v1175_v25 }
 0x1cd   :  { %v2180_v26 = vsub.f32 %v1166_v45, %v1200_v24 }
 0x1ce   :  { %v2182_v29 = vsub.f32 %v1164_v4, %v1198_v11  ;;  %v1184_v30 = vpop.xlane.xlu1 %1183 }
 0x1cf   :  { %v1201_v31 = vmul.f32 0.03125, %v1184_v30  ;;  %v1187_v12 = vpop.xlane.xlu0 %1186  ;;  %v1216_v32 = vmul.f32 %v2180_v26, %v2180_v26 }
 0x1d0   :  { %v1202_v33 = vmul.f32 0.03125, %v1187_v12  ;;  %v1214_v36 = vmul.f32 %v2182_v29, %v2182_v29 }
 0x1d1   :  { %v2186_v34 = vsub.f32 %v1167_v7, %v1201_v31  ;;  %v1228_v35 = vsel %vm1172_vm0, %v1216_v32, 0.0 }
 0x1d2   :  { %v2191_v37 = vsub.f32 %v1168_v59, %v1202_v33  ;;  %v1190_v38 = vpop.xlane.xlu1 %1189  ;;  %1229 = vadd.xlane.f32.xlu0 %v1228_v35  ;;  %v1222_v46 = vsel %vm1172_vm0, %v1214_v36, 0.0 }
 0x1d3   :  { %v1203_v39 = vmul.f32 0.03125, %v1190_v38  ;;  %v1178_v40 = vpop.xlane.xlu0 %1177  ;;  %v1217_v41 = vmul.f32 %v2186_v34, %v2186_v34 }
 0x1d4   :  { %v1199_v27 = vmul.f32 0.03125, %v1178_v40  ;;  %v1218_v47 = vmul.f32 %v2191_v37, %v2191_v37 }
 0x1d5   :  { %v1231_v42 = vsel %vm1172_vm0, %v1217_v41, 0.0  ;;  %v2199_v48 = vsub.f32 %v1169_v13, %v1203_v39 }
 0x1d6   :  { %v2201_v28 = vsub.f32 %v1165_v60, %v1199_v27  ;;  %1232 = vadd.xlane.f32.xlu1 %v1231_v42  ;;  %v1196_v49 = vpop.xlane.xlu1 %1195  ;;  %1223 = vadd.xlane.f32.xlu0 %v1222_v46  ;;  %v1234_v53 = vsel %vm1172_vm0, %v1218_v47, 0.0 }
 0x1d7   :  { %v1205_v50 = vmul.f32 0.03125, %v1196_v49  ;;  %v1193_v51 = vpop.xlane.xlu0 %1192  ;;  %v1219_v44 = vmul.f32 %v2199_v48, %v2199_v48 }
 0x1d8   :  { %v1204_v52 = vmul.f32 0.03125, %v1193_v51  ;;  %v1215_v43 = vmul.f32 %v2201_v28, %v2201_v28 }
 0x1d9   :  { %v2206_v54 = vsub.f32 %v1171_v18, %v1205_v50  ;;  %v1237_v58 = vsel %vm1172_vm0, %v1219_v44, 0.0 }
 0x1da   :  { %v2208_v55 = vsub.f32 %v1170_v20, %v1204_v52  ;;  %1235 = vadd.xlane.f32.xlu0 %v1234_v53  ;;  %v1225_v56 = vsel %vm1172_vm0, %v1215_v43, 0.0 }
 0x1db   :  { %1226 = vadd.xlane.f32.xlu1 %v1225_v56  ;;  %v1221_v63 = vmul.f32 %v2206_v54, %v2206_v54 }
 0x1dc   :  { %v1220_v57 = vmul.f32 %v2208_v55, %v2208_v55 }
 0x1dd   :  { %v1243_v45 = vsel %vm1172_vm0, %v1221_v63, 0.0 }
 0x1de   :  { %v1240_v61 = vsel %vm1172_vm0, %v1220_v57, 0.0 }
 0x1df   :  { %1238 = vadd.xlane.f32.xlu1 %v1237_v58  ;;  %1241 = vadd.xlane.f32.xlu0 %v1240_v61 }
 0x1e3   :  { %1244 = vadd.xlane.f32.xlu1 %v1243_v45 }
 0x25f   :  { %v1230_v1 = vpop.xlane.xlu0 %1229 }
 0x260   :  { %v1248_v2 = vmul.f32 0.03125, %v1230_v1 }
 0x262   :  { %v1256_v3 = vadd.f32 1e-05, %v1248_v2 }
 0x263   :  { %v1233_v62 = vpop.xlane.xlu1 %1232  ;;  %v1224_v4 = vpop.xlane.xlu0 %1223 }
 0x264   :  { %1767 = vrsqrt.f32 %v1256_v3  ;;  %v1249_v5 = vmul.f32 0.03125, %v1233_v62  ;;  %v1246_v6 = vmul.f32 0.03125, %v1224_v4 }
 0x266   :  { %v1257_v7 = vadd.f32 1e-05, %v1249_v5  ;;  %v1254_v8 = vadd.f32 1e-05, %v1246_v6 }
 0x267   :  { %v1236_v59 = vpop.xlane.xlu0 %1235 }
 0x268   :  { %1769 = vrsqrt.f32 %v1257_v7  ;;  %v1250_v9 = vmul.f32 0.03125, %v1236_v59  ;;  %v1227_v10 = vpop.xlane.xlu1 %1226 }
 0x269   :  { %1771 = vrsqrt.f32 %v1254_v8  ;;  %v1247_v0 = vmul.f32 0.03125, %v1227_v10 }
 0x26a   :  { %v1258_v13 = vadd.f32 1e-05, %v1250_v9 }
 0x26b   :  { %v1255_v14 = vadd.f32 1e-05, %v1247_v0 }
 0x26c   :  { %1773 = vrsqrt.f32 %v1258_v13  ;;  %v1239_v60 = vpop.xlane.xlu1 %1238  ;;  %v1242_v15 = vpop.xlane.xlu0 %1241 }
 0x26d   :  { %1775 = vrsqrt.f32 %v1255_v14  ;;  %v1251_v16 = vmul.f32 0.03125, %v1239_v60  ;;  %v1252_v17 = vmul.f32 0.03125, %v1242_v15 }
 0x26e   :  { %v1768_v18 = vpop.eup %1767 }
 0x26f   :  { %v1272_v20 = vmul.f32 %v1768_v18, %v2180_v26  ;;  %v1259_v21 = vadd.f32 1e-05, %v1251_v16  ;;  %v1260_v22 = vadd.f32 1e-05, %v1252_v17 }
 0x270   :  { %v1245_v24 = vpop.xlane.xlu1 %1244 }
 0x271   :  { %v1287_v25 = vmul.f32 %v1429_v19, %v1272_v20  ;;  %1777 = vrsqrt.f32 %v1259_v21  ;;  %v1253_v11 = vmul.f32 0.03125, %v1245_v24 }
 0x272   :  { %v1770_v30 = vpop.eup %1769  ;;  %1779 = vrsqrt.f32 %v1260_v22 }
 0x273   :  { %v1772_v31 = vpop.eup %1771  ;;  %v1302_v12 = vadd.f32 %v1430_v23, %v1287_v25  ;;  %v1273_v32 = vmul.f32 %v1770_v30, %v2186_v34  ;;  %v1261_v33 = vadd.f32 1e-05, %v1253_v11 }
 0x274   :  { %v1270_v35 = vmul.f32 %v1772_v31, %v2182_v29 }
 0x275   :  { %1310 = vst.msk [vmem:[%s2272_s6 + $0x10] sm:$0xff] %vm1172_vm0, %v1302_v12  ;;  %v1288_v26 = vmul.f32 %v1429_v19, %v1273_v32  ;;  %1781 = vrsqrt.f32 %v1261_v33 }
 0x276   :  { %v1774_v36 = vpop.eup %1773  ;;  %v1285_v38 = vmul.f32 %v1429_v19, %v1270_v35 }
 0x277   :  { %v1776_v39 = vpop.eup %1775  ;;  %v1303_v40 = vadd.f32 %v1430_v23, %v1288_v26  ;;  %v1274_v41 = vmul.f32 %v1774_v36, %v2191_v37 }
 0x278   :  { %v1300_v27 = vadd.f32 %v1430_v23, %v1285_v38  ;;  %v1271_v42 = vmul.f32 %v1776_v39, %v2201_v28 }
 0x279   :  { %1311 = vst.msk [vmem:[%s2272_s6 + $0x18] sm:$0xff] %vm1172_vm0, %v1303_v40  ;;  %v1289_v29 = vmul.f32 %v1429_v19, %v1274_v41 }
 0x27a   :  { %1308 = vst.msk [vmem:[%s2272_s6] sm:$0xff] %vm1172_vm0, %v1300_v27  ;;  %v1286_v34 = vmul.f32 %v1429_v19, %v1271_v42 }
 0x27b   :  { %v1778_v46 = vpop.eup %1777  ;;  %v1304_v47 = vadd.f32 %v1430_v23, %v1289_v29 }
 0x27c   :  { %v1780_v49 = vpop.eup %1779  ;;  %v1301_v50 = vadd.f32 %v1430_v23, %v1286_v34  ;;  %v1275_v37 = vmul.f32 %v1778_v46, %v2199_v48 }
 0x27d   :  { %1312 = vst.msk [vmem:[%s2272_s6 + $0x20] sm:$0xff] %vm1172_vm0, %v1304_v47  ;;  %v1276_v28 = vmul.f32 %v1780_v49, %v2208_v55 }
 0x27e   :  { %1309 = vst.msk [vmem:[%s2272_s6 + $0x8] sm:$0xff] %vm1172_vm0, %v1301_v50  ;;  %v1290_v51 = vmul.f32 %v1429_v19, %v1275_v37 }
 0x27f   :  { %v1782_v52 = vpop.eup %1781  ;;  %v1291_v43 = vmul.f32 %v1429_v19, %v1276_v28 }
 0x280   :  { %v1305_v53 = vadd.f32 %v1430_v23, %v1290_v51  ;;  %v1277_v56 = vmul.f32 %v1782_v52, %v2206_v54 }
 0x281   :  { %v1306_v44 = vadd.f32 %v1430_v23, %v1291_v43 }
 0x282   :  { %1313 = vst.msk [vmem:[%s2272_s6 + $0x28] sm:$0xff] %vm1172_vm0, %v1305_v53  ;;  %v1292_v48 = vmul.f32 %v1429_v19, %v1277_v56 }
 0x283   :  { %1314 = vst.msk [vmem:[%s2272_s6 + $0x30] sm:$0xff] %vm1172_vm0, %v1306_v44 }
 0x284   :  { %v1307_v55 = vadd.f32 %v1430_v23, %v1292_v48 }
 0x286   :  { %1315 = vst.msk [vmem:[%s2272_s6 + $0x38] sm:$0xff] %vm1172_vm0, %v1307_v55 }

// kernel: _forward_core.45
= control target key start
LH: loop header
LB: loop body
LE: loop exit
PB: predicated region body
PF: predicated region fallthrough
CT: control target
= control target key end

     0   :  { %v408_v0 = vmov 0.0|0.0   ;;  %vm409_vm0 = vmmov 0   ;;  %v410_v4 = vmov 0.0   ;;  %vm38_vm1 = vcmask 261120   ;;  %s529_s1 = inlined_call_operand.vmem [shape: f32[32,64], index: 1, kind: input, shape index: {}]   ;;  %s530_s3 = inlined_call_operand.vmem [shape: f32[64,64], index: 3, kind: input, shape index: {}]   ;;  %s531_s0 = inlined_call_operand.vmem [shape: f32[2,32], index: 0, kind: input, shape index: {}]   ;;  %s532_s5 = inlined_call_operand.vmem [shape: f32[64,4], index: 5, kind: input, shape index: {}]   ;;  %s533_s2 = inlined_call_operand.vmem [shape: f32[1,64], index: 2, kind: input, shape index: {}]   ;;  %s534_s4 = inlined_call_operand.vmem [shape: f32[1,64], index: 4, kind: input, shape index: {}]   ;;  %s535_s6 = inlined_call_operand.vmem [shape: f32[1,4], index: 6, kind: input, shape index: {}]   ;;  %s536_s7 = inlined_call_operand.vmem [shape: f32[2,4], index: 7, kind: output, shape index: {}]  }
   0x1   :  { %375 = vmatprep.subr.bf16.mxu0 %v408_v0  ;;  %v27_v1 = vld [vmem:[%s529_s1] sm:$0xff]  ;;  %v28_v2 = vld [vmem:[%s529_s1 + $0x8] sm:$0xff]  ;;  %v29_v3 = vld [vmem:[%s529_s1 + $0x10] sm:$0xff]  ;;  %334 = vmatprep.mubr.msk.f32.mxu0 %vm409_vm0, %v410_v4  ;;  %vm128_vm2 = vcmask 523264   ;;  %vm291_vm3 = vcmask 25600  }
   0x2   :  { %v376_v5 = vpack.c.bf16 %v28_v2, %v27_v1  ;;  %v30_v6 = vld [vmem:[%s529_s1 + $0x18] sm:$0xff]  ;;  %381 = vmatprep.subr.bf16.mxu1 %v408_v0  ;;  %v113_v7 = vld [vmem:[%s530_s3] sm:$0xff]  ;;  %353 = vmatprep.mubr.msk.f32.mxu1 %vm409_vm0, %v410_v4  ;;  %v114_v8 = vld [vmem:[%s530_s3 + $0x8] sm:$0xff] }
   0x3   :  { %v115_v9 = vld [vmem:[%s530_s3 + $0x10] sm:$0xff]  ;;  %v116_v10 = vld [vmem:[%s530_s3 + $0x18] sm:$0xff]  ;;  %v379_v11 = vpack.c.bf16 %v30_v6, %v29_v3  ;;  %v382_v12 = vpack.c.bf16 %v114_v8, %v113_v7  ;;  %v117_v14 = vld [vmem:[%s530_s3 + $0x20] sm:$0xff] }
   0x4   :  { %377 = vmatpush3.bf16.msra.mxu0 %v376_v5  ;;  %v385_v13 = vpack.c.bf16 %v116_v10, %v115_v9  ;;  %v118_v15 = vld [vmem:[%s530_s3 + $0x28] sm:$0xff]  ;;  %v26_v16 = vld [vmem:[%s531_s0] sm:$0x3]  ;;  %v119_v18 = vld [vmem:[%s530_s3 + $0x30] sm:$0xff] }
   0x5   :  { %378 = vmatprep.subr.bf16.mxu0 %v408_v0  ;;  %383 = vmatpush3.bf16.msra.mxu1 %v382_v12  ;;  %v388_v17 = vpack.c.bf16 %v118_v15, %v117_v14  ;;  %v120_v19 = vld [vmem:[%s530_s3 + $0x38] sm:$0xff]  ;;  %v203_v21 = vld [vmem:[%s532_s5] sm:$0xff]  ;;  %v204_v22 = vld [vmem:[%s532_s5 + $0x8] sm:$0xff] }
   0x6   :  { %384 = vmatprep.subr.bf16.mxu1 %v408_v0  ;;  %v391_v20 = vpack.c.bf16 %v120_v19, %v119_v18  ;;  %v205_v23 = vld [vmem:[%s532_s5 + $0x10] sm:$0xff]  ;;  %v394_v24 = vpack.c.bf16 %v204_v22, %v203_v21  ;;  %v206_v25 = vld [vmem:[%s532_s5 + $0x18] sm:$0xff]  ;;  %v207_v27 = vld [vmem:[%s532_s5 + $0x20] sm:$0xff] }
   0x7   :  { %v397_v26 = vpack.c.bf16 %v206_v25, %v205_v23  ;;  %v208_v28 = vld [vmem:[%s532_s5 + $0x28] sm:$0xff]  ;;  %v297_v30 = vld [vmem:[%s533_s2] ss:$0 sm:$0xff]  ;;  %v209_v35 = vld [vmem:[%s532_s5 + $0x30] sm:$0xff] }
   0x8   :  { %380 = vmatpush3.bf16.msra.mxu0 %v379_v11  ;;  %v400_v29 = vpack.c.bf16 %v208_v28, %v207_v27  ;;  %v210_v36 = vld [vmem:[%s532_s5 + $0x38] sm:$0xff]  ;;  %v299_v38 = vld [vmem:[%s534_s4] ss:$0 sm:$0xff] }
   0x9   :  { %393 = vmatprep.subr.bf16.mxu0 %v408_v0  ;;  %386 = vmatpush3.bf16.msra.mxu1 %v385_v13  ;;  %v403_v37 = vpack.c.bf16 %v210_v36, %v209_v35  ;;  %v301_v43 = vld [vmem:[%s535_s6] ss:$0 sm:$0xff] }
   0xa   :  { %387 = vmatprep.subr.bf16.mxu1 %v408_v0 }
   0xb   :  { %335 = vmatmul.mubr.msk.f32.vlgmr.msra.gmra.mrb[0].mxu0 %vm38_vm1, %v26_v16 }
   0xc   :  { %372 = vmatprep.mubr.msk.f32.mxu0 %vm409_vm0, %v410_v4  ;;  %395 = vmatpush3.bf16.msra.mxu0 %v394_v24 }
   0xd   :  { %389 = vmatpush3.bf16.msra.mxu1 %v388_v17  ;;  %396 = vmatprep.subr.bf16.mxu0 %v408_v0 }
   0xe   :  { %390 = vmatprep.subr.bf16.mxu1 %v408_v0 }
  0x10   :  { %398 = vmatpush3.bf16.msra.mxu0 %v397_v26 }
  0x11   :  { %392 = vmatpush3.bf16.msra.mxu1 %v391_v20  ;;  %399 = vmatprep.subr.bf16.mxu0 %v408_v0 }
  0x14   :  { %401 = vmatpush3.bf16.msra.mxu0 %v400_v29 }
  0x15   :  { %402 = vmatprep.subr.bf16.mxu0 %v408_v0 }
  0x18   :  { %404 = vmatpush3.bf16.msra.mxu0 %v403_v37 }
  0xde   :  { %v108_v31 = vpop.f32.mrb[0].mxu0 }
  0xdf   :  { %v109_v32 = vadd.f32 %v297_v30, %v108_v31  ;;  %v336_v33 = vpop.f32.mrb[1].mxu0 }
  0xe1   :  { %v112_v34 = vmax.f32 %v109_v32, 0.0 }
  0xe3   :  { %354 = vmatmul.mubr.msk.f32.vlgmr.msra.gmra.mrb[0].mxu1 %vm128_vm2, %v112_v34 }
 0x1b6   :  { %v198_v39 = vpop.f32.mrb[0].mxu1 }
 0x1b7   :  { %v199_v40 = vadd.f32 %v299_v38, %v198_v39  ;;  %v355_v41 = vpop.f32.mrb[1].mxu1 }
 0x1b9   :  { %v202_v42 = vmax.f32 %v199_v40, 0.0 }
 0x1bb   :  { %373 = vmatmul.mubr.msk.f32.vlgmr.msra.gmra.mrb[2].mxu0 %vm128_vm2, %v202_v42 }
 0x28e   :  { %v287_v44 = vpop.f32.mrb[2].mxu0 }
 0x28f   :  { %v288_v45 = vadd.f32 %v301_v43, %v287_v44  ;;  %v374_v46 = vpop.f32.mrb[3].mxu0 }
 0x291   :  { %292 = vst.msk [vmem:[%s536_s7] sm:$0x3] %vm291_vm3, %v288_v45 }

// kernel: _forward_core.43
= control target key start
LH: loop header
LB: loop body
LE: loop exit
PB: predicated region body
PF: predicated region fallthrough
CT: control target
= control target key end

     0   :  { %s902_s24 = smov 0   ;;  %s954_s0 = inlined_call_operand.vmem [shape: f32[5,2,32], index: 0, kind: input, shape index: {}]   ;;  %s955_s1 = inlined_call_operand.vmem [shape: f32[5,32,32], index: 1, kind: input, shape index: {}]   ;;  %s956_s2 = inlined_call_operand.vmem [shape: f32[5,1,32], index: 2, kind: input, shape index: {}]   ;;  %s957_s3 = inlined_call_operand.vmem [shape: f32[5,32,32], index: 3, kind: input, shape index: {}]   ;;  %s958_s4 = inlined_call_operand.vmem [shape: f32[5,1,32], index: 4, kind: input, shape index: {}]   ;;  %s959_s5 = inlined_call_operand.vmem [shape: f32[5,32,4], index: 5, kind: input, shape index: {}]   ;;  %s960_s6 = inlined_call_operand.vmem [shape: f32[5,1,4], index: 6, kind: input, shape index: {}]   ;;  %s961_s7 = inlined_call_operand.vmem [shape: f32[5,2,4], index: 7, kind: output, shape index: {}]  }
   0x1 LB: > { %s750_s25 = sadd.s32 4294967295, %s857_s24   ;;  %p754_p0 = scmp.ge.s32.totalorder %s857_s24, 1  ;;  %s857_s24 = sphi %s902_s24, %s17_s24  }
   0x2   : > { %p290_p1 = scmp.lt.s32.totalorder %s857_s24, 6 }
   0x4   : > { %p291_p2 = pnand %p754_p0, %p290_p1 }
   0x5   : > { %p344_p3 = scmp.lt.s32.totalorder (!%p291_p2), %s750_s25, 4  ;;  %v859_v0 = vmov (!%p291_p2), 0.0|0.0   ;;  %vm860_vm0 = vmmov (!%p291_p2), 0   ;;  %v861_v1 = vmov (!%p291_p2), 0.0   ;;  %vm388_vm1 = vcmask (!%p291_p2), 261120  }
   0x6   : > { %294 = sbr.rel (%p291_p2) target bundleno = 673 (0x2a1), region = 48  ;;  %822 = vmatprep.subr.bf16.mxu0 (!%p291_p2), %v859_v0  ;;  %797 = vmatprep.mubr.msk.f32.mxu0 (!%p291_p2), %vm860_vm0, %v861_v1  ;;  %vm632_vm2 = vcmask (!%p291_p2), 25600  }
   0x7   : > { %828 = vmatprep.subr.bf16.mxu1 (!%p291_p2), %v859_v0  ;;  %808 = vmatprep.mubr.msk.f32.mxu1 (!%p291_p2), %vm860_vm0, %v861_v1 }
   0xd   : > { %s963_s25 = smov (!%p344_p3, %s750_s25), 4 }
   0xe   : > { %s771_s26 = sshll.u32 %s963_s25, 5  ;;  %s755_s30 = sshll.u32 %s963_s25, 1 }
   0xf   : > { %s352_s29 = scalar_lea.vmem %s955_s1, %s771_s26  ;;  %s360_s10 = scalar_lea.vmem %s957_s3, %s771_s26 }
  0x10   : > { %v377_v2 = vld [vmem:[%s352_s29] sm:$0xff]  ;;  %v378_v3 = vld [vmem:[%s352_s29 + $0x8] sm:$0xff]  ;;  %v379_v4 = vld [vmem:[%s352_s29 + $0x10] sm:$0xff]  ;;  %s347_s13 = scalar_lea.vmem %s954_s0, %s755_s30  ;;  %s368_s16 = scalar_lea.vmem %s959_s5, %s771_s26 }
  0x11   : > { %v823_v5 = vpack.c.bf16 %v378_v3, %v377_v2  ;;  %v380_v6 = vld [vmem:[%s352_s29 + $0x18] sm:$0xff]  ;;  %v463_v7 = vld [vmem:[%s360_s10] sm:$0xff]  ;;  %v464_v8 = vld [vmem:[%s360_s10 + $0x8] sm:$0xff]  ;;  %s355_s19 = scalar_lea.vmem %s956_s2, %s963_s25  ;;  %s363_s22 = scalar_lea.vmem %s958_s4, %s963_s25 }
  0x12   : > { %v826_v9 = vpack.c.bf16 %v380_v6, %v379_v4  ;;  %v829_v10 = vpack.c.bf16 %v464_v8, %v463_v7  ;;  %v376_v11 = vld [vmem:[%s347_s13] sm:$0x3]  ;;  %v465_v12 = vld [vmem:[%s360_s10 + $0x10] sm:$0xff]  ;;  %v466_v13 = vld [vmem:[%s360_s10 + $0x18] sm:$0xff]  ;;  %s371_s27 = scalar_lea.vmem %s960_s6, %s963_s25  ;;  %s375_s8 = scalar_lea.vmem %s961_s7, %s755_s30 }
  0x13   : > { %824 = vmatpush3.bf16.msra.mxu0 %v823_v5  ;;  %v832_v14 = vpack.c.bf16 %v466_v13, %v465_v12  ;;  %v548_v15 = vld [vmem:[%s368_s16] sm:$0xff]  ;;  %v549_v16 = vld [vmem:[%s368_s16 + $0x8] sm:$0xff]  ;;  %v550_v23 = vld [vmem:[%s368_s16 + $0x10] sm:$0xff] }
  0x14   : > { %825 = vmatprep.subr.bf16.mxu0 %v859_v0  ;;  %830 = vmatpush3.bf16.msra.mxu1 %v829_v10  ;;  %v835_v17 = vpack.c.bf16 %v549_v16, %v548_v15  ;;  %v763_v18 = vld [vmem:[%s355_s19] ss:$0 sm:$0xff]  ;;  %v551_v24 = vld [vmem:[%s368_s16 + $0x18] sm:$0xff] }
  0x15   : > { %831 = vmatprep.subr.bf16.mxu1 %v859_v0  ;;  %v838_v25 = vpack.c.bf16 %v551_v24, %v550_v23  ;;  %v765_v26 = vld [vmem:[%s363_s22] ss:$0 sm:$0xff] }
  0x16   : > { %v767_v31 = vld [vmem:[%s371_s27] ss:$0 sm:$0xff] }
  0x17   : > { %827 = vmatpush3.bf16.msra.mxu0 %v826_v9 }
  0x18   : > { %834 = vmatprep.subr.bf16.mxu0 %v859_v0  ;;  %833 = vmatpush3.bf16.msra.mxu1 %v832_v14 }
  0x1a   : > { %798 = vmatmul.mubr.msk.f32.vlgmr.msra.gmra.mrb[0].mxu0 %vm388_vm1, %v376_v11 }
  0x1b   : > { %819 = vmatprep.mubr.msk.f32.mxu0 %vm860_vm0, %v861_v1  ;;  %836 = vmatpush3.bf16.msra.mxu0 %v835_v17 }
  0x1c   : > { %837 = vmatprep.subr.bf16.mxu0 %v859_v0 }
  0x1f   : > { %839 = vmatpush3.bf16.msra.mxu0 %v838_v25 }
  0xed   : > { %v458_v19 = vpop.f32.mrb[0].mxu0 }
  0xee   : > { %v459_v20 = vadd.f32 %v763_v18, %v458_v19  ;;  %v799_v21 = vpop.f32.mrb[1].mxu0 }
  0xf0   : > { %v462_v22 = vmax.f32 %v459_v20, 0.0 }
  0xf2   : > { %809 = vmatmul.mubr.msk.f32.vlgmr.msra.gmra.mrb[0].mxu1 %vm388_vm1, %v462_v22 }
 0x1c5   : > { %v543_v27 = vpop.f32.mrb[0].mxu1 }
 0x1c6   : > { %v544_v28 = vadd.f32 %v765_v26, %v543_v27  ;;  %v810_v29 = vpop.f32.mrb[1].mxu1 }
 0x1c8   : > { %v547_v30 = vmax.f32 %v544_v28, 0.0 }
 0x1ca   : > { %820 = vmatmul.mubr.msk.f32.vlgmr.msra.gmra.mrb[2].mxu0 %vm388_vm1, %v547_v30 }
 0x29d   : > { %v628_v32 = vpop.f32.mrb[2].mxu0 }
 0x29e   : > { %v629_v33 = vadd.f32 %v767_v31, %v628_v32  ;;  %v821_v34 = vpop.f32.mrb[3].mxu0 }
 0x2a0   : > { %633 = vst.msk [vmem:[%s375_s8] sm:$0x3] %vm632_vm2, %v629_v33 }
 0x2a1 PF: > { %s17_s24 = sadd.s32 1, %s857_s24  }
 0x2a2   : > { %p14_p4 = scmp.ge.s32.totalorder %s17_s24, 7  }
 0x2a4   :  { %16 = sbr.rel (!%p14_p4) target bundleno = 1 (0x1), region = 96 }

// kernel: _forward_core.38
= control target key start
LH: loop header
LB: loop body
LE: loop exit
PB: predicated region body
PF: predicated region fallthrough
CT: control target
= control target key end

     0   :  { %vm94_vm0 = vcmask 261120   ;;  %s424_s1 = inlined_call_operand.vmem [shape: bf16[32,32], index: 1, kind: input, shape index: {}]   ;;  %s425_s0 = inlined_call_operand.vmem [shape: bf16[128,32], index: 0, kind: input, shape index: {}]   ;;  %s426_s2 = inlined_call_operand.vmem [shape: f32[1,32], index: 2, kind: input, shape index: {}]   ;;  %s427_s3 = inlined_call_operand.vmem [shape: f32[128,32], index: 3, kind: output, shape index: {}]  }
   0x1   :  { %v289_v0 = vld [vmem:[%s424_s1] sm:$0xff]   ;;  %v290_v1 = vld [vmem:[%s424_s1 + $0x8] sm:$0xff]   ;;  %v295_v6 = vld [vmem:[%s425_s0 + $0x10] sm:$0xff]  }
   0x2   :  { %265 = vmatprep.subr.bf16.mxu0 %v289_v0  ;;  %285 = vmatprep.subr.bf16.mxu1 %v289_v0  ;;  %v291_v2 = vld [vmem:[%s425_s0] sm:$0xff]   ;;  %v293_v4 = vld [vmem:[%s425_s0 + $0x8] sm:$0xff]   ;;  %v296_v7 = vld [vmem:[%s425_s0 + $0x30] sm:$0xff]  }
   0x3   :  { %266 = vmatpush3.bf16.msra.mxu0 %v289_v0  ;;  %287 = vmatpush3.bf16.msra.mxu1 %v289_v0  ;;  %v292_v3 = vld [vmem:[%s425_s0 + $0x20] sm:$0xff]   ;;  %v294_v5 = vld [vmem:[%s425_s0 + $0x28] sm:$0xff]   ;;  %v297_v8 = vld [vmem:[%s425_s0 + $0x18] sm:$0xff]  }
   0x4   :  { %267 = vmatprep.subr.bf16.mxu0 %v290_v1  ;;  %286 = vmatprep.subr.bf16.mxu1 %v290_v1  ;;  %v298_v9 = vld [vmem:[%s425_s0 + $0x38] sm:$0xff]   ;;  %v236_v10 = vld [vmem:[%s426_s2] ss:$0 sm:$0xff] }
   0x5   :  { %269 = vmatprep.mubr.msk.bf16.mxu0 %vm94_vm0, %v291_v2  ;;  %277 = vmatprep.mubr.msk.bf16.mxu1 %vm94_vm0, %v292_v3 }
   0x7   :  { %268 = vmatpush3.bf16.msra.mxu0 %v290_v1  ;;  %288 = vmatpush3.bf16.msra.mxu1 %v290_v1 }
   0xa   :  { %270 = vmatmul.mubr.msk.bf16.vlgmr.msra.gmra.mrb[0].mxu0 %vm94_vm0, %v293_v4  ;;  %278 = vmatmul.mubr.msk.bf16.vlgmr.msra.gmra.mrb[0].mxu1 %vm94_vm0, %v294_v5 }
   0xb   :  { %273 = vmatprep.mubr.msk.bf16.mxu0 %vm94_vm0, %v295_v6  ;;  %281 = vmatprep.mubr.msk.bf16.mxu1 %vm94_vm0, %v296_v7 }
  0x12   :  { %274 = vmatmul.mubr.msk.bf16.gmra.mrb[4].mxu0 %vm94_vm0, %v297_v8  ;;  %282 = vmatmul.mubr.msk.bf16.gmra.mrb[4].mxu1 %vm94_vm0, %v298_v9 }
  0xdd   :  { %v271_v11 = vpop.f32.mrb[0].mxu0  ;;  %v279_v12 = vpop.f32.mrb[0].mxu1 }
  0xde   :  { %v162_v13 = vadd.f32 %v271_v11, %v236_v10  ;;  %v194_v14 = vadd.f32 %v279_v12, %v236_v10  ;;  %v153_v15 = vpop.f32.mrb[1].mxu0  ;;  %v185_v16 = vpop.f32.mrb[1].mxu1 }
  0xdf   :  { %v154_v17 = vadd.f32 %v236_v10, %v153_v15  ;;  %v186_v18 = vadd.f32 %v236_v10, %v185_v16  ;;  %v272_v19 = vpop.f32.mrb[2].mxu0  ;;  %v280_v20 = vpop.f32.mrb[2].mxu1 }
  0xe0   :  { %218 = vst.msk [vmem:[%s427_s3 + $0x10] sm:$0xff] %vm94_vm0, %v162_v13  ;;  %226 = vst.msk [vmem:[%s427_s3 + $0x50] sm:$0xff] %vm94_vm0, %v194_v14  ;;  %v165_v21 = vadd.f32 %v272_v19, %v236_v10  ;;  %v197_v22 = vadd.f32 %v280_v20, %v236_v10  ;;  %v156_v23 = vpop.f32.mrb[3].mxu0  ;;  %v188_v24 = vpop.f32.mrb[3].mxu1 }
  0xe1   :  { %216 = vst.msk [vmem:[%s427_s3] sm:$0xff] %vm94_vm0, %v154_v17  ;;  %224 = vst.msk [vmem:[%s427_s3 + $0x40] sm:$0xff] %vm94_vm0, %v186_v18  ;;  %v157_v25 = vadd.f32 %v236_v10, %v156_v23  ;;  %v189_v26 = vadd.f32 %v236_v10, %v188_v24 }
  0xe2   :  { %219 = vst.msk [vmem:[%s427_s3 + $0x18] sm:$0xff] %vm94_vm0, %v165_v21  ;;  %227 = vst.msk [vmem:[%s427_s3 + $0x58] sm:$0xff] %vm94_vm0, %v197_v22 }
  0xe3   :  { %217 = vst.msk [vmem:[%s427_s3 + $0x8] sm:$0xff] %vm94_vm0, %v157_v25  ;;  %225 = vst.msk [vmem:[%s427_s3 + $0x48] sm:$0xff] %vm94_vm0, %v189_v26 }
  0xe5   :  { %v275_v27 = vpop.f32.mrb[4].mxu0  ;;  %v283_v28 = vpop.f32.mrb[4].mxu1 }
  0xe6   :  { %v178_v29 = vadd.f32 %v275_v27, %v236_v10  ;;  %v210_v30 = vadd.f32 %v283_v28, %v236_v10  ;;  %v169_v31 = vpop.f32.mrb[5].mxu0  ;;  %v201_v32 = vpop.f32.mrb[5].mxu1 }
  0xe7   :  { %v170_v33 = vadd.f32 %v236_v10, %v169_v31  ;;  %v202_v34 = vadd.f32 %v236_v10, %v201_v32  ;;  %v276_v35 = vpop.f32.mrb[6].mxu0  ;;  %v284_v36 = vpop.f32.mrb[6].mxu1 }
  0xe8   :  { %222 = vst.msk [vmem:[%s427_s3 + $0x30] sm:$0xff] %vm94_vm0, %v178_v29  ;;  %230 = vst.msk [vmem:[%s427_s3 + $0x70] sm:$0xff] %vm94_vm0, %v210_v30  ;;  %v181_v37 = vadd.f32 %v276_v35, %v236_v10  ;;  %v213_v38 = vadd.f32 %v284_v36, %v236_v10  ;;  %v172_v39 = vpop.f32.mrb[7].mxu0  ;;  %v204_v40 = vpop.f32.mrb[7].mxu1 }
  0xe9   :  { %220 = vst.msk [vmem:[%s427_s3 + $0x20] sm:$0xff] %vm94_vm0, %v170_v33  ;;  %228 = vst.msk [vmem:[%s427_s3 + $0x60] sm:$0xff] %vm94_vm0, %v202_v34  ;;  %v173_v41 = vadd.f32 %v236_v10, %v172_v39  ;;  %v205_v42 = vadd.f32 %v236_v10, %v204_v40 }
  0xea   :  { %223 = vst.msk [vmem:[%s427_s3 + $0x38] sm:$0xff] %vm94_vm0, %v181_v37  ;;  %231 = vst.msk [vmem:[%s427_s3 + $0x78] sm:$0xff] %vm94_vm0, %v213_v38 }
  0xeb   :  { %221 = vst.msk [vmem:[%s427_s3 + $0x28] sm:$0xff] %vm94_vm0, %v173_v41  ;;  %229 = vst.msk [vmem:[%s427_s3 + $0x68] sm:$0xff] %vm94_vm0, %v205_v42 }

// kernel: _forward_core.39
= control target key start
LH: loop header
LB: loop body
LE: loop exit
PB: predicated region body
PF: predicated region fallthrough
CT: control target
= control target key end

     0   :  { %s903_s12 = smov 0   ;;  %s1453_s0 = inlined_call_operand.vmem [shape: f32[512,8], index: 0, kind: input, shape index: {}]   ;;  %s1454_s1 = inlined_call_operand.vmem [shape: f32[1,8], index: 1, kind: input, shape index: {}]   ;;  %s1455_s2 = inlined_call_operand.vmem [shape: f32[1,8], index: 2, kind: input, shape index: {}]   ;;  %s1456_s3 = inlined_call_operand.vmem [shape: f32[512,8], index: 3, kind: output, shape index: {}]  }
   0x1 LB: > { %s790_s13 = sadd.s32 4294967295, %s881_s12   ;;  %p794_p0 = scmp.ge.s32.totalorder %s881_s12, 1  ;;  %s881_s12 = sphi %s903_s12, %s13_s12  }
   0x2   : > { %p138_p1 = scmp.lt.s32.totalorder %s881_s12, 3 }
   0x4   : > { %p139_p2 = pnand %p794_p0, %p138_p1 }
   0x5   : > { %s795_s14 = sshll.u32 (!%p139_p2), %s790_s13, 5  ;;  %vm206_vm0 = vcmask (!%p139_p2), 64512  }
   0x6   : > { %142 = sbr.rel (%p139_p2) target bundleno = 395 (0x18b), region = 32  ;;  %p163_p3 = scmp.lt.s32.totalorder (!%p139_p2), %s795_s14, 63 }
   0xd   : > { %s1458_s14 = smov (!%p163_p3, %s795_s14), 63 }
   0xe   : > { %s796_s15 = sshll.u32 %s1458_s14, 3 }
   0xf   : > { %s919_s18 = scalar_lea.vmem %s1453_s0, %s796_s15  ;;  %s1290_s25 = scalar_lea.vmem %s1456_s3, %s796_s15 }
  0x10   : > { %v922_v0 = vld [vmem:[%s919_s18] sm:$0xff]  ;;  %v925_v1 = vld [vmem:[%s919_s18 + $0x10] sm:$0xff]  ;;  %v928_v2 = vld [vmem:[%s919_s18 + $0x8] sm:$0xff] }
  0x11   : > { %v207_v3 = vsel %vm206_vm0, %v922_v0, 0.0  ;;  %v213_v4 = vsel %vm206_vm0, %v925_v1, 0.0  ;;  %v935_v5 = vld [vmem:[%s919_s18 + $0x18] sm:$0xff]  ;;  %v210_v6 = vsel %vm206_vm0, %v928_v2, 0.0  ;;  %v942_v8 = vld [vmem:[%s919_s18 + $0x20] sm:$0xff]  ;;  %v945_v9 = vld [vmem:[%s919_s18 + $0x28] sm:$0xff] }
  0x12   : > { %208 = vadd.xlane.f32.xlu0 %v207_v3  ;;  %214 = vadd.xlane.f32.xlu1 %v213_v4  ;;  %v216_v7 = vsel %vm206_vm0, %v935_v5, 0.0  ;;  %v219_v10 = vsel %vm206_vm0, %v942_v8, 0.0  ;;  %v222_v11 = vsel %vm206_vm0, %v945_v9, 0.0  ;;  %v952_v12 = vld [vmem:[%s919_s18 + $0x30] sm:$0xff]  ;;  %v955_v13 = vld [vmem:[%s919_s18 + $0x38] sm:$0xff]  ;;  %v962_v16 = vld [vmem:[%s919_s18 + $0x40] sm:$0xff] }
  0x13   : > { %v225_v14 = vsel %vm206_vm0, %v952_v12, 0.0  ;;  %v228_v15 = vsel %vm206_vm0, %v955_v13, 0.0  ;;  %v965_v17 = vld [vmem:[%s919_s18 + $0x48] sm:$0xff]  ;;  %v231_v18 = vsel %vm206_vm0, %v962_v16, 0.0  ;;  %v972_v20 = vld [vmem:[%s919_s18 + $0x50] sm:$0xff]  ;;  %v975_v21 = vld [vmem:[%s919_s18 + $0x58] sm:$0xff] }
  0x14   : > { %v234_v19 = vsel %vm206_vm0, %v965_v17, 0.0  ;;  %v237_v22 = vsel %vm206_vm0, %v972_v20, 0.0  ;;  %v240_v23 = vsel %vm206_vm0, %v975_v21, 0.0  ;;  %v982_v24 = vld [vmem:[%s919_s18 + $0x60] sm:$0xff]  ;;  %v985_v25 = vld [vmem:[%s919_s18 + $0x68] sm:$0xff]  ;;  %v992_v28 = vld [vmem:[%s919_s18 + $0x70] sm:$0xff] }
  0x15   : > { %v243_v26 = vsel %vm206_vm0, %v982_v24, 0.0  ;;  %v246_v27 = vsel %vm206_vm0, %v985_v25, 0.0  ;;  %v995_v29 = vld [vmem:[%s919_s18 + $0x78] sm:$0xff]  ;;  %v249_v30 = vsel %vm206_vm0, %v992_v28, 0.0  ;;  %v1002_v32 = vld [vmem:[%s919_s18 + $0x80] sm:$0xff]  ;;  %v1005_v33 = vld [vmem:[%s919_s18 + $0x88] sm:$0xff] }
  0x16   : > { %211 = vadd.xlane.f32.xlu0 %v210_v6  ;;  %217 = vadd.xlane.f32.xlu1 %v216_v7  ;;  %v252_v31 = vsel %vm206_vm0, %v995_v29, 0.0  ;;  %v255_v34 = vsel %vm206_vm0, %v1002_v32, 0.0  ;;  %v258_v35 = vsel %vm206_vm0, %v1005_v33, 0.0  ;;  %v1012_v36 = vld [vmem:[%s919_s18 + $0x90] sm:$0xff]  ;;  %v1015_v37 = vld [vmem:[%s919_s18 + $0x98] sm:$0xff]  ;;  %v1022_v40 = vld [vmem:[%s919_s18 + $0xa0] sm:$0xff] }
  0x17   : > { %v261_v38 = vsel %vm206_vm0, %v1012_v36, 0.0  ;;  %v264_v39 = vsel %vm206_vm0, %v1015_v37, 0.0  ;;  %v1025_v41 = vld [vmem:[%s919_s18 + $0xa8] sm:$0xff]  ;;  %v267_v42 = vsel %vm206_vm0, %v1022_v40, 0.0  ;;  %v1032_v44 = vld [vmem:[%s919_s18 + $0xb0] sm:$0xff]  ;;  %v1035_v45 = vld [vmem:[%s919_s18 + $0xb8] sm:$0xff] }
  0x18   : > { %v270_v43 = vsel %vm206_vm0, %v1025_v41, 0.0  ;;  %v273_v46 = vsel %vm206_vm0, %v1032_v44, 0.0  ;;  %v276_v47 = vsel %vm206_vm0, %v1035_v45, 0.0  ;;  %v1042_v48 = vld [vmem:[%s919_s18 + $0xc0] sm:$0xff]  ;;  %v1045_v49 = vld [vmem:[%s919_s18 + $0xc8] sm:$0xff]  ;;  %v1052_v52 = vld [vmem:[%s919_s18 + $0xd0] sm:$0xff] }
  0x19   : > { %v279_v50 = vsel %vm206_vm0, %v1042_v48, 0.0  ;;  %v282_v51 = vsel %vm206_vm0, %v1045_v49, 0.0  ;;  %v1055_v53 = vld [vmem:[%s919_s18 + $0xd8] sm:$0xff]  ;;  %v285_v54 = vsel %vm206_vm0, %v1052_v52, 0.0  ;;  %v1062_v56 = vld [vmem:[%s919_s18 + $0xe0] sm:$0xff]  ;;  %v1065_v57 = vld [vmem:[%s919_s18 + $0xe8] sm:$0xff] }
  0x1a   : > { %220 = vadd.xlane.f32.xlu0 %v219_v10  ;;  %223 = vadd.xlane.f32.xlu1 %v222_v11  ;;  %v288_v55 = vsel %vm206_vm0, %v1055_v53, 0.0  ;;  %v291_v58 = vsel %vm206_vm0, %v1062_v56, 0.0  ;;  %v294_v59 = vsel %vm206_vm0, %v1065_v57, 0.0  ;;  %v1072_v60 = vld [vmem:[%s919_s18 + $0xf0] sm:$0xff]  ;;  %v1075_v61 = vld [vmem:[%s919_s18 + $0xf8] sm:$0xff] }
  0x1b   : > { %v297_v62 = vsel %vm206_vm0, %v1072_v60, 0.0  ;;  %v300_v63 = vsel %vm206_vm0, %v1075_v61, 0.0 }
  0x1e   : > { %226 = vadd.xlane.f32.xlu0 %v225_v14  ;;  %229 = vadd.xlane.f32.xlu1 %v228_v15 }
  0x22   : > { %232 = vadd.xlane.f32.xlu0 %v231_v18  ;;  %235 = vadd.xlane.f32.xlu1 %v234_v19 }
  0x26   : > { %238 = vadd.xlane.f32.xlu0 %v237_v22  ;;  %241 = vadd.xlane.f32.xlu1 %v240_v23 }
  0x2a   : > { %244 = vadd.xlane.f32.xlu0 %v243_v26  ;;  %247 = vadd.xlane.f32.xlu1 %v246_v27 }
  0x2e   : > { %250 = vadd.xlane.f32.xlu0 %v249_v30  ;;  %253 = vadd.xlane.f32.xlu1 %v252_v31 }
  0x32   : > { %256 = vadd.xlane.f32.xlu0 %v255_v34  ;;  %259 = vadd.xlane.f32.xlu1 %v258_v35 }
  0x36   : > { %262 = vadd.xlane.f32.xlu0 %v261_v38  ;;  %265 = vadd.xlane.f32.xlu1 %v264_v39 }
  0x3a   : > { %268 = vadd.xlane.f32.xlu0 %v267_v42  ;;  %271 = vadd.xlane.f32.xlu1 %v270_v43 }
  0x3e   : > { %274 = vadd.xlane.f32.xlu0 %v273_v46  ;;  %277 = vadd.xlane.f32.xlu1 %v276_v47 }
  0x42   : > { %280 = vadd.xlane.f32.xlu0 %v279_v50  ;;  %283 = vadd.xlane.f32.xlu1 %v282_v51 }
  0x46   : > { %286 = vadd.xlane.f32.xlu0 %v285_v54  ;;  %289 = vadd.xlane.f32.xlu1 %v288_v55 }
  0x4a   : > { %292 = vadd.xlane.f32.xlu0 %v291_v58  ;;  %295 = vadd.xlane.f32.xlu1 %v294_v59 }
  0x4e   : > { %298 = vadd.xlane.f32.xlu0 %v297_v62  ;;  %301 = vadd.xlane.f32.xlu1 %v300_v63 }
  0x9f   : > { %v209_v3 = vpop.xlane.xlu0 %208  ;;  %v215_v4 = vpop.xlane.xlu1 %214 }
  0xa0   : > { %v304_v6 = vmul.f32 0.125, %v209_v3  ;;  %v306_v7 = vmul.f32 0.125, %v215_v4 }
  0xa2   : > { %v1082_v10 = vsub.f32 %v922_v0, %v304_v6  ;;  %v1085_v11 = vsub.f32 %v925_v1, %v306_v7 }
  0xa3   : > { %v212_v14 = vpop.xlane.xlu0 %211  ;;  %v218_v15 = vpop.xlane.xlu1 %217 }
  0xa4   : > { %v305_v18 = vmul.f32 0.125, %v212_v14  ;;  %v307_v19 = vmul.f32 0.125, %v218_v15  ;;  %v368_v22 = vmul.f32 %v1082_v10, %v1082_v10  ;;  %v370_v23 = vmul.f32 %v1085_v11, %v1085_v11 }
  0xa6   : > { %v1092_v26 = vsub.f32 %v928_v2, %v305_v18  ;;  %v1095_v27 = vsub.f32 %v935_v5, %v307_v19  ;;  %v400_v0 = vsel %vm206_vm0, %v368_v22, 0.0  ;;  %v406_v31 = vsel %vm206_vm0, %v370_v23, 0.0 }
  0xa7   : > { %401 = vadd.xlane.f32.xlu0 %v400_v0  ;;  %v221_v1 = vpop.xlane.xlu0 %220  ;;  %v224_v30 = vpop.xlane.xlu1 %223 }
  0xa8   : > { %v308_v34 = vmul.f32 0.125, %v221_v1  ;;  %v309_v35 = vmul.f32 0.125, %v224_v30  ;;  %v369_v38 = vmul.f32 %v1092_v26, %v1092_v26  ;;  %v371_v39 = vmul.f32 %v1095_v27, %v1095_v27 }
  0xaa   : > { %v1104_v2 = vsub.f32 %v942_v8, %v308_v34  ;;  %v1107_v5 = vsub.f32 %v945_v9, %v309_v35  ;;  %v403_v42 = vsel %vm206_vm0, %v369_v38, 0.0  ;;  %v409_v47 = vsel %vm206_vm0, %v371_v39, 0.0 }
  0xab   : > { %407 = vadd.xlane.f32.xlu0 %v406_v31  ;;  %404 = vadd.xlane.f32.xlu1 %v403_v42  ;;  %v227_v43 = vpop.xlane.xlu0 %226  ;;  %v230_v46 = vpop.xlane.xlu1 %229 }
  0xac   : > { %v310_v50 = vmul.f32 0.125, %v227_v43  ;;  %v311_v51 = vmul.f32 0.125, %v230_v46  ;;  %v372_v54 = vmul.f32 %v1104_v2, %v1104_v2  ;;  %v373_v8 = vmul.f32 %v1107_v5, %v1107_v5 }
  0xae   : > { %v1116_v55 = vsub.f32 %v952_v12, %v310_v50  ;;  %v1119_v9 = vsub.f32 %v955_v13, %v311_v51  ;;  %v412_v58 = vsel %vm206_vm0, %v372_v54, 0.0  ;;  %v415_v63 = vsel %vm206_vm0, %v373_v8, 0.0 }
  0xaf   : > { %410 = vadd.xlane.f32.xlu1 %v409_v47  ;;  %413 = vadd.xlane.f32.xlu0 %v412_v58  ;;  %v233_v59 = vpop.xlane.xlu0 %232  ;;  %v236_v62 = vpop.xlane.xlu1 %235 }
  0xb0   : > { %v312_v3 = vmul.f32 0.125, %v233_v59  ;;  %v313_v4 = vmul.f32 0.125, %v236_v62  ;;  %v374_v6 = vmul.f32 %v1116_v55, %v1116_v55  ;;  %v375_v12 = vmul.f32 %v1119_v9, %v1119_v9 }
  0xb2   : > { %v1128_v7 = vsub.f32 %v962_v16, %v312_v3  ;;  %v1131_v13 = vsub.f32 %v965_v17, %v313_v4  ;;  %v418_v14 = vsel %vm206_vm0, %v374_v6, 0.0  ;;  %v421_v19 = vsel %vm206_vm0, %v375_v12, 0.0 }
  0xb3   : > { %416 = vadd.xlane.f32.xlu1 %v415_v63  ;;  %419 = vadd.xlane.f32.xlu0 %v418_v14  ;;  %v239_v15 = vpop.xlane.xlu0 %238  ;;  %v242_v18 = vpop.xlane.xlu1 %241 }
  0xb4   : > { %v314_v22 = vmul.f32 0.125, %v239_v15  ;;  %v315_v23 = vmul.f32 0.125, %v242_v18  ;;  %v376_v0 = vmul.f32 %v1128_v7, %v1128_v7  ;;  %v377_v16 = vmul.f32 %v1131_v13, %v1131_v13 }
  0xb6   : > { %v1140_v1 = vsub.f32 %v972_v20, %v314_v22  ;;  %v1143_v17 = vsub.f32 %v975_v21, %v315_v23  ;;  %v424_v30 = vsel %vm206_vm0, %v376_v0, 0.0  ;;  %v427_v35 = vsel %vm206_vm0, %v377_v16, 0.0 }
  0xb7   : > { %422 = vadd.xlane.f32.xlu1 %v421_v19  ;;  %425 = vadd.xlane.f32.xlu0 %v424_v30  ;;  %v245_v31 = vpop.xlane.xlu0 %244  ;;  %v248_v34 = vpop.xlane.xlu1 %247 }
  0xb8   : > { %v316_v38 = vmul.f32 0.125, %v245_v31  ;;  %v317_v39 = vmul.f32 0.125, %v248_v34  ;;  %v378_v42 = vmul.f32 %v1140_v1, %v1140_v1  ;;  %v379_v20 = vmul.f32 %v1143_v17, %v1143_v17 }
  0xba   : > { %v1152_v43 = vsub.f32 %v982_v24, %v316_v38  ;;  %v1155_v21 = vsub.f32 %v985_v25, %v317_v39  ;;  %v430_v46 = vsel %vm206_vm0, %v378_v42, 0.0  ;;  %v433_v51 = vsel %vm206_vm0, %v379_v20, 0.0 }
  0xbb   : > { %428 = vadd.xlane.f32.xlu1 %v427_v35  ;;  %431 = vadd.xlane.f32.xlu0 %v430_v46  ;;  %v251_v47 = vpop.xlane.xlu0 %250  ;;  %v254_v50 = vpop.xlane.xlu1 %253 }
  0xbc   : > { %v318_v54 = vmul.f32 0.125, %v251_v47  ;;  %v319_v8 = vmul.f32 0.125, %v254_v50  ;;  %v380_v58 = vmul.f32 %v1152_v43, %v1152_v43  ;;  %v381_v24 = vmul.f32 %v1155_v21, %v1155_v21 }
  0xbe   : > { %v1164_v59 = vsub.f32 %v992_v28, %v318_v54  ;;  %v1167_v25 = vsub.f32 %v995_v29, %v319_v8  ;;  %v436_v62 = vsel %vm206_vm0, %v380_v58, 0.0  ;;  %v439_v4 = vsel %vm206_vm0, %v381_v24, 0.0 }
  0xbf   : > { %434 = vadd.xlane.f32.xlu1 %v433_v51  ;;  %437 = vadd.xlane.f32.xlu0 %v436_v62  ;;  %v257_v63 = vpop.xlane.xlu0 %256  ;;  %v260_v3 = vpop.xlane.xlu1 %259 }
  0xc0   : > { %v320_v6 = vmul.f32 0.125, %v257_v63  ;;  %v321_v12 = vmul.f32 0.125, %v260_v3  ;;  %v382_v14 = vmul.f32 %v1164_v59, %v1164_v59  ;;  %v383_v28 = vmul.f32 %v1167_v25, %v1167_v25 }
  0xc2   : > { %v1176_v15 = vsub.f32 %v1002_v32, %v320_v6  ;;  %v1179_v29 = vsub.f32 %v1005_v33, %v321_v12  ;;  %v442_v18 = vsel %vm206_vm0, %v382_v14, 0.0  ;;  %v445_v23 = vsel %vm206_vm0, %v383_v28, 0.0 }
  0xc3   : > { %440 = vadd.xlane.f32.xlu1 %v439_v4  ;;  %443 = vadd.xlane.f32.xlu0 %v442_v18  ;;  %v263_v19 = vpop.xlane.xlu0 %262  ;;  %v266_v22 = vpop.xlane.xlu1 %265 }
  0xc4   : > { %v322_v0 = vmul.f32 0.125, %v263_v19  ;;  %v323_v16 = vmul.f32 0.125, %v266_v22  ;;  %v384_v30 = vmul.f32 %v1176_v15, %v1176_v15  ;;  %v385_v32 = vmul.f32 %v1179_v29, %v1179_v29 }
  0xc6   : > { %v1188_v31 = vsub.f32 %v1012_v36, %v322_v0  ;;  %v1191_v33 = vsub.f32 %v1015_v37, %v323_v16  ;;  %v448_v34 = vsel %vm206_vm0, %v384_v30, 0.0  ;;  %v451_v39 = vsel %vm206_vm0, %v385_v32, 0.0 }
  0xc7   : > { %446 = vadd.xlane.f32.xlu1 %v445_v23  ;;  %449 = vadd.xlane.f32.xlu0 %v448_v34  ;;  %v269_v35 = vpop.xlane.xlu0 %268  ;;  %v272_v38 = vpop.xlane.xlu1 %271 }
  0xc8   : > { %v324_v42 = vmul.f32 0.125, %v269_v35  ;;  %v325_v20 = vmul.f32 0.125, %v272_v38  ;;  %v386_v46 = vmul.f32 %v1188_v31, %v1188_v31  ;;  %v387_v36 = vmul.f32 %v1191_v33, %v1191_v33 }
  0xca   : > { %v1200_v47 = vsub.f32 %v1022_v40, %v324_v42  ;;  %v1203_v37 = vsub.f32 %v1025_v41, %v325_v20  ;;  %v454_v50 = vsel %vm206_vm0, %v386_v46, 0.0  ;;  %v457_v8 = vsel %vm206_vm0, %v387_v36, 0.0 }
  0xcb   : > { %452 = vadd.xlane.f32.xlu1 %v451_v39  ;;  %455 = vadd.xlane.f32.xlu0 %v454_v50  ;;  %v275_v51 = vpop.xlane.xlu0 %274  ;;  %v278_v54 = vpop.xlane.xlu1 %277 }
  0xcc   : > { %v326_v58 = vmul.f32 0.125, %v275_v51  ;;  %v327_v24 = vmul.f32 0.125, %v278_v54  ;;  %v388_v62 = vmul.f32 %v1200_v47, %v1200_v47  ;;  %v389_v40 = vmul.f32 %v1203_v37, %v1203_v37 }
  0xce   : > { %v1212_v63 = vsub.f32 %v1032_v44, %v326_v58  ;;  %v1215_v41 = vsub.f32 %v1035_v45, %v327_v24  ;;  %v460_v3 = vsel %vm206_vm0, %v388_v62, 0.0  ;;  %v463_v12 = vsel %vm206_vm0, %v389_v40, 0.0 }
  0xcf   : > { %458 = vadd.xlane.f32.xlu1 %v457_v8  ;;  %461 = vadd.xlane.f32.xlu0 %v460_v3  ;;  %v281_v4 = vpop.xlane.xlu0 %280  ;;  %v284_v6 = vpop.xlane.xlu1 %283 }
  0xd0   : > { %v328_v14 = vmul.f32 0.125, %v281_v4  ;;  %v329_v28 = vmul.f32 0.125, %v284_v6  ;;  %v390_v18 = vmul.f32 %v1212_v63, %v1212_v63  ;;  %v391_v44 = vmul.f32 %v1215_v41, %v1215_v41 }
  0xd2   : > { %v1224_v19 = vsub.f32 %v1042_v48, %v328_v14  ;;  %v1227_v45 = vsub.f32 %v1045_v49, %v329_v28  ;;  %v466_v22 = vsel %vm206_vm0, %v390_v18, 0.0  ;;  %v469_v16 = vsel %vm206_vm0, %v391_v44, 0.0 }
  0xd3   : > { %464 = vadd.xlane.f32.xlu1 %v463_v12  ;;  %467 = vadd.xlane.f32.xlu0 %v466_v22  ;;  %v287_v23 = vpop.xlane.xlu0 %286  ;;  %v290_v0 = vpop.xlane.xlu1 %289 }
  0xd4   : > { %v330_v30 = vmul.f32 0.125, %v287_v23  ;;  %v331_v32 = vmul.f32 0.125, %v290_v0  ;;  %v392_v34 = vmul.f32 %v1224_v19, %v1224_v19  ;;  %v393_v48 = vmul.f32 %v1227_v45, %v1227_v45 }
  0xd6   : > { %v1236_v35 = vsub.f32 %v1052_v52, %v330_v30  ;;  %v1239_v49 = vsub.f32 %v1055_v53, %v331_v32  ;;  %v472_v38 = vsel %vm206_vm0, %v392_v34, 0.0  ;;  %v475_v20 = vsel %vm206_vm0, %v393_v48, 0.0 }
  0xd7   : > { %470 = vadd.xlane.f32.xlu1 %v469_v16  ;;  %473 = vadd.xlane.f32.xlu0 %v472_v38  ;;  %v293_v39 = vpop.xlane.xlu0 %292  ;;  %v296_v42 = vpop.xlane.xlu1 %295 }
  0xd8   : > { %v332_v46 = vmul.f32 0.125, %v293_v39  ;;  %v333_v36 = vmul.f32 0.125, %v296_v42  ;;  %v394_v50 = vmul.f32 %v1236_v35, %v1236_v35  ;;  %v395_v52 = vmul.f32 %v1239_v49, %v1239_v49 }
  0xda   : > { %v1248_v51 = vsub.f32 %v1062_v56, %v332_v46  ;;  %v1251_v53 = vsub.f32 %v1065_v57, %v333_v36  ;;  %v478_v54 = vsel %vm206_vm0, %v394_v50, 0.0  ;;  %v481_v24 = vsel %vm206_vm0, %v395_v52, 0.0 }
  0xdb   : > { %476 = vadd.xlane.f32.xlu1 %v475_v20  ;;  %479 = vadd.xlane.f32.xlu0 %v478_v54  ;;  %v299_v8 = vpop.xlane.xlu0 %298  ;;  %v302_v58 = vpop.xlane.xlu1 %301 }
  0xdc   : > { %v334_v62 = vmul.f32 0.125, %v299_v8  ;;  %v335_v40 = vmul.f32 0.125, %v302_v58  ;;  %v396_v3 = vmul.f32 %v1248_v51, %v1248_v51  ;;  %v397_v56 = vmul.f32 %v1251_v53, %v1251_v53  ;;  %v1276_v58 = vld [vmem:[%s1454_s1] ss:$0 sm:$0xff] }
  0xde   : > { %v1260_v4 = vsub.f32 %v1072_v60, %v334_v62  ;;  %v1263_v57 = vsub.f32 %v1075_v61, %v335_v40  ;;  %v484_v6 = vsel %vm206_vm0, %v396_v3, 0.0  ;;  %v487_v12 = vsel %vm206_vm0, %v397_v56, 0.0 }
  0xdf   : > { %482 = vadd.xlane.f32.xlu1 %v481_v24  ;;  %485 = vadd.xlane.f32.xlu0 %v484_v6  ;;  %v1282_v6 = vld [vmem:[%s1455_s2] ss:$0 sm:$0xff] }
  0xe0   : > { %v398_v14 = vmul.f32 %v1260_v4, %v1260_v4  ;;  %v399_v28 = vmul.f32 %v1263_v57, %v1263_v57 }
  0xe2   : > { %v490_v18 = vsel %vm206_vm0, %v398_v14, 0.0  ;;  %v493_v60 = vsel %vm206_vm0, %v399_v28, 0.0 }
  0xe3   : > { %488 = vadd.xlane.f32.xlu1 %v487_v12  ;;  %491 = vadd.xlane.f32.xlu0 %v490_v18 }
  0xe7   : > { %494 = vadd.xlane.f32.xlu1 %v493_v60 }
 0x134   : > { %v402_v61 = vpop.xlane.xlu0 %401 }
 0x135   : > { %v496_v44 = vmul.f32 0.125, %v402_v61 }
 0x137   : > { %v528_v22 = vadd.f32 1e-06, %v496_v44 }
 0x138   : > { %v405_v23 = vpop.xlane.xlu1 %404  ;;  %v408_v0 = vpop.xlane.xlu0 %407 }
 0x139   : > { %811 = vrsqrt.f32 %v528_v22  ;;  %v497_v16 = vmul.f32 0.125, %v405_v23  ;;  %v498_v30 = vmul.f32 0.125, %v408_v0 }
 0x13b   : > { %v529_v32 = vadd.f32 1e-06, %v497_v16  ;;  %v530_v34 = vadd.f32 1e-06, %v498_v30 }
 0x13c   : > { %v411_v48 = vpop.xlane.xlu1 %410  ;;  %v414_v38 = vpop.xlane.xlu0 %413 }
 0x13d   : > { %813 = vrsqrt.f32 %v529_v32  ;;  %v499_v39 = vmul.f32 0.125, %v411_v48  ;;  %v500_v42 = vmul.f32 0.125, %v414_v38 }
 0x13e   : > { %815 = vrsqrt.f32 %v530_v34 }
 0x13f   : > { %v531_v20 = vadd.f32 1e-06, %v499_v39  ;;  %v532_v46 = vadd.f32 1e-06, %v500_v42 }
 0x140   : > { %v417_v36 = vpop.xlane.xlu1 %416  ;;  %v420_v50 = vpop.xlane.xlu0 %419 }
 0x141   : > { %817 = vrsqrt.f32 %v531_v20  ;;  %v501_v52 = vmul.f32 0.125, %v417_v36  ;;  %v502_v54 = vmul.f32 0.125, %v420_v50 }
 0x142   : > { %819 = vrsqrt.f32 %v532_v46 }
 0x143   : > { %v812_v8 = vpop.eup %811  ;;  %v533_v24 = vadd.f32 1e-06, %v501_v52  ;;  %v534_v62 = vadd.f32 1e-06, %v502_v54 }
 0x144   : > { %v592_v40 = vmul.f32 %v812_v8, %v1082_v10  ;;  %v423_v3 = vpop.xlane.xlu1 %422  ;;  %v426_v56 = vpop.xlane.xlu0 %425 }
 0x145   : > { %821 = vrsqrt.f32 %v533_v24  ;;  %v503_v12 = vmul.f32 0.125, %v423_v3  ;;  %v504_v14 = vmul.f32 0.125, %v426_v56 }
 0x146   : > { %v631_v28 = vmul.f32 %v1276_v58, %v592_v40  ;;  %823 = vrsqrt.f32 %v534_v62 }
 0x147   : > { %v814_v18 = vpop.eup %813  ;;  %v535_v10 = vadd.f32 1e-06, %v503_v12  ;;  %v536_v60 = vadd.f32 1e-06, %v504_v14 }
 0x148   : > { %v816_v61 = vpop.eup %815  ;;  %v670_v44 = vadd.f32 %v1282_v6, %v631_v28  ;;  %v593_v22 = vmul.f32 %v814_v18, %v1092_v26  ;;  %v429_v23 = vpop.xlane.xlu1 %428 }
 0x149   : > { %v432_v0 = vpop.xlane.xlu0 %431  ;;  %v594_v16 = vmul.f32 %v816_v61, %v1085_v11  ;;  %825 = vrsqrt.f32 %v535_v10  ;;  %v505_v30 = vmul.f32 0.125, %v429_v23 }
 0x14a   : > { %v506_v32 = vmul.f32 0.125, %v432_v0  ;;  %702 = vst.msk [vmem:[%s1290_s25] sm:$0xff] %vm206_vm0, %v670_v44  ;;  %v632_v34 = vmul.f32 %v1276_v58, %v593_v22  ;;  %827 = vrsqrt.f32 %v536_v60 }
 0x14b   : > { %v818_v48 = vpop.eup %817  ;;  %v633_v38 = vmul.f32 %v1276_v58, %v594_v16  ;;  %v537_v39 = vadd.f32 1e-06, %v505_v30 }
 0x14c   : > { %v538_v42 = vadd.f32 1e-06, %v506_v32  ;;  %v820_v26 = vpop.eup %819  ;;  %v671_v20 = vadd.f32 %v1282_v6, %v632_v34  ;;  %v595_v11 = vmul.f32 %v818_v48, %v1095_v27  ;;  %v435_v46 = vpop.xlane.xlu1 %434 }
 0x14d   : > { %v438_v36 = vpop.xlane.xlu0 %437  ;;  %v672_v50 = vadd.f32 %v1282_v6, %v633_v38  ;;  %v596_v52 = vmul.f32 %v820_v26, %v1104_v2  ;;  %829 = vrsqrt.f32 %v537_v39  ;;  %v507_v54 = vmul.f32 0.125, %v435_v46 }
 0x14e   : > { %703 = vst.msk [vmem:[%s1290_s25 + $0x8] sm:$0xff] %vm206_vm0, %v671_v20  ;;  %v634_v8 = vmul.f32 %v1276_v58, %v595_v11  ;;  %831 = vrsqrt.f32 %v538_v42  ;;  %v508_v24 = vmul.f32 0.125, %v438_v36 }
 0x14f   : > { %v822_v62 = vpop.eup %821  ;;  %704 = vst.msk [vmem:[%s1290_s25 + $0x10] sm:$0xff] %vm206_vm0, %v672_v50  ;;  %v635_v27 = vmul.f32 %v1276_v58, %v596_v52  ;;  %v539_v40 = vadd.f32 1e-06, %v507_v54 }
 0x150   : > { %v824_v3 = vpop.eup %823  ;;  %v673_v56 = vadd.f32 %v1282_v6, %v634_v8  ;;  %v597_v2 = vmul.f32 %v822_v62, %v1107_v5  ;;  %v540_v12 = vadd.f32 1e-06, %v508_v24  ;;  %v441_v14 = vpop.xlane.xlu1 %440 }
 0x151   : > { %v444_v28 = vpop.xlane.xlu0 %443  ;;  %v674_v18 = vadd.f32 %v1282_v6, %v635_v27  ;;  %v598_v10 = vmul.f32 %v824_v3, %v1116_v55  ;;  %833 = vrsqrt.f32 %v539_v40  ;;  %v509_v60 = vmul.f32 0.125, %v441_v14 }
 0x152   : > { %705 = vst.msk [vmem:[%s1290_s25 + $0x18] sm:$0xff] %vm206_vm0, %v673_v56  ;;  %v636_v61 = vmul.f32 %v1276_v58, %v597_v2  ;;  %835 = vrsqrt.f32 %v540_v12  ;;  %v510_v44 = vmul.f32 0.125, %v444_v28 }
 0x153   : > { %v826_v22 = vpop.eup %825  ;;  %706 = vst.msk [vmem:[%s1290_s25 + $0x20] sm:$0xff] %vm206_vm0, %v674_v18  ;;  %v637_v5 = vmul.f32 %v1276_v58, %v598_v10  ;;  %v541_v23 = vadd.f32 1e-06, %v509_v60 }
 0x154   : > { %v828_v0 = vpop.eup %827  ;;  %v675_v16 = vadd.f32 %v1282_v6, %v636_v61  ;;  %v599_v55 = vmul.f32 %v826_v22, %v1119_v9  ;;  %v542_v30 = vadd.f32 1e-06, %v510_v44  ;;  %v447_v32 = vpop.xlane.xlu1 %446 }
 0x155   : > { %v450_v34 = vpop.xlane.xlu0 %449  ;;  %v676_v48 = vadd.f32 %v1282_v6, %v637_v5  ;;  %v600_v38 = vmul.f32 %v828_v0, %v1128_v7  ;;  %837 = vrsqrt.f32 %v541_v23  ;;  %v511_v39 = vmul.f32 0.125, %v447_v32 }
 0x156   : > { %707 = vst.msk [vmem:[%s1290_s25 + $0x28] sm:$0xff] %vm206_vm0, %v675_v16  ;;  %v638_v42 = vmul.f32 %v1276_v58, %v599_v55  ;;  %839 = vrsqrt.f32 %v542_v30  ;;  %v512_v26 = vmul.f32 0.125, %v450_v34 }
 0x157   : > { %v830_v20 = vpop.eup %829  ;;  %708 = vst.msk [vmem:[%s1290_s25 + $0x30] sm:$0xff] %vm206_vm0, %v676_v48  ;;  %v639_v9 = vmul.f32 %v1276_v58, %v600_v38  ;;  %v543_v11 = vadd.f32 1e-06, %v511_v39 }
 0x158   : > { %v832_v46 = vpop.eup %831  ;;  %v677_v36 = vadd.f32 %v1282_v6, %v638_v42  ;;  %v601_v7 = vmul.f32 %v830_v20, %v1131_v13  ;;  %v544_v50 = vadd.f32 1e-06, %v512_v26  ;;  %v453_v52 = vpop.xlane.xlu1 %452 }
 0x159   : > { %v456_v54 = vpop.xlane.xlu0 %455  ;;  %v678_v8 = vadd.f32 %v1282_v6, %v639_v9  ;;  %v602_v24 = vmul.f32 %v832_v46, %v1140_v1  ;;  %841 = vrsqrt.f32 %v543_v11  ;;  %v513_v62 = vmul.f32 0.125, %v453_v52 }
 0x15a   : > { %709 = vst.msk [vmem:[%s1290_s25 + $0x38] sm:$0xff] %vm206_vm0, %v677_v36  ;;  %v640_v27 = vmul.f32 %v1276_v58, %v601_v7  ;;  %843 = vrsqrt.f32 %v544_v50  ;;  %v514_v40 = vmul.f32 0.125, %v456_v54 }
 0x15b   : > { %v834_v3 = vpop.eup %833  ;;  %710 = vst.msk [vmem:[%s1290_s25 + $0x40] sm:$0xff] %vm206_vm0, %v678_v8  ;;  %v641_v13 = vmul.f32 %v1276_v58, %v602_v24  ;;  %v545_v56 = vadd.f32 1e-06, %v513_v62 }
 0x15c   : > { %v836_v2 = vpop.eup %835  ;;  %v679_v12 = vadd.f32 %v1282_v6, %v640_v27  ;;  %v603_v1 = vmul.f32 %v834_v3, %v1143_v17  ;;  %v546_v14 = vadd.f32 1e-06, %v514_v40  ;;  %v459_v28 = vpop.xlane.xlu1 %458 }
 0x15d   : > { %v462_v18 = vpop.xlane.xlu0 %461  ;;  %v680_v10 = vadd.f32 %v1282_v6, %v641_v13  ;;  %v604_v60 = vmul.f32 %v836_v2, %v1152_v43  ;;  %845 = vrsqrt.f32 %v545_v56  ;;  %v515_v61 = vmul.f32 0.125, %v459_v28 }
 0x15e   : > { %711 = vst.msk [vmem:[%s1290_s25 + $0x48] sm:$0xff] %vm206_vm0, %v679_v12  ;;  %v642_v44 = vmul.f32 %v1276_v58, %v603_v1  ;;  %847 = vrsqrt.f32 %v546_v14  ;;  %v516_v22 = vmul.f32 0.125, %v462_v18 }
 0x15f   : > { %v838_v5 = vpop.eup %837  ;;  %712 = vst.msk [vmem:[%s1290_s25 + $0x50] sm:$0xff] %vm206_vm0, %v680_v10  ;;  %v643_v17 = vmul.f32 %v1276_v58, %v604_v60  ;;  %v547_v23 = vadd.f32 1e-06, %v515_v61 }
 0x160   : > { %v840_v0 = vpop.eup %839  ;;  %v681_v16 = vadd.f32 %v1282_v6, %v642_v44  ;;  %v605_v43 = vmul.f32 %v838_v5, %v1155_v21  ;;  %v548_v55 = vadd.f32 1e-06, %v516_v22  ;;  %v465_v30 = vpop.xlane.xlu1 %464 }
 0x161   : > { %v468_v32 = vpop.xlane.xlu0 %467  ;;  %v682_v34 = vadd.f32 %v1282_v6, %v643_v17  ;;  %v606_v48 = vmul.f32 %v840_v0, %v1164_v59  ;;  %849 = vrsqrt.f32 %v547_v23  ;;  %v517_v38 = vmul.f32 0.125, %v465_v30 }
 0x162   : > { %713 = vst.msk [vmem:[%s1290_s25 + $0x58] sm:$0xff] %vm206_vm0, %v681_v16  ;;  %v644_v39 = vmul.f32 %v1276_v58, %v605_v43  ;;  %851 = vrsqrt.f32 %v548_v55  ;;  %v518_v42 = vmul.f32 0.125, %v468_v32 }
 0x163   : > { %v842_v26 = vpop.eup %841  ;;  %714 = vst.msk [vmem:[%s1290_s25 + $0x60] sm:$0xff] %vm206_vm0, %v682_v34  ;;  %v645_v21 = vmul.f32 %v1276_v58, %v606_v48  ;;  %v549_v20 = vadd.f32 1e-06, %v517_v38 }
 0x164   : > { %v844_v9 = vpop.eup %843  ;;  %v683_v11 = vadd.f32 %v1282_v6, %v644_v39  ;;  %v607_v59 = vmul.f32 %v842_v26, %v1167_v25  ;;  %v550_v46 = vadd.f32 1e-06, %v518_v42  ;;  %v471_v36 = vpop.xlane.xlu1 %470 }
 0x165   : > { %v474_v7 = vpop.xlane.xlu0 %473  ;;  %v684_v50 = vadd.f32 %v1282_v6, %v645_v21  ;;  %v608_v52 = vmul.f32 %v844_v9, %v1176_v15  ;;  %853 = vrsqrt.f32 %v549_v20  ;;  %v519_v54 = vmul.f32 0.125, %v471_v36 }
 0x166   : > { %715 = vst.msk [vmem:[%s1290_s25 + $0x68] sm:$0xff] %vm206_vm0, %v683_v11  ;;  %v646_v8 = vmul.f32 %v1276_v58, %v607_v59  ;;  %855 = vrsqrt.f32 %v550_v46  ;;  %v520_v24 = vmul.f32 0.125, %v474_v7 }
 0x167   : > { %v846_v62 = vpop.eup %845  ;;  %716 = vst.msk [vmem:[%s1290_s25 + $0x70] sm:$0xff] %vm206_vm0, %v684_v50  ;;  %v647_v25 = vmul.f32 %v1276_v58, %v608_v52  ;;  %v551_v27 = vadd.f32 1e-06, %v519_v54 }
 0x168   : > { %v848_v40 = vpop.eup %847  ;;  %v685_v3 = vadd.f32 %v1282_v6, %v646_v8  ;;  %v609_v15 = vmul.f32 %v846_v62, %v1179_v29  ;;  %v552_v13 = vadd.f32 1e-06, %v520_v24  ;;  %v477_v56 = vpop.xlane.xlu1 %476 }
 0x169   : > { %v480_v2 = vpop.xlane.xlu0 %479  ;;  %v686_v12 = vadd.f32 %v1282_v6, %v647_v25  ;;  %v610_v1 = vmul.f32 %v848_v40, %v1188_v31  ;;  %857 = vrsqrt.f32 %v551_v27  ;;  %v521_v14 = vmul.f32 0.125, %v477_v56 }
 0x16a   : > { %717 = vst.msk [vmem:[%s1290_s25 + $0x78] sm:$0xff] %vm206_vm0, %v685_v3  ;;  %v648_v28 = vmul.f32 %v1276_v58, %v609_v15  ;;  %859 = vrsqrt.f32 %v552_v13  ;;  %v522_v18 = vmul.f32 0.125, %v480_v2 }
 0x16b   : > { %v850_v10 = vpop.eup %849  ;;  %718 = vst.msk [vmem:[%s1290_s25 + $0x80] sm:$0xff] %vm206_vm0, %v686_v12  ;;  %v649_v29 = vmul.f32 %v1276_v58, %v610_v1  ;;  %v553_v60 = vadd.f32 1e-06, %v521_v14 }
 0x16c   : > { %v852_v61 = vpop.eup %851  ;;  %v687_v44 = vadd.f32 %v1282_v6, %v648_v28  ;;  %v611_v31 = vmul.f32 %v850_v10, %v1191_v33  ;;  %v554_v22 = vadd.f32 1e-06, %v522_v18  ;;  %v483_v5 = vpop.xlane.xlu1 %482 }
 0x16d   : > { %v486_v17 = vpop.xlane.xlu0 %485  ;;  %v688_v23 = vadd.f32 %v1282_v6, %v649_v29  ;;  %v612_v0 = vmul.f32 %v852_v61, %v1200_v47  ;;  %861 = vrsqrt.f32 %v553_v60  ;;  %v523_v16 = vmul.f32 0.125, %v483_v5 }
 0x16e   : > { %719 = vst.msk [vmem:[%s1290_s25 + $0x88] sm:$0xff] %vm206_vm0, %v687_v44  ;;  %v650_v43 = vmul.f32 %v1276_v58, %v611_v31  ;;  %863 = vrsqrt.f32 %v554_v22  ;;  %v524_v55 = vmul.f32 0.125, %v486_v17 }
 0x16f   : > { %v854_v30 = vpop.eup %853  ;;  %720 = vst.msk [vmem:[%s1290_s25 + $0x90] sm:$0xff] %vm206_vm0, %v688_v23  ;;  %v651_v33 = vmul.f32 %v1276_v58, %v612_v0  ;;  %v555_v32 = vadd.f32 1e-06, %v523_v16 }
 0x170   : > { %v856_v34 = vpop.eup %855  ;;  %v689_v48 = vadd.f32 %v1282_v6, %v650_v43  ;;  %v613_v47 = vmul.f32 %v854_v30, %v1203_v37  ;;  %v556_v38 = vadd.f32 1e-06, %v524_v55  ;;  %v489_v39 = vpop.xlane.xlu1 %488 }
 0x171   : > { %v492_v42 = vpop.xlane.xlu0 %491  ;;  %v690_v26 = vadd.f32 %v1282_v6, %v651_v33  ;;  %v614_v21 = vmul.f32 %v856_v34, %v1212_v63  ;;  %865 = vrsqrt.f32 %v555_v32  ;;  %v525_v20 = vmul.f32 0.125, %v489_v39 }
 0x172   : > { %721 = vst.msk [vmem:[%s1290_s25 + $0x98] sm:$0xff] %vm206_vm0, %v689_v48  ;;  %v652_v9 = vmul.f32 %v1276_v58, %v613_v47  ;;  %867 = vrsqrt.f32 %v556_v38  ;;  %v526_v11 = vmul.f32 0.125, %v492_v42 }
 0x173   : > { %v858_v59 = vpop.eup %857  ;;  %722 = vst.msk [vmem:[%s1290_s25 + $0xa0] sm:$0xff] %vm206_vm0, %v690_v26  ;;  %v653_v37 = vmul.f32 %v1276_v58, %v614_v21  ;;  %v557_v46 = vadd.f32 1e-06, %v525_v20 }
 0x174   : > { %v860_v36 = vpop.eup %859  ;;  %v691_v7 = vadd.f32 %v1282_v6, %v652_v9  ;;  %v615_v63 = vmul.f32 %v858_v59, %v1215_v41  ;;  %v558_v50 = vadd.f32 1e-06, %v526_v11  ;;  %v495_v52 = vpop.xlane.xlu1 %494 }
 0x175   : > { %v692_v54 = vadd.f32 %v1282_v6, %v653_v37  ;;  %v616_v8 = vmul.f32 %v860_v36, %v1224_v19  ;;  %869 = vrsqrt.f32 %v557_v46  ;;  %v527_v24 = vmul.f32 0.125, %v495_v52 }
 0x176   : > { %723 = vst.msk [vmem:[%s1290_s25 + $0xa8] sm:$0xff] %vm206_vm0, %v691_v7  ;;  %v654_v62 = vmul.f32 %v1276_v58, %v615_v63  ;;  %871 = vrsqrt.f32 %v558_v50 }
 0x177   : > { %v862_v25 = vpop.eup %861  ;;  %724 = vst.msk [vmem:[%s1290_s25 + $0xb0] sm:$0xff] %vm206_vm0, %v692_v54  ;;  %v655_v41 = vmul.f32 %v1276_v58, %v616_v8  ;;  %v559_v27 = vadd.f32 1e-06, %v527_v24 }
 0x178   : > { %v864_v40 = vpop.eup %863  ;;  %v693_v3 = vadd.f32 %v1282_v6, %v654_v62  ;;  %v617_v19 = vmul.f32 %v862_v25, %v1227_v45 }
 0x179   : > { %v694_v15 = vadd.f32 %v1282_v6, %v655_v41  ;;  %v618_v13 = vmul.f32 %v864_v40, %v1236_v35  ;;  %873 = vrsqrt.f32 %v559_v27 }
 0x17a   : > { %725 = vst.msk [vmem:[%s1290_s25 + $0xb8] sm:$0xff] %vm206_vm0, %v693_v3  ;;  %v656_v56 = vmul.f32 %v1276_v58, %v617_v19 }
 0x17b   : > { %v866_v2 = vpop.eup %865  ;;  %726 = vst.msk [vmem:[%s1290_s25 + $0xc0] sm:$0xff] %vm206_vm0, %v694_v15  ;;  %v657_v12 = vmul.f32 %v1276_v58, %v618_v13 }
 0x17c   : > { %v868_v1 = vpop.eup %867  ;;  %v695_v14 = vadd.f32 %v1282_v6, %v656_v56  ;;  %v619_v45 = vmul.f32 %v866_v2, %v1239_v49 }
 0x17d   : > { %v696_v28 = vadd.f32 %v1282_v6, %v657_v12  ;;  %v620_v35 = vmul.f32 %v868_v1, %v1248_v51 }
 0x17e   : > { %727 = vst.msk [vmem:[%s1290_s25 + $0xc8] sm:$0xff] %vm206_vm0, %v695_v14  ;;  %v658_v18 = vmul.f32 %v1276_v58, %v619_v45 }
 0x17f   : > { %v870_v10 = vpop.eup %869  ;;  %728 = vst.msk [vmem:[%s1290_s25 + $0xd0] sm:$0xff] %vm206_vm0, %v696_v28  ;;  %v659_v29 = vmul.f32 %v1276_v58, %v620_v35 }
 0x180   : > { %v872_v60 = vpop.eup %871  ;;  %v697_v61 = vadd.f32 %v1282_v6, %v658_v18  ;;  %v621_v49 = vmul.f32 %v870_v10, %v1251_v53 }
 0x181   : > { %v698_v44 = vadd.f32 %v1282_v6, %v659_v29  ;;  %v622_v51 = vmul.f32 %v872_v60, %v1260_v4 }
 0x182   : > { %729 = vst.msk [vmem:[%s1290_s25 + $0xd8] sm:$0xff] %vm206_vm0, %v697_v61  ;;  %v660_v31 = vmul.f32 %v1276_v58, %v621_v49 }
 0x183   : > { %v874_v22 = vpop.eup %873  ;;  %730 = vst.msk [vmem:[%s1290_s25 + $0xe0] sm:$0xff] %vm206_vm0, %v698_v44  ;;  %v661_v5 = vmul.f32 %v1276_v58, %v622_v51 }
 0x184   : > { %v699_v17 = vadd.f32 %v1282_v6, %v660_v31  ;;  %v623_v23 = vmul.f32 %v874_v22, %v1263_v57 }
 0x185   : > { %v700_v0 = vadd.f32 %v1282_v6, %v661_v5 }
 0x186   : > { %731 = vst.msk [vmem:[%s1290_s25 + $0xe8] sm:$0xff] %vm206_vm0, %v699_v17  ;;  %v662_v53 = vmul.f32 %v1276_v58, %v623_v23 }
 0x187   : > { %732 = vst.msk [vmem:[%s1290_s25 + $0xf0] sm:$0xff] %vm206_vm0, %v700_v0 }
 0x188   : > { %v701_v4 = vadd.f32 %v1282_v6, %v662_v53 }
 0x18a   : > { %733 = vst.msk [vmem:[%s1290_s25 + $0xf8] sm:$0xff] %vm206_vm0, %v701_v4 }
 0x18b PF: > { %s13_s12 = sadd.s32 1, %s881_s12  }
 0x18c   : > { %p10_p4 = scmp.ge.s32.totalorder %s13_s12, 4  }
 0x18e   :  { %12 = sbr.rel (!%p10_p4) target bundleno = 1 (0x1), region = 62 }

// kernel: _forward_core.40
= control target key start
LH: loop header
LB: loop body
LE: loop exit
PB: predicated region body
PF: predicated region fallthrough
CT: control target
= control target key end

     0   :  { %s749_s12 = smov 0   ;;  %s910_s0 = inlined_call_operand.vmem [shape: bf16[512,8], index: 0, kind: input, shape index: {}]   ;;  %s911_s1 = inlined_call_operand.vmem [shape: bf16[8,16], index: 1, kind: input, shape index: {}]   ;;  %s912_s2 = inlined_call_operand.vmem [shape: f32[1,16], index: 2, kind: input, shape index: {}]   ;;  %s913_s3 = inlined_call_operand.vmem [shape: f32[512,16], index: 3, kind: output, shape index: {}]  }
   0x1 LB: > { %s598_s13 = sadd.s32 4294967295, %s727_s12   ;;  %p602_p0 = scmp.ge.s32.totalorder %s727_s12, 1  ;;  %s727_s12 = sphi %s749_s12, %s13_s12  }
   0x2   : > { %p138_p1 = scmp.lt.s32.totalorder %s727_s12, 3 }
   0x4   : > { %p139_p2 = pnand %p602_p0, %p138_p1 }
   0x5   : > { %v207_v0 = vld [vmem:[%s911_s1] sm:$0xf] (!%p139_p2)  ;;  %vm344_vm0 = vcmask (!%p139_p2), 1043456   ;;  %s603_s16 = sshll.u32 (!%p139_p2), %s598_s13, 5  ;;  %vm295_vm1 = vcmask (!%p139_p2), 64512   ;;  %vm509_vm2 = vcmask (!%p139_p2), 130048  }
   0x6   : > { %142 = sbr.rel (%p139_p2) target bundleno = 261 (0x105), region = 32  ;;  %695 = vmatprep.subr.msk.bf16.mxu0 (!%p139_p2), %vm344_vm0, %v207_v0  ;;  %696 = vmatprep.subr.msk.bf16.mxu1 (!%p139_p2), %vm344_vm0, %v207_v0  ;;  %v346_v1 = vsel (!%p139_p2), %vm344_vm0, %v207_v0, 0  ;;  %p163_p3 = scmp.lt.s32.totalorder (!%p139_p2), %s603_s16, 63  ;;  %v804_v18 = vld [vmem:[%s912_s2] ss:$0 sm:$0xff] (!%p139_p2) }
   0x7   : > { %660 = vmatpush3.bf16.msra.mxu0 (!%p139_p2), %v346_v1  ;;  %694 = vmatpush3.bf16.msra.mxu1 (!%p139_p2), %v346_v1 }
   0xd   : > { %s915_s16 = smov (!%p163_p3, %s603_s16), 63 }
   0xe   : > { %s604_s17 = sshll.u32 %s915_s16, 2  ;;  %s606_s21 = sshll.u32 %s915_s16, 3 }
   0xf   : > { %s766_s20 = scalar_lea.vmem %s910_s0, %s604_s17  ;;  %s809_s26 = scalar_lea.vmem %s913_s3, %s606_s21 }
  0x10   : > { %v705_v2 = vld [vmem:[%s766_s20] sm:$0xff]   ;;  %v707_v4 = vld [vmem:[%s766_s20 + $0x8] sm:$0xff]   ;;  %v709_v6 = vld [vmem:[%s766_s20 + $0x10] sm:$0xff]  }
  0x11   : > { %v706_v3 = vld [vmem:[%s766_s20 + $0x40] sm:$0xff]   ;;  %661 = vmatprep.mubr.msk.bf16.mxu0 %vm295_vm1, %v705_v2  ;;  %v708_v5 = vld [vmem:[%s766_s20 + $0x48] sm:$0xff]   ;;  %v710_v7 = vld [vmem:[%s766_s20 + $0x50] sm:$0xff]  }
  0x12   : > { %677 = vmatprep.mubr.msk.bf16.mxu1 %vm295_vm1, %v706_v3  ;;  %662 = vmatmul.mubr.msk.bf16.vlgmr.msra.gmra.mrb[0].mxu0 %vm295_vm1, %v707_v4  ;;  %v711_v8 = vld [vmem:[%s766_s20 + $0x18] sm:$0xff]   ;;  %v713_v10 = vld [vmem:[%s766_s20 + $0x20] sm:$0xff]   ;;  %v715_v12 = vld [vmem:[%s766_s20 + $0x28] sm:$0xff]  }
  0x13   : > { %678 = vmatmul.mubr.msk.bf16.vlgmr.msra.gmra.mrb[0].mxu1 %vm295_vm1, %v708_v5  ;;  %665 = vmatprep.mubr.msk.bf16.mxu0 %vm295_vm1, %v709_v6  ;;  %v712_v9 = vld [vmem:[%s766_s20 + $0x58] sm:$0xff]   ;;  %v714_v11 = vld [vmem:[%s766_s20 + $0x60] sm:$0xff]   ;;  %v716_v13 = vld [vmem:[%s766_s20 + $0x68] sm:$0xff]  }
  0x14   : > { %681 = vmatprep.mubr.msk.bf16.mxu1 %vm295_vm1, %v710_v7  ;;  %v717_v14 = vld [vmem:[%s766_s20 + $0x30] sm:$0xff]   ;;  %v719_v16 = vld [vmem:[%s766_s20 + $0x38] sm:$0xff]  }
  0x15   : > { %v718_v15 = vld [vmem:[%s766_s20 + $0x70] sm:$0xff]   ;;  %v720_v17 = vld [vmem:[%s766_s20 + $0x78] sm:$0xff]  }
  0x1a   : > { %666 = vmatmul.mubr.msk.bf16.gmra.mrb[4].mxu0 %vm295_vm1, %v711_v8 }
  0x1b   : > { %682 = vmatmul.mubr.msk.bf16.gmra.mrb[4].mxu1 %vm295_vm1, %v712_v9  ;;  %669 = vmatprep.mubr.msk.bf16.mxu0 %vm295_vm1, %v713_v10 }
  0x1c   : > { %685 = vmatprep.mubr.msk.bf16.mxu1 %vm295_vm1, %v714_v11 }
  0x22   : > { %670 = vmatmul.mubr.msk.bf16.gmra.mrb[8].mxu0 %vm295_vm1, %v715_v12 }
  0x23   : > { %686 = vmatmul.mubr.msk.bf16.gmra.mrb[8].mxu1 %vm295_vm1, %v716_v13  ;;  %673 = vmatprep.mubr.msk.bf16.mxu0 %vm295_vm1, %v717_v14 }
  0x24   : > { %689 = vmatprep.mubr.msk.bf16.mxu1 %vm295_vm1, %v718_v15 }
  0x2a   : > { %674 = vmatmul.mubr.msk.bf16.gmra.mrb[12].mxu0 %vm295_vm1, %v719_v16 }
  0x2b   : > { %690 = vmatmul.mubr.msk.bf16.gmra.mrb[12].mxu1 %vm295_vm1, %v720_v17 }
  0xe5   : > { %v663_v19 = vpop.f32.mrb[0].mxu0 }
  0xe6   : > { %v391_v20 = vadd.f32 %v663_v19, %v804_v18  ;;  %v679_v21 = vpop.f32.mrb[0].mxu1  ;;  %v382_v22 = vpop.f32.mrb[1].mxu0 }
  0xe7   : > { %v455_v23 = vadd.f32 %v679_v21, %v804_v18  ;;  %v383_v24 = vadd.f32 %v804_v18, %v382_v22  ;;  %v446_v25 = vpop.f32.mrb[1].mxu1  ;;  %v664_v26 = vpop.f32.mrb[2].mxu0 }
  0xe8   : > { %512 = vst.msk [vmem:[%s809_s26 + $0x10] sm:$0xff] %vm509_vm2, %v391_v20  ;;  %v447_v27 = vadd.f32 %v804_v18, %v446_v25  ;;  %v394_v28 = vadd.f32 %v664_v26, %v804_v18  ;;  %v680_v29 = vpop.f32.mrb[2].mxu1  ;;  %v385_v30 = vpop.f32.mrb[3].mxu0 }
  0xe9   : > { %528 = vst.msk [vmem:[%s809_s26 + $0x90] sm:$0xff] %vm509_vm2, %v455_v23  ;;  %510 = vst.msk [vmem:[%s809_s26] sm:$0xff] %vm509_vm2, %v383_v24  ;;  %v458_v31 = vadd.f32 %v680_v29, %v804_v18  ;;  %v386_v32 = vadd.f32 %v804_v18, %v385_v30  ;;  %v449_v33 = vpop.f32.mrb[3].mxu1 }
  0xea   : > { %526 = vst.msk [vmem:[%s809_s26 + $0x80] sm:$0xff] %vm509_vm2, %v447_v27  ;;  %513 = vst.msk [vmem:[%s809_s26 + $0x18] sm:$0xff] %vm509_vm2, %v394_v28  ;;  %v450_v34 = vadd.f32 %v804_v18, %v449_v33 }
  0xeb   : > { %529 = vst.msk [vmem:[%s809_s26 + $0x98] sm:$0xff] %vm509_vm2, %v458_v31  ;;  %511 = vst.msk [vmem:[%s809_s26 + $0x8] sm:$0xff] %vm509_vm2, %v386_v32 }
  0xec   : > { %527 = vst.msk [vmem:[%s809_s26 + $0x88] sm:$0xff] %vm509_vm2, %v450_v34 }
  0xed   : > { %v667_v35 = vpop.f32.mrb[4].mxu0 }
  0xee   : > { %v407_v36 = vadd.f32 %v667_v35, %v804_v18  ;;  %v683_v37 = vpop.f32.mrb[4].mxu1  ;;  %v398_v38 = vpop.f32.mrb[5].mxu0 }
  0xef   : > { %v471_v39 = vadd.f32 %v683_v37, %v804_v18  ;;  %v399_v40 = vadd.f32 %v804_v18, %v398_v38  ;;  %v462_v41 = vpop.f32.mrb[5].mxu1  ;;  %v668_v42 = vpop.f32.mrb[6].mxu0 }
  0xf0   : > { %516 = vst.msk [vmem:[%s809_s26 + $0x30] sm:$0xff] %vm509_vm2, %v407_v36  ;;  %v463_v43 = vadd.f32 %v804_v18, %v462_v41  ;;  %v410_v44 = vadd.f32 %v668_v42, %v804_v18  ;;  %v684_v45 = vpop.f32.mrb[6].mxu1  ;;  %v401_v46 = vpop.f32.mrb[7].mxu0 }
  0xf1   : > { %532 = vst.msk [vmem:[%s809_s26 + $0xb0] sm:$0xff] %vm509_vm2, %v471_v39  ;;  %514 = vst.msk [vmem:[%s809_s26 + $0x20] sm:$0xff] %vm509_vm2, %v399_v40  ;;  %v474_v47 = vadd.f32 %v684_v45, %v804_v18  ;;  %v402_v48 = vadd.f32 %v804_v18, %v401_v46  ;;  %v465_v49 = vpop.f32.mrb[7].mxu1 }
  0xf2   : > { %530 = vst.msk [vmem:[%s809_s26 + $0xa0] sm:$0xff] %vm509_vm2, %v463_v43  ;;  %517 = vst.msk [vmem:[%s809_s26 + $0x38] sm:$0xff] %vm509_vm2, %v410_v44  ;;  %v466_v50 = vadd.f32 %v804_v18, %v465_v49 }
  0xf3   : > { %533 = vst.msk [vmem:[%s809_s26 + $0xb8] sm:$0xff] %vm509_vm2, %v474_v47  ;;  %515 = vst.msk [vmem:[%s809_s26 + $0x28] sm:$0xff] %vm509_vm2, %v402_v48 }
  0xf4   : > { %531 = vst.msk [vmem:[%s809_s26 + $0xa8] sm:$0xff] %vm509_vm2, %v466_v50 }
  0xf5   : > { %v671_v51 = vpop.f32.mrb[8].mxu0 }
  0xf6   : > { %v423_v52 = vadd.f32 %v671_v51, %v804_v18  ;;  %v687_v53 = vpop.f32.mrb[8].mxu1  ;;  %v414_v54 = vpop.f32.mrb[9].mxu0 }
  0xf7   : > { %v487_v55 = vadd.f32 %v687_v53, %v804_v18  ;;  %v415_v56 = vadd.f32 %v804_v18, %v414_v54  ;;  %v478_v57 = vpop.f32.mrb[9].mxu1  ;;  %v672_v58 = vpop.f32.mrb[10].mxu0 }
  0xf8   : > { %520 = vst.msk [vmem:[%s809_s26 + $0x50] sm:$0xff] %vm509_vm2, %v423_v52  ;;  %v479_v59 = vadd.f32 %v804_v18, %v478_v57  ;;  %v426_v60 = vadd.f32 %v672_v58, %v804_v18  ;;  %v688_v61 = vpop.f32.mrb[10].mxu1  ;;  %v417_v62 = vpop.f32.mrb[11].mxu0 }
  0xf9   : > { %536 = vst.msk [vmem:[%s809_s26 + $0xd0] sm:$0xff] %vm509_vm2, %v487_v55  ;;  %518 = vst.msk [vmem:[%s809_s26 + $0x40] sm:$0xff] %vm509_vm2, %v415_v56  ;;  %v490_v63 = vadd.f32 %v688_v61, %v804_v18  ;;  %v418_v0 = vadd.f32 %v804_v18, %v417_v62  ;;  %v481_v1 = vpop.f32.mrb[11].mxu1 }
  0xfa   : > { %534 = vst.msk [vmem:[%s809_s26 + $0xc0] sm:$0xff] %vm509_vm2, %v479_v59  ;;  %521 = vst.msk [vmem:[%s809_s26 + $0x58] sm:$0xff] %vm509_vm2, %v426_v60  ;;  %v482_v2 = vadd.f32 %v804_v18, %v481_v1 }
  0xfb   : > { %537 = vst.msk [vmem:[%s809_s26 + $0xd8] sm:$0xff] %vm509_vm2, %v490_v63  ;;  %519 = vst.msk [vmem:[%s809_s26 + $0x48] sm:$0xff] %vm509_vm2, %v418_v0 }
  0xfc   : > { %535 = vst.msk [vmem:[%s809_s26 + $0xc8] sm:$0xff] %vm509_vm2, %v482_v2 }
  0xfd   : > { %v675_v3 = vpop.f32.mrb[12].mxu0 }
  0xfe   : > { %v439_v4 = vadd.f32 %v675_v3, %v804_v18  ;;  %v691_v5 = vpop.f32.mrb[12].mxu1  ;;  %v430_v6 = vpop.f32.mrb[13].mxu0 }
  0xff   : > { %v503_v7 = vadd.f32 %v691_v5, %v804_v18  ;;  %v431_v8 = vadd.f32 %v804_v18, %v430_v6  ;;  %v494_v9 = vpop.f32.mrb[13].mxu1  ;;  %v676_v10 = vpop.f32.mrb[14].mxu0 }
 0x100   : > { %524 = vst.msk [vmem:[%s809_s26 + $0x70] sm:$0xff] %vm509_vm2, %v439_v4  ;;  %v495_v11 = vadd.f32 %v804_v18, %v494_v9  ;;  %v442_v12 = vadd.f32 %v676_v10, %v804_v18  ;;  %v692_v13 = vpop.f32.mrb[14].mxu1  ;;  %v433_v14 = vpop.f32.mrb[15].mxu0 }
 0x101   : > { %540 = vst.msk [vmem:[%s809_s26 + $0xf0] sm:$0xff] %vm509_vm2, %v503_v7  ;;  %522 = vst.msk [vmem:[%s809_s26 + $0x60] sm:$0xff] %vm509_vm2, %v431_v8  ;;  %v506_v15 = vadd.f32 %v692_v13, %v804_v18  ;;  %v434_v16 = vadd.f32 %v804_v18, %v433_v14  ;;  %v497_v17 = vpop.f32.mrb[15].mxu1 }
 0x102   : > { %538 = vst.msk [vmem:[%s809_s26 + $0xe0] sm:$0xff] %vm509_vm2, %v495_v11  ;;  %525 = vst.msk [vmem:[%s809_s26 + $0x78] sm:$0xff] %vm509_vm2, %v442_v12  ;;  %v498_v19 = vadd.f32 %v804_v18, %v497_v17 }
 0x103   : > { %541 = vst.msk [vmem:[%s809_s26 + $0xf8] sm:$0xff] %vm509_vm2, %v506_v15  ;;  %523 = vst.msk [vmem:[%s809_s26 + $0x68] sm:$0xff] %vm509_vm2, %v434_v16 }
 0x104   : > { %539 = vst.msk [vmem:[%s809_s26 + $0xe8] sm:$0xff] %vm509_vm2, %v498_v19 }
 0x105 PF: > { %s13_s12 = sadd.s32 1, %s727_s12  }
 0x106   : > { %p10_p4 = scmp.ge.s32.totalorder %s13_s12, 4  }
 0x108   :  { %12 = sbr.rel (!%p10_p4) target bundleno = 1 (0x1), region = 62 }

// kernel: _forward_core.41
= control target key start
LH: loop header
LB: loop body
LE: loop exit
PB: predicated region body
PF: predicated region fallthrough
CT: control target
= control target key end

     0   :  { %s1409_s18 = smov 0   ;;  %s2002_s0 = inlined_call_operand.vmem [shape: bf16[2048,36], index: 0, kind: input, shape index: {}]   ;;  %s2003_s1 = inlined_call_operand.vmem [shape: bf16[36,8], index: 1, kind: input, shape index: {}]   ;;  %s2004_s2 = inlined_call_operand.vmem [shape: f32[1,8], index: 2, kind: input, shape index: {}]   ;;  %s2005_s3 = inlined_call_operand.vmem [shape: f32[1,8], index: 3, kind: input, shape index: {}]   ;;  %s2006_s4 = inlined_call_operand.vmem [shape: f32[1,8], index: 4, kind: input, shape index: {}]   ;;  %s2007_s5 = inlined_call_operand.vmem [shape: f32[2048,8], index: 5, kind: output, shape index: {}]  }
   0x1 LB: > { %s1166_s19 = sadd.s32 4294967295, %s1377_s18   ;;  %p1170_p0 = scmp.ge.s32.totalorder %s1377_s18, 1  ;;  %s1377_s18 = sphi %s1409_s18, %s15_s18  }
   0x2   : > { %p188_p1 = scmp.lt.s32.totalorder %s1377_s18, 9 }
   0x4   : > { %p189_p2 = pnand %p1170_p0, %p188_p1 }
   0x5   : > { %v1288_v0 = vld [vmem:[%s2003_s1] sm:$0xff] (!%p189_p2)   ;;  %v1289_v1 = vld [vmem:[%s2003_s1 + $0x8] sm:$0xff] (!%p189_p2)   ;;  %s1171_s24 = sshll.u32 (!%p189_p2), %s1166_s19, 5  ;;  %v1290_v2 = vld [vmem:[%s2003_s1 + $0x10] ss:$0 sps:$4 sm:$0x33] (!%p189_p2)  }
   0x6   : > { %192 = sbr.rel (%p189_p2) target bundleno = 611 (0x263), region = 40  ;;  %1234 = vmatprep.subr.bf16.mxu0 (!%p189_p2), %v1288_v0  ;;  %1272 = vmatprep.subr.bf16.mxu1 (!%p189_p2), %v1288_v0  ;;  %p217_p3 = scmp.lt.s32.totalorder (!%p189_p2), %s1171_s24, 255  ;;  %vm417_vm0 = vcmask (!%p189_p2), 1041408   ;;  %vm368_vm1 = vcmask (!%p189_p2), 293888   ;;  %v1469_v20 = vld [vmem:[%s2004_s2] ss:$0 sm:$0xff] (!%p189_p2) }
   0x7   : > { %1235 = vmatpush3.bf16.msra.mxu0 (!%p189_p2), %v1288_v0  ;;  %1275 = vmatpush3.bf16.msra.mxu1 (!%p189_p2), %v1288_v0  ;;  %v419_v3 = vsel (!%p189_p2), %vm417_vm0, %v1290_v2, 0  ;;  %vm582_vm2 = vcmask (!%p189_p2), 64512  }
   0x8   : > { %1236 = vmatprep.subr.bf16.mxu0 (!%p189_p2), %v1289_v1  ;;  %1273 = vmatprep.subr.bf16.mxu1 (!%p189_p2), %v1289_v1 }
   0xb   : > { %1237 = vmatpush3.bf16.msra.mxu0 (!%p189_p2), %v1289_v1  ;;  %1276 = vmatpush3.bf16.msra.mxu1 (!%p189_p2), %v1289_v1 }
   0xc   : > { %1278 = vmatprep.subr.msk.bf16.mxu0 (!%p189_p2), %vm417_vm0, %v1290_v2  ;;  %1279 = vmatprep.subr.msk.bf16.mxu1 (!%p189_p2), %vm417_vm0, %v1290_v2 }
   0xd   : > { %s2009_s24 = smov (!%p217_p3, %s1171_s24), 255 }
   0xe   : > { %s1172_s27 = sshll.u32 %s2009_s24, 2  ;;  %s1174_s10 = sshll.u32 %s2009_s24, 3 }
   0xf   : > { %s1432_s30 = scalar_lea.vmem %s2002_s0, %s1172_s27  ;;  %1239 = vmatpush3.bf16.msra.mxu0 %v419_v3  ;;  %1277 = vmatpush3.bf16.msra.mxu1 %v419_v3  ;;  %s1839_s15 = scalar_lea.vmem %s2007_s5, %s1174_s10 }
  0x10   : > { %v1291_v4 = vld [vmem:[%s1432_s30] sm:$0xff]   ;;  %v1293_v6 = vld [vmem:[%s1432_s30 + $0x8] sm:$0xff]   ;;  %v1295_v8 = vld [vmem:[%s1432_s30 + $0x10] sm:$0xff]  }
  0x11   : > { %v1292_v5 = vld [vmem:[%s1432_s30 + $0x40] sm:$0xff]   ;;  %1240 = vmatprep.mubr.msk.bf16.mxu0 %vm368_vm1, %v1291_v4  ;;  %v1294_v7 = vld [vmem:[%s1432_s30 + $0x48] sm:$0xff]   ;;  %v1297_v9 = vld [vmem:[%s1432_s30 + $0x50] sm:$0xff]  }
  0x12   : > { %1256 = vmatprep.mubr.msk.bf16.mxu1 %vm368_vm1, %v1292_v5  ;;  %1241 = vmatmul.mubr.msk.bf16.vlgmr.msra.gmra.mrb[0].mxu0 %vm368_vm1, %v1293_v6  ;;  %v1296_v10 = vld [vmem:[%s1432_s30 + $0x18] sm:$0xff]   ;;  %v1299_v12 = vld [vmem:[%s1432_s30 + $0x20] sm:$0xff]   ;;  %v1300_v14 = vld [vmem:[%s1432_s30 + $0x28] sm:$0xff]  }
  0x13   : > { %1257 = vmatmul.mubr.msk.bf16.vlgmr.msra.gmra.mrb[0].mxu1 %vm368_vm1, %v1294_v7  ;;  %1244 = vmatprep.mubr.msk.bf16.mxu0 %vm368_vm1, %v1295_v8  ;;  %v1298_v11 = vld [vmem:[%s1432_s30 + $0x58] sm:$0xff]   ;;  %v1301_v13 = vld [vmem:[%s1432_s30 + $0x60] sm:$0xff]   ;;  %v1302_v15 = vld [vmem:[%s1432_s30 + $0x68] sm:$0xff]  }
  0x14   : > { %1260 = vmatprep.mubr.msk.bf16.mxu1 %vm368_vm1, %v1297_v9  ;;  %v1303_v16 = vld [vmem:[%s1432_s30 + $0x30] sm:$0xff]   ;;  %v1304_v18 = vld [vmem:[%s1432_s30 + $0x38] sm:$0xff]  }
  0x15   : > { %v1305_v17 = vld [vmem:[%s1432_s30 + $0x70] sm:$0xff]   ;;  %v1306_v19 = vld [vmem:[%s1432_s30 + $0x78] sm:$0xff]  }
  0x1a   : > { %1245 = vmatmul.mubr.msk.bf16.gmra.mrb[4].mxu0 %vm368_vm1, %v1296_v10 }
  0x1b   : > { %1261 = vmatmul.mubr.msk.bf16.gmra.mrb[4].mxu1 %vm368_vm1, %v1298_v11  ;;  %1248 = vmatprep.mubr.msk.bf16.mxu0 %vm368_vm1, %v1299_v12 }
  0x1c   : > { %1264 = vmatprep.mubr.msk.bf16.mxu1 %vm368_vm1, %v1301_v13 }
  0x22   : > { %1249 = vmatmul.mubr.msk.bf16.gmra.mrb[8].mxu0 %vm368_vm1, %v1300_v14 }
  0x23   : > { %1265 = vmatmul.mubr.msk.bf16.gmra.mrb[8].mxu1 %vm368_vm1, %v1302_v15  ;;  %1252 = vmatprep.mubr.msk.bf16.mxu0 %vm368_vm1, %v1303_v16 }
  0x24   : > { %1268 = vmatprep.mubr.msk.bf16.mxu1 %vm368_vm1, %v1305_v17 }
  0x2a   : > { %1253 = vmatmul.mubr.msk.bf16.gmra.mrb[12].mxu0 %vm368_vm1, %v1304_v18 }
  0x2b   : > { %1269 = vmatmul.mubr.msk.bf16.gmra.mrb[12].mxu1 %vm368_vm1, %v1306_v19 }
  0xe5   : > { %v1242_v21 = vpop.f32.mrb[0].mxu0 }
  0xe6   : > { %v1258_v22 = vpop.f32.mrb[0].mxu1  ;;  %v1472_v23 = vadd.f32 %v1242_v21, %v1469_v20  ;;  %v455_v25 = vpop.f32.mrb[1].mxu0 }
  0xe7   : > { %v1475_v24 = vadd.f32 %v1258_v22, %v1469_v20  ;;  %v519_v26 = vpop.f32.mrb[1].mxu1  ;;  %v1243_v27 = vpop.f32.mrb[2].mxu0  ;;  %v1478_v29 = vadd.f32 %v1469_v20, %v455_v25 }
  0xe8   : > { %v1259_v28 = vpop.f32.mrb[2].mxu1  ;;  %v1481_v30 = vadd.f32 %v1243_v27, %v1469_v20  ;;  %v458_v31 = vpop.f32.mrb[3].mxu0  ;;  %v589_v34 = vsel %vm582_vm2, %v1472_v23, 0.0  ;;  %v1488_v35 = vadd.f32 %v1469_v20, %v519_v26 }
  0xe9   : > { %v522_v32 = vpop.f32.mrb[3].mxu1  ;;  %v637_v33 = vsel %vm582_vm2, %v1475_v24, 0.0  ;;  %590 = vadd.xlane.f32.xlu1 %v589_v34  ;;  %v1491_v36 = vadd.f32 %v1259_v28, %v1469_v20  ;;  %v583_v38 = vsel %vm582_vm2, %v1478_v29, 0.0  ;;  %v1498_v45 = vadd.f32 %v1469_v20, %v458_v31 }
  0xea   : > { %638 = vadd.xlane.f32.xlu0 %v637_v33  ;;  %v592_v37 = vsel %vm582_vm2, %v1481_v30, 0.0  ;;  %v1501_v46 = vadd.f32 %v1469_v20, %v522_v32  ;;  %v631_v48 = vsel %vm582_vm2, %v1488_v35, 0.0 }
  0xeb   : > { %v640_v47 = vsel %vm582_vm2, %v1491_v36, 0.0  ;;  %v586_v54 = vsel %vm582_vm2, %v1498_v45, 0.0 }
  0xec   : > { %v634_v53 = vsel %vm582_vm2, %v1501_v46, 0.0 }
  0xed   : > { %593 = vadd.xlane.f32.xlu1 %v592_v37  ;;  %v1246_v39 = vpop.f32.mrb[4].mxu0 }
  0xee   : > { %584 = vadd.xlane.f32.xlu0 %v583_v38  ;;  %v1262_v40 = vpop.f32.mrb[4].mxu1  ;;  %v471_v41 = vpop.f32.mrb[5].mxu0  ;;  %v1508_v51 = vadd.f32 %v1246_v39, %v1469_v20 }
  0xef   : > { %v535_v42 = vpop.f32.mrb[5].mxu1  ;;  %v1247_v43 = vpop.f32.mrb[6].mxu0  ;;  %v1518_v57 = vadd.f32 %v1262_v40, %v1469_v20  ;;  %v1532_v5 = vadd.f32 %v1469_v20, %v471_v41 }
  0xf0   : > { %v1263_v44 = vpop.f32.mrb[6].mxu1  ;;  %v474_v49 = vpop.f32.mrb[7].mxu0  ;;  %v1511_v52 = vadd.f32 %v1247_v43, %v1469_v20  ;;  %v601_v60 = vsel %vm582_vm2, %v1508_v51, 0.0  ;;  %v1538_v13 = vadd.f32 %v1469_v20, %v535_v42 }
  0xf1   : > { %v538_v50 = vpop.f32.mrb[7].mxu1  ;;  %641 = vadd.xlane.f32.xlu1 %v640_v47  ;;  %v1521_v58 = vadd.f32 %v1263_v44, %v1469_v20  ;;  %v649_v4 = vsel %vm582_vm2, %v1518_v57, 0.0  ;;  %v1535_v6 = vadd.f32 %v1469_v20, %v474_v49  ;;  %v595_v16 = vsel %vm582_vm2, %v1532_v5, 0.0 }
  0xf2   : > { %632 = vadd.xlane.f32.xlu0 %v631_v48  ;;  %v604_v59 = vsel %vm582_vm2, %v1511_v52, 0.0  ;;  %v1541_v14 = vadd.f32 %v1469_v20, %v538_v50  ;;  %v643_v25 = vsel %vm582_vm2, %v1538_v13, 0.0 }
  0xf3   : > { %v652_v3 = vsel %vm582_vm2, %v1521_v58, 0.0  ;;  %v598_v15 = vsel %vm582_vm2, %v1535_v6, 0.0 }
  0xf4   : > { %v646_v22 = vsel %vm582_vm2, %v1541_v14, 0.0 }
  0xf5   : > { %635 = vadd.xlane.f32.xlu1 %v634_v53  ;;  %v1250_v55 = vpop.f32.mrb[8].mxu0 }
  0xf6   : > { %587 = vadd.xlane.f32.xlu0 %v586_v54  ;;  %v1266_v56 = vpop.f32.mrb[8].mxu1  ;;  %v487_v61 = vpop.f32.mrb[9].mxu0  ;;  %v1548_v19 = vadd.f32 %v1250_v55, %v1469_v20 }
  0xf7   : > { %v551_v62 = vpop.f32.mrb[9].mxu1  ;;  %v1251_v63 = vpop.f32.mrb[10].mxu0  ;;  %v1558_v26 = vadd.f32 %v1266_v56, %v1469_v20  ;;  %v1572_v34 = vadd.f32 %v1469_v20, %v487_v61 }
  0xf8   : > { %v1267_v0 = vpop.f32.mrb[10].mxu1  ;;  %v490_v1 = vpop.f32.mrb[11].mxu0  ;;  %v1551_v21 = vadd.f32 %v1251_v63, %v1469_v20  ;;  %v613_v31 = vsel %vm582_vm2, %v1548_v19, 0.0  ;;  %v1578_v38 = vadd.f32 %v1469_v20, %v551_v62 }
  0xf9   : > { %v554_v2 = vpop.f32.mrb[11].mxu1  ;;  %605 = vadd.xlane.f32.xlu1 %v604_v59  ;;  %v1561_v27 = vadd.f32 %v1267_v0, %v1469_v20  ;;  %v661_v33 = vsel %vm582_vm2, %v1558_v26, 0.0  ;;  %v1575_v37 = vadd.f32 %v1469_v20, %v490_v1  ;;  %v607_v41 = vsel %vm582_vm2, %v1572_v34, 0.0 }
  0xfa   : > { %602 = vadd.xlane.f32.xlu0 %v601_v60  ;;  %v616_v28 = vsel %vm582_vm2, %v1551_v21, 0.0  ;;  %v1581_v39 = vadd.f32 %v1469_v20, %v554_v2  ;;  %v655_v47 = vsel %vm582_vm2, %v1578_v38, 0.0 }
  0xfb   : > { %v664_v32 = vsel %vm582_vm2, %v1561_v27, 0.0  ;;  %v610_v40 = vsel %vm582_vm2, %v1575_v37, 0.0 }
  0xfc   : > { %v658_v44 = vsel %vm582_vm2, %v1581_v39, 0.0 }
  0xfd   : > { %653 = vadd.xlane.f32.xlu1 %v652_v3  ;;  %v1254_v7 = vpop.f32.mrb[12].mxu0 }
  0xfe   : > { %650 = vadd.xlane.f32.xlu0 %v649_v4  ;;  %v1270_v8 = vpop.f32.mrb[12].mxu1  ;;  %v503_v9 = vpop.f32.mrb[13].mxu0  ;;  %v1588_v42 = vadd.f32 %v1254_v7, %v1469_v20 }
  0xff   : > { %v567_v10 = vpop.f32.mrb[13].mxu1  ;;  %v1255_v11 = vpop.f32.mrb[14].mxu0  ;;  %v1602_v50 = vadd.f32 %v1469_v20, %v503_v9  ;;  %v1622_v62 = vadd.f32 %v1270_v8, %v1469_v20 }
 0x100   : > { %v1271_v12 = vpop.f32.mrb[14].mxu1  ;;  %v506_v17 = vpop.f32.mrb[15].mxu0  ;;  %v1591_v43 = vadd.f32 %v1255_v11, %v1469_v20  ;;  %v625_v49 = vsel %vm582_vm2, %v1588_v42, 0.0  ;;  %v1608_v54 = vadd.f32 %v1469_v20, %v567_v10 }
 0x101   : > { %v570_v18 = vpop.f32.mrb[15].mxu1  ;;  %599 = vadd.xlane.f32.xlu1 %v598_v15  ;;  %v1605_v53 = vadd.f32 %v1469_v20, %v506_v17  ;;  %v619_v59 = vsel %vm582_vm2, %v1602_v50, 0.0  ;;  %v1625_v63 = vadd.f32 %v1271_v12, %v1469_v20  ;;  %v673_v1 = vsel %vm582_vm2, %v1622_v62, 0.0 }
 0x102   : > { %596 = vadd.xlane.f32.xlu0 %v595_v16  ;;  %v628_v48 = vsel %vm582_vm2, %v1591_v43, 0.0  ;;  %v1611_v55 = vadd.f32 %v1469_v20, %v570_v18  ;;  %v667_v61 = vsel %vm582_vm2, %v1608_v54, 0.0 }
 0x103   : > { %v622_v56 = vsel %vm582_vm2, %v1605_v53, 0.0  ;;  %v676_v0 = vsel %vm582_vm2, %v1625_v63, 0.0 }
 0x104   : > { %v670_v60 = vsel %vm582_vm2, %v1611_v55, 0.0 }
 0x105   : > { %647 = vadd.xlane.f32.xlu1 %v646_v22 }
 0x106   : > { %644 = vadd.xlane.f32.xlu0 %v643_v25 }
 0x109   : > { %617 = vadd.xlane.f32.xlu1 %v616_v28 }
 0x10a   : > { %614 = vadd.xlane.f32.xlu0 %v613_v31 }
 0x10d   : > { %665 = vadd.xlane.f32.xlu1 %v664_v32 }
 0x10e   : > { %662 = vadd.xlane.f32.xlu0 %v661_v33 }
 0x111   : > { %611 = vadd.xlane.f32.xlu1 %v610_v40 }
 0x112   : > { %608 = vadd.xlane.f32.xlu0 %v607_v41 }
 0x115   : > { %659 = vadd.xlane.f32.xlu1 %v658_v44 }
 0x116   : > { %656 = vadd.xlane.f32.xlu0 %v655_v47 }
 0x119   : > { %629 = vadd.xlane.f32.xlu1 %v628_v48 }
 0x11a   : > { %626 = vadd.xlane.f32.xlu0 %v625_v49 }
 0x11d   : > { %623 = vadd.xlane.f32.xlu1 %v622_v56 }
 0x11e   : > { %620 = vadd.xlane.f32.xlu0 %v619_v59 }
 0x121   : > { %671 = vadd.xlane.f32.xlu1 %v670_v60 }
 0x122   : > { %668 = vadd.xlane.f32.xlu0 %v667_v61 }
 0x125   : > { %677 = vadd.xlane.f32.xlu1 %v676_v0 }
 0x126   : > { %674 = vadd.xlane.f32.xlu0 %v673_v1 }
 0x176   : > { %v591_v3 = vpop.xlane.xlu1 %590 }
 0x177   : > { %v639_v2 = vpop.xlane.xlu0 %638  ;;  %v682_v7 = vmul.f32 0.125, %v591_v3 }
 0x178   : > { %v698_v4 = vmul.f32 0.125, %v639_v2 }
 0x179   : > { %v1635_v20 = vsub.f32 %v1472_v23, %v682_v7 }
 0x17a   : > { %v1632_v8 = vsub.f32 %v1475_v24, %v698_v4  ;;  %v594_v9 = vpop.xlane.xlu1 %593 }
 0x17b   : > { %v585_v10 = vpop.xlane.xlu0 %584  ;;  %v683_v11 = vmul.f32 0.125, %v594_v9  ;;  %v746_v15 = vmul.f32 %v1635_v20, %v1635_v20 }
 0x17c   : > { %v680_v12 = vmul.f32 0.125, %v585_v10  ;;  %v762_v24 = vmul.f32 %v1632_v8, %v1632_v8 }
 0x17d   : > { %v1640_v16 = vsub.f32 %v1481_v30, %v683_v11  ;;  %v782_v18 = vsel %vm582_vm2, %v746_v15, 0.0 }
 0x17e   : > { %v1643_v17 = vsub.f32 %v1478_v29, %v680_v12  ;;  %v642_v23 = vpop.xlane.xlu1 %641  ;;  %783 = vadd.xlane.f32.xlu0 %v782_v18  ;;  %v830_v40 = vsel %vm582_vm2, %v762_v24, 0.0 }
 0x17f   : > { %v633_v22 = vpop.xlane.xlu0 %632  ;;  %v699_v25 = vmul.f32 0.125, %v642_v23  ;;  %v747_v31 = vmul.f32 %v1640_v16, %v1640_v16 }
 0x180   : > { %v696_v28 = vmul.f32 0.125, %v633_v22  ;;  %v744_v30 = vmul.f32 %v1643_v17, %v1643_v17 }
 0x181   : > { %v1653_v32 = vsub.f32 %v1491_v36, %v699_v25  ;;  %v785_v33 = vsel %vm582_vm2, %v747_v31, 0.0 }
 0x182   : > { %v1656_v29 = vsub.f32 %v1488_v35, %v696_v28  ;;  %v636_v41 = vpop.xlane.xlu1 %635  ;;  %786 = vadd.xlane.f32.xlu1 %v785_v33  ;;  %831 = vadd.xlane.f32.xlu0 %v830_v40  ;;  %v776_v56 = vsel %vm582_vm2, %v744_v30, 0.0 }
 0x183   : > { %v588_v44 = vpop.xlane.xlu0 %587  ;;  %v697_v47 = vmul.f32 0.125, %v636_v41  ;;  %v763_v49 = vmul.f32 %v1653_v32, %v1653_v32 }
 0x184   : > { %v681_v48 = vmul.f32 0.125, %v588_v44  ;;  %v760_v60 = vmul.f32 %v1656_v29, %v1656_v29 }
 0x185   : > { %v1664_v36 = vsub.f32 %v1501_v46, %v697_v47  ;;  %v833_v59 = vsel %vm582_vm2, %v763_v49, 0.0 }
 0x186   : > { %v1667_v35 = vsub.f32 %v1498_v45, %v681_v48  ;;  %v606_v61 = vpop.xlane.xlu1 %605  ;;  %834 = vadd.xlane.f32.xlu1 %v833_v59  ;;  %777 = vadd.xlane.f32.xlu0 %v776_v56  ;;  %v824_v7 = vsel %vm582_vm2, %v760_v60, 0.0 }
 0x187   : > { %v603_v0 = vpop.xlane.xlu0 %602  ;;  %v687_v1 = vmul.f32 0.125, %v606_v61  ;;  %v761_v46 = vmul.f32 %v1664_v36, %v1664_v36 }
 0x188   : > { %v686_v2 = vmul.f32 0.125, %v603_v0  ;;  %v745_v3 = vmul.f32 %v1667_v35, %v1667_v35 }
 0x189   : > { %v1677_v45 = vsub.f32 %v1511_v52, %v687_v1  ;;  %v827_v24 = vsel %vm582_vm2, %v761_v46, 0.0 }
 0x18a   : > { %v1680_v4 = vsub.f32 %v1508_v51, %v686_v2  ;;  %v779_v9 = vsel %vm582_vm2, %v745_v3, 0.0  ;;  %v654_v10 = vpop.xlane.xlu1 %653  ;;  %825 = vadd.xlane.f32.xlu0 %v824_v7 }
 0x18b   : > { %780 = vadd.xlane.f32.xlu1 %v779_v9  ;;  %v651_v11 = vpop.xlane.xlu0 %650  ;;  %v703_v12 = vmul.f32 0.125, %v654_v10  ;;  %v751_v22 = vmul.f32 %v1677_v45, %v1677_v45 }
 0x18c   : > { %v702_v15 = vmul.f32 0.125, %v651_v11  ;;  %v750_v18 = vmul.f32 %v1680_v4, %v1680_v4 }
 0x18d   : > { %v1688_v52 = vsub.f32 %v1521_v58, %v703_v12  ;;  %v797_v41 = vsel %vm582_vm2, %v751_v22, 0.0 }
 0x18e   : > { %v1691_v51 = vsub.f32 %v1518_v57, %v702_v15  ;;  %v794_v23 = vsel %vm582_vm2, %v750_v18, 0.0  ;;  %v600_v25 = vpop.xlane.xlu1 %599 }
 0x18f   : > { %828 = vadd.xlane.f32.xlu1 %v827_v24  ;;  %795 = vadd.xlane.f32.xlu0 %v794_v23  ;;  %v597_v28 = vpop.xlane.xlu0 %596  ;;  %v685_v31 = vmul.f32 0.125, %v600_v25  ;;  %v767_v58 = vmul.f32 %v1688_v52, %v1688_v52 }
 0x190   : > { %v684_v30 = vmul.f32 0.125, %v597_v28  ;;  %v766_v33 = vmul.f32 %v1691_v51, %v1691_v51 }
 0x191   : > { %v1701_v57 = vsub.f32 %v1535_v6, %v685_v31  ;;  %v845_v60 = vsel %vm582_vm2, %v767_v58, 0.0 }
 0x192   : > { %v1704_v40 = vsub.f32 %v1532_v5, %v684_v30  ;;  %v842_v44 = vsel %vm582_vm2, %v766_v33, 0.0  ;;  %v648_v47 = vpop.xlane.xlu1 %647 }
 0x193   : > { %798 = vadd.xlane.f32.xlu1 %v797_v41  ;;  %843 = vadd.xlane.f32.xlu0 %v842_v44  ;;  %v645_v48 = vpop.xlane.xlu0 %644  ;;  %v701_v49 = vmul.f32 0.125, %v648_v47  ;;  %v749_v0 = vmul.f32 %v1701_v57, %v1701_v57 }
 0x194   : > { %v700_v56 = vmul.f32 0.125, %v645_v48  ;;  %v748_v59 = vmul.f32 %v1704_v40, %v1704_v40 }
 0x195   : > { %v1712_v6 = vsub.f32 %v1541_v14, %v701_v49  ;;  %v791_v10 = vsel %vm582_vm2, %v749_v0, 0.0 }
 0x196   : > { %v1715_v5 = vsub.f32 %v1538_v13, %v700_v56  ;;  %v788_v61 = vsel %vm582_vm2, %v748_v59, 0.0  ;;  %v618_v1 = vpop.xlane.xlu1 %617 }
 0x197   : > { %846 = vadd.xlane.f32.xlu1 %v845_v60  ;;  %789 = vadd.xlane.f32.xlu0 %v788_v61  ;;  %v615_v2 = vpop.xlane.xlu0 %614  ;;  %v691_v3 = vmul.f32 0.125, %v618_v1  ;;  %v765_v14 = vmul.f32 %v1712_v6, %v1712_v6 }
 0x198   : > { %v690_v46 = vmul.f32 0.125, %v615_v2  ;;  %v764_v7 = vmul.f32 %v1715_v5, %v1715_v5 }
 0x199   : > { %v1725_v13 = vsub.f32 %v1551_v21, %v691_v3  ;;  %v839_v22 = vsel %vm582_vm2, %v765_v14, 0.0 }
 0x19a   : > { %v1728_v9 = vsub.f32 %v1548_v19, %v690_v46  ;;  %v836_v11 = vsel %vm582_vm2, %v764_v7, 0.0  ;;  %v666_v12 = vpop.xlane.xlu1 %665 }
 0x19b   : > { %792 = vadd.xlane.f32.xlu1 %v791_v10  ;;  %837 = vadd.xlane.f32.xlu0 %v836_v11  ;;  %v663_v15 = vpop.xlane.xlu0 %662  ;;  %v707_v18 = vmul.f32 0.125, %v666_v12  ;;  %v755_v28 = vmul.f32 %v1725_v13, %v1725_v13 }
 0x19c   : > { %v706_v24 = vmul.f32 0.125, %v663_v15  ;;  %v754_v23 = vmul.f32 %v1728_v9, %v1728_v9 }
 0x19d   : > { %v1736_v21 = vsub.f32 %v1561_v27, %v707_v18  ;;  %v809_v47 = vsel %vm582_vm2, %v755_v28, 0.0 }
 0x19e   : > { %v1739_v19 = vsub.f32 %v1558_v26, %v706_v24  ;;  %v806_v25 = vsel %vm582_vm2, %v754_v23, 0.0  ;;  %v612_v31 = vpop.xlane.xlu1 %611 }
 0x19f   : > { %840 = vadd.xlane.f32.xlu1 %v839_v22  ;;  %807 = vadd.xlane.f32.xlu0 %v806_v25  ;;  %v609_v30 = vpop.xlane.xlu0 %608  ;;  %v689_v33 = vmul.f32 0.125, %v612_v31  ;;  %v771_v27 = vmul.f32 %v1736_v21, %v1736_v21 }
 0x1a0   : > { %v688_v58 = vmul.f32 0.125, %v609_v30  ;;  %v770_v41 = vmul.f32 %v1739_v19, %v1739_v19 }
 0x1a1   : > { %v1749_v26 = vsub.f32 %v1575_v37, %v689_v33  ;;  %v857_v0 = vsel %vm582_vm2, %v771_v27, 0.0 }
 0x1a2   : > { %v1752_v44 = vsub.f32 %v1572_v34, %v688_v58  ;;  %v854_v48 = vsel %vm582_vm2, %v770_v41, 0.0  ;;  %v660_v49 = vpop.xlane.xlu1 %659 }
 0x1a3   : > { %810 = vadd.xlane.f32.xlu1 %v809_v47  ;;  %855 = vadd.xlane.f32.xlu0 %v854_v48  ;;  %v657_v56 = vpop.xlane.xlu0 %656  ;;  %v705_v59 = vmul.f32 0.125, %v660_v49  ;;  %v753_v2 = vmul.f32 %v1749_v26, %v1749_v26 }
 0x1a4   : > { %v704_v60 = vmul.f32 0.125, %v657_v56  ;;  %v752_v61 = vmul.f32 %v1752_v44, %v1752_v44 }
 0x1a5   : > { %v1760_v37 = vsub.f32 %v1581_v39, %v705_v59  ;;  %v803_v12 = vsel %vm582_vm2, %v753_v2, 0.0 }
 0x1a6   : > { %v1763_v34 = vsub.f32 %v1578_v38, %v704_v60  ;;  %v800_v1 = vsel %vm582_vm2, %v752_v61, 0.0  ;;  %v630_v3 = vpop.xlane.xlu1 %629 }
 0x1a7   : > { %858 = vadd.xlane.f32.xlu1 %v857_v0  ;;  %801 = vadd.xlane.f32.xlu0 %v800_v1  ;;  %v627_v46 = vpop.xlane.xlu0 %626  ;;  %v695_v7 = vmul.f32 0.125, %v630_v3  ;;  %v769_v39 = vmul.f32 %v1760_v37, %v1760_v37 }
 0x1a8   : > { %v694_v14 = vmul.f32 0.125, %v627_v46  ;;  %v768_v10 = vmul.f32 %v1763_v34, %v1763_v34 }
 0x1a9   : > { %v1773_v38 = vsub.f32 %v1591_v43, %v695_v7  ;;  %v851_v28 = vsel %vm582_vm2, %v769_v39, 0.0 }
 0x1aa   : > { %v1776_v11 = vsub.f32 %v1588_v42, %v694_v14  ;;  %v848_v15 = vsel %vm582_vm2, %v768_v10, 0.0  ;;  %v624_v18 = vpop.xlane.xlu1 %623 }
 0x1ab   : > { %804 = vadd.xlane.f32.xlu1 %v803_v12  ;;  %849 = vadd.xlane.f32.xlu0 %v848_v15  ;;  %v621_v24 = vpop.xlane.xlu0 %620  ;;  %v693_v23 = vmul.f32 0.125, %v624_v18  ;;  %v759_v30 = vmul.f32 %v1773_v38, %v1773_v38 }
 0x1ac   : > { %v692_v22 = vmul.f32 0.125, %v621_v24  ;;  %v758_v25 = vmul.f32 %v1776_v11, %v1776_v11 }
 0x1ad   : > { %v1784_v43 = vsub.f32 %v1605_v53, %v693_v23  ;;  %v821_v49 = vsel %vm582_vm2, %v759_v30, 0.0 }
 0x1ae   : > { %v1787_v42 = vsub.f32 %v1602_v50, %v692_v22  ;;  %v818_v31 = vsel %vm582_vm2, %v758_v25, 0.0  ;;  %v672_v33 = vpop.xlane.xlu1 %671 }
 0x1af   : > { %852 = vadd.xlane.f32.xlu1 %v851_v28  ;;  %819 = vadd.xlane.f32.xlu0 %v818_v31  ;;  %v669_v58 = vpop.xlane.xlu0 %668  ;;  %v709_v41 = vmul.f32 0.125, %v672_v33  ;;  %v757_v53 = vmul.f32 %v1784_v43, %v1784_v43 }
 0x1b0   : > { %v708_v27 = vmul.f32 0.125, %v669_v58  ;;  %v756_v47 = vmul.f32 %v1787_v42, %v1787_v42 }
 0x1b1   : > { %v1797_v50 = vsub.f32 %v1611_v55, %v709_v41  ;;  %v815_v2 = vsel %vm582_vm2, %v757_v53, 0.0 }
 0x1b2   : > { %v1800_v48 = vsub.f32 %v1608_v54, %v708_v27  ;;  %v812_v56 = vsel %vm582_vm2, %v756_v47, 0.0  ;;  %v678_v59 = vpop.xlane.xlu1 %677 }
 0x1b3   : > { %822 = vadd.xlane.f32.xlu1 %v821_v49  ;;  %813 = vadd.xlane.f32.xlu0 %v812_v56  ;;  %v675_v60 = vpop.xlane.xlu0 %674  ;;  %v711_v61 = vmul.f32 0.125, %v678_v59  ;;  %v773_v46 = vmul.f32 %v1797_v50, %v1797_v50 }
 0x1b4   : > { %v710_v0 = vmul.f32 0.125, %v675_v60  ;;  %v772_v1 = vmul.f32 %v1800_v48, %v1800_v48  ;;  %v1826_v60 = vld [vmem:[%s2005_s3] ss:$0 sm:$0xff] }
 0x1b5   : > { %v1808_v55 = vsub.f32 %v1625_v63, %v711_v61  ;;  %v863_v14 = vsel %vm582_vm2, %v773_v46, 0.0  ;;  %v1833_v46 = vld [vmem:[%s2006_s4] ss:$0 sm:$0xff] }
 0x1b6   : > { %v1811_v54 = vsub.f32 %v1622_v62, %v710_v0  ;;  %v860_v3 = vsel %vm582_vm2, %v772_v1, 0.0 }
 0x1b7   : > { %816 = vadd.xlane.f32.xlu1 %v815_v2  ;;  %861 = vadd.xlane.f32.xlu0 %v860_v3  ;;  %v775_v63 = vmul.f32 %v1808_v55, %v1808_v55 }
 0x1b8   : > { %v774_v7 = vmul.f32 %v1811_v54, %v1811_v54 }
 0x1b9   : > { %v869_v62 = vsel %vm582_vm2, %v775_v63, 0.0 }
 0x1ba   : > { %v866_v10 = vsel %vm582_vm2, %v774_v7, 0.0 }
 0x1bb   : > { %864 = vadd.xlane.f32.xlu1 %v863_v14  ;;  %867 = vadd.xlane.f32.xlu0 %v866_v10 }
 0x1bf   : > { %870 = vadd.xlane.f32.xlu1 %v869_v62 }
 0x20b   : > { %v784_v39 = vpop.xlane.xlu0 %783 }
 0x20c   : > { %v874_v12 = vmul.f32 0.125, %v784_v39 }
 0x20e   : > { %v906_v15 = vadd.f32 1e-06, %v874_v12 }
 0x20f   : > { %v787_v18 = vpop.xlane.xlu1 %786  ;;  %v832_v24 = vpop.xlane.xlu0 %831 }
 0x210   : > { %1307 = vrsqrt.f32 %v906_v15  ;;  %v875_v23 = vmul.f32 0.125, %v787_v18  ;;  %v890_v22 = vmul.f32 0.125, %v832_v24 }
 0x212   : > { %v907_v25 = vadd.f32 1e-06, %v875_v23  ;;  %v922_v28 = vadd.f32 1e-06, %v890_v22 }
 0x213   : > { %v835_v31 = vpop.xlane.xlu1 %834  ;;  %v778_v30 = vpop.xlane.xlu0 %777 }
 0x214   : > { %1309 = vrsqrt.f32 %v907_v25  ;;  %v891_v33 = vmul.f32 0.125, %v835_v31  ;;  %v872_v58 = vmul.f32 0.125, %v778_v30 }
 0x215   : > { %1311 = vrsqrt.f32 %v922_v28 }
 0x216   : > { %v923_v41 = vadd.f32 1e-06, %v891_v33  ;;  %v904_v27 = vadd.f32 1e-06, %v872_v58 }
 0x217   : > { %v826_v53 = vpop.xlane.xlu0 %825 }
 0x218   : > { %v781_v47 = vpop.xlane.xlu1 %780  ;;  %1313 = vrsqrt.f32 %v923_v41  ;;  %v888_v56 = vmul.f32 0.125, %v826_v53 }
 0x219   : > { %v873_v49 = vmul.f32 0.125, %v781_v47  ;;  %1315 = vrsqrt.f32 %v904_v27 }
 0x21a   : > { %v1308_v59 = vpop.eup %1307  ;;  %v920_v0 = vadd.f32 1e-06, %v888_v56 }
 0x21b   : > { %v905_v61 = vadd.f32 1e-06, %v873_v49  ;;  %v970_v1 = vmul.f32 %v1308_v59, %v1635_v20 }
 0x21c   : > { %v829_v2 = vpop.xlane.xlu1 %828  ;;  %v796_v3 = vpop.xlane.xlu0 %795 }
 0x21d   : > { %1317 = vrsqrt.f32 %v905_v61  ;;  %v889_v7 = vmul.f32 0.125, %v829_v2  ;;  %v878_v14 = vmul.f32 0.125, %v796_v3  ;;  %v1009_v10 = vmul.f32 %v1826_v60, %v970_v1 }
 0x21e   : > { %1319 = vrsqrt.f32 %v920_v0  ;;  %v1310_v63 = vpop.eup %1309 }
 0x21f   : > { %v921_v20 = vadd.f32 1e-06, %v889_v7  ;;  %v910_v62 = vadd.f32 1e-06, %v878_v14  ;;  %v1312_v39 = vpop.eup %1311  ;;  %v1048_v12 = vadd.f32 %v1833_v46, %v1009_v10  ;;  %v971_v15 = vmul.f32 %v1310_v63, %v1640_v16 }
 0x220   : > { %v799_v18 = vpop.xlane.xlu1 %798  ;;  %v844_v24 = vpop.xlane.xlu0 %843  ;;  %v986_v23 = vmul.f32 %v1312_v39, %v1632_v8 }
 0x221   : > { %1321 = vrsqrt.f32 %v921_v20  ;;  %v879_v22 = vmul.f32 0.125, %v799_v18  ;;  %v894_v25 = vmul.f32 0.125, %v844_v24  ;;  %1080 = vst.msk [vmem:[%s1839_s15 + $0x10] sm:$0xff] %vm582_vm2, %v1048_v12  ;;  %v1010_v28 = vmul.f32 %v1826_v60, %v971_v15 }
 0x222   : > { %1323 = vrsqrt.f32 %v910_v62  ;;  %v1314_v31 = vpop.eup %1313  ;;  %v1025_v30 = vmul.f32 %v1826_v60, %v986_v23 }
 0x223   : > { %v911_v33 = vadd.f32 1e-06, %v879_v22  ;;  %v926_v58 = vadd.f32 1e-06, %v894_v25  ;;  %v1316_v16 = vpop.eup %1315  ;;  %v1049_v41 = vadd.f32 %v1833_v46, %v1010_v28  ;;  %v987_v8 = vmul.f32 %v1314_v31, %v1653_v32 }
 0x224   : > { %v847_v27 = vpop.xlane.xlu1 %846  ;;  %v790_v47 = vpop.xlane.xlu0 %789  ;;  %v1064_v53 = vadd.f32 %v1833_v46, %v1025_v30  ;;  %v968_v49 = vmul.f32 %v1316_v16, %v1643_v17 }
 0x225   : > { %1325 = vrsqrt.f32 %v911_v33  ;;  %v895_v56 = vmul.f32 0.125, %v847_v27  ;;  %1081 = vst.msk [vmem:[%s1839_s15 + $0x18] sm:$0xff] %vm582_vm2, %v1049_v41  ;;  %v1026_v59 = vmul.f32 %v1826_v60, %v987_v8  ;;  %v876_v61 = vmul.f32 0.125, %v790_v47 }
 0x226   : > { %1327 = vrsqrt.f32 %v926_v58  ;;  %1096 = vst.msk [vmem:[%s1839_s15 + $0x90] sm:$0xff] %vm582_vm2, %v1064_v53  ;;  %v1007_v32 = vmul.f32 %v1826_v60, %v968_v49 }
 0x227   : > { %v1318_v0 = vpop.eup %1317  ;;  %v927_v1 = vadd.f32 1e-06, %v895_v56  ;;  %v1065_v3 = vadd.f32 %v1833_v46, %v1026_v59  ;;  %v908_v7 = vadd.f32 1e-06, %v876_v61 }
 0x228   : > { %v1320_v2 = vpop.eup %1319  ;;  %v969_v17 = vmul.f32 %v1318_v0, %v1667_v35  ;;  %v793_v14 = vpop.xlane.xlu1 %792  ;;  %v1046_v63 = vadd.f32 %v1833_v46, %v1007_v32 }
 0x229   : > { %v838_v10 = vpop.xlane.xlu0 %837  ;;  %v984_v20 = vmul.f32 %v1320_v2, %v1656_v29  ;;  %1329 = vrsqrt.f32 %v927_v1  ;;  %v877_v62 = vmul.f32 0.125, %v793_v14  ;;  %1097 = vst.msk [vmem:[%s1839_s15 + $0x98] sm:$0xff] %vm582_vm2, %v1065_v3 }
 0x22a   : > { %v1008_v39 = vmul.f32 %v1826_v60, %v969_v17  ;;  %1331 = vrsqrt.f32 %v908_v7  ;;  %v892_v12 = vmul.f32 0.125, %v838_v10  ;;  %1078 = vst.msk [vmem:[%s1839_s15] sm:$0xff] %vm582_vm2, %v1046_v63 }
 0x22b   : > { %v1322_v15 = vpop.eup %1321  ;;  %v1023_v35 = vmul.f32 %v1826_v60, %v984_v20  ;;  %v909_v18 = vadd.f32 1e-06, %v877_v62 }
 0x22c   : > { %v1324_v24 = vpop.eup %1323  ;;  %v1047_v23 = vadd.f32 %v1833_v46, %v1008_v39  ;;  %v985_v29 = vmul.f32 %v1322_v15, %v1664_v36  ;;  %v924_v22 = vadd.f32 1e-06, %v892_v12  ;;  %v841_v25 = vpop.xlane.xlu1 %840 }
 0x22d   : > { %v808_v28 = vpop.xlane.xlu0 %807  ;;  %v1062_v31 = vadd.f32 %v1833_v46, %v1023_v35  ;;  %v974_v30 = vmul.f32 %v1324_v24, %v1680_v4  ;;  %1333 = vrsqrt.f32 %v909_v18  ;;  %v893_v33 = vmul.f32 0.125, %v841_v25 }
 0x22e   : > { %1079 = vst.msk [vmem:[%s1839_s15 + $0x8] sm:$0xff] %vm582_vm2, %v1047_v23  ;;  %v1024_v58 = vmul.f32 %v1826_v60, %v985_v29  ;;  %1335 = vrsqrt.f32 %v924_v22  ;;  %v882_v16 = vmul.f32 0.125, %v808_v28 }
 0x22f   : > { %v1326_v41 = vpop.eup %1325  ;;  %1094 = vst.msk [vmem:[%s1839_s15 + $0x80] sm:$0xff] %vm582_vm2, %v1062_v31  ;;  %v1013_v36 = vmul.f32 %v1826_v60, %v974_v30  ;;  %v925_v8 = vadd.f32 1e-06, %v893_v33 }
 0x230   : > { %v1328_v27 = vpop.eup %1327  ;;  %v1063_v47 = vadd.f32 %v1833_v46, %v1024_v58  ;;  %v975_v4 = vmul.f32 %v1326_v41, %v1677_v45  ;;  %v914_v53 = vadd.f32 1e-06, %v882_v16  ;;  %v811_v49 = vpop.xlane.xlu1 %810 }
 0x231   : > { %v856_v56 = vpop.xlane.xlu0 %855  ;;  %v1052_v59 = vadd.f32 %v1833_v46, %v1013_v36  ;;  %v990_v61 = vmul.f32 %v1328_v27, %v1691_v51  ;;  %1337 = vrsqrt.f32 %v925_v8  ;;  %v883_v0 = vmul.f32 0.125, %v811_v49 }
 0x232   : > { %1095 = vst.msk [vmem:[%s1839_s15 + $0x88] sm:$0xff] %vm582_vm2, %v1063_v47  ;;  %v1014_v32 = vmul.f32 %v1826_v60, %v975_v4  ;;  %1339 = vrsqrt.f32 %v914_v53  ;;  %v898_v1 = vmul.f32 0.125, %v856_v56 }
 0x233   : > { %v1330_v2 = vpop.eup %1329  ;;  %1084 = vst.msk [vmem:[%s1839_s15 + $0x30] sm:$0xff] %vm582_vm2, %v1052_v59  ;;  %v1029_v45 = vmul.f32 %v1826_v60, %v990_v61  ;;  %v915_v3 = vadd.f32 1e-06, %v883_v0 }
 0x234   : > { %v1332_v17 = vpop.eup %1331  ;;  %v1053_v7 = vadd.f32 %v1833_v46, %v1014_v32  ;;  %v991_v51 = vmul.f32 %v1330_v2, %v1688_v52  ;;  %v930_v14 = vadd.f32 1e-06, %v898_v1  ;;  %v859_v10 = vpop.xlane.xlu1 %858 }
 0x235   : > { %v802_v63 = vpop.xlane.xlu0 %801  ;;  %v1068_v20 = vadd.f32 %v1833_v46, %v1029_v45  ;;  %v972_v62 = vmul.f32 %v1332_v17, %v1704_v40  ;;  %1341 = vrsqrt.f32 %v915_v3  ;;  %v899_v39 = vmul.f32 0.125, %v859_v10 }
 0x236   : > { %1085 = vst.msk [vmem:[%s1839_s15 + $0x38] sm:$0xff] %vm582_vm2, %v1053_v7  ;;  %v1030_v12 = vmul.f32 %v1826_v60, %v991_v51  ;;  %1343 = vrsqrt.f32 %v930_v14  ;;  %v880_v15 = vmul.f32 0.125, %v802_v63 }
 0x237   : > { %v1334_v35 = vpop.eup %1333  ;;  %1100 = vst.msk [vmem:[%s1839_s15 + $0xb0] sm:$0xff] %vm582_vm2, %v1068_v20  ;;  %v1011_v52 = vmul.f32 %v1826_v60, %v972_v62  ;;  %v931_v18 = vadd.f32 1e-06, %v899_v39 }
 0x238   : > { %v1336_v24 = vpop.eup %1335  ;;  %v1069_v23 = vadd.f32 %v1833_v46, %v1030_v12  ;;  %v973_v40 = vmul.f32 %v1334_v35, %v1701_v57  ;;  %v912_v29 = vadd.f32 1e-06, %v880_v15  ;;  %v805_v22 = vpop.xlane.xlu1 %804 }
 0x239   : > { %v850_v25 = vpop.xlane.xlu0 %849  ;;  %v1050_v28 = vadd.f32 %v1833_v46, %v1011_v52  ;;  %v988_v31 = vmul.f32 %v1336_v24, %v1715_v5  ;;  %1345 = vrsqrt.f32 %v931_v18  ;;  %v881_v30 = vmul.f32 0.125, %v805_v22 }
 0x23a   : > { %1101 = vst.msk [vmem:[%s1839_s15 + $0xb8] sm:$0xff] %vm582_vm2, %v1069_v23  ;;  %v1012_v33 = vmul.f32 %v1826_v60, %v973_v40  ;;  %1347 = vrsqrt.f32 %v912_v29  ;;  %v896_v58 = vmul.f32 0.125, %v850_v25 }
 0x23b   : > { %v1338_v16 = vpop.eup %1337  ;;  %1082 = vst.msk [vmem:[%s1839_s15 + $0x20] sm:$0xff] %vm582_vm2, %v1050_v28  ;;  %v1027_v57 = vmul.f32 %v1826_v60, %v988_v31  ;;  %v913_v41 = vadd.f32 1e-06, %v881_v30 }
 0x23c   : > { %v1340_v36 = vpop.eup %1339  ;;  %v1051_v8 = vadd.f32 %v1833_v46, %v1012_v33  ;;  %v989_v5 = vmul.f32 %v1338_v16, %v1712_v6  ;;  %v928_v27 = vadd.f32 1e-06, %v896_v58  ;;  %v853_v47 = vpop.xlane.xlu1 %852 }
 0x23d   : > { %v820_v4 = vpop.xlane.xlu0 %819  ;;  %v1066_v53 = vadd.f32 %v1833_v46, %v1027_v57  ;;  %v978_v49 = vmul.f32 %v1340_v36, %v1728_v9  ;;  %1349 = vrsqrt.f32 %v913_v41  ;;  %v897_v56 = vmul.f32 0.125, %v853_v47 }
 0x23e   : > { %1083 = vst.msk [vmem:[%s1839_s15 + $0x28] sm:$0xff] %vm582_vm2, %v1051_v8  ;;  %v1028_v59 = vmul.f32 %v1826_v60, %v989_v5  ;;  %1351 = vrsqrt.f32 %v928_v27  ;;  %v886_v61 = vmul.f32 0.125, %v820_v4 }
 0x23f   : > { %v1342_v0 = vpop.eup %1341  ;;  %1098 = vst.msk [vmem:[%s1839_s15 + $0xa0] sm:$0xff] %vm582_vm2, %v1066_v53  ;;  %v1017_v6 = vmul.f32 %v1826_v60, %v978_v49  ;;  %v929_v32 = vadd.f32 1e-06, %v897_v56 }
 0x240   : > { %v1344_v1 = vpop.eup %1343  ;;  %v1067_v2 = vadd.f32 %v1833_v46, %v1028_v59  ;;  %v979_v9 = vmul.f32 %v1342_v0, %v1725_v13  ;;  %v918_v45 = vadd.f32 1e-06, %v886_v61  ;;  %v823_v3 = vpop.xlane.xlu1 %822 }
 0x241   : > { %v814_v17 = vpop.xlane.xlu0 %813  ;;  %v1056_v7 = vadd.f32 %v1833_v46, %v1017_v6  ;;  %v994_v51 = vmul.f32 %v1344_v1, %v1739_v19  ;;  %1353 = vrsqrt.f32 %v929_v32  ;;  %v887_v14 = vmul.f32 0.125, %v823_v3 }
 0x242   : > { %1099 = vst.msk [vmem:[%s1839_s15 + $0xa8] sm:$0xff] %vm582_vm2, %v1067_v2  ;;  %v1018_v10 = vmul.f32 %v1826_v60, %v979_v9  ;;  %1355 = vrsqrt.f32 %v918_v45  ;;  %v884_v63 = vmul.f32 0.125, %v814_v17 }
 0x243   : > { %v1346_v20 = vpop.eup %1345  ;;  %1088 = vst.msk [vmem:[%s1839_s15 + $0x50] sm:$0xff] %vm582_vm2, %v1056_v7  ;;  %v1033_v13 = vmul.f32 %v1826_v60, %v994_v51  ;;  %v919_v62 = vadd.f32 1e-06, %v887_v14 }
 0x244   : > { %v1348_v39 = vpop.eup %1347  ;;  %v1057_v12 = vadd.f32 %v1833_v46, %v1018_v10  ;;  %v995_v19 = vmul.f32 %v1346_v20, %v1736_v21  ;;  %v916_v15 = vadd.f32 1e-06, %v884_v63  ;;  %v817_v35 = vpop.xlane.xlu1 %816 }
 0x245   : > { %v862_v52 = vpop.xlane.xlu0 %861  ;;  %v1072_v18 = vadd.f32 %v1833_v46, %v1033_v13  ;;  %v976_v24 = vmul.f32 %v1348_v39, %v1752_v44  ;;  %1357 = vrsqrt.f32 %v919_v62  ;;  %v885_v23 = vmul.f32 0.125, %v817_v35 }
 0x246   : > { %1089 = vst.msk [vmem:[%s1839_s15 + $0x58] sm:$0xff] %vm582_vm2, %v1057_v12  ;;  %v1034_v40 = vmul.f32 %v1826_v60, %v995_v19  ;;  %1359 = vrsqrt.f32 %v916_v15  ;;  %v900_v29 = vmul.f32 0.125, %v862_v52 }
 0x247   : > { %v1350_v22 = vpop.eup %1349  ;;  %1104 = vst.msk [vmem:[%s1839_s15 + $0xd0] sm:$0xff] %vm582_vm2, %v1072_v18  ;;  %v1015_v21 = vmul.f32 %v1826_v60, %v976_v24  ;;  %v917_v25 = vadd.f32 1e-06, %v885_v23 }
 0x248   : > { %v1352_v28 = vpop.eup %1351  ;;  %v1073_v31 = vadd.f32 %v1833_v46, %v1034_v40  ;;  %v977_v44 = vmul.f32 %v1350_v22, %v1749_v26  ;;  %v932_v30 = vadd.f32 1e-06, %v900_v29  ;;  %v865_v33 = vpop.xlane.xlu1 %864 }
 0x249   : > { %v868_v58 = vpop.xlane.xlu0 %867  ;;  %v1054_v16 = vadd.f32 %v1833_v46, %v1015_v21  ;;  %v992_v57 = vmul.f32 %v1352_v28, %v1763_v34  ;;  %1361 = vrsqrt.f32 %v917_v25  ;;  %v901_v41 = vmul.f32 0.125, %v865_v33 }
 0x24a   : > { %1105 = vst.msk [vmem:[%s1839_s15 + $0xd8] sm:$0xff] %vm582_vm2, %v1073_v31  ;;  %v1016_v36 = vmul.f32 %v1826_v60, %v977_v44  ;;  %1363 = vrsqrt.f32 %v932_v30  ;;  %v902_v8 = vmul.f32 0.125, %v868_v58 }
 0x24b   : > { %v1354_v5 = vpop.eup %1353  ;;  %1086 = vst.msk [vmem:[%s1839_s15 + $0x40] sm:$0xff] %vm582_vm2, %v1054_v16  ;;  %v1031_v26 = vmul.f32 %v1826_v60, %v992_v57  ;;  %v933_v27 = vadd.f32 1e-06, %v901_v41 }
 0x24c   : > { %v1356_v47 = vpop.eup %1355  ;;  %v1055_v4 = vadd.f32 %v1833_v46, %v1016_v36  ;;  %v993_v34 = vmul.f32 %v1354_v5, %v1760_v37  ;;  %v934_v53 = vadd.f32 1e-06, %v902_v8  ;;  %v871_v49 = vpop.xlane.xlu1 %870 }
 0x24d   : > { %v1070_v56 = vadd.f32 %v1833_v46, %v1031_v26  ;;  %v982_v59 = vmul.f32 %v1356_v47, %v1776_v11  ;;  %1365 = vrsqrt.f32 %v933_v27  ;;  %v903_v61 = vmul.f32 0.125, %v871_v49 }
 0x24e   : > { %1087 = vst.msk [vmem:[%s1839_s15 + $0x48] sm:$0xff] %vm582_vm2, %v1055_v4  ;;  %v1032_v0 = vmul.f32 %v1826_v60, %v993_v34  ;;  %1367 = vrsqrt.f32 %v934_v53 }
 0x24f   : > { %v1358_v6 = vpop.eup %1357  ;;  %1102 = vst.msk [vmem:[%s1839_s15 + $0xc0] sm:$0xff] %vm582_vm2, %v1070_v56  ;;  %v1021_v37 = vmul.f32 %v1826_v60, %v982_v59  ;;  %v935_v32 = vadd.f32 1e-06, %v903_v61 }
 0x250   : > { %v1360_v1 = vpop.eup %1359  ;;  %v1071_v2 = vadd.f32 %v1833_v46, %v1032_v0  ;;  %v983_v11 = vmul.f32 %v1358_v6, %v1773_v38 }
 0x251   : > { %v1060_v9 = vadd.f32 %v1833_v46, %v1021_v37  ;;  %v980_v45 = vmul.f32 %v1360_v1, %v1787_v42  ;;  %1369 = vrsqrt.f32 %v935_v32 }
 0x252   : > { %1103 = vst.msk [vmem:[%s1839_s15 + $0xc8] sm:$0xff] %vm582_vm2, %v1071_v2  ;;  %v1022_v3 = vmul.f32 %v1826_v60, %v983_v11 }
 0x253   : > { %v1362_v17 = vpop.eup %1361  ;;  %1092 = vst.msk [vmem:[%s1839_s15 + $0x70] sm:$0xff] %vm582_vm2, %v1060_v9  ;;  %v1019_v7 = vmul.f32 %v1826_v60, %v980_v45 }
 0x254   : > { %v1364_v51 = vpop.eup %1363  ;;  %v1061_v14 = vadd.f32 %v1833_v46, %v1022_v3  ;;  %v981_v38 = vmul.f32 %v1362_v17, %v1784_v43 }
 0x255   : > { %v1058_v10 = vadd.f32 %v1833_v46, %v1019_v7  ;;  %v996_v42 = vmul.f32 %v1364_v51, %v1800_v48 }
 0x256   : > { %1093 = vst.msk [vmem:[%s1839_s15 + $0x78] sm:$0xff] %vm582_vm2, %v1061_v14  ;;  %v1020_v63 = vmul.f32 %v1826_v60, %v981_v38 }
 0x257   : > { %v1366_v20 = vpop.eup %1365  ;;  %1090 = vst.msk [vmem:[%s1839_s15 + $0x60] sm:$0xff] %vm582_vm2, %v1058_v10  ;;  %v1035_v13 = vmul.f32 %v1826_v60, %v996_v42 }
 0x258   : > { %v1368_v62 = vpop.eup %1367  ;;  %v1059_v39 = vadd.f32 %v1833_v46, %v1020_v63  ;;  %v997_v43 = vmul.f32 %v1366_v20, %v1797_v50 }
 0x259   : > { %v1074_v12 = vadd.f32 %v1833_v46, %v1035_v13  ;;  %v998_v48 = vmul.f32 %v1368_v62, %v1811_v54 }
 0x25a   : > { %1091 = vst.msk [vmem:[%s1839_s15 + $0x68] sm:$0xff] %vm582_vm2, %v1059_v39  ;;  %v1036_v19 = vmul.f32 %v1826_v60, %v997_v43 }
 0x25b   : > { %v1370_v15 = vpop.eup %1369  ;;  %1106 = vst.msk [vmem:[%s1839_s15 + $0xe0] sm:$0xff] %vm582_vm2, %v1074_v12  ;;  %v1037_v35 = vmul.f32 %v1826_v60, %v998_v48 }
 0x25c   : > { %v1075_v52 = vadd.f32 %v1833_v46, %v1036_v19  ;;  %v999_v18 = vmul.f32 %v1370_v15, %v1808_v55 }
 0x25d   : > { %v1076_v24 = vadd.f32 %v1833_v46, %v1037_v35 }
 0x25e   : > { %1107 = vst.msk [vmem:[%s1839_s15 + $0xe8] sm:$0xff] %vm582_vm2, %v1075_v52  ;;  %v1038_v50 = vmul.f32 %v1826_v60, %v999_v18 }
 0x25f   : > { %1108 = vst.msk [vmem:[%s1839_s15 + $0xf0] sm:$0xff] %vm582_vm2, %v1076_v24 }
 0x260   : > { %v1077_v54 = vadd.f32 %v1833_v46, %v1038_v50 }
 0x262   : > { %1109 = vst.msk [vmem:[%s1839_s15 + $0xf8] sm:$0xff] %vm582_vm2, %v1077_v54 }
 0x263 PF: > { %s15_s18 = sadd.s32 1, %s1377_s18  }
 0x264   : > { %p12_p4 = scmp.ge.s32.totalorder %s15_s18, 10  }
 0x266   :  { %14 = sbr.rel (!%p12_p4) target bundleno = 1 (0x1), region = 70 }

// kernel: _forward_core.42
= control target key start
LH: loop header
LB: loop body
LE: loop exit
PB: predicated region body
PF: predicated region fallthrough
CT: control target
= control target key end

     0   :  { %s946_s15 = smov 0   ;;  %s1156_s0 = inlined_call_operand.vmem [shape: bf16[2048,72], index: 0, kind: input, shape index: {}]   ;;  %s1157_s1 = inlined_call_operand.vmem [shape: bf16[72,4], index: 1, kind: input, shape index: {}]   ;;  %s1158_s2 = inlined_call_operand.vmem [shape: f32[1,4], index: 2, kind: input, shape index: {}]   ;;  %s1159_s3 = inlined_call_operand.vmem [shape: f32[2048,4], index: 3, kind: input, shape index: {}]   ;;  %s1160_s4 = inlined_call_operand.vmem [shape: f32[2048,4], index: 4, kind: output, shape index: {}]  }
   0x1 LB: > { %s758_s16 = sadd.s32 4294967295, %s919_s15   ;;  %p762_p0 = scmp.ge.s32.totalorder %s919_s15, 1  ;;  %s919_s15 = sphi %s946_s15, %s14_s15  }
   0x2   : > { %p174_p1 = scmp.lt.s32.totalorder %s919_s15, 9 }
   0x4   : > { %p175_p2 = pnand %p762_p0, %p174_p1 }
   0x5   : > { %v892_v0 = vld [vmem:[%s1157_s1] sm:$0xff] (!%p175_p2)   ;;  %v893_v1 = vld [vmem:[%s1157_s1 + $0x8] sm:$0xff] (!%p175_p2)   ;;  %s763_s21 = sshll.u32 (!%p175_p2), %s758_s16, 5  ;;  %v894_v2 = vld [vmem:[%s1157_s1 + $0x10] sm:$0xff] (!%p175_p2)   ;;  %vm379_vm0 = vcmask (!%p175_p2), 588800   ;;  %vm428_vm1 = vcmask (!%p175_p2), 1043456  }
   0x6   : > { %178 = sbr.rel (%p175_p2) target bundleno = 270 (0x10e), region = 36  ;;  %830 = vmatprep.subr.bf16.mxu0 (!%p175_p2), %v892_v0  ;;  %872 = vmatprep.subr.bf16.mxu1 (!%p175_p2), %v892_v0  ;;  %p206_p3 = scmp.lt.s32.totalorder (!%p175_p2), %s763_s21, 255  ;;  %v895_v3 = vld [vmem:[%s1157_s1 + $0x18] sm:$0xff] (!%p175_p2)   ;;  %v896_v6 = vld [vmem:[%s1157_s1 + $0x20] ss:$0 sps:$4 sm:$0xff] (!%p175_p2)   ;;  %vm657_vm2 = vcmask (!%p175_p2), 31744  }
   0x7   : > { %831 = vmatpush3.bf16.msra.mxu0 (!%p175_p2), %v892_v0  ;;  %877 = vmatpush3.bf16.msra.mxu1 (!%p175_p2), %v892_v0  ;;  %v430_v7 = vsel (!%p175_p2), %vm428_vm1, %v896_v6, 0  ;;  %v1018_v22 = vld [vmem:[%s1158_s2] ss:$0 sm:$0xff] (!%p175_p2) }
   0x8   : > { %832 = vmatprep.subr.bf16.mxu0 (!%p175_p2), %v893_v1  ;;  %873 = vmatprep.subr.bf16.mxu1 (!%p175_p2), %v893_v1 }
   0xb   : > { %833 = vmatpush3.bf16.msra.mxu0 (!%p175_p2), %v893_v1  ;;  %878 = vmatpush3.bf16.msra.mxu1 (!%p175_p2), %v893_v1 }
   0xc   : > { %834 = vmatprep.subr.bf16.mxu0 (!%p175_p2), %v894_v2  ;;  %874 = vmatprep.subr.bf16.mxu1 (!%p175_p2), %v894_v2 }
   0xd   : > { %s1162_s21 = smov (!%p206_p3, %s763_s21), 255 }
   0xe   : > { %s764_s24 = sshll.u32 %s1162_s21, 2  ;;  %s766_s6 = sshll.u32 %s1162_s21, 3 }
   0xf   : > { %s972_s29 = scalar_lea.vmem %s1156_s0, %s764_s24  ;;  %835 = vmatpush3.bf16.msra.mxu0 %v894_v2  ;;  %879 = vmatpush3.bf16.msra.mxu1 %v894_v2  ;;  %s1013_s9 = scalar_lea.vmem %s1159_s3, %s766_s6 }
  0x10   : > { %v897_v4 = vld [vmem:[%s972_s29] sm:$0xff]   ;;  %836 = vmatprep.subr.bf16.mxu0 %v895_v3  ;;  %875 = vmatprep.subr.bf16.mxu1 %v895_v3  ;;  %v899_v8 = vld [vmem:[%s972_s29 + $0x8] sm:$0xff]   ;;  %v901_v10 = vld [vmem:[%s972_s29 + $0x10] sm:$0xff]   ;;  %s1029_s14 = scalar_lea.vmem %s1160_s4, %s766_s6 }
  0x11   : > { %v898_v5 = vld [vmem:[%s972_s29 + $0x40] sm:$0xff]   ;;  %840 = vmatprep.mubr.msk.bf16.mxu0 %vm379_vm0, %v897_v4  ;;  %v900_v9 = vld [vmem:[%s972_s29 + $0x48] sm:$0xff]   ;;  %v902_v11 = vld [vmem:[%s972_s29 + $0x50] sm:$0xff]  }
  0x12   : > { %856 = vmatprep.mubr.msk.bf16.mxu1 %vm379_vm0, %v898_v5  ;;  %v903_v12 = vld [vmem:[%s972_s29 + $0x18] sm:$0xff]   ;;  %v905_v14 = vld [vmem:[%s972_s29 + $0x20] sm:$0xff]   ;;  %v907_v16 = vld [vmem:[%s972_s29 + $0x28] sm:$0xff]  }
  0x13   : > { %837 = vmatpush3.bf16.msra.mxu0 %v895_v3  ;;  %880 = vmatpush3.bf16.msra.mxu1 %v895_v3  ;;  %v904_v13 = vld [vmem:[%s972_s29 + $0x58] sm:$0xff]   ;;  %v906_v15 = vld [vmem:[%s972_s29 + $0x60] sm:$0xff]   ;;  %v908_v17 = vld [vmem:[%s972_s29 + $0x68] sm:$0xff]  }
  0x14   : > { %882 = vmatprep.subr.msk.bf16.mxu0 %vm428_vm1, %v896_v6  ;;  %883 = vmatprep.subr.msk.bf16.mxu1 %vm428_vm1, %v896_v6  ;;  %v909_v18 = vld [vmem:[%s972_s29 + $0x30] sm:$0xff]   ;;  %v911_v20 = vld [vmem:[%s972_s29 + $0x38] sm:$0xff]   ;;  %v593_v30 = vld [vmem:[%s1013_s9] sm:$0xff] }
  0x15   : > { %v910_v19 = vld [vmem:[%s972_s29 + $0x70] sm:$0xff]   ;;  %v912_v21 = vld [vmem:[%s972_s29 + $0x78] sm:$0xff]   ;;  %v609_v32 = vld [vmem:[%s1013_s9 + $0x80] sm:$0xff] }
  0x16   : > { %v595_v24 = vld [vmem:[%s1013_s9 + $0x10] sm:$0xff]  ;;  %v596_v36 = vld [vmem:[%s1013_s9 + $0x18] sm:$0xff]  ;;  %v594_v44 = vld [vmem:[%s1013_s9 + $0x8] sm:$0xff] }
  0x17   : > { %839 = vmatpush3.bf16.msra.mxu0 %v430_v7  ;;  %881 = vmatpush3.bf16.msra.mxu1 %v430_v7  ;;  %v611_v26 = vld [vmem:[%s1013_s9 + $0x90] sm:$0xff]  ;;  %v612_v38 = vld [vmem:[%s1013_s9 + $0x98] sm:$0xff]  ;;  %v610_v46 = vld [vmem:[%s1013_s9 + $0x88] sm:$0xff] }
  0x18   : > { %v599_v56 = vld [vmem:[%s1013_s9 + $0x30] sm:$0xff]  ;;  %v597_v62 = vld [vmem:[%s1013_s9 + $0x20] sm:$0xff]  ;;  %v600_v4 = vld [vmem:[%s1013_s9 + $0x38] sm:$0xff] }
  0x19   : > { %v615_v58 = vld [vmem:[%s1013_s9 + $0xb0] sm:$0xff]  ;;  %v613_v0 = vld [vmem:[%s1013_s9 + $0xa0] sm:$0xff]  ;;  %v616_v6 = vld [vmem:[%s1013_s9 + $0xb8] sm:$0xff] }
  0x1a   : > { %841 = vmatmul.mubr.msk.bf16.vlgmr.msra.gmra.mrb[0].mxu0 %vm379_vm0, %v899_v8  ;;  %857 = vmatmul.mubr.msk.bf16.vlgmr.msra.gmra.mrb[0].mxu1 %vm379_vm0, %v900_v9 }
  0x1b   : > { %844 = vmatprep.mubr.msk.bf16.mxu0 %vm379_vm0, %v901_v10  ;;  %860 = vmatprep.mubr.msk.bf16.mxu1 %vm379_vm0, %v902_v11 }
  0x22   : > { %845 = vmatmul.mubr.msk.bf16.gmra.mrb[4].mxu0 %vm379_vm0, %v903_v12  ;;  %861 = vmatmul.mubr.msk.bf16.gmra.mrb[4].mxu1 %vm379_vm0, %v904_v13  ;;  %v598_v12 = vld [vmem:[%s1013_s9 + $0x28] sm:$0xff] }
  0x23   : > { %848 = vmatprep.mubr.msk.bf16.mxu0 %vm379_vm0, %v905_v14  ;;  %864 = vmatprep.mubr.msk.bf16.mxu1 %vm379_vm0, %v906_v15  ;;  %v614_v14 = vld [vmem:[%s1013_s9 + $0xa8] sm:$0xff] }
  0x2a   : > { %849 = vmatmul.mubr.msk.bf16.gmra.mrb[8].mxu0 %vm379_vm0, %v907_v16  ;;  %865 = vmatmul.mubr.msk.bf16.gmra.mrb[8].mxu1 %vm379_vm0, %v908_v17 }
  0x2b   : > { %852 = vmatprep.mubr.msk.bf16.mxu0 %vm379_vm0, %v909_v18  ;;  %868 = vmatprep.mubr.msk.bf16.mxu1 %vm379_vm0, %v910_v19 }
  0x32   : > { %853 = vmatmul.mubr.msk.bf16.gmra.mrb[12].mxu0 %vm379_vm0, %v911_v20  ;;  %869 = vmatmul.mubr.msk.bf16.gmra.mrb[12].mxu1 %vm379_vm0, %v912_v21 }
  0xed   : > { %v842_v23 = vpop.f32.mrb[0].mxu0  ;;  %v858_v25 = vpop.f32.mrb[0].mxu1 }
  0xee   : > { %v475_v27 = vadd.f32 %v842_v23, %v1018_v22  ;;  %v539_v28 = vadd.f32 %v858_v25, %v1018_v22  ;;  %v466_v29 = vpop.f32.mrb[1].mxu0  ;;  %v530_v31 = vpop.f32.mrb[1].mxu1  ;;  %v603_v25 = vld [vmem:[%s1013_s9 + $0x50] sm:$0xff] }
  0xef   : > { %v467_v33 = vadd.f32 %v1018_v22, %v466_v29  ;;  %v531_v34 = vadd.f32 %v1018_v22, %v530_v31  ;;  %v843_v35 = vpop.f32.mrb[2].mxu0  ;;  %v859_v37 = vpop.f32.mrb[2].mxu1  ;;  %v601_v31 = vld [vmem:[%s1013_s9 + $0x40] sm:$0xff] }
  0xf0   : > { %v627_v39 = vadd.f32 %v595_v24, %v475_v27  ;;  %v643_v40 = vadd.f32 %v611_v26, %v539_v28  ;;  %v478_v41 = vadd.f32 %v843_v35, %v1018_v22  ;;  %v542_v42 = vadd.f32 %v859_v37, %v1018_v22  ;;  %v469_v43 = vpop.f32.mrb[3].mxu0  ;;  %v533_v45 = vpop.f32.mrb[3].mxu1  ;;  %v619_v27 = vld [vmem:[%s1013_s9 + $0xd0] sm:$0xff]  ;;  %v604_v37 = vld [vmem:[%s1013_s9 + $0x58] sm:$0xff] }
  0xf1   : > { %v625_v47 = vadd.f32 %v593_v30, %v467_v33  ;;  %v641_v48 = vadd.f32 %v609_v32, %v531_v34  ;;  %v470_v49 = vadd.f32 %v1018_v22, %v469_v43  ;;  %v534_v50 = vadd.f32 %v1018_v22, %v533_v45  ;;  %v617_v33 = vld [vmem:[%s1013_s9 + $0xc0] sm:$0xff]  ;;  %v602_v45 = vld [vmem:[%s1013_s9 + $0x48] sm:$0xff] }
  0xf2   : > { %660 = vst.msk [vmem:[%s1029_s14 + $0x10] sm:$0xff] %vm657_vm2, %v627_v39  ;;  %676 = vst.msk [vmem:[%s1029_s14 + $0x90] sm:$0xff] %vm657_vm2, %v643_v40  ;;  %v628_v51 = vadd.f32 %v596_v36, %v478_v41  ;;  %v644_v52 = vadd.f32 %v612_v38, %v542_v42  ;;  %v620_v39 = vld [vmem:[%s1013_s9 + $0xd8] sm:$0xff] }
  0xf3   : > { %658 = vst.msk [vmem:[%s1029_s14] sm:$0xff] %vm657_vm2, %v625_v47  ;;  %674 = vst.msk [vmem:[%s1029_s14 + $0x80] sm:$0xff] %vm657_vm2, %v641_v48  ;;  %v626_v53 = vadd.f32 %v594_v44, %v470_v49  ;;  %v642_v54 = vadd.f32 %v610_v46, %v534_v50  ;;  %v618_v47 = vld [vmem:[%s1013_s9 + $0xc8] sm:$0xff] }
  0xf4   : > { %661 = vst.msk [vmem:[%s1029_s14 + $0x18] sm:$0xff] %vm657_vm2, %v628_v51  ;;  %677 = vst.msk [vmem:[%s1029_s14 + $0x98] sm:$0xff] %vm657_vm2, %v644_v52 }
  0xf5   : > { %659 = vst.msk [vmem:[%s1029_s14 + $0x8] sm:$0xff] %vm657_vm2, %v626_v53  ;;  %675 = vst.msk [vmem:[%s1029_s14 + $0x88] sm:$0xff] %vm657_vm2, %v642_v54  ;;  %v846_v55 = vpop.f32.mrb[4].mxu0  ;;  %v862_v57 = vpop.f32.mrb[4].mxu1 }
  0xf6   : > { %v491_v59 = vadd.f32 %v846_v55, %v1018_v22  ;;  %v555_v60 = vadd.f32 %v862_v57, %v1018_v22  ;;  %v482_v61 = vpop.f32.mrb[5].mxu0  ;;  %v546_v63 = vpop.f32.mrb[5].mxu1  ;;  %v607_v57 = vld [vmem:[%s1013_s9 + $0x70] sm:$0xff] }
  0xf7   : > { %v483_v1 = vadd.f32 %v1018_v22, %v482_v61  ;;  %v547_v2 = vadd.f32 %v1018_v22, %v546_v63  ;;  %v847_v3 = vpop.f32.mrb[6].mxu0  ;;  %v863_v5 = vpop.f32.mrb[6].mxu1  ;;  %v605_v63 = vld [vmem:[%s1013_s9 + $0x60] sm:$0xff] }
  0xf8   : > { %v631_v7 = vadd.f32 %v599_v56, %v491_v59  ;;  %v647_v8 = vadd.f32 %v615_v58, %v555_v60  ;;  %v494_v9 = vadd.f32 %v847_v3, %v1018_v22  ;;  %v558_v10 = vadd.f32 %v863_v5, %v1018_v22  ;;  %v485_v11 = vpop.f32.mrb[7].mxu0  ;;  %v549_v13 = vpop.f32.mrb[7].mxu1  ;;  %v623_v59 = vld [vmem:[%s1013_s9 + $0xf0] sm:$0xff]  ;;  %v608_v5 = vld [vmem:[%s1013_s9 + $0x78] sm:$0xff] }
  0xf9   : > { %v629_v15 = vadd.f32 %v597_v62, %v483_v1  ;;  %v645_v16 = vadd.f32 %v613_v0, %v547_v2  ;;  %v486_v17 = vadd.f32 %v1018_v22, %v485_v11  ;;  %v550_v18 = vadd.f32 %v1018_v22, %v549_v13  ;;  %v621_v1 = vld [vmem:[%s1013_s9 + $0xe0] sm:$0xff]  ;;  %v606_v13 = vld [vmem:[%s1013_s9 + $0x68] sm:$0xff] }
  0xfa   : > { %664 = vst.msk [vmem:[%s1029_s14 + $0x30] sm:$0xff] %vm657_vm2, %v631_v7  ;;  %680 = vst.msk [vmem:[%s1029_s14 + $0xb0] sm:$0xff] %vm657_vm2, %v647_v8  ;;  %v632_v19 = vadd.f32 %v600_v4, %v494_v9  ;;  %v648_v20 = vadd.f32 %v616_v6, %v558_v10  ;;  %v624_v7 = vld [vmem:[%s1013_s9 + $0xf8] sm:$0xff] }
  0xfb   : > { %662 = vst.msk [vmem:[%s1029_s14 + $0x20] sm:$0xff] %vm657_vm2, %v629_v15  ;;  %678 = vst.msk [vmem:[%s1029_s14 + $0xa0] sm:$0xff] %vm657_vm2, %v645_v16  ;;  %v630_v21 = vadd.f32 %v598_v12, %v486_v17  ;;  %v646_v23 = vadd.f32 %v614_v14, %v550_v18  ;;  %v622_v15 = vld [vmem:[%s1013_s9 + $0xe8] sm:$0xff] }
  0xfc   : > { %665 = vst.msk [vmem:[%s1029_s14 + $0x38] sm:$0xff] %vm657_vm2, %v632_v19  ;;  %681 = vst.msk [vmem:[%s1029_s14 + $0xb8] sm:$0xff] %vm657_vm2, %v648_v20 }
  0xfd   : > { %663 = vst.msk [vmem:[%s1029_s14 + $0x28] sm:$0xff] %vm657_vm2, %v630_v21  ;;  %679 = vst.msk [vmem:[%s1029_s14 + $0xa8] sm:$0xff] %vm657_vm2, %v646_v23  ;;  %v850_v24 = vpop.f32.mrb[8].mxu0  ;;  %v866_v26 = vpop.f32.mrb[8].mxu1 }
  0xfe   : > { %v507_v28 = vadd.f32 %v850_v24, %v1018_v22  ;;  %v571_v29 = vadd.f32 %v866_v26, %v1018_v22  ;;  %v498_v30 = vpop.f32.mrb[9].mxu0  ;;  %v562_v32 = vpop.f32.mrb[9].mxu1 }
  0xff   : > { %v499_v34 = vadd.f32 %v1018_v22, %v498_v30  ;;  %v563_v35 = vadd.f32 %v1018_v22, %v562_v32  ;;  %v851_v36 = vpop.f32.mrb[10].mxu0  ;;  %v867_v38 = vpop.f32.mrb[10].mxu1 }
 0x100   : > { %v635_v40 = vadd.f32 %v603_v25, %v507_v28  ;;  %v651_v41 = vadd.f32 %v619_v27, %v571_v29  ;;  %v510_v42 = vadd.f32 %v851_v36, %v1018_v22  ;;  %v574_v43 = vadd.f32 %v867_v38, %v1018_v22  ;;  %v501_v44 = vpop.f32.mrb[11].mxu0  ;;  %v565_v46 = vpop.f32.mrb[11].mxu1 }
 0x101   : > { %v633_v48 = vadd.f32 %v601_v31, %v499_v34  ;;  %v649_v49 = vadd.f32 %v617_v33, %v563_v35  ;;  %v502_v50 = vadd.f32 %v1018_v22, %v501_v44  ;;  %v566_v51 = vadd.f32 %v1018_v22, %v565_v46 }
 0x102   : > { %668 = vst.msk [vmem:[%s1029_s14 + $0x50] sm:$0xff] %vm657_vm2, %v635_v40  ;;  %684 = vst.msk [vmem:[%s1029_s14 + $0xd0] sm:$0xff] %vm657_vm2, %v651_v41  ;;  %v636_v52 = vadd.f32 %v604_v37, %v510_v42  ;;  %v652_v53 = vadd.f32 %v620_v39, %v574_v43 }
 0x103   : > { %666 = vst.msk [vmem:[%s1029_s14 + $0x40] sm:$0xff] %vm657_vm2, %v633_v48  ;;  %682 = vst.msk [vmem:[%s1029_s14 + $0xc0] sm:$0xff] %vm657_vm2, %v649_v49  ;;  %v634_v54 = vadd.f32 %v602_v45, %v502_v50  ;;  %v650_v55 = vadd.f32 %v618_v47, %v566_v51 }
 0x104   : > { %669 = vst.msk [vmem:[%s1029_s14 + $0x58] sm:$0xff] %vm657_vm2, %v636_v52  ;;  %685 = vst.msk [vmem:[%s1029_s14 + $0xd8] sm:$0xff] %vm657_vm2, %v652_v53 }
 0x105   : > { %667 = vst.msk [vmem:[%s1029_s14 + $0x48] sm:$0xff] %vm657_vm2, %v634_v54  ;;  %683 = vst.msk [vmem:[%s1029_s14 + $0xc8] sm:$0xff] %vm657_vm2, %v650_v55  ;;  %v854_v56 = vpop.f32.mrb[12].mxu0  ;;  %v870_v58 = vpop.f32.mrb[12].mxu1 }
 0x106   : > { %v523_v60 = vadd.f32 %v854_v56, %v1018_v22  ;;  %v587_v61 = vadd.f32 %v870_v58, %v1018_v22  ;;  %v514_v62 = vpop.f32.mrb[13].mxu0  ;;  %v578_v0 = vpop.f32.mrb[13].mxu1 }
 0x107   : > { %v515_v2 = vadd.f32 %v1018_v22, %v514_v62  ;;  %v579_v3 = vadd.f32 %v1018_v22, %v578_v0  ;;  %v855_v4 = vpop.f32.mrb[14].mxu0  ;;  %v871_v6 = vpop.f32.mrb[14].mxu1 }
 0x108   : > { %v639_v8 = vadd.f32 %v607_v57, %v523_v60  ;;  %v655_v9 = vadd.f32 %v623_v59, %v587_v61  ;;  %v526_v10 = vadd.f32 %v855_v4, %v1018_v22  ;;  %v590_v11 = vadd.f32 %v871_v6, %v1018_v22  ;;  %v517_v12 = vpop.f32.mrb[15].mxu0  ;;  %v581_v14 = vpop.f32.mrb[15].mxu1 }
 0x109   : > { %v637_v16 = vadd.f32 %v605_v63, %v515_v2  ;;  %v653_v17 = vadd.f32 %v621_v1, %v579_v3  ;;  %v518_v18 = vadd.f32 %v1018_v22, %v517_v12  ;;  %v582_v19 = vadd.f32 %v1018_v22, %v581_v14 }
 0x10a   : > { %672 = vst.msk [vmem:[%s1029_s14 + $0x70] sm:$0xff] %vm657_vm2, %v639_v8  ;;  %688 = vst.msk [vmem:[%s1029_s14 + $0xf0] sm:$0xff] %vm657_vm2, %v655_v9  ;;  %v640_v20 = vadd.f32 %v608_v5, %v526_v10  ;;  %v656_v21 = vadd.f32 %v624_v7, %v590_v11 }
 0x10b   : > { %670 = vst.msk [vmem:[%s1029_s14 + $0x60] sm:$0xff] %vm657_vm2, %v637_v16  ;;  %686 = vst.msk [vmem:[%s1029_s14 + $0xe0] sm:$0xff] %vm657_vm2, %v653_v17  ;;  %v638_v23 = vadd.f32 %v606_v13, %v518_v18  ;;  %v654_v24 = vadd.f32 %v622_v15, %v582_v19 }
 0x10c   : > { %673 = vst.msk [vmem:[%s1029_s14 + $0x78] sm:$0xff] %vm657_vm2, %v640_v20  ;;  %689 = vst.msk [vmem:[%s1029_s14 + $0xf8] sm:$0xff] %vm657_vm2, %v656_v21 }
 0x10d   : > { %671 = vst.msk [vmem:[%s1029_s14 + $0x68] sm:$0xff] %vm657_vm2, %v638_v23  ;;  %687 = vst.msk [vmem:[%s1029_s14 + $0xe8] sm:$0xff] %vm657_vm2, %v654_v24 }
 0x10e PF: > { %s14_s15 = sadd.s32 1, %s919_s15  }
 0x10f   : > { %p11_p4 = scmp.ge.s32.totalorder %s14_s15, 10  }
 0x111   :  { %13 = sbr.rel (!%p11_p4) target bundleno = 1 (0x1), region = 69 }

// kernel: _forward_core.44
= control target key start
LH: loop header
LB: loop body
LE: loop exit
PB: predicated region body
PF: predicated region fallthrough
CT: control target
= control target key end

     0   :  { %s1047_s12 = smov 0   ;;  %s1107_s0 = inlined_call_operand.vmem [shape: f32[2,5,4], index: 0, kind: input, shape index: {}]   ;;  %s1108_s1 = inlined_call_operand.vmem [shape: f32[2,4,1024], index: 1, kind: input, shape index: {}]   ;;  %s1109_s2 = inlined_call_operand.vmem [shape: f32[2,4,1024], index: 2, kind: input, shape index: {}]   ;;  %s1110_s3 = inlined_call_operand.vmem [shape: f32[2,5,1024], index: 3, kind: output, shape index: {}]  }
   0x1 LB: > { %s960_s13 = sadd.s32 4294967295, %s1024_s12   ;;  %p964_p0 = scmp.ge.s32.totalorder %s1024_s12, 1  ;;  %s1024_s12 = sphi %s1047_s12, %s13_s12  }
   0x2   : > { %p156_p1 = scmp.lt.s32.totalorder %s1024_s12, 3 }
   0x4   : > { %p157_p2 = pnand %p964_p0, %p156_p1 }
   0x5   : > { %p189_p3 = scmp.lt.s32.totalorder (!%p157_p2), %s960_s13, 1  ;;  %v1026_v0 = vmov (!%p157_p2), 0.0   ;;  %vm225_vm0 = vcmask (!%p157_p2), 1043456   ;;  %vm221_vm1 = vcmask (!%p157_p2), 31744  }
   0x6   : > { %160 = sbr.rel (%p157_p2) target bundleno = 251 (0xfb), region = 32  ;;  %306 = vmatprep.mubr.f32.mxu0 (!%p157_p2), %v1026_v0  ;;  %377 = vmatprep.mubr.f32.mxu1 (!%p157_p2), %v1026_v0 }
   0xd   : > { %s1112_s13 = smov (!%p189_p3, %s960_s13), 1 }
   0xe   : > { %s998_s14 = sshll.u32 %s1112_s13, 5  ;;  %s965_s21 = sshll.u32 %s1112_s13, 3 }
   0xf   : > { %s197_s17 = scalar_lea.vmem %s1108_s1, %s998_s14  ;;  %s202_s20 = scalar_lea.vmem %s1109_s2, %s998_s14 }
  0x10   : > { %v209_v1 = vld [vmem:[%s197_s17] sm:$0xff]  ;;  %v210_v2 = vld [vmem:[%s197_s17 + $0x8] sm:$0xff]  ;;  %v211_v3 = vld [vmem:[%s197_s17 + $0x10] sm:$0xff]  ;;  %s192_s24 = scalar_lea.vmem %s1107_s0, %s965_s21  ;;  %s1000_s25 = sshll.u32 %s1112_s13, 6 }
  0x11   : > { %v217_v4 = vcombine.high %v209_v1, %v209_v1  ;;  %v218_v5 = vcombine.high %v210_v2, %v210_v2  ;;  %v212_v6 = vld [vmem:[%s197_s17 + $0x18] sm:$0xff]  ;;  %v208_v7 = vld [vmem:[%s192_s24] sm:$0x1f]  ;;  %v219_v8 = vcombine.high %v211_v3, %v211_v3  ;;  %v527_v11 = vld [vmem:[%s202_s20 + $0x8] sm:$0xff]  ;;  %s207_s28 = scalar_lea.vmem %s1110_s3, %s1000_s25 }
  0x12   : > { %v220_v9 = vcombine.high %v212_v6, %v212_v6  ;;  %v526_v10 = vld [vmem:[%s202_s20] sm:$0xff]  ;;  %v536_v13 = vcombine.high %v527_v11, %v527_v11  ;;  %v528_v14 = vld [vmem:[%s202_s20 + $0x10] sm:$0xff]  ;;  %v529_v15 = vld [vmem:[%s202_s20 + $0x18] sm:$0xff]  ;;  %v530_v16 = vrot.slane %v208_v7, 4 }
  0x13   : > { %972 = vmatprep.subr.msk.mxu0 %vm225_vm0, %v217_v4  ;;  %975 = vmatprep.subr.msk.mxu1 %vm225_vm0, %v218_v5  ;;  %v535_v12 = vcombine.high %v526_v10, %v526_v10  ;;  %v537_v17 = vcombine.high %v528_v14, %v528_v14  ;;  %v538_v18 = vcombine.high %v529_v15, %v529_v15 }
  0x14   : > { %973 = vmatpush1.msk.msra.mxu0 %vm225_vm0, %v209_v1  ;;  %976 = vmatpush1.msk.msra.mxu1 %vm225_vm0, %v210_v2 }
  0x15   : > { %974 = vmatmul.mubr.msk.f32.vlgmr.msra.gmra.mrb[0].mxu0 %vm221_vm1, %v208_v7  ;;  %977 = vmatmul.mubr.msk.f32.vlgmr.msra.gmra.mrb[0].mxu1 %vm221_vm1, %v208_v7 }
  0x16   : > { %978 = vmatprep.subr.msk.mxu0 %vm225_vm0, %v219_v8  ;;  %981 = vmatprep.subr.msk.mxu1 %vm225_vm0, %v220_v9 }
  0x17   : > { %979 = vmatpush1.msk.msra.mxu0 %vm225_vm0, %v211_v3  ;;  %982 = vmatpush1.msk.msra.mxu1 %vm225_vm0, %v212_v6 }
  0x18   : > { %448 = vmatprep.mubr.f32.mxu0 %v1026_v0  ;;  %519 = vmatprep.mubr.f32.mxu1 %v1026_v0 }
  0x19   : > { %980 = vmatmul.mubr.msk.f32.vlgmr.msra.gmra.mrb[2].mxu0 %vm221_vm1, %v208_v7  ;;  %983 = vmatmul.mubr.msk.f32.vlgmr.msra.gmra.mrb[2].mxu1 %vm221_vm1, %v208_v7 }
  0x1a   : > { %984 = vmatprep.subr.msk.mxu0 %vm225_vm0, %v535_v12  ;;  %987 = vmatprep.subr.msk.mxu1 %vm225_vm0, %v536_v13 }
  0x1b   : > { %985 = vmatpush1.msk.msra.mxu0 %vm225_vm0, %v526_v10  ;;  %988 = vmatpush1.msk.msra.mxu1 %vm225_vm0, %v527_v11 }
  0x1c   : > { %621 = vmatprep.mubr.f32.mxu0 %v1026_v0  ;;  %692 = vmatprep.mubr.f32.mxu1 %v1026_v0 }
  0x1d   : > { %986 = vmatmul.mubr.msk.f32.vlgmr.msra.gmra.mrb[4].mxu0 %vm221_vm1, %v530_v16  ;;  %989 = vmatmul.mubr.msk.f32.vlgmr.msra.gmra.mrb[4].mxu1 %vm221_vm1, %v530_v16 }
  0x1e   : > { %990 = vmatprep.subr.msk.mxu0 %vm225_vm0, %v537_v17  ;;  %993 = vmatprep.subr.msk.mxu1 %vm225_vm0, %v538_v18 }
  0x1f   : > { %991 = vmatpush1.msk.msra.mxu0 %vm225_vm0, %v528_v14  ;;  %994 = vmatpush1.msk.msra.mxu1 %vm225_vm0, %v529_v15 }
  0x20   : > { %763 = vmatprep.mubr.f32.mxu0 %v1026_v0  ;;  %834 = vmatprep.mubr.f32.mxu1 %v1026_v0 }
  0x21   : > { %992 = vmatmul.mubr.msk.f32.vlgmr.msra.gmra.mrb[6].mxu0 %vm221_vm1, %v530_v16  ;;  %995 = vmatmul.mubr.msk.f32.vlgmr.msra.gmra.mrb[6].mxu1 %vm221_vm1, %v530_v16 }
  0xe8   : > { %v308_v19 = vpop.f32.mrb[0].mxu0  ;;  %v379_v20 = vpop.f32.mrb[0].mxu1 }
  0xe9   : > { %v310_v21 = vpop.f32.mrb[1].mxu0  ;;  %v381_v22 = vpop.f32.mrb[1].mxu1 }
  0xec   : > { %v450_v23 = vpop.f32.mrb[2].mxu0  ;;  %v521_v24 = vpop.f32.mrb[2].mxu1 }
  0xed   : > { %v452_v25 = vpop.f32.mrb[3].mxu0  ;;  %v523_v26 = vpop.f32.mrb[3].mxu1 }
  0xf0   : > { %v623_v27 = vpop.f32.mrb[4].mxu0  ;;  %v694_v28 = vpop.f32.mrb[4].mxu1 }
  0xf1   : > { %v849_v29 = vrot.slane %v623_v27, 4  ;;  %v851_v30 = vrot.slane %v694_v28, 4  ;;  %v625_v31 = vpop.f32.mrb[5].mxu0  ;;  %v696_v32 = vpop.f32.mrb[5].mxu1 }
  0xf2   : > { %v850_v33 = vrot.slane %v625_v31, 4  ;;  %v852_v34 = vrot.slane %v696_v32, 4 }
  0xf3   : > { %v865_v35 = vsel %vm225_vm0, %v308_v19, %v849_v29  ;;  %v867_v36 = vsel %vm225_vm0, %v379_v20, %v851_v30 }
  0xf4   : > { %873 = vst [vmem:[%s207_s28] sm:$0x1f] %v865_v35  ;;  %875 = vst [vmem:[%s207_s28 + $0x10] sm:$0x1f] %v867_v36  ;;  %v866_v37 = vsel %vm225_vm0, %v310_v21, %v850_v33  ;;  %v868_v38 = vsel %vm225_vm0, %v381_v22, %v852_v34  ;;  %v765_v39 = vpop.f32.mrb[6].mxu0  ;;  %v836_v40 = vpop.f32.mrb[6].mxu1 }
  0xf5   : > { %874 = vst [vmem:[%s207_s28 + $0x8] sm:$0x1f] %v866_v37  ;;  %876 = vst [vmem:[%s207_s28 + $0x18] sm:$0x1f] %v868_v38  ;;  %v853_v41 = vrot.slane %v765_v39, 4  ;;  %v855_v42 = vrot.slane %v836_v40, 4 }
  0xf6   : > { %v767_v43 = vpop.f32.mrb[7].mxu0  ;;  %v838_v44 = vpop.f32.mrb[7].mxu1 }
  0xf7   : > { %v854_v45 = vrot.slane %v767_v43, 4  ;;  %v856_v46 = vrot.slane %v838_v44, 4  ;;  %v869_v47 = vsel %vm225_vm0, %v450_v23, %v853_v41  ;;  %v871_v48 = vsel %vm225_vm0, %v521_v24, %v855_v42 }
  0xf8   : > { %877 = vst [vmem:[%s207_s28 + $0x20] sm:$0x1f] %v869_v47  ;;  %879 = vst [vmem:[%s207_s28 + $0x30] sm:$0x1f] %v871_v48 }
  0xf9   : > { %v870_v49 = vsel %vm225_vm0, %v452_v25, %v854_v45  ;;  %v872_v50 = vsel %vm225_vm0, %v523_v26, %v856_v46 }
  0xfa   : > { %878 = vst [vmem:[%s207_s28 + $0x28] sm:$0x1f] %v870_v49  ;;  %880 = vst [vmem:[%s207_s28 + $0x38] sm:$0x1f] %v872_v50 }
  0xfb PF: > { %s13_s12 = sadd.s32 1, %s1024_s12  }
  0xfc   : > { %p10_p4 = scmp.ge.s32.totalorder %s13_s12, 4  }
  0xfe   :  { %12 = sbr.rel (!%p10_p4) target bundleno = 1 (0x1), region = 68 }

</bundles_post_ra>
